<compile_context>
chip_gen: v5e
topology: v5e:2x2
jax: 0.10.0
libtpu: 0.0.40
codegen_flags: <defaults>
</compile_context>

<pallas_src>
import functools

import jax
import jax.numpy as jnp
from jax.experimental import pallas as pl
from jax.experimental.pallas import tpu as pltpu


# ----------------------------------------------------------------------------
# Generic row-tiled matmul kernel: out[N, Co] = x[N, K] @ w[K, Co]
# Used for the 1x1 convs (qkv1, proj) and the im2col'd 3x3 conv (qkv2).
# ----------------------------------------------------------------------------
def _matmul_kernel(x_ref, w_ref, o_ref):
    o_ref[...] = jnp.dot(
        x_ref[...], w_ref[...], preferred_element_type=jnp.float32
    ).astype(o_ref.dtype)


def pallas_matmul(x2d, w, *, tm=256):
    """x2d: (N, K), w: (K, Co) -> (N, Co). Row-tiled; weight stays resident."""
    N, K = x2d.shape
    Kw, Co = w.shape
    assert K == Kw, (K, Kw)
    # Sublane-aligned row tile; no host-side padding — Pallas masks the ragged
    # last block (grid = cdiv).
    tm = min(tm, ((N + 7) // 8) * 8)
    grid_m = pl.cdiv(N, tm)
    return pl.pallas_call(
        _matmul_kernel,
        out_shape=jax.ShapeDtypeStruct((N, Co), x2d.dtype),
        grid_spec=pltpu.PrefetchScalarGridSpec(
            num_scalar_prefetch=0,
            grid=(grid_m,),
            in_specs=[
                pl.BlockSpec((tm, K), lambda i: (i, 0)),
                pl.BlockSpec((K, Co), lambda i: (0, 0)),
            ],
            out_specs=pl.BlockSpec((tm, Co), lambda i: (i, 0)),
        ),
        compiler_params=pltpu.CompilerParams(
            dimension_semantics=("parallel",),
            vmem_limit_bytes=64 << 20,
        ),
    )(x2d, w)


# ----------------------------------------------------------------------------
# Channel-attention kernel: one (batch, head) tile per grid step.
#   q, k, v: (head_dim, HW).  q/k L2-normalized along HW,
#   attn = softmax((q_n @ k_n^T) * scale[head]),  out = attn @ v.
# ----------------------------------------------------------------------------
def _attention_kernel(q_ref, k_ref, v_ref, scale_ref, o_ref):
    q = q_ref[0, 0].astype(jnp.float32)   # (hd, hw)
    k = k_ref[0, 0].astype(jnp.float32)
    v = v_ref[0, 0].astype(jnp.float32)

    # F.normalize(x, dim=-1): x / max(||x||_2, 1e-12)
    qn = q / jnp.maximum(jnp.sqrt(jnp.sum(q * q, axis=-1, keepdims=True)), 1e-12)
    kn = k / jnp.maximum(jnp.sqrt(jnp.sum(k * k, axis=-1, keepdims=True)), 1e-12)

    # (hd, hw) x (hd, hw)^T -> (hd, hd): contract the last dims on the MXU.
    logits = jax.lax.dot_general(
        qn, kn, (((1,), (1,)), ((), ())), preferred_element_type=jnp.float32
    )
    logits = logits * scale_ref[0]        # per-head scale, pre-broadcast to (hd, hd)

    m = jnp.max(logits, axis=-1, keepdims=True)
    p = jnp.exp(logits - m)
    p = p / jnp.sum(p, axis=-1, keepdims=True)

    out = jnp.dot(p, v, preferred_element_type=jnp.float32)   # (hd, hw)
    o_ref[0, 0] = out.astype(o_ref.dtype)


def channel_attention(q, k, v, scale):
    """q, k, v: (B, heads, head_dim, HW); scale: (heads, 1, 1)."""
    b, nh, hd, hw = q.shape
    # Tiny per-head scale, broadcast to the logits shape so it rides in VMEM
    # with a legal (hd, hd) block (avoids sub-(8,128) scalar blocks).
    scale_b = jnp.broadcast_to(scale.reshape(nh, 1, 1), (nh, hd, hd)).astype(q.dtype)

    def qkv_spec():
        return pl.BlockSpec((1, 1, hd, hw), lambda i, j: (i, j, 0, 0))

    return pl.pallas_call(
        _attention_kernel,
        out_shape=jax.ShapeDtypeStruct((b, nh, hd, hw), q.dtype),
        grid_spec=pltpu.PrefetchScalarGridSpec(
            num_scalar_prefetch=0,
            grid=(b, nh),
            in_specs=[
                qkv_spec(), qkv_spec(), qkv_spec(),
                pl.BlockSpec((1, hd, hd), lambda i, j: (j, 0, 0)),
            ],
            out_specs=qkv_spec(),
        ),
        compiler_params=pltpu.CompilerParams(
            dimension_semantics=("parallel", "parallel"),
            vmem_limit_bytes=64 << 20,
        ),
    )(q, k, v, scale_b)


# ----------------------------------------------------------------------------
# im2col for the 3x3 / pad=1 conv.
# TODO(synk): the overlapping-window halo gather has no clean BlockSpec
# expression, so it is done with XLA slicing here; the dominant FLOPs (the
# (N, 9*Cin) @ (9*Cin, Cout) matmul) run in the Pallas kernel.
# ----------------------------------------------------------------------------
def _im2col_3x3(x_nhwc):
    b, h, w, c = x_nhwc.shape
    xp = jnp.pad(x_nhwc, ((0, 0), (1, 1), (1, 1), (0, 0)))
    cols = [xp[:, dy:dy + h, dx:dx + w, :] for dy in range(3) for dx in range(3)]
    return jnp.concatenate(cols, axis=-1).reshape(b * h * w, 9 * c)


# ----------------------------------------------------------------------------
# Full AttentionBase forward (matches the PyTorch module, qkv_bias=False).
# ----------------------------------------------------------------------------
def attention_base_forward(x, qkv1_w, qkv2_w, proj_w, scale, *, num_heads):
    b, c, h, w = x.shape
    hw = h * w
    hd = c // num_heads

    # NCHW -> NHWC -> (N, C) rows with channels on lanes.
    x2d = jnp.transpose(x, (0, 2, 3, 1)).reshape(b * hw, c)

    # qkv1: 1x1 conv == matmul with (Cin, Cout) weight.
    w1 = qkv1_w.reshape(3 * c, c).T                        # (c, 3c)
    y1 = pallas_matmul(x2d, w1)                            # (N, 3c)

    # qkv2: 3x3 conv, padding=1 (im2col + Pallas matmul).
    cols = _im2col_3x3(y1.reshape(b, h, w, 3 * c))         # (N, 9*3c)
    w2 = jnp.transpose(qkv2_w, (2, 3, 1, 0)).reshape(9 * 3 * c, 3 * c)
    qkv = pallas_matmul(cols, w2)                          # (N, 3c)

    # chunk(3, dim=channel), then 'b (head c) h w -> b head c (h w)'.
    qkv = qkv.reshape(b, hw, 3, num_heads, hd)
    q = jnp.transpose(qkv[:, :, 0], (0, 2, 3, 1))          # (b, heads, hd, hw)
    k = jnp.transpose(qkv[:, :, 1], (0, 2, 3, 1))
    v = jnp.transpose(qkv[:, :, 2], (0, 2, 3, 1))

    out = channel_attention(q, k, v, scale)                # (b, heads, hd, hw)

    # 'b head c (h w) -> b (head c) h w', then proj (1x1 conv).
    out2d = jnp.transpose(out, (0, 3, 1, 2)).reshape(b * hw, c)
    wp = proj_w.reshape(c, c).T                            # (c, c)
    y = pallas_matmul(out2d, wp)                           # (N, c)

    return jnp.transpose(y.reshape(b, h, w, c), (0, 3, 1, 2))   # NCHW


# ----------------------------------------------------------------------------
# Plain-JAX reference (mirrors the PyTorch forward exactly).
# ----------------------------------------------------------------------------
def _ref_forward(x, qkv1_w, qkv2_w, proj_w, scale, num_heads):
    b, c, h, w = x.shape
    hp = jax.lax.Precision.HIGHEST
    dn = ("NCHW", "OIHW", "NCHW")
    y1 = jax.lax.conv_general_dilated(x, qkv1_w, (1, 1), "VALID",
                                      dimension_numbers=dn, precision=hp)
    y2 = jax.lax.conv_general_dilated(y1, qkv2_w, (1, 1), ((1, 1), (1, 1)),
                                      dimension_numbers=dn, precision=hp)
    q, k, v = jnp.split(y2, 3, axis=1)
    rs = lambda t: t.reshape(b, num_heads, c // num_heads, h * w)
    q, k, v = rs(q), rs(k), rs(v)
    l2n = lambda t: t / jnp.maximum(
        jnp.sqrt(jnp.sum(t * t, axis=-1, keepdims=True)), 1e-12)
    q, k = l2n(q), l2n(k)
    attn = jnp.einsum("bhcn,bhdn->bhcd", q, k, precision=hp) * scale[None]
    attn = jax.nn.softmax(attn, axis=-1)
    out = jnp.einsum("bhcd,bhdn->bhcn", attn, v, precision=hp)
    out = out.reshape(b, c, h, w)
    return jax.lax.conv_general_dilated(out, proj_w, (1, 1), "VALID",
                                        dimension_numbers=dn, precision=hp)


if __name__ == "__main__":
    dim, num_heads = 64, 8
    B, H, W = 2, 16, 16

    key = jax.random.PRNGKey(0)
    kx, k1, k2, k3 = jax.random.split(key, 4)
    x = jax.random.normal(kx, (B, dim, H, W), jnp.float32)
    qkv1_w = jax.random.normal(k1, (3 * dim, dim, 1, 1), jnp.float32) * (dim ** -0.5)
    qkv2_w = jax.random.normal(k2, (3 * dim, 3 * dim, 3, 3), jnp.float32) * ((9 * 3 * dim) ** -0.5)
    proj_w = jax.random.normal(k3, (dim, dim, 1, 1), jnp.float32) * (dim ** -0.5)
    # nn.Parameter(torch.ones(num_heads, 1, 1)) init, perturbed so it matters.
    scale = 1.0 + 0.1 * jnp.arange(num_heads, dtype=jnp.float32).reshape(num_heads, 1, 1)

    fwd = jax.jit(functools.partial(attention_base_forward, num_heads=num_heads))
    y = jax.block_until_ready(fwd(x, qkv1_w, qkv2_w, proj_w, scale))

    ref = _ref_forward(x, qkv1_w, qkv2_w, proj_w, scale, num_heads)
    assert y.shape == ref.shape, (y.shape, ref.shape)
    err = float(jnp.max(jnp.abs(y - ref)))
    assert jnp.allclose(y, ref, atol=2e-2, rtol=2e-2), f"max abs err = {err}"
    print("KERNEL_OK")
</pallas_src>

<mosaic_0001>
module attributes {stable_mosaic.version = 11 : i64} {
  func.func @_matmul_kernel(%arg0: i32, %arg1: memref<256x64xf32, #tpu.memory_space<vmem>>, %arg2: memref<64x192xf32, #tpu.memory_space<vmem>>, %arg3: memref<256x192xf32, #tpu.memory_space<vmem>>) attributes {dimension_semantics = [#tpu.dimension_semantics<parallel>], iteration_bounds = array<i64: 2>, scalar_prefetch = 0 : i64, scratch_operands = 0 : i64, tpu.core_type = #tpu.core_type<tc>, window_params = [{transform_indices = @transform_0, window_bounds = array<i64: 256, 64>}, {pipeline_mode = #tpu.pipeline_mode<synchronous>, transform_indices = @transform_1, window_bounds = array<i64: 64, 192>}, {transform_indices = @transform_2, window_bounds = array<i64: 256, 192>}]} {
    %c0 = arith.constant 0 : index
    %c0_0 = arith.constant 0 : index
    %0 = vector.load %arg1[%c0, %c0_0] : memref<256x64xf32, #tpu.memory_space<vmem>>, vector<256x64xf32>
    %c0_1 = arith.constant 0 : index
    %c0_2 = arith.constant 0 : index
    %1 = vector.load %arg2[%c0_1, %c0_2] : memref<64x192xf32, #tpu.memory_space<vmem>>, vector<64x192xf32>
    %cst = arith.constant dense<0.000000e+00> : vector<256x192xf32>
    %2 = tpu.matmul %0, %1, %cst {dimension_numbers = #tpu.dot_dimension_numbers<[1], [0], [0], [1], [0, 0, 1, 1], [], []>} : vector<256x64xf32>, vector<64x192xf32>, vector<256x192xf32> -> vector<256x192xf32>
    %c0_3 = arith.constant 0 : index
    %c0_4 = arith.constant 0 : index
    %3 = vector.load %arg3[%c0_3, %c0_4] : memref<256x192xf32, #tpu.memory_space<vmem>>, vector<256x192xf32>
    tpu.vector_store %arg3[%c0_3, %c0_4], %2 {strides = array<i32>} : memref<256x192xf32, #tpu.memory_space<vmem>>, vector<256x192xf32>,
    return
  }
  func.func @transform_0(%arg0: i32) -> (i32, i32) {
    %c0_i32 = arith.constant 0 : i32
    %c0_i32_0 = arith.constant 0 : i32
    return %arg0, %c0_i32 : i32, i32
  }
  func.func @transform_1(%arg0: i32) -> (i32, i32) {
    %c0_i32 = arith.constant 0 : i32
    %c0_i32_0 = arith.constant 0 : i32
    %c0_i32_1 = arith.constant 0 : i32
    return %c0_i32, %c0_i32_0 : i32, i32
  }
  func.func @transform_2(%arg0: i32) -> (i32, i32) {
    %c0_i32 = arith.constant 0 : i32
    %c0_i32_0 = arith.constant 0 : i32
    return %arg0, %c0_i32 : i32, i32
  }
}

module attributes {stable_mosaic.version = 11 : i64} {
  func.func @_matmul_kernel(%arg0: i32, %arg1: memref<256x1728xf32, #tpu.memory_space<vmem>>, %arg2: memref<1728x192xf32, #tpu.memory_space<vmem>>, %arg3: memref<256x192xf32, #tpu.memory_space<vmem>>) attributes {dimension_semantics = [#tpu.dimension_semantics<parallel>], iteration_bounds = array<i64: 2>, scalar_prefetch = 0 : i64, scratch_operands = 0 : i64, tpu.core_type = #tpu.core_type<tc>, window_params = [{transform_indices = @transform_0, window_bounds = array<i64: 256, 1728>}, {pipeline_mode = #tpu.pipeline_mode<synchronous>, transform_indices = @transform_1, window_bounds = array<i64: 1728, 192>}, {transform_indices = @transform_2, window_bounds = array<i64: 256, 192>}]} {
    %c0 = arith.constant 0 : index
    %c0_0 = arith.constant 0 : index
    %0 = vector.load %arg1[%c0, %c0_0] : memref<256x1728xf32, #tpu.memory_space<vmem>>, vector<256x1728xf32>
    %c0_1 = arith.constant 0 : index
    %c0_2 = arith.constant 0 : index
    %1 = vector.load %arg2[%c0_1, %c0_2] : memref<1728x192xf32, #tpu.memory_space<vmem>>, vector<1728x192xf32>
    %cst = arith.constant dense<0.000000e+00> : vector<256x192xf32>
    %2 = tpu.matmul %0, %1, %cst {dimension_numbers = #tpu.dot_dimension_numbers<[1], [0], [0], [1], [0, 0, 1, 1], [], []>} : vector<256x1728xf32>, vector<1728x192xf32>, vector<256x192xf32> -> vector<256x192xf32>
    %c0_3 = arith.constant 0 : index
    %c0_4 = arith.constant 0 : index
    %3 = vector.load %arg3[%c0_3, %c0_4] : memref<256x192xf32, #tpu.memory_space<vmem>>, vector<256x192xf32>
    tpu.vector_store %arg3[%c0_3, %c0_4], %2 {strides = array<i32>} : memref<256x192xf32, #tpu.memory_space<vmem>>, vector<256x192xf32>,
    return
  }
  func.func @transform_0(%arg0: i32) -> (i32, i32) {
    %c0_i32 = arith.constant 0 : i32
    %c0_i32_0 = arith.constant 0 : i32
    return %arg0, %c0_i32 : i32, i32
  }
  func.func @transform_1(%arg0: i32) -> (i32, i32) {
    %c0_i32 = arith.constant 0 : i32
    %c0_i32_0 = arith.constant 0 : i32
    %c0_i32_1 = arith.constant 0 : i32
    return %c0_i32, %c0_i32_0 : i32, i32
  }
  func.func @transform_2(%arg0: i32) -> (i32, i32) {
    %c0_i32 = arith.constant 0 : i32
    %c0_i32_0 = arith.constant 0 : i32
    return %arg0, %c0_i32 : i32, i32
  }
}

module attributes {stable_mosaic.version = 11 : i64} {
  func.func @_attention_kernel(%arg0: i32, %arg1: i32, %arg2: memref<1x1x8x256xf32, #tpu.memory_space<vmem>>, %arg3: memref<1x1x8x256xf32, #tpu.memory_space<vmem>>, %arg4: memref<1x1x8x256xf32, #tpu.memory_space<vmem>>, %arg5: memref<1x8x8xf32, #tpu.memory_space<vmem>>, %arg6: memref<1x1x8x256xf32, #tpu.memory_space<vmem>>) attributes {dimension_semantics = [#tpu.dimension_semantics<parallel>, #tpu.dimension_semantics<parallel>], iteration_bounds = array<i64: 2, 8>, scalar_prefetch = 0 : i64, scratch_operands = 0 : i64, tpu.core_type = #tpu.core_type<tc>, window_params = [{transform_indices = @transform_0, window_bounds = array<i64: 1, 1, 8, 256>}, {transform_indices = @transform_1, window_bounds = array<i64: 1, 1, 8, 256>}, {transform_indices = @transform_2, window_bounds = array<i64: 1, 1, 8, 256>}, {transform_indices = @transform_3, window_bounds = array<i64: 1, 8, 8>}, {transform_indices = @transform_4, window_bounds = array<i64: 1, 1, 8, 256>}]} {
    %c0 = arith.constant 0 : index
    %c0_0 = arith.constant 0 : index
    %c0_1 = arith.constant 0 : index
    %c0_2 = arith.constant 0 : index
    %0 = vector.load %arg2[%c0, %c0_0, %c0_1, %c0_2] : memref<1x1x8x256xf32, #tpu.memory_space<vmem>>, vector<1x1x8x256xf32>
    %1 = vector.shape_cast %0 : vector<1x1x8x256xf32> to vector<8x256xf32>
    %c0_3 = arith.constant 0 : index
    %c0_4 = arith.constant 0 : index
    %c0_5 = arith.constant 0 : index
    %c0_6 = arith.constant 0 : index
    %2 = vector.load %arg3[%c0_3, %c0_4, %c0_5, %c0_6] : memref<1x1x8x256xf32, #tpu.memory_space<vmem>>, vector<1x1x8x256xf32>
    %3 = vector.shape_cast %2 : vector<1x1x8x256xf32> to vector<8x256xf32>
    %c0_7 = arith.constant 0 : index
    %c0_8 = arith.constant 0 : index
    %c0_9 = arith.constant 0 : index
    %c0_10 = arith.constant 0 : index
    %4 = vector.load %arg4[%c0_7, %c0_8, %c0_9, %c0_10] : memref<1x1x8x256xf32, #tpu.memory_space<vmem>>, vector<1x1x8x256xf32>
    %5 = vector.shape_cast %4 : vector<1x1x8x256xf32> to vector<8x256xf32>
    %6 = arith.mulf %1, %1 : vector<8x256xf32>
    %cst = arith.constant dense<0.000000e+00> : vector<8xf32>
    %7 = vector.multi_reduction <add>, %6, %cst [1] : vector<8x256xf32> to vector<8xf32>
    %8 = vector.shape_cast %7 : vector<8xf32> to vector<8x1xf32>
    %9 = math.sqrt %8 : vector<8x1xf32>
    %cst_11 = arith.constant 9.99999996E-13 : f32
    %10 = vector.broadcast %cst_11 : f32 to vector<8x1xf32>
    %11 = arith.maximumf %9, %10 : vector<8x1xf32>
    %12 = vector.broadcast %11 : vector<8x1xf32> to vector<8x256xf32>
    %13 = arith.divf %1, %12 : vector<8x256xf32>
    %14 = arith.mulf %3, %3 : vector<8x256xf32>
    %cst_12 = arith.constant dense<0.000000e+00> : vector<8xf32>
    %15 = vector.multi_reduction <add>, %14, %cst_12 [1] : vector<8x256xf32> to vector<8xf32>
    %16 = vector.shape_cast %15 : vector<8xf32> to vector<8x1xf32>
    %17 = math.sqrt %16 : vector<8x1xf32>
    %cst_13 = arith.constant 9.99999996E-13 : f32
    %18 = vector.broadcast %cst_13 : f32 to vector<8x1xf32>
    %19 = arith.maximumf %17, %18 : vector<8x1xf32>
    %20 = vector.broadcast %19 : vector<8x1xf32> to vector<8x256xf32>
    %21 = arith.divf %3, %20 : vector<8x256xf32>
    %cst_14 = arith.constant dense<0.000000e+00> : vector<8x8xf32>
    %22 = tpu.matmul %13, %21, %cst_14 {dimension_numbers = #tpu.dot_dimension_numbers<[1], [1], [0], [0], [0, 0, 1, 0], [], []>} : vector<8x256xf32>, vector<8x256xf32>, vector<8x8xf32> -> vector<8x8xf32>
    %c0_15 = arith.constant 0 : index
    %c0_16 = arith.constant 0 : index
    %c0_17 = arith.constant 0 : index
    %23 = vector.load %arg5[%c0_15, %c0_16, %c0_17] : memref<1x8x8xf32, #tpu.memory_space<vmem>>, vector<1x8x8xf32>
    %24 = vector.shape_cast %23 : vector<1x8x8xf32> to vector<8x8xf32>
    %25 = arith.mulf %22, %24 : vector<8x8xf32>
    %cst_18 = arith.constant dense<0xFF800000> : vector<8xf32>
    %26 = vector.multi_reduction <maximumf>, %25, %cst_18 [1] : vector<8x8xf32> to vector<8xf32>
    %27 = vector.shape_cast %26 : vector<8xf32> to vector<8x1xf32>
    %28 = vector.broadcast %27 : vector<8x1xf32> to vector<8x8xf32>
    %29 = arith.subf %25, %28 : vector<8x8xf32>
    %30 = math.exp %29 : vector<8x8xf32>
    %cst_19 = arith.constant dense<0.000000e+00> : vector<8xf32>
    %31 = vector.multi_reduction <add>, %30, %cst_19 [1] : vector<8x8xf32> to vector<8xf32>
    %32 = vector.shape_cast %31 : vector<8xf32> to vector<8x1xf32>
    %33 = vector.broadcast %32 : vector<8x1xf32> to vector<8x8xf32>
    %34 = arith.divf %30, %33 : vector<8x8xf32>
    %cst_20 = arith.constant dense<0.000000e+00> : vector<8x256xf32>
    %35 = tpu.matmul %34, %5, %cst_20 {dimension_numbers = #tpu.dot_dimension_numbers<[1], [0], [0], [1], [0, 0, 1, 1], [], []>} : vector<8x8xf32>, vector<8x256xf32>, vector<8x256xf32> -> vector<8x256xf32>
    %c0_21 = arith.constant 0 : index
    %c0_22 = arith.constant 0 : index
    %c0_23 = arith.constant 0 : index
    %c0_24 = arith.constant 0 : index
    %36 = vector.load %arg6[%c0_21, %c0_22, %c0_23, %c0_24] : memref<1x1x8x256xf32, #tpu.memory_space<vmem>>, vector<1x1x8x256xf32>
    %37 = vector.shape_cast %36 : vector<1x1x8x256xf32> to vector<8x256xf32>
    %38 = vector.shape_cast %35 : vector<8x256xf32> to vector<1x1x8x256xf32>
    tpu.vector_store %arg6[%c0_21, %c0_22, %c0_23, %c0_24], %38 {strides = array<i32>} : memref<1x1x8x256xf32, #tpu.memory_space<vmem>>, vector<1x1x8x256xf32>,
    return
  }
  func.func @transform_0(%arg0: i32, %arg1: i32) -> (i32, i32, i32, i32) {
    %c0_i32 = arith.constant 0 : i32
    %c0_i32_0 = arith.constant 0 : i32
    %c0_i32_1 = arith.constant 0 : i32
    return %arg0, %arg1, %c0_i32, %c0_i32_0 : i32, i32, i32, i32
  }
  func.func @transform_1(%arg0: i32, %arg1: i32) -> (i32, i32, i32, i32) {
    %c0_i32 = arith.constant 0 : i32
    %c0_i32_0 = arith.constant 0 : i32
    %c0_i32_1 = arith.constant 0 : i32
    return %arg0, %arg1, %c0_i32, %c0_i32_0 : i32, i32, i32, i32
  }
  func.func @transform_2(%arg0: i32, %arg1: i32) -> (i32, i32, i32, i32) {
    %c0_i32 = arith.constant 0 : i32
    %c0_i32_0 = arith.constant 0 : i32
    %c0_i32_1 = arith.constant 0 : i32
    return %arg0, %arg1, %c0_i32, %c0_i32_0 : i32, i32, i32, i32
  }
  func.func @transform_3(%arg0: i32, %arg1: i32) -> (i32, i32, i32) {
    %c0_i32 = arith.constant 0 : i32
    %c0_i32_0 = arith.constant 0 : i32
    %c0_i32_1 = arith.constant 0 : i32
    return %arg1, %c0_i32, %c0_i32_0 : i32, i32, i32
  }
  func.func @transform_4(%arg0: i32, %arg1: i32) -> (i32, i32, i32, i32) {
    %c0_i32 = arith.constant 0 : i32
    %c0_i32_0 = arith.constant 0 : i32
    %c0_i32_1 = arith.constant 0 : i32
    return %arg0, %arg1, %c0_i32, %c0_i32_0 : i32, i32, i32, i32
  }
}

module attributes {stable_mosaic.version = 11 : i64} {
  func.func @_matmul_kernel(%arg0: i32, %arg1: memref<256x64xf32, #tpu.memory_space<vmem>>, %arg2: memref<64x64xf32, #tpu.memory_space<vmem>>, %arg3: memref<256x64xf32, #tpu.memory_space<vmem>>) attributes {dimension_semantics = [#tpu.dimension_semantics<parallel>], iteration_bounds = array<i64: 2>, scalar_prefetch = 0 : i64, scratch_operands = 0 : i64, tpu.core_type = #tpu.core_type<tc>, window_params = [{transform_indices = @transform_0, window_bounds = array<i64: 256, 64>}, {pipeline_mode = #tpu.pipeline_mode<synchronous>, transform_indices = @transform_1, window_bounds = array<i64: 64, 64>}, {transform_indices = @transform_2, window_bounds = array<i64: 256, 64>}]} {
    %c0 = arith.constant 0 : index
    %c0_0 = arith.constant 0 : index
    %0 = vector.load %arg1[%c0, %c0_0] : memref<256x64xf32, #tpu.memory_space<vmem>>, vector<256x64xf32>
    %c0_1 = arith.constant 0 : index
    %c0_2 = arith.constant 0 : index
    %1 = vector.load %arg2[%c0_1, %c0_2] : memref<64x64xf32, #tpu.memory_space<vmem>>, vector<64x64xf32>
    %cst = arith.constant dense<0.000000e+00> : vector<256x64xf32>
    %2 = tpu.matmul %0, %1, %cst {dimension_numbers = #tpu.dot_dimension_numbers<[1], [0], [0], [1], [0, 0, 1, 1], [], []>} : vector<256x64xf32>, vector<64x64xf32>, vector<256x64xf32> -> vector<256x64xf32>
    %c0_3 = arith.constant 0 : index
    %c0_4 = arith.constant 0 : index
    %3 = vector.load %arg3[%c0_3, %c0_4] : memref<256x64xf32, #tpu.memory_space<vmem>>, vector<256x64xf32>
    tpu.vector_store %arg3[%c0_3, %c0_4], %2 {strides = array<i32>} : memref<256x64xf32, #tpu.memory_space<vmem>>, vector<256x64xf32>,
    return
  }
  func.func @transform_0(%arg0: i32) -> (i32, i32) {
    %c0_i32 = arith.constant 0 : i32
    %c0_i32_0 = arith.constant 0 : i32
    return %arg0, %c0_i32 : i32, i32
  }
  func.func @transform_1(%arg0: i32) -> (i32, i32) {
    %c0_i32 = arith.constant 0 : i32
    %c0_i32_0 = arith.constant 0 : i32
    %c0_i32_1 = arith.constant 0 : i32
    return %c0_i32, %c0_i32_0 : i32, i32
  }
  func.func @transform_2(%arg0: i32) -> (i32, i32) {
    %c0_i32 = arith.constant 0 : i32
    %c0_i32_0 = arith.constant 0 : i32
    return %arg0, %c0_i32 : i32, i32
  }
}

</mosaic_0001>

<bundles_post_ra>
// kernel: attention_base_forward.4
= control target key start
LH: loop header
LB: loop body
LE: loop exit
PB: predicated region body
PF: predicated region fallthrough
CT: control target
= control target key end

     0   :  { %7 = vsyncpa [#allocation3], 0  ;;  %s1229_s0 = inlined_call_operand.hbm [shape: f32[512,64], index: 0, kind: input, shape index: {}]   ;;  %s1230_s1 = inlined_call_operand.vmem [shape: f32[64,192], index: 1, kind: input, shape index: {}]   ;;  %s1231_s2 = inlined_call_operand.vmem [shape: f32[512,192], index: 2, kind: output, shape index: {}]  }
   0x1   :  { %9 = vsyncpa [#allocation3 + $0x1], 0  ;;  %s894_s9 = smov 0   ;;  %s896_s10 = smov 0  }
   0x2   :  { %s898_s11 = smov 0   ;;  %s900_s12 = smov 0  }
   0x3 LB: > { %s674_s13 = sadd.s32 4294967295, %s875_s12   ;;  %s914_s14 = sadd.s32 1, %s875_s12   ;;  %s875_s12 = sphi %s900_s12, %s1238_s12   ;;  %s871_s11 = sphi %s898_s11, %s1237_s11   ;;  %s867_s10 = sphi %s896_s10, %s1236_s10   ;;  %s863_s9 = sphi %s894_s9, %s1235_s9  }
   0x4   : > { %s19_s15 = ssub.s32 %s875_s12, %s914_s14  ;;  %s22_s16 = sadd.s32 1, %s871_s11 }
   0x5   : > { %p20_p0 = scmp.eq.s32.totalorder %s19_s15, 0  ;;  %p29_p1 = scmp.ne.s32.totalorder %s871_s11, %s867_s10 }
   0x6   : > { %p30_p2 = scmp.eq.s32.totalorder %s875_s12, 0  ;;  %p35_p3 = scmp.ne.s32.totalorder %s867_s10, %s863_s9 }
   0x7   : > { %s924_s17 = scalar_select %p20_p0, %s871_s11, %s22_s16  }
   0x8   : > { %p926_p4 = por %p30_p2, %p29_p1  ;;  %p36_p5 = scmp.eq.s32.totalorder %s674_s13, 0 }
   0x9   : > { %p776_p6 = scmp.lt.s32.totalorder %s875_s12, 2  ;;  %s109_s20 = sand.u32 1, %s871_s11  }
   0xa   : > { %p933_p7 = por %p36_p5, %p35_p3  ;;  %s678_s21 = sshll.u32 %s109_s20, 8 }
   0xb   : > { %s752_s22 = sshll.u32 %s875_s12, 8  ;;  %s113_s26 = scalar_lea.vmem [#allocation2], %s678_s21 }
   0xc   : > { %s118_s25 = scalar_lea.hbm %s1229_s0, %s752_s22  ;;  %s121_s27 = sshll.u32 %s113_s26, 4  ;;  %s122_s27 = int_to_ptr.vmem [resolvable:$true] %s121_s27 }
   0xd   : > { %s119_s28 = sshll.u32 %s118_s25, 4  ;;  %p944_p8 = pnand %p776_p6, %p926_p4  ;;  %s120_s28 = int_to_ptr.hbm [resolvable:$true] %s119_s28 }
   0xe   : > { %p681_p9 = scmp.ge.s32.totalorder %s875_s12, 1  ;;  %s110_s30 = scalar_lea.sflag [#allocation3], %s109_s20 }
   0xf   : > { %s811_s3 = sshra.s32 %s120_s28, 4  ;;  %p815_p11 = pneg %p944_p8  ;;  %s812_s3 = int_to_ptr.hbm [resolvable:$true] %s811_s3 }
  0x10   : > { %s813_s4 = scalar_lea.hbm %s812_s3, 256  ;;  %s818_s7 = scalar_lea.hbm %s1229_s0, 512 }
  0x11   : > { %p814_p10 = scmp.ne.s32.totalorder %s812_s3, %s813_s4  ;;  %p819_p0 = scmp.lt.s32.totalorder %s812_s3, %s1229_s0 }
  0x12   : > { %p820_p1 = scmp.lt.s32.totalorder %s818_s7, %s813_s4 }
  0x13   : > { %p816_p12 = pnand %p815_p11, %p814_p10 }
  0x14   : > { %p821_p2 = por %p820_p1, %p819_p0 }
  0x15   : > { %p817_p13 = pneg %p816_p12 }
  0x17   : > { %p822_p3 = pnand %p821_p2, %p817_p13 }
  0x19   : > { %825 = shalt.err (!%p822_p3)
}
  0x1a   : > { %s877_s15 = smov 128   ;;  %s878_s16 = smov 8  }
  0x1b   : > { %775 = dma.hbm_to_vmem [thread:$0]  (!%p944_p8), %s120_s28, 4096, %s122_s27, %s110_s30, %s877_s15, %s877_s15, %s878_s16  }
  0x1c   : > { %p129_p4 = scmp.lt.s32.totalorder %s875_s12, 3 }
  0x1e   : > { %p130_p5 = pnand %p681_p9, %p129_p4 }
  0x1f   : > { %s135_s18 = sand.u32 (!%p130_p5), 1, %s867_s10  }
  0x20   : > { %133 = sbr.rel (%p130_p5) target bundleno = 308 (0x134), region = 28  ;;  %s682_s20 = sshll.u32 (!%p130_p5), %s135_s18, 8 }
  0x21   : > { %s136_s21 = scalar_lea.sflag (!%p130_p5), [#allocation3], %s135_s18  ;;  %s963_s22 = scalar_lea.vmem (!%p130_p5), [#allocation2], %s682_s20 }
  0x25   : > { %858 = dma.done.wait (%p933_p7), %s136_s21, 4096  }
  0x26   : > { %860 = vsyncadd (%p933_p7), %s136_s21, 4294963200  ;;  %v216_v0 = vld [vmem:[%s1230_s1 + $0x70] sm:$0xff]  ;;  %v217_v1 = vld [vmem:[%s1230_s1 + $0x78] sm:$0xff]  ;;  %vm218_vm0 = vcmask 523264   ;;  %s683_s5 = sshll.u32 %s674_s13, 5 }
  0x27   : > { %v214_v2 = vld [vmem:[%s1230_s1 + $0x60] sm:$0xff]  ;;  %754 = vmatpush.msra.mxu2 %v216_v0  ;;  %762 = vmatpush.msra.mxu3 %v217_v1  ;;  %v215_v3 = vld [vmem:[%s1230_s1 + $0x68] sm:$0xff]  ;;  %v212_v4 = vld [vmem:[%s1230_s1 + $0x50] sm:$0xff]  ;;  %p164_p6 = scmp.lt.s32.totalorder %s683_s5, 63 }
  0x28   : > { %v213_v5 = vld [vmem:[%s1230_s1 + $0x58] sm:$0xff]  ;;  %323 = vmatpush.msra.mxu0 %v216_v0  ;;  %436 = vmatpush.msra.mxu1 %v217_v1  ;;  %v210_v6 = vld [vmem:[%s1230_s1 + $0x40] sm:$0xff]  ;;  %v211_v7 = vld [vmem:[%s1230_s1 + $0x48] sm:$0xff] }
  0x29   : > { %755 = vmatpush.msra.mxu2 %v214_v2  ;;  %763 = vmatpush.msra.mxu3 %v215_v3  ;;  %v208_v8 = vld [vmem:[%s1230_s1 + $0x30] sm:$0xff]  ;;  %v209_v9 = vld [vmem:[%s1230_s1 + $0x38] sm:$0xff]  ;;  %v206_v10 = vld [vmem:[%s1230_s1 + $0x20] sm:$0xff]  ;;  %s1240_s5 = smov (!%p164_p6, %s683_s5), 63 }
  0x2a   : > { %324 = vmatpush.msra.mxu0 %v214_v2  ;;  %437 = vmatpush.msra.mxu1 %v215_v3  ;;  %v207_v11 = vld [vmem:[%s1230_s1 + $0x28] sm:$0xff]  ;;  %v204_v12 = vld [vmem:[%s1230_s1 + $0x10] sm:$0xff]  ;;  %v205_v13 = vld [vmem:[%s1230_s1 + $0x18] sm:$0xff]  ;;  %s753_s12 = sshll.u32 %s1240_s5, 4 }
  0x2b   : > { %756 = vmatpush.msra.mxu2 %v212_v4  ;;  %764 = vmatpush.msra.mxu3 %v213_v5  ;;  %v202_v14 = vld [vmem:[%s1230_s1] sm:$0xff]  ;;  %v203_v15 = vld [vmem:[%s1230_s1 + $0x8] sm:$0xff]  ;;  %v188_v20 = vld [vmem:[%s963_s22 + $0x90] sm:$0xff]  ;;  %s1118_s7 = scalar_lea.vmem %s1231_s2, %s753_s12 }
  0x2c   : > { %325 = vmatpush.msra.mxu0 %v212_v4  ;;  %438 = vmatpush.msra.mxu1 %v213_v5  ;;  %v186_v16 = vld [vmem:[%s963_s22 + $0x80] sm:$0xff]  ;;  %v187_v18 = vld [vmem:[%s963_s22 + $0x88] sm:$0xff]  ;;  %v172_v21 = vld [vmem:[%s963_s22 + $0x10] sm:$0xff] }
  0x2d   : > { %757 = vmatpush.msra.mxu2 %v210_v6  ;;  %765 = vmatpush.msra.mxu3 %v211_v7  ;;  %v170_v17 = vld [vmem:[%s963_s22] sm:$0xff]  ;;  %v171_v19 = vld [vmem:[%s963_s22 + $0x8] sm:$0xff]  ;;  %v189_v22 = vld [vmem:[%s963_s22 + $0x98] sm:$0xff] }
  0x2e   : > { %326 = vmatpush.msra.mxu0 %v210_v6  ;;  %439 = vmatpush.msra.mxu1 %v211_v7  ;;  %v173_v23 = vld [vmem:[%s963_s22 + $0x18] sm:$0xff]  ;;  %v190_v24 = vld [vmem:[%s963_s22 + $0xa0] sm:$0xff]  ;;  %v191_v26 = vld [vmem:[%s963_s22 + $0xa8] sm:$0xff] }
  0x2f   : > { %758 = vmatpush.msra.mxu2 %v208_v8  ;;  %766 = vmatpush.msra.mxu3 %v209_v9  ;;  %v174_v25 = vld [vmem:[%s963_s22 + $0x20] sm:$0xff]  ;;  %v175_v27 = vld [vmem:[%s963_s22 + $0x28] sm:$0xff]  ;;  %v192_v28 = vld [vmem:[%s963_s22 + $0xb0] sm:$0xff] }
  0x30   : > { %327 = vmatpush.msra.mxu0 %v208_v8  ;;  %440 = vmatpush.msra.mxu1 %v209_v9  ;;  %v176_v29 = vld [vmem:[%s963_s22 + $0x30] sm:$0xff]  ;;  %v193_v30 = vld [vmem:[%s963_s22 + $0xb8] sm:$0xff]  ;;  %v194_v32 = vld [vmem:[%s963_s22 + $0xc0] sm:$0xff] }
  0x31   : > { %759 = vmatpush.msra.mxu2 %v206_v10  ;;  %767 = vmatpush.msra.mxu3 %v207_v11  ;;  %v177_v31 = vld [vmem:[%s963_s22 + $0x38] sm:$0xff]  ;;  %v178_v33 = vld [vmem:[%s963_s22 + $0x40] sm:$0xff]  ;;  %v195_v34 = vld [vmem:[%s963_s22 + $0xc8] sm:$0xff] }
  0x32   : > { %328 = vmatpush.msra.mxu0 %v206_v10  ;;  %441 = vmatpush.msra.mxu1 %v207_v11  ;;  %v179_v35 = vld [vmem:[%s963_s22 + $0x48] sm:$0xff]  ;;  %v196_v36 = vld [vmem:[%s963_s22 + $0xd0] sm:$0xff]  ;;  %v197_v38 = vld [vmem:[%s963_s22 + $0xd8] sm:$0xff] }
  0x33   : > { %760 = vmatpush.msra.mxu2 %v204_v12  ;;  %768 = vmatpush.msra.mxu3 %v205_v13  ;;  %v180_v37 = vld [vmem:[%s963_s22 + $0x50] sm:$0xff]  ;;  %v181_v39 = vld [vmem:[%s963_s22 + $0x58] sm:$0xff]  ;;  %v198_v40 = vld [vmem:[%s963_s22 + $0xe0] sm:$0xff] }
  0x34   : > { %329 = vmatpush.msra.mxu0 %v204_v12  ;;  %442 = vmatpush.msra.mxu1 %v205_v13  ;;  %v182_v41 = vld [vmem:[%s963_s22 + $0x60] sm:$0xff]  ;;  %v199_v42 = vld [vmem:[%s963_s22 + $0xe8] sm:$0xff]  ;;  %v200_v44 = vld [vmem:[%s963_s22 + $0xf0] sm:$0xff] }
  0x35   : > { %761 = vmatpush.msra.mxu2 %v202_v14  ;;  %769 = vmatpush.msra.mxu3 %v203_v15  ;;  %v183_v43 = vld [vmem:[%s963_s22 + $0x68] sm:$0xff]  ;;  %v184_v45 = vld [vmem:[%s963_s22 + $0x70] sm:$0xff]  ;;  %v201_v46 = vld [vmem:[%s963_s22 + $0xf8] sm:$0xff] }
  0x36   : > { %702 = vmatmul.msk.f32.vlgmr.msra.gmra.mxu2 %vm218_vm0, %v186_v16  ;;  %734 = vmatmul.msk.f32.vlgmr.msra.gmra.mxu3 %vm218_vm0, %v186_v16  ;;  %v185_v47 = vld [vmem:[%s963_s22 + $0x78] sm:$0xff] }
  0x37   : > { %330 = vmatpush.msra.mxu0 %v202_v14  ;;  %443 = vmatpush.msra.mxu1 %v203_v15 }
  0x38   : > { %686 = vmatmul.msk.f32.vlgmr.msra.gmra.mxu0 %vm218_vm0, %v170_v17  ;;  %718 = vmatmul.msk.f32.vlgmr.msra.gmra.mxu1 %vm218_vm0, %v170_v17 }
  0x3e   : > { %703 = vmatmul.msk.f32.gmra.mxu2 %vm218_vm0, %v187_v18  ;;  %735 = vmatmul.msk.f32.gmra.mxu3 %vm218_vm0, %v187_v18 }
  0x40   : > { %687 = vmatmul.msk.f32.gmra.mxu0 %vm218_vm0, %v171_v19  ;;  %719 = vmatmul.msk.f32.gmra.mxu1 %vm218_vm0, %v171_v19 }
  0x46   : > { %704 = vmatmul.msk.f32.gmra.mxu2 %vm218_vm0, %v188_v20  ;;  %736 = vmatmul.msk.f32.gmra.mxu3 %vm218_vm0, %v188_v20 }
  0x48   : > { %688 = vmatmul.msk.f32.gmra.mxu0 %vm218_vm0, %v172_v21  ;;  %720 = vmatmul.msk.f32.gmra.mxu1 %vm218_vm0, %v172_v21 }
  0x4e   : > { %705 = vmatmul.msk.f32.gmra.mxu2 %vm218_vm0, %v189_v22  ;;  %737 = vmatmul.msk.f32.gmra.mxu3 %vm218_vm0, %v189_v22 }
  0x50   : > { %689 = vmatmul.msk.f32.gmra.mxu0 %vm218_vm0, %v173_v23  ;;  %721 = vmatmul.msk.f32.gmra.mxu1 %vm218_vm0, %v173_v23 }
  0x56   : > { %706 = vmatmul.msk.f32.gmra.mxu2 %vm218_vm0, %v190_v24  ;;  %738 = vmatmul.msk.f32.gmra.mxu3 %vm218_vm0, %v190_v24 }
  0x58   : > { %690 = vmatmul.msk.f32.gmra.mxu0 %vm218_vm0, %v174_v25  ;;  %722 = vmatmul.msk.f32.gmra.mxu1 %vm218_vm0, %v174_v25 }
  0x5e   : > { %707 = vmatmul.msk.f32.gmra.mxu2 %vm218_vm0, %v191_v26  ;;  %739 = vmatmul.msk.f32.gmra.mxu3 %vm218_vm0, %v191_v26 }
  0x60   : > { %691 = vmatmul.msk.f32.gmra.mxu0 %vm218_vm0, %v175_v27  ;;  %723 = vmatmul.msk.f32.gmra.mxu1 %vm218_vm0, %v175_v27 }
  0x66   : > { %708 = vmatmul.msk.f32.gmra.mxu2 %vm218_vm0, %v192_v28  ;;  %740 = vmatmul.msk.f32.gmra.mxu3 %vm218_vm0, %v192_v28 }
  0x68   : > { %692 = vmatmul.msk.f32.gmra.mxu0 %vm218_vm0, %v176_v29  ;;  %724 = vmatmul.msk.f32.gmra.mxu1 %vm218_vm0, %v176_v29 }
  0x6e   : > { %709 = vmatmul.msk.f32.gmra.mxu2 %vm218_vm0, %v193_v30  ;;  %741 = vmatmul.msk.f32.gmra.mxu3 %vm218_vm0, %v193_v30 }
  0x70   : > { %693 = vmatmul.msk.f32.gmra.mxu0 %vm218_vm0, %v177_v31  ;;  %725 = vmatmul.msk.f32.gmra.mxu1 %vm218_vm0, %v177_v31 }
  0x76   : > { %710 = vmatmul.msk.f32.gmra.mxu2 %vm218_vm0, %v194_v32  ;;  %742 = vmatmul.msk.f32.gmra.mxu3 %vm218_vm0, %v194_v32 }
  0x78   : > { %694 = vmatmul.msk.f32.gmra.mxu0 %vm218_vm0, %v178_v33  ;;  %726 = vmatmul.msk.f32.gmra.mxu1 %vm218_vm0, %v178_v33 }
  0x7e   : > { %711 = vmatmul.msk.f32.gmra.mxu2 %vm218_vm0, %v195_v34  ;;  %743 = vmatmul.msk.f32.gmra.mxu3 %vm218_vm0, %v195_v34 }
  0x80   : > { %695 = vmatmul.msk.f32.gmra.mxu0 %vm218_vm0, %v179_v35  ;;  %727 = vmatmul.msk.f32.gmra.mxu1 %vm218_vm0, %v179_v35 }
  0x86   : > { %712 = vmatmul.msk.f32.gmra.mxu2 %vm218_vm0, %v196_v36  ;;  %744 = vmatmul.msk.f32.gmra.mxu3 %vm218_vm0, %v196_v36 }
  0x88   : > { %696 = vmatmul.msk.f32.gmra.mxu0 %vm218_vm0, %v180_v37  ;;  %728 = vmatmul.msk.f32.gmra.mxu1 %vm218_vm0, %v180_v37 }
  0x8e   : > { %713 = vmatmul.msk.f32.gmra.mxu2 %vm218_vm0, %v197_v38  ;;  %745 = vmatmul.msk.f32.gmra.mxu3 %vm218_vm0, %v197_v38 }
  0x90   : > { %697 = vmatmul.msk.f32.gmra.mxu0 %vm218_vm0, %v181_v39  ;;  %729 = vmatmul.msk.f32.gmra.mxu1 %vm218_vm0, %v181_v39 }
  0x96   : > { %714 = vmatmul.msk.f32.gmra.mxu2 %vm218_vm0, %v198_v40  ;;  %746 = vmatmul.msk.f32.gmra.mxu3 %vm218_vm0, %v198_v40 }
  0x98   : > { %698 = vmatmul.msk.f32.gmra.mxu0 %vm218_vm0, %v182_v41  ;;  %730 = vmatmul.msk.f32.gmra.mxu1 %vm218_vm0, %v182_v41 }
  0x9e   : > { %715 = vmatmul.msk.f32.gmra.mxu2 %vm218_vm0, %v199_v42  ;;  %747 = vmatmul.msk.f32.gmra.mxu3 %vm218_vm0, %v199_v42 }
  0xa0   : > { %699 = vmatmul.msk.f32.gmra.mxu0 %vm218_vm0, %v183_v43  ;;  %731 = vmatmul.msk.f32.gmra.mxu1 %vm218_vm0, %v183_v43 }
  0xa6   : > { %716 = vmatmul.msk.f32.gmra.mxu2 %vm218_vm0, %v200_v44  ;;  %748 = vmatmul.msk.f32.gmra.mxu3 %vm218_vm0, %v200_v44 }
  0xa8   : > { %700 = vmatmul.msk.f32.gmra.mxu0 %vm218_vm0, %v184_v45  ;;  %732 = vmatmul.msk.f32.gmra.mxu1 %vm218_vm0, %v184_v45 }
  0xae   : > { %717 = vmatmul.msk.f32.gmra.mxu2 %vm218_vm0, %v201_v46  ;;  %749 = vmatmul.msk.f32.gmra.mxu3 %vm218_vm0, %v201_v46 }
  0xb0   : > { %701 = vmatmul.msk.f32.gmra.mxu0 %vm218_vm0, %v185_v47  ;;  %733 = vmatmul.msk.f32.gmra.mxu1 %vm218_vm0, %v185_v47 }
  0xb5   : > { %v332_v48 = vpop.f32.mrf.mxu0  ;;  %v445_v49 = vpop.f32.mrf.mxu1 }
  0xb6   : > { %541 = vst [vmem:[%s1118_s7] sm:$0xff] %v332_v48 }
  0xb7   : > { %542 = vst.msk [vmem:[%s1118_s7 + $0x8] sm:$0xff] %vm218_vm0, %v445_v49 }
  0xb9   : > { %v380_v50 = vpop.f32.mrf.mxu2  ;;  %v493_v51 = vpop.f32.mrf.mxu3 }
  0xba   : > { %573 = vst [vmem:[%s1118_s7 + $0x100] sm:$0xff] %v380_v50 }
  0xbb   : > { %574 = vst.msk [vmem:[%s1118_s7 + $0x108] sm:$0xff] %vm218_vm0, %v493_v51 }
  0xbd   : > { %v335_v52 = vpop.f32.mrf.mxu0  ;;  %v448_v53 = vpop.f32.mrf.mxu1 }
  0xbe   : > { %543 = vst [vmem:[%s1118_s7 + $0x10] sm:$0xff] %v335_v52 }
  0xbf   : > { %544 = vst.msk [vmem:[%s1118_s7 + $0x18] sm:$0xff] %vm218_vm0, %v448_v53 }
  0xc1   : > { %v383_v54 = vpop.f32.mrf.mxu2  ;;  %v496_v55 = vpop.f32.mrf.mxu3 }
  0xc2   : > { %575 = vst [vmem:[%s1118_s7 + $0x110] sm:$0xff] %v383_v54 }
  0xc3   : > { %576 = vst.msk [vmem:[%s1118_s7 + $0x118] sm:$0xff] %vm218_vm0, %v496_v55 }
  0xc5   : > { %v338_v56 = vpop.f32.mrf.mxu0  ;;  %v451_v57 = vpop.f32.mrf.mxu1 }
  0xc6   : > { %545 = vst [vmem:[%s1118_s7 + $0x20] sm:$0xff] %v338_v56 }
  0xc7   : > { %546 = vst.msk [vmem:[%s1118_s7 + $0x28] sm:$0xff] %vm218_vm0, %v451_v57 }
  0xc9   : > { %v386_v58 = vpop.f32.mrf.mxu2  ;;  %v499_v59 = vpop.f32.mrf.mxu3 }
  0xca   : > { %577 = vst [vmem:[%s1118_s7 + $0x120] sm:$0xff] %v386_v58 }
  0xcb   : > { %578 = vst.msk [vmem:[%s1118_s7 + $0x128] sm:$0xff] %vm218_vm0, %v499_v59 }
  0xcd   : > { %v341_v60 = vpop.f32.mrf.mxu0  ;;  %v454_v61 = vpop.f32.mrf.mxu1 }
  0xce   : > { %547 = vst [vmem:[%s1118_s7 + $0x30] sm:$0xff] %v341_v60 }
  0xcf   : > { %548 = vst.msk [vmem:[%s1118_s7 + $0x38] sm:$0xff] %vm218_vm0, %v454_v61 }
  0xd1   : > { %v389_v62 = vpop.f32.mrf.mxu2  ;;  %v502_v63 = vpop.f32.mrf.mxu3 }
  0xd2   : > { %579 = vst [vmem:[%s1118_s7 + $0x130] sm:$0xff] %v389_v62 }
  0xd3   : > { %580 = vst.msk [vmem:[%s1118_s7 + $0x138] sm:$0xff] %vm218_vm0, %v502_v63 }
  0xd5   : > { %v344_v0 = vpop.f32.mrf.mxu0  ;;  %v457_v1 = vpop.f32.mrf.mxu1 }
  0xd6   : > { %549 = vst [vmem:[%s1118_s7 + $0x40] sm:$0xff] %v344_v0 }
  0xd7   : > { %550 = vst.msk [vmem:[%s1118_s7 + $0x48] sm:$0xff] %vm218_vm0, %v457_v1 }
  0xd9   : > { %v392_v2 = vpop.f32.mrf.mxu2  ;;  %v505_v3 = vpop.f32.mrf.mxu3 }
  0xda   : > { %581 = vst [vmem:[%s1118_s7 + $0x140] sm:$0xff] %v392_v2 }
  0xdb   : > { %582 = vst.msk [vmem:[%s1118_s7 + $0x148] sm:$0xff] %vm218_vm0, %v505_v3 }
  0xdd   : > { %v347_v4 = vpop.f32.mrf.mxu0  ;;  %v460_v5 = vpop.f32.mrf.mxu1 }
  0xde   : > { %551 = vst [vmem:[%s1118_s7 + $0x50] sm:$0xff] %v347_v4 }
  0xdf   : > { %552 = vst.msk [vmem:[%s1118_s7 + $0x58] sm:$0xff] %vm218_vm0, %v460_v5 }
  0xe1   : > { %v395_v6 = vpop.f32.mrf.mxu2  ;;  %v508_v7 = vpop.f32.mrf.mxu3 }
  0xe2   : > { %583 = vst [vmem:[%s1118_s7 + $0x150] sm:$0xff] %v395_v6 }
  0xe3   : > { %584 = vst.msk [vmem:[%s1118_s7 + $0x158] sm:$0xff] %vm218_vm0, %v508_v7 }
  0xe5   : > { %v350_v8 = vpop.f32.mrf.mxu0  ;;  %v463_v9 = vpop.f32.mrf.mxu1 }
  0xe6   : > { %553 = vst [vmem:[%s1118_s7 + $0x60] sm:$0xff] %v350_v8 }
  0xe7   : > { %554 = vst.msk [vmem:[%s1118_s7 + $0x68] sm:$0xff] %vm218_vm0, %v463_v9 }
  0xe9   : > { %v398_v10 = vpop.f32.mrf.mxu2  ;;  %v511_v11 = vpop.f32.mrf.mxu3 }
  0xea   : > { %585 = vst [vmem:[%s1118_s7 + $0x160] sm:$0xff] %v398_v10 }
  0xeb   : > { %586 = vst.msk [vmem:[%s1118_s7 + $0x168] sm:$0xff] %vm218_vm0, %v511_v11 }
  0xed   : > { %v353_v12 = vpop.f32.mrf.mxu0  ;;  %v466_v13 = vpop.f32.mrf.mxu1 }
  0xee   : > { %555 = vst [vmem:[%s1118_s7 + $0x70] sm:$0xff] %v353_v12 }
  0xef   : > { %556 = vst.msk [vmem:[%s1118_s7 + $0x78] sm:$0xff] %vm218_vm0, %v466_v13 }
  0xf1   : > { %v401_v14 = vpop.f32.mrf.mxu2  ;;  %v514_v15 = vpop.f32.mrf.mxu3 }
  0xf2   : > { %587 = vst [vmem:[%s1118_s7 + $0x170] sm:$0xff] %v401_v14 }
  0xf3   : > { %588 = vst.msk [vmem:[%s1118_s7 + $0x178] sm:$0xff] %vm218_vm0, %v514_v15 }
  0xf5   : > { %v356_v16 = vpop.f32.mrf.mxu0  ;;  %v469_v17 = vpop.f32.mrf.mxu1 }
  0xf6   : > { %557 = vst [vmem:[%s1118_s7 + $0x80] sm:$0xff] %v356_v16 }
  0xf7   : > { %558 = vst.msk [vmem:[%s1118_s7 + $0x88] sm:$0xff] %vm218_vm0, %v469_v17 }
  0xf9   : > { %v404_v18 = vpop.f32.mrf.mxu2  ;;  %v517_v19 = vpop.f32.mrf.mxu3 }
  0xfa   : > { %589 = vst [vmem:[%s1118_s7 + $0x180] sm:$0xff] %v404_v18 }
  0xfb   : > { %590 = vst.msk [vmem:[%s1118_s7 + $0x188] sm:$0xff] %vm218_vm0, %v517_v19 }
  0xfd   : > { %v359_v20 = vpop.f32.mrf.mxu0  ;;  %v472_v21 = vpop.f32.mrf.mxu1 }
  0xfe   : > { %559 = vst [vmem:[%s1118_s7 + $0x90] sm:$0xff] %v359_v20 }
  0xff   : > { %560 = vst.msk [vmem:[%s1118_s7 + $0x98] sm:$0xff] %vm218_vm0, %v472_v21 }
 0x101   : > { %v407_v22 = vpop.f32.mrf.mxu2  ;;  %v520_v23 = vpop.f32.mrf.mxu3 }
 0x102   : > { %591 = vst [vmem:[%s1118_s7 + $0x190] sm:$0xff] %v407_v22 }
 0x103   : > { %592 = vst.msk [vmem:[%s1118_s7 + $0x198] sm:$0xff] %vm218_vm0, %v520_v23 }
 0x105   : > { %v362_v24 = vpop.f32.mrf.mxu0  ;;  %v475_v25 = vpop.f32.mrf.mxu1 }
 0x106   : > { %561 = vst [vmem:[%s1118_s7 + $0xa0] sm:$0xff] %v362_v24 }
 0x107   : > { %562 = vst.msk [vmem:[%s1118_s7 + $0xa8] sm:$0xff] %vm218_vm0, %v475_v25 }
 0x109   : > { %v410_v26 = vpop.f32.mrf.mxu2  ;;  %v523_v27 = vpop.f32.mrf.mxu3 }
 0x10a   : > { %593 = vst [vmem:[%s1118_s7 + $0x1a0] sm:$0xff] %v410_v26 }
 0x10b   : > { %594 = vst.msk [vmem:[%s1118_s7 + $0x1a8] sm:$0xff] %vm218_vm0, %v523_v27 }
 0x10d   : > { %v365_v28 = vpop.f32.mrf.mxu0  ;;  %v478_v29 = vpop.f32.mrf.mxu1 }
 0x10e   : > { %563 = vst [vmem:[%s1118_s7 + $0xb0] sm:$0xff] %v365_v28 }
 0x10f   : > { %564 = vst.msk [vmem:[%s1118_s7 + $0xb8] sm:$0xff] %vm218_vm0, %v478_v29 }
 0x111   : > { %v413_v30 = vpop.f32.mrf.mxu2  ;;  %v526_v31 = vpop.f32.mrf.mxu3 }
 0x112   : > { %595 = vst [vmem:[%s1118_s7 + $0x1b0] sm:$0xff] %v413_v30 }
 0x113   : > { %596 = vst.msk [vmem:[%s1118_s7 + $0x1b8] sm:$0xff] %vm218_vm0, %v526_v31 }
 0x115   : > { %v368_v32 = vpop.f32.mrf.mxu0  ;;  %v481_v33 = vpop.f32.mrf.mxu1 }
 0x116   : > { %565 = vst [vmem:[%s1118_s7 + $0xc0] sm:$0xff] %v368_v32 }
 0x117   : > { %566 = vst.msk [vmem:[%s1118_s7 + $0xc8] sm:$0xff] %vm218_vm0, %v481_v33 }
 0x119   : > { %v416_v34 = vpop.f32.mrf.mxu2  ;;  %v529_v35 = vpop.f32.mrf.mxu3 }
 0x11a   : > { %597 = vst [vmem:[%s1118_s7 + $0x1c0] sm:$0xff] %v416_v34 }
 0x11b   : > { %598 = vst.msk [vmem:[%s1118_s7 + $0x1c8] sm:$0xff] %vm218_vm0, %v529_v35 }
 0x11d   : > { %v371_v36 = vpop.f32.mrf.mxu0  ;;  %v484_v37 = vpop.f32.mrf.mxu1 }
 0x11e   : > { %567 = vst [vmem:[%s1118_s7 + $0xd0] sm:$0xff] %v371_v36 }
 0x11f   : > { %568 = vst.msk [vmem:[%s1118_s7 + $0xd8] sm:$0xff] %vm218_vm0, %v484_v37 }
 0x121   : > { %v419_v38 = vpop.f32.mrf.mxu2  ;;  %v532_v39 = vpop.f32.mrf.mxu3 }
 0x122   : > { %599 = vst [vmem:[%s1118_s7 + $0x1d0] sm:$0xff] %v419_v38 }
 0x123   : > { %600 = vst.msk [vmem:[%s1118_s7 + $0x1d8] sm:$0xff] %vm218_vm0, %v532_v39 }
 0x125   : > { %v374_v40 = vpop.f32.mrf.mxu0  ;;  %v487_v41 = vpop.f32.mrf.mxu1 }
 0x126   : > { %569 = vst [vmem:[%s1118_s7 + $0xe0] sm:$0xff] %v374_v40 }
 0x127   : > { %570 = vst.msk [vmem:[%s1118_s7 + $0xe8] sm:$0xff] %vm218_vm0, %v487_v41 }
 0x129   : > { %v422_v42 = vpop.f32.mrf.mxu2  ;;  %v535_v43 = vpop.f32.mrf.mxu3 }
 0x12a   : > { %601 = vst [vmem:[%s1118_s7 + $0x1e0] sm:$0xff] %v422_v42 }
 0x12b   : > { %602 = vst.msk [vmem:[%s1118_s7 + $0x1e8] sm:$0xff] %vm218_vm0, %v535_v43 }
 0x12d   : > { %v377_v44 = vpop.f32.mrf.mxu0  ;;  %v490_v45 = vpop.f32.mrf.mxu1 }
 0x12e   : > { %571 = vst [vmem:[%s1118_s7 + $0xf0] sm:$0xff] %v377_v44 }
 0x12f   : > { %572 = vst.msk [vmem:[%s1118_s7 + $0xf8] sm:$0xff] %vm218_vm0, %v490_v45 }
 0x131   : > { %v425_v46 = vpop.f32.mrf.mxu2  ;;  %v538_v47 = vpop.f32.mrf.mxu3 }
 0x132   : > { %603 = vst [vmem:[%s1118_s7 + $0x1f0] sm:$0xff] %v425_v46 }
 0x133   : > { %604 = vst.msk [vmem:[%s1118_s7 + $0x1f8] sm:$0xff] %vm218_vm0, %v538_v47 }
 0x134 PF: > { %p12_p7 = scmp.ge.s32.totalorder %s914_s14, 4   ;;  %s1235_s9 = smov %s867_s10 }
 0x135   : > { %s1236_s10 = smov %s871_s11  ;;  %s1237_s11 = smov %s924_s17 }
 0x136   : > { %s1238_s12 = smov %s914_s14  ;;  %14 = sbr.rel (!%p12_p7) target bundleno = 3 (0x3), region = 68 }
 0x13b   :  { %629 = vsyncpa [#allocation3], 1 }
 0x13c   :  { %631 = vsyncpa [#allocation3 + $0x1], 1 }

// kernel: attention_base_forward.6
= control target key start
LH: loop header
LB: loop body
LE: loop exit
PB: predicated region body
PF: predicated region fallthrough
CT: control target
= control target key end

     0   :  { %s793_s15 = smov 0   ;;  %s795_s16 = smov 0   ;;  %s877_s0 = inlined_call_operand.vmem [shape: f32[2,8,8,256], index: 0, kind: input, shape index: {}]   ;;  %s878_s1 = inlined_call_operand.vmem [shape: f32[2,8,8,256], index: 1, kind: input, shape index: {}]   ;;  %s879_s2 = inlined_call_operand.vmem [shape: f32[2,8,8,256], index: 2, kind: input, shape index: {}]   ;;  %s880_s3 = inlined_call_operand.vmem [shape: f32[8,8,8], index: 3, kind: input, shape index: {}]   ;;  %s881_s4 = inlined_call_operand.vmem [shape: f32[2,8,8,256], index: 4, kind: output, shape index: {}]  }
   0x1   :  { %s797_s17 = smov 0   ;;  %s799_s18 = smov 0  }
   0x2   :  { %s801_s19 = smov 0  }
   0x3 LB: > { %s23_s20 = sadd.s32 1, %s758_s17  ;;  %s26_s21 = sadd.s32 1, %s762_s18  ;;  %s766_s19 = sphi %s801_s19, %s14_s19   ;;  %s762_s18 = sphi %s799_s18, %s885_s18   ;;  %s758_s17 = sphi %s797_s17, %s884_s17   ;;  %s754_s16 = sphi %s795_s16, %s883_s16   ;;  %s750_s15 = sphi %s793_s15, %s882_s15  }
   0x4   : > { %p24_p0 = scmp.ge.s32.totalorder %s23_s20, 8  ;;  %p658_p1 = scmp.ge.s32.totalorder %s766_s19, 1 }
   0x5   : > { %p223_p2 = scmp.lt.s32.totalorder %s766_s19, 17 }
   0x6   : > { %s887_s20 = smov (%p24_p0, %s23_s20), 0  ;;  %s889_s21 = smov (!%p24_p0, %s26_s21), %s762_s18 }
   0x7   : > { %p224_p3 = pnand %p658_p1, %p223_p2  ;;  %p28_p4 = scmp.ge.s32.totalorder %s889_s21, 2 }
   0x8   : > { %p279_p5 = scmp.lt.s32.totalorder (!%p224_p3), %s754_s16, 1  ;;  %p281_p6 = scmp.lt.s32.totalorder (!%p224_p3), %s750_s15, 7 }
   0x9   : > { %s891_s21 = smov (%p28_p4, %s889_s21), 0  ;;  %227 = sbr.rel (%p224_p3) target bundleno = 718 (0x2ce), region = 36 }
   0xe   : > { %s893_s16 = smov (!%p279_p5, %s754_s16), 1  ;;  %s895_s15 = smov (!%p281_p6, %s750_s15), 7  ;;  %vm435_vm12 = vcmask 64512  }
   0xf   : > { %s660_s22 = sshll.u32 %s893_s16, 4  ;;  %s659_s23 = sshll.u32 %s895_s15, 1 }
  0x10   : > { %s285_s24 = sadd.s32 %s660_s22, %s659_s23  ;;  %s668_s6 = sshll.u32 %s895_s15, 3 }
  0x11   : > { %s826_s25 = sshll.u32 %s285_s24, 3  ;;  %s309_s9 = scalar_lea.vmem %s880_s3, %s668_s6 }
  0x12   : > { %s296_s28 = scalar_lea.vmem %s878_s1, %s826_s25  ;;  %s287_s5 = scalar_lea.vmem %s877_s0, %s826_s25  ;;  %v433_v60 = vld [vmem:[%s309_s9] sm:$0xff] }
  0x13   : > { %v321_v0 = vld [vmem:[%s296_s28] sm:$0xff]  ;;  %v322_v1 = vld [vmem:[%s296_s28 + $0x8] sm:$0xff]  ;;  %s305_s12 = scalar_lea.vmem %s879_s2, %s826_s25  ;;  %s318_s15 = scalar_lea.vmem %s881_s4, %s826_s25 }
  0x14   : > { %v359_v2 = vmul.f32 %v321_v0, %v321_v0  ;;  %v360_v3 = vmul.f32 %v322_v1, %v322_v1  ;;  %v836_v4 = vld [vmem:[%s287_s5] sm:$0xff]  ;;  %v838_v5 = vld [vmem:[%s287_s5 + $0x8] sm:$0xff] }
  0x15   : > { %v325_v7 = vmul.f32 %v836_v4, %v836_v4  ;;  %v326_v8 = vmul.f32 %v838_v5, %v838_v5 }
  0x16   : > { %v361_v6 = vadd.f32 %v360_v3, %v359_v2 }
  0x17   : > { %v327_v9 = vadd.f32 %v326_v8, %v325_v7 }
  0x18   : > { %362 = vadd.xlane.f32.xlu0 %v361_v6  ;;  %v324_v6 = vld [vmem:[%s305_s12 + $0x8] sm:$0xff] }
  0x19   : > { %498 = vmatpush.msra.mxu3 %v324_v6 }
  0x20   : > { %328 = vadd.xlane.f32.xlu0 %v327_v9 }
  0x8b   : > { %v363_v10 = vpop.xlane.xlu0 %362 }
  0x8c   : > { %716 = vrsqrt.f32 %v363_v10  ;;  %vm371_vm0 = vcmp.eq.f32.partialorder %v363_v10, inf  ;;  %v374_v22 = vand.u32 2147483648, %v363_v10  ;;  %vm373_vm1 = vcmp.eq.f32.partialorder %v363_v10, 0.0 }
  0x92   : > { %v717_v11 = vpop.eup %716 }
  0x93   : > { %v365_v12 = vmul.f32 %v717_v11, %v363_v10  ;;  %v329_v13 = vpop.xlane.xlu0 %328 }
  0x94   : > { %718 = vrsqrt.f32 %v329_v13  ;;  %vm337_vm2 = vcmp.eq.f32.partialorder %v329_v13, inf  ;;  %v340_v30 = vand.u32 2147483648, %v329_v13  ;;  %vm339_vm3 = vcmp.eq.f32.partialorder %v329_v13, 0.0 }
  0x95   : > { %v366_v14 = vmul.f32 %v717_v11, %v365_v12 }
  0x97   : > { %v367_v15 = vmul.f32 0.5, %v366_v14 }
  0x99   : > { %v368_v16 = vsub.f32 1.5, %v367_v15 }
  0x9a   : > { %v719_v17 = vpop.eup %718 }
  0x9b   : > { %v369_v18 = vmul.f32 %v717_v11, %v368_v16  ;;  %v331_v19 = vmul.f32 %v719_v17, %v329_v13 }
  0x9d   : > { %v370_v20 = vmul.f32 %v369_v18, %v363_v10  ;;  %v332_v21 = vmul.f32 %v719_v17, %v331_v19 }
  0x9f   : > { %v372_v23 = vsel %vm371_vm0, %v363_v10, %v370_v20  ;;  %v333_v24 = vmul.f32 0.5, %v332_v21 }
  0xa0   : > { %v375_v25 = vsel %vm373_vm1, %v374_v22, %v372_v23 }
  0xa1   : > { %v334_v26 = vsub.f32 1.5, %v333_v24  ;;  %v376_v27 = vmax.f32 %v375_v25, 1e-12 }
  0xa3   : > { %v335_v28 = vmul.f32 %v719_v17, %v334_v26  ;;  %720 = vrcp.f32 %v376_v27  ;;  %v388_v37 = vand.u32 2147483648, %v376_v27  ;;  %v386_v39 = vand.u32 2147483647, %v376_v27 }
  0xa4   : > { %vm382_vm5 = vweird.f32 %v376_v27 }
  0xa5   : > { %v336_v29 = vmul.f32 %v335_v28, %v329_v13  ;;  %v389_v42 = vor.u32 1.1754944e-38, %v388_v37  ;;  %vm387_vm7 = vcmp.eq.f32.partialorder %v386_v39, 8.507059e+37 }
  0xa7   : > { %v338_v31 = vsel %vm337_vm2, %v329_v13, %v336_v29 }
  0xa8   : > { %v341_v32 = vsel %vm339_vm3, %v340_v30, %v338_v31 }
  0xa9   : > { %v721_v33 = vpop.eup %720  ;;  %v342_v34 = vmax.f32 %v341_v32, 1e-12 }
  0xaa   : > { %v378_v35 = vmul.f32 %v721_v33, %v376_v27  ;;  %vm383_vm4 = vweird.f32 %v721_v33 }
  0xab   : > { %722 = vrcp.f32 %v342_v34  ;;  %vm384_vm6 = vmor %vm382_vm5, %vm383_vm4  ;;  %v354_v49 = vand.u32 2147483648, %v342_v34  ;;  %v352_v51 = vand.u32 2147483647, %v342_v34  ;;  %vm348_vm9 = vweird.f32 %v342_v34 }
  0xac   : > { %v379_v36 = vsub.f32 1.0, %v378_v35 }
  0xad   : > { %v355_v53 = vor.u32 1.1754944e-38, %v354_v49  ;;  %vm353_vm11 = vcmp.eq.f32.partialorder %v352_v51, 8.507059e+37 }
  0xae   : > { %v380_v38 = vmul.f32 %v721_v33, %v379_v36 }
  0xb0   : > { %v381_v40 = vadd.f32 %v721_v33, %v380_v38 }
  0xb1   : > { %v723_v41 = vpop.eup %722 }
  0xb2   : > { %v385_v43 = vsel %vm384_vm6, %v721_v33, %v381_v40  ;;  %v344_v44 = vmul.f32 %v723_v41, %v342_v34  ;;  %vm349_vm8 = vweird.f32 %v723_v41 }
  0xb3   : > { %v390_v45 = vsel %vm387_vm7, %v389_v42, %v385_v43  ;;  %vm350_vm10 = vmor %vm348_vm9, %vm349_vm8 }
  0xb4   : > { %v391_v46 = vmul.f32 %v390_v45, %v321_v0  ;;  %v392_v47 = vmul.f32 %v390_v45, %v322_v1  ;;  %v345_v48 = vsub.f32 1.0, %v344_v44 }
  0xb6   : > { %408 = vmatpush.xpose.msra.mxu0 %v391_v46  ;;  %428 = vmatpush.xpose.msra.mxu1 %v392_v47  ;;  %v346_v50 = vmul.f32 %v723_v41, %v345_v48 }
  0xb8   : > { %v347_v52 = vadd.f32 %v723_v41, %v346_v50 }
  0xba   : > { %v351_v54 = vsel %vm350_vm10, %v723_v41, %v347_v52 }
  0xbb   : > { %v356_v55 = vsel %vm353_vm11, %v355_v53, %v351_v54 }
  0xbc   : > { %v357_v56 = vmul.f32 %v356_v55, %v836_v4  ;;  %v358_v57 = vmul.f32 %v356_v55, %v838_v5  ;;  %v323_v5 = vld [vmem:[%s305_s12] sm:$0xff] }
  0xbd   : > { %478 = vmatpush.msra.mxu2 %v323_v5 }
  0xbe   : > { %409 = vmatmul.f32.vlgmr.msra.gmra.mxu0 %v357_v56  ;;  %429 = vmatmul.f32.vlgmr.msra.gmra.mxu1 %v358_v57 }
 0x13b   : > { %v410_v58 = vpop.f32.mrf.mxu0  ;;  %v430_v59 = vpop.f32.mrf.mxu1 }
 0x13c   : > { %v431_v61 = vadd.f32 %v430_v59, %v410_v58 }
 0x13e   : > { %v434_v62 = vmul.f32 %v433_v60, %v431_v61 }
 0x140   : > { %v436_v63 = vsel %vm435_vm12, %v434_v62, -inf }
 0x141   : > { %437 = vmax.xlane.f32.xlu1 %v436_v63 }
 0x1b4   : > { %v438_v0 = vpop.xlane.xlu1 %437 }
 0x1b5   : > { %v439_v1 = vsub.f32 %v434_v62, %v438_v0 }
 0x1b7   : > { %v440_v2 = vmul.f32 1.442695, %v439_v1 }
 0x1b9   : > { %724 = vpow2.f32 %v440_v2 }
 0x1bf   : > { %v725_v3 = vpop.eup %724 }
 0x1c0   : > { %v442_v4 = vsel %vm435_vm12, %v725_v3, 0.0 }
 0x1c1   : > { %443 = vadd.xlane.f32.xlu1 %v442_v4 }
 0x234   : > { %v444_v7 = vpop.xlane.xlu1 %443 }
 0x235   : > { %726 = vrcp.f32 %v444_v7  ;;  %v456_v11 = vand.u32 2147483648, %v444_v7  ;;  %v454_v13 = vand.u32 2147483647, %v444_v7  ;;  %vm450_vm14 = vweird.f32 %v444_v7 }
 0x237   : > { %v457_v15 = vor.u32 1.1754944e-38, %v456_v11  ;;  %vm455_vm0 = vcmp.eq.f32.partialorder %v454_v13, 8.507059e+37 }
 0x23b   : > { %v727_v8 = vpop.eup %726 }
 0x23c   : > { %v446_v9 = vmul.f32 %v727_v8, %v444_v7  ;;  %vm451_vm13 = vweird.f32 %v727_v8 }
 0x23d   : > { %vm452_vm15 = vmor %vm450_vm14, %vm451_vm13 }
 0x23e   : > { %v447_v10 = vsub.f32 1.0, %v446_v9 }
 0x240   : > { %v448_v12 = vmul.f32 %v727_v8, %v447_v10 }
 0x242   : > { %v449_v14 = vadd.f32 %v727_v8, %v448_v12 }
 0x244   : > { %v453_v16 = vsel %vm452_vm15, %v727_v8, %v449_v14 }
 0x245   : > { %v458_v17 = vsel %vm455_vm0, %v457_v15, %v453_v16 }
 0x246   : > { %v459_v18 = vmul.f32 %v725_v3, %v458_v17 }
 0x248   : > { %672 = vmatmul.msk.f32.vlgmr.msra.gmra.mxu2 %vm435_vm12, %v459_v18  ;;  %673 = vmatmul.msk.f32.vlgmr.msra.gmra.mxu3 %vm435_vm12, %v459_v18 }
 0x2cb   : > { %v480_v19 = vpop.f32.mrf.mxu2  ;;  %v500_v20 = vpop.f32.mrf.mxu3 }
 0x2cc   : > { %503 = vst [vmem:[%s318_s15] sm:$0xff] %v480_v19 }
 0x2cd   : > { %504 = vst [vmem:[%s318_s15 + $0x8] sm:$0xff] %v500_v20 }
 0x2ce PF: > { %s14_s19 = sadd.s32 1, %s766_s19   ;;  %s882_s15 = smov %s758_s17 }
 0x2cf   : > { %p11_p7 = scmp.ge.s32.totalorder %s14_s19, 18   ;;  %s883_s16 = smov %s762_s18 }
 0x2d0   : > { %s884_s17 = smov %s887_s20  ;;  %s885_s18 = smov %s891_s21 }
 0x2d1   :  { %13 = sbr.rel (!%p11_p7) target bundleno = 3 (0x3), region = 75 }

// kernel: attention_base_forward.7
= control target key start
LH: loop header
LB: loop body
LE: loop exit
PB: predicated region body
PF: predicated region fallthrough
CT: control target
= control target key end

     0   :  { %7 = vsyncpa [#allocation3], 0  ;;  %s941_s0 = inlined_call_operand.vmem [shape: f32[512,64], index: 0, kind: input, shape index: {}]   ;;  %s942_s1 = inlined_call_operand.vmem [shape: f32[64,64], index: 1, kind: input, shape index: {}]   ;;  %s943_s2 = inlined_call_operand.hbm [shape: f32[512,64], index: 2, kind: output, shape index: {}]  }
   0x1   :  { %9 = vsyncpa [#allocation3 + $0x1], 0  ;;  %s696_s9 = smov 0   ;;  %s698_s10 = smov 0  }
   0x2   :  { %s700_s11 = smov 0   ;;  %s702_s12 = smov 0  }
   0x3 LB: > { %s717_s13 = sadd.s32 4294967295, %s677_s12   ;;  %s505_s14 = sadd.s32 4294967294, %s677_s12   ;;  %s677_s12 = sphi %s702_s12, %s949_s12   ;;  %s673_s11 = sphi %s700_s11, %s948_s11   ;;  %s669_s10 = sphi %s698_s10, %s947_s10   ;;  %s665_s9 = sphi %s696_s9, %s946_s9  }
   0x4   : > { %s721_s15 = sadd.s32 1, %s677_s12   ;;  %s69_s16 = sadd.s32 1, %s673_s11 }
   0x5   : > { %s66_s17 = ssub.s32 %s677_s12, %s721_s15  ;;  %p79_p0 = scmp.ne.s32.totalorder %s673_s11, %s669_s10 }
   0x6   : > { %p67_p1 = scmp.eq.s32.totalorder %s66_s17, 0  ;;  %p80_p2 = scmp.eq.s32.totalorder %s717_s13, 1 }
   0x7   : > { %p85_p3 = scmp.ne.s32.totalorder %s669_s10, %s665_s9  ;;  %p86_p4 = scmp.eq.s32.totalorder %s505_s14, 1 }
   0x8   : > { %s732_s18 = scalar_select %p67_p1, %s673_s11, %s69_s16  }
   0x9   : > { %p734_p5 = por %p80_p2, %p79_p0  ;;  %p738_p6 = por %p86_p4, %p85_p3 }
   0xa   : > { %p508_p7 = scmp.ge.s32.totalorder %s677_s12, 1  ;;  %p116_p8 = scmp.lt.s32.totalorder %s677_s12, 3 }
   0xc   : > { %p117_p9 = pnand %p508_p7, %p116_p8 }
   0xd   : > { %s510_s25 = sshll.u32 (!%p117_p9), %s717_s13, 5  ;;  %s135_s23 = sand.u32 (!%p117_p9), 1, %s669_s10  }
   0xe   : > { %120 = sbr.rel (%p117_p9) target bundleno = 228 (0xe4), region = 28  ;;  %p139_p10 = scmp.lt.s32.totalorder (!%p117_p9), %s510_s25, 63 }
   0xf   : > { %s509_s24 = sshll.u32 (!%p117_p9), %s135_s23, 8  ;;  %s549_s26 = sshll.u32 (!%p117_p9), %s717_s13, 8 }
  0x10   : > { %s439_s29 = scalar_lea.hbm (!%p117_p9), %s943_s2, %s549_s26  ;;  %s428_s13 = scalar_lea.sflag (!%p117_p9), [#allocation3], %s135_s23 }
  0x11   : > { %s442_s3 = sshll.u32 (!%p117_p9), %s439_s29, 4  ;;  %s635_s8 = scalar_lea.hbm (!%p117_p9), %s943_s2, 512  ;;  %s443_s3 = int_to_ptr.hbm [resolvable:$true] %s442_s3 }
  0x13   : > { %v184_v0 = vld [vmem:[%s942_s1 + $0x38] sm:$0xff]  ;;  %v183_v1 = vld [vmem:[%s942_s1 + $0x30] sm:$0xff]  ;;  %v182_v2 = vld [vmem:[%s942_s1 + $0x28] sm:$0xff]  ;;  %s951_s25 = smov (!%p139_p10, %s510_s25), 63  ;;  %vm185_vm0 = vcmask 523264  }
  0x14   : > { %551 = vmatpush.msra.mxu2 %v184_v0  ;;  %552 = vmatpush.msra.mxu3 %v184_v0  ;;  %v181_v3 = vld [vmem:[%s942_s1 + $0x20] sm:$0xff]  ;;  %v180_v4 = vld [vmem:[%s942_s1 + $0x18] sm:$0xff]  ;;  %s511_s4 = sshll.u32 %s951_s25, 3  ;;  %v179_v5 = vld [vmem:[%s942_s1 + $0x10] sm:$0xff]  ;;  %s841_s25 = scalar_lea.vmem [#allocation2], %s509_s24 }
  0x15   : > { %290 = vmatpush.msra.mxu0 %v184_v0  ;;  %550 = vmatpush.msra.mxu1 %v184_v0  ;;  %v178_v6 = vld [vmem:[%s942_s1 + $0x8] sm:$0xff]  ;;  %s769_s17 = scalar_lea.vmem %s941_s0, %s511_s4  ;;  %v177_v7 = vld [vmem:[%s942_s1] sm:$0xff]  ;;  %s440_s30 = sshll.u32 %s841_s25, 4  ;;  %s441_s30 = int_to_ptr.vmem [resolvable:$true] %s440_s30 }
  0x16   : > { %554 = vmatpush.msra.mxu2 %v183_v1  ;;  %555 = vmatpush.msra.mxu3 %v183_v1  ;;  %v161_v8 = vld [vmem:[%s769_s17 + $0x80] sm:$0xff]  ;;  %v162_v12 = vld [vmem:[%s769_s17 + $0x88] sm:$0xff]  ;;  %v163_v16 = vld [vmem:[%s769_s17 + $0x90] sm:$0xff]  ;;  %s629_s4 = sshra.s32 %s443_s3, 4  ;;  %s630_s4 = int_to_ptr.hbm [resolvable:$true] %s629_s4 }
  0x17   : > { %291 = vmatpush.msra.mxu0 %v183_v1  ;;  %553 = vmatpush.msra.mxu1 %v183_v1  ;;  %v169_v9 = vld [vmem:[%s769_s17 + $0xc0] sm:$0xff]  ;;  %v170_v13 = vld [vmem:[%s769_s17 + $0xc8] sm:$0xff]  ;;  %v171_v17 = vld [vmem:[%s769_s17 + $0xd0] sm:$0xff]  ;;  %s631_s5 = scalar_lea.hbm %s630_s4, 256  ;;  %p636_p0 = scmp.lt.s32.totalorder %s630_s4, %s943_s2 }
  0x18   : > { %557 = vmatpush.msra.mxu2 %v182_v2  ;;  %558 = vmatpush.msra.mxu3 %v182_v2  ;;  %v145_v10 = vld [vmem:[%s769_s17] sm:$0xff]  ;;  %v146_v14 = vld [vmem:[%s769_s17 + $0x8] sm:$0xff]  ;;  %v147_v18 = vld [vmem:[%s769_s17 + $0x10] sm:$0xff]  ;;  %p632_p11 = scmp.ne.s32.totalorder %s630_s4, %s631_s5  ;;  %p637_p1 = scmp.lt.s32.totalorder %s635_s8, %s631_s5 }
  0x19   : > { %292 = vmatpush.msra.mxu0 %v182_v2  ;;  %556 = vmatpush.msra.mxu1 %v182_v2  ;;  %v153_v11 = vld [vmem:[%s769_s17 + $0x40] sm:$0xff]  ;;  %v154_v15 = vld [vmem:[%s769_s17 + $0x48] sm:$0xff]  ;;  %v155_v19 = vld [vmem:[%s769_s17 + $0x50] sm:$0xff] }
  0x1a   : > { %560 = vmatpush.msra.mxu2 %v181_v3  ;;  %561 = vmatpush.msra.mxu3 %v181_v3  ;;  %v164_v20 = vld [vmem:[%s769_s17 + $0x98] sm:$0xff]  ;;  %v165_v24 = vld [vmem:[%s769_s17 + $0xa0] sm:$0xff]  ;;  %v166_v28 = vld [vmem:[%s769_s17 + $0xa8] sm:$0xff]  ;;  %p633_p12 = pnand %p632_p11, %p734_p5  ;;  %p638_p2 = por %p637_p1, %p636_p0 }
  0x1b   : > { %293 = vmatpush.msra.mxu0 %v181_v3  ;;  %559 = vmatpush.msra.mxu1 %v181_v3  ;;  %v172_v21 = vld [vmem:[%s769_s17 + $0xd8] sm:$0xff]  ;;  %v173_v25 = vld [vmem:[%s769_s17 + $0xe0] sm:$0xff]  ;;  %v174_v29 = vld [vmem:[%s769_s17 + $0xe8] sm:$0xff] }
  0x1c   : > { %563 = vmatpush.msra.mxu2 %v180_v4  ;;  %564 = vmatpush.msra.mxu3 %v180_v4  ;;  %v148_v22 = vld [vmem:[%s769_s17 + $0x18] sm:$0xff]  ;;  %v149_v26 = vld [vmem:[%s769_s17 + $0x20] sm:$0xff]  ;;  %v150_v30 = vld [vmem:[%s769_s17 + $0x28] sm:$0xff]  ;;  %p634_p13 = pneg %p633_p12 }
  0x1d   : > { %294 = vmatpush.msra.mxu0 %v180_v4  ;;  %562 = vmatpush.msra.mxu1 %v180_v4  ;;  %v156_v23 = vld [vmem:[%s769_s17 + $0x58] sm:$0xff]  ;;  %v157_v27 = vld [vmem:[%s769_s17 + $0x60] sm:$0xff]  ;;  %v158_v31 = vld [vmem:[%s769_s17 + $0x68] sm:$0xff] }
  0x1e   : > { %566 = vmatpush.msra.mxu2 %v179_v5  ;;  %567 = vmatpush.msra.mxu3 %v179_v5  ;;  %v167_v32 = vld [vmem:[%s769_s17 + $0xb0] sm:$0xff]  ;;  %v168_v36 = vld [vmem:[%s769_s17 + $0xb8] sm:$0xff]  ;;  %p639_p3 = pnand %p638_p2, %p634_p13 }
  0x1f   : > { %295 = vmatpush.msra.mxu0 %v179_v5  ;;  %565 = vmatpush.msra.mxu1 %v179_v5  ;;  %v175_v33 = vld [vmem:[%s769_s17 + $0xf0] sm:$0xff]  ;;  %v176_v37 = vld [vmem:[%s769_s17 + $0xf8] sm:$0xff] }
  0x20   : > { %569 = vmatpush.msra.mxu2 %v178_v6  ;;  %570 = vmatpush.msra.mxu3 %v178_v6  ;;  %v151_v34 = vld [vmem:[%s769_s17 + $0x30] sm:$0xff]  ;;  %v152_v38 = vld [vmem:[%s769_s17 + $0x38] sm:$0xff] }
  0x21   : > { %296 = vmatpush.msra.mxu0 %v178_v6  ;;  %568 = vmatpush.msra.mxu1 %v178_v6  ;;  %v159_v35 = vld [vmem:[%s769_s17 + $0x70] sm:$0xff]  ;;  %v160_v39 = vld [vmem:[%s769_s17 + $0x78] sm:$0xff] }
  0x22   : > { %572 = vmatpush.msra.mxu2 %v177_v7  ;;  %573 = vmatpush.msra.mxu3 %v177_v7 }
  0x23   : > { %528 = vmatmul.msk.f32.vlgmr.msra.gmra.mxu2 %vm185_vm0, %v161_v8  ;;  %536 = vmatmul.msk.f32.vlgmr.msra.gmra.mxu3 %vm185_vm0, %v169_v9 }
  0x24   : > { %297 = vmatpush.msra.mxu0 %v177_v7  ;;  %571 = vmatpush.msra.mxu1 %v177_v7 }
  0x25   : > { %512 = vmatmul.msk.f32.vlgmr.msra.gmra.mxu0 %vm185_vm0, %v145_v10  ;;  %520 = vmatmul.msk.f32.vlgmr.msra.gmra.mxu1 %vm185_vm0, %v153_v11 }
  0x2b   : > { %529 = vmatmul.msk.f32.gmra.mxu2 %vm185_vm0, %v162_v12  ;;  %537 = vmatmul.msk.f32.gmra.mxu3 %vm185_vm0, %v170_v13 }
  0x2d   : > { %513 = vmatmul.msk.f32.gmra.mxu0 %vm185_vm0, %v146_v14  ;;  %521 = vmatmul.msk.f32.gmra.mxu1 %vm185_vm0, %v154_v15 }
  0x33   : > { %530 = vmatmul.msk.f32.gmra.mxu2 %vm185_vm0, %v163_v16  ;;  %538 = vmatmul.msk.f32.gmra.mxu3 %vm185_vm0, %v171_v17 }
  0x35   : > { %514 = vmatmul.msk.f32.gmra.mxu0 %vm185_vm0, %v147_v18  ;;  %522 = vmatmul.msk.f32.gmra.mxu1 %vm185_vm0, %v155_v19 }
  0x3b   : > { %531 = vmatmul.msk.f32.gmra.mxu2 %vm185_vm0, %v164_v20  ;;  %539 = vmatmul.msk.f32.gmra.mxu3 %vm185_vm0, %v172_v21 }
  0x3d   : > { %515 = vmatmul.msk.f32.gmra.mxu0 %vm185_vm0, %v148_v22  ;;  %523 = vmatmul.msk.f32.gmra.mxu1 %vm185_vm0, %v156_v23 }
  0x43   : > { %532 = vmatmul.msk.f32.gmra.mxu2 %vm185_vm0, %v165_v24  ;;  %540 = vmatmul.msk.f32.gmra.mxu3 %vm185_vm0, %v173_v25 }
  0x45   : > { %516 = vmatmul.msk.f32.gmra.mxu0 %vm185_vm0, %v149_v26  ;;  %524 = vmatmul.msk.f32.gmra.mxu1 %vm185_vm0, %v157_v27 }
  0x4b   : > { %533 = vmatmul.msk.f32.gmra.mxu2 %vm185_vm0, %v166_v28  ;;  %541 = vmatmul.msk.f32.gmra.mxu3 %vm185_vm0, %v174_v29 }
  0x4d   : > { %517 = vmatmul.msk.f32.gmra.mxu0 %vm185_vm0, %v150_v30  ;;  %525 = vmatmul.msk.f32.gmra.mxu1 %vm185_vm0, %v158_v31 }
  0x53   : > { %534 = vmatmul.msk.f32.gmra.mxu2 %vm185_vm0, %v167_v32  ;;  %542 = vmatmul.msk.f32.gmra.mxu3 %vm185_vm0, %v175_v33 }
  0x55   : > { %518 = vmatmul.msk.f32.gmra.mxu0 %vm185_vm0, %v151_v34  ;;  %526 = vmatmul.msk.f32.gmra.mxu1 %vm185_vm0, %v159_v35 }
  0x5b   : > { %535 = vmatmul.msk.f32.gmra.mxu2 %vm185_vm0, %v168_v36  ;;  %543 = vmatmul.msk.f32.gmra.mxu3 %vm185_vm0, %v176_v37 }
  0x5d   : > { %519 = vmatmul.msk.f32.gmra.mxu0 %vm185_vm0, %v152_v38  ;;  %527 = vmatmul.msk.f32.gmra.mxu1 %vm185_vm0, %v160_v39 }
  0xa2   : > { %v299_v40 = vpop.f32.mrf.mxu0  ;;  %v323_v41 = vpop.f32.mrf.mxu1 }
  0xa3   : > { %395 = vst.msk [vmem:[%s841_s25] sm:$0xff] %vm185_vm0, %v299_v40 }
  0xa4   : > { %403 = vst.msk [vmem:[%s841_s25 + $0x40] sm:$0xff] %vm185_vm0, %v323_v41 }
  0xa6   : > { %v347_v42 = vpop.f32.mrf.mxu2  ;;  %v371_v43 = vpop.f32.mrf.mxu3 }
  0xa7   : > { %411 = vst.msk [vmem:[%s841_s25 + $0x80] sm:$0xff] %vm185_vm0, %v347_v42 }
  0xa8   : > { %419 = vst.msk [vmem:[%s841_s25 + $0xc0] sm:$0xff] %vm185_vm0, %v371_v43 }
  0xaa   : > { %v302_v44 = vpop.f32.mrf.mxu0  ;;  %v326_v45 = vpop.f32.mrf.mxu1 }
  0xab   : > { %396 = vst.msk [vmem:[%s841_s25 + $0x8] sm:$0xff] %vm185_vm0, %v302_v44 }
  0xac   : > { %404 = vst.msk [vmem:[%s841_s25 + $0x48] sm:$0xff] %vm185_vm0, %v326_v45 }
  0xae   : > { %v350_v46 = vpop.f32.mrf.mxu2  ;;  %v374_v47 = vpop.f32.mrf.mxu3 }
  0xaf   : > { %412 = vst.msk [vmem:[%s841_s25 + $0x88] sm:$0xff] %vm185_vm0, %v350_v46 }
  0xb0   : > { %420 = vst.msk [vmem:[%s841_s25 + $0xc8] sm:$0xff] %vm185_vm0, %v374_v47 }
  0xb2   : > { %v305_v48 = vpop.f32.mrf.mxu0  ;;  %v329_v49 = vpop.f32.mrf.mxu1 }
  0xb3   : > { %397 = vst.msk [vmem:[%s841_s25 + $0x10] sm:$0xff] %vm185_vm0, %v305_v48 }
  0xb4   : > { %405 = vst.msk [vmem:[%s841_s25 + $0x50] sm:$0xff] %vm185_vm0, %v329_v49 }
  0xb6   : > { %v353_v50 = vpop.f32.mrf.mxu2  ;;  %v377_v51 = vpop.f32.mrf.mxu3 }
  0xb7   : > { %413 = vst.msk [vmem:[%s841_s25 + $0x90] sm:$0xff] %vm185_vm0, %v353_v50 }
  0xb8   : > { %421 = vst.msk [vmem:[%s841_s25 + $0xd0] sm:$0xff] %vm185_vm0, %v377_v51 }
  0xba   : > { %v308_v52 = vpop.f32.mrf.mxu0  ;;  %v332_v53 = vpop.f32.mrf.mxu1 }
  0xbb   : > { %398 = vst.msk [vmem:[%s841_s25 + $0x18] sm:$0xff] %vm185_vm0, %v308_v52 }
  0xbc   : > { %406 = vst.msk [vmem:[%s841_s25 + $0x58] sm:$0xff] %vm185_vm0, %v332_v53 }
  0xbe   : > { %v356_v54 = vpop.f32.mrf.mxu2  ;;  %v380_v55 = vpop.f32.mrf.mxu3 }
  0xbf   : > { %414 = vst.msk [vmem:[%s841_s25 + $0x98] sm:$0xff] %vm185_vm0, %v356_v54 }
  0xc0   : > { %422 = vst.msk [vmem:[%s841_s25 + $0xd8] sm:$0xff] %vm185_vm0, %v380_v55 }
  0xc2   : > { %v311_v56 = vpop.f32.mrf.mxu0  ;;  %v335_v57 = vpop.f32.mrf.mxu1 }
  0xc3   : > { %399 = vst.msk [vmem:[%s841_s25 + $0x20] sm:$0xff] %vm185_vm0, %v311_v56 }
  0xc4   : > { %407 = vst.msk [vmem:[%s841_s25 + $0x60] sm:$0xff] %vm185_vm0, %v335_v57 }
  0xc6   : > { %v359_v58 = vpop.f32.mrf.mxu2  ;;  %v383_v59 = vpop.f32.mrf.mxu3 }
  0xc7   : > { %415 = vst.msk [vmem:[%s841_s25 + $0xa0] sm:$0xff] %vm185_vm0, %v359_v58 }
  0xc8   : > { %423 = vst.msk [vmem:[%s841_s25 + $0xe0] sm:$0xff] %vm185_vm0, %v383_v59 }
  0xca   : > { %v314_v60 = vpop.f32.mrf.mxu0  ;;  %v338_v61 = vpop.f32.mrf.mxu1 }
  0xcb   : > { %400 = vst.msk [vmem:[%s841_s25 + $0x28] sm:$0xff] %vm185_vm0, %v314_v60 }
  0xcc   : > { %408 = vst.msk [vmem:[%s841_s25 + $0x68] sm:$0xff] %vm185_vm0, %v338_v61 }
  0xce   : > { %v362_v62 = vpop.f32.mrf.mxu2  ;;  %v386_v63 = vpop.f32.mrf.mxu3 }
  0xcf   : > { %416 = vst.msk [vmem:[%s841_s25 + $0xa8] sm:$0xff] %vm185_vm0, %v362_v62 }
  0xd0   : > { %424 = vst.msk [vmem:[%s841_s25 + $0xe8] sm:$0xff] %vm185_vm0, %v386_v63 }
  0xd2   : > { %v317_v0 = vpop.f32.mrf.mxu0  ;;  %v341_v1 = vpop.f32.mrf.mxu1 }
  0xd3   : > { %401 = vst.msk [vmem:[%s841_s25 + $0x30] sm:$0xff] %vm185_vm0, %v317_v0 }
  0xd4   : > { %409 = vst.msk [vmem:[%s841_s25 + $0x70] sm:$0xff] %vm185_vm0, %v341_v1 }
  0xd6   : > { %v365_v2 = vpop.f32.mrf.mxu2  ;;  %v389_v3 = vpop.f32.mrf.mxu3 }
  0xd7   : > { %417 = vst.msk [vmem:[%s841_s25 + $0xb0] sm:$0xff] %vm185_vm0, %v365_v2 }
  0xd8   : > { %425 = vst.msk [vmem:[%s841_s25 + $0xf0] sm:$0xff] %vm185_vm0, %v389_v3 }
  0xda   : > { %v320_v4 = vpop.f32.mrf.mxu0  ;;  %v344_v5 = vpop.f32.mrf.mxu1 }
  0xdb   : > { %402 = vst.msk [vmem:[%s841_s25 + $0x38] sm:$0xff] %vm185_vm0, %v320_v4 }
  0xdc   : > { %410 = vst.msk [vmem:[%s841_s25 + $0x78] sm:$0xff] %vm185_vm0, %v344_v5 }
  0xde   : > { %v368_v6 = vpop.f32.mrf.mxu2  ;;  %v392_v7 = vpop.f32.mrf.mxu3 }
  0xdf   : > { %418 = vst.msk [vmem:[%s841_s25 + $0xb8] sm:$0xff] %vm185_vm0, %v368_v6 }
  0xe0   : > { %426 = vst.msk [vmem:[%s841_s25 + $0xf8] sm:$0xff] %vm185_vm0, %v392_v7 }
  0xe1   : > { %642 = shalt.err (!%p639_p3)
}
  0xe2   : > { %s679_s17 = smov 128   ;;  %s680_s21 = smov 8  }
  0xe3   : > { %574 = dma.vmem_to_hbm [thread:$0]  (%p734_p5), %s441_s30, 4096, %s443_s3, %s428_s13, %s679_s17, %s679_s17, %s680_s21  }
  0xe4 PF: > { %p580_p4 = scmp.ge.s32.totalorder %s677_s12, 2  ;;  %s457_s22 = sand.u32 1, %s665_s9  }
  0xe5   : > { %s458_s23 = scalar_lea.sflag [#allocation3], %s457_s22 }
  0xe6   : > { %p577_p7 = pnand %p580_p4, %p738_p6 }
  0xe8   : > { %p578_p8 = pneg %p577_p7 }
  0xea   : > { %660 = dma.done.wait (%p578_p8), %s458_s23, 4096  }
  0xeb   : > { %662 = vsyncadd (%p578_p8), %s458_s23, 4294963200  ;;  %p12_p9 = scmp.ge.s32.totalorder %s721_s15, 4   ;;  %s946_s9 = smov %s669_s10 }
  0xec   : > { %s947_s10 = smov %s673_s11  ;;  %s948_s11 = smov %s732_s18 }
  0xed   : > { %s949_s12 = smov %s721_s15  ;;  %14 = sbr.rel (!%p12_p9) target bundleno = 3 (0x3), region = 63 }
  0xf2   :  { %464 = vsyncpa [#allocation3], 1 }
  0xf3   :  { %466 = vsyncpa [#allocation3 + $0x1], 1 }

// kernel: attention_base_forward.5
= control target key start
LH: loop header
LB: loop body
LE: loop exit
PB: predicated region body
PF: predicated region fallthrough
CT: control target
= control target key end

     0   :  { %s4972_s9 = smov 0   ;;  %s7933_s0 = inlined_call_operand.vmem [shape: f32[512,1728], index: 0, kind: input, shape index: {}]   ;;  %s7934_s1 = inlined_call_operand.vmem [shape: f32[1728,192], index: 1, kind: input, shape index: {}]   ;;  %s7935_s2 = inlined_call_operand.vmem [shape: f32[512,192], index: 2, kind: output, shape index: {}]  }
   0x1 LB: > { %s4415_s10 = sadd.s32 4294967295, %s4955_s9   ;;  %p4419_p0 = scmp.ge.s32.totalorder %s4955_s9, 1  ;;  %s4955_s9 = sphi %s4972_s9, %s12_s9  }
   0x2   : > { %p114_p1 = scmp.lt.s32.totalorder %s4955_s9, 3 }
   0x4   : > { %p115_p2 = pnand %p4419_p0, %p114_p1 }
   0x5   : > { %s5066_s15 = sshll.u32 (!%p115_p2), %s4415_s10, 5 }
   0x6   : > { %118 = sbr.rel (%p115_p2) target bundleno = 1966 (0x7ae), region = 28  ;;  %p139_p3 = scmp.lt.s32.totalorder (!%p115_p2), %s5066_s15, 63 }
   0xb   : > { %v630_v0 = vld [vmem:[%s7934_s1 + $0xf0] sm:$0xff]  ;;  %v628_v3 = vld [vmem:[%s7934_s1 + $0xe0] sm:$0xff]  ;;  %s7937_s15 = smov (!%p139_p3, %s5066_s15), 63  ;;  %vm1032_vm0 = vcmask 523264  }
   0xc   : > { %v694_v1 = vld [vmem:[%s7934_s1 + $0x2f0] sm:$0xff]  ;;  %1129 = vmatpush.msra.mxu0 %v630_v0  ;;  %v692_v5 = vld [vmem:[%s7934_s1 + $0x2e0] sm:$0xff]  ;;  %s4492_s5 = smul.u32 112, %s7937_s15  ;;  %s4491_s11 = sshll.u32 %s7937_s15, 4 }
   0xd   : > { %v726_v2 = vld [vmem:[%s7934_s1 + $0x3f0] sm:$0xff]  ;;  %1355 = vmatpush.msra.mxu2 %v694_v1  ;;  %v724_v6 = vld [vmem:[%s7934_s1 + $0x3e0] sm:$0xff]  ;;  %s6586_s14 = scalar_lea.vmem %s7935_s2, %s4491_s11 }
   0xe   : > { %v662_v4 = vld [vmem:[%s7934_s1 + $0x1f0] sm:$0xff]  ;;  %1468 = vmatpush.msra.mxu3 %v726_v2  ;;  %v660_v8 = vld [vmem:[%s7934_s1 + $0x1e0] sm:$0xff]  ;;  %1130 = vmatpush.msra.mxu0 %v628_v3  ;;  %s5168_s26 = scalar_lea.vmem %s7933_s0, %s4492_s5 }
   0xf   : > { %1242 = vmatpush.msra.mxu1 %v662_v4  ;;  %v626_v7 = vld [vmem:[%s7934_s1 + $0xd0] sm:$0xff]  ;;  %1356 = vmatpush.msra.mxu2 %v692_v5  ;;  %v624_v11 = vld [vmem:[%s7934_s1 + $0xc0] sm:$0xff]  ;;  %v155_v1 = vld [vmem:[%s5168_s26 + $0x18] sm:$0xff] }
  0x10   : > { %v690_v9 = vld [vmem:[%s7934_s1 + $0x2d0] sm:$0xff]  ;;  %1469 = vmatpush.msra.mxu3 %v724_v6  ;;  %v688_v13 = vld [vmem:[%s7934_s1 + $0x2c0] sm:$0xff]  ;;  %1131 = vmatpush.msra.mxu0 %v626_v7  ;;  %v153_v4 = vld [vmem:[%s5168_s26 + $0x8] sm:$0xff] }
  0x11   : > { %v722_v10 = vld [vmem:[%s7934_s1 + $0x3d0] sm:$0xff]  ;;  %1243 = vmatpush.msra.mxu1 %v660_v8  ;;  %1357 = vmatpush.msra.mxu2 %v690_v9  ;;  %v720_v14 = vld [vmem:[%s7934_s1 + $0x3c0] sm:$0xff] }
  0x12   : > { %v658_v12 = vld [vmem:[%s7934_s1 + $0x1d0] sm:$0xff]  ;;  %v656_v15 = vld [vmem:[%s7934_s1 + $0x1c0] sm:$0xff]  ;;  %1470 = vmatpush.msra.mxu3 %v722_v10  ;;  %1132 = vmatpush.msra.mxu0 %v624_v11 }
  0x13   : > { %1244 = vmatpush.msra.mxu1 %v658_v12  ;;  %v622_v16 = vld [vmem:[%s7934_s1 + $0xb0] sm:$0xff]  ;;  %1358 = vmatpush.msra.mxu2 %v688_v13  ;;  %v620_v20 = vld [vmem:[%s7934_s1 + $0xa0] sm:$0xff] }
  0x14   : > { %v686_v17 = vld [vmem:[%s7934_s1 + $0x2b0] sm:$0xff]  ;;  %1471 = vmatpush.msra.mxu3 %v720_v14  ;;  %v684_v21 = vld [vmem:[%s7934_s1 + $0x2a0] sm:$0xff]  ;;  %1133 = vmatpush.msra.mxu0 %v622_v16 }
  0x15   : > { %v718_v18 = vld [vmem:[%s7934_s1 + $0x3b0] sm:$0xff]  ;;  %1245 = vmatpush.msra.mxu1 %v656_v15  ;;  %1359 = vmatpush.msra.mxu2 %v686_v17  ;;  %v716_v22 = vld [vmem:[%s7934_s1 + $0x3a0] sm:$0xff]  ;;  %v169_v17 = vld [vmem:[%s5168_s26 + $0x88] sm:$0xff] }
  0x16   : > { %v654_v19 = vld [vmem:[%s7934_s1 + $0x1b0] sm:$0xff]  ;;  %v652_v23 = vld [vmem:[%s7934_s1 + $0x1a0] sm:$0xff]  ;;  %1472 = vmatpush.msra.mxu3 %v718_v18  ;;  %1134 = vmatpush.msra.mxu0 %v620_v20 }
  0x17   : > { %1246 = vmatpush.msra.mxu1 %v654_v19  ;;  %v618_v24 = vld [vmem:[%s7934_s1 + $0x90] sm:$0xff]  ;;  %1360 = vmatpush.msra.mxu2 %v684_v21  ;;  %v616_v28 = vld [vmem:[%s7934_s1 + $0x80] sm:$0xff]  ;;  %v167_v19 = vld [vmem:[%s5168_s26 + $0x78] sm:$0xff] }
  0x18   : > { %v682_v25 = vld [vmem:[%s7934_s1 + $0x290] sm:$0xff]  ;;  %1473 = vmatpush.msra.mxu3 %v716_v22  ;;  %v680_v29 = vld [vmem:[%s7934_s1 + $0x280] sm:$0xff]  ;;  %1135 = vmatpush.msra.mxu0 %v618_v24  ;;  %v183_v22 = vld [vmem:[%s5168_s26 + $0xf8] sm:$0xff] }
  0x19   : > { %v714_v26 = vld [vmem:[%s7934_s1 + $0x390] sm:$0xff]  ;;  %1247 = vmatpush.msra.mxu1 %v652_v23  ;;  %1361 = vmatpush.msra.mxu2 %v682_v25  ;;  %v712_v30 = vld [vmem:[%s7934_s1 + $0x380] sm:$0xff]  ;;  %v181_v23 = vld [vmem:[%s5168_s26 + $0xe8] sm:$0xff] }
  0x1a   : > { %v650_v27 = vld [vmem:[%s7934_s1 + $0x190] sm:$0xff]  ;;  %v648_v31 = vld [vmem:[%s7934_s1 + $0x180] sm:$0xff]  ;;  %1474 = vmatpush.msra.mxu3 %v714_v26  ;;  %1136 = vmatpush.msra.mxu0 %v616_v28 }
  0x1b   : > { %1248 = vmatpush.msra.mxu1 %v650_v27  ;;  %v614_v32 = vld [vmem:[%s7934_s1 + $0x70] sm:$0xff]  ;;  %1362 = vmatpush.msra.mxu2 %v680_v29  ;;  %v612_v36 = vld [vmem:[%s7934_s1 + $0x60] sm:$0xff] }
  0x1c   : > { %v678_v33 = vld [vmem:[%s7934_s1 + $0x270] sm:$0xff]  ;;  %1475 = vmatpush.msra.mxu3 %v712_v30  ;;  %v676_v37 = vld [vmem:[%s7934_s1 + $0x260] sm:$0xff]  ;;  %1137 = vmatpush.msra.mxu0 %v614_v32  ;;  %v197_v30 = vld [vmem:[%s5168_s26 + $0x168] sm:$0xff] }
  0x1d   : > { %v710_v34 = vld [vmem:[%s7934_s1 + $0x370] sm:$0xff]  ;;  %1249 = vmatpush.msra.mxu1 %v648_v31  ;;  %1363 = vmatpush.msra.mxu2 %v678_v33  ;;  %v708_v38 = vld [vmem:[%s7934_s1 + $0x360] sm:$0xff]  ;;  %v195_v31 = vld [vmem:[%s5168_s26 + $0x158] sm:$0xff] }
  0x1e   : > { %v646_v35 = vld [vmem:[%s7934_s1 + $0x170] sm:$0xff]  ;;  %v644_v39 = vld [vmem:[%s7934_s1 + $0x160] sm:$0xff]  ;;  %1476 = vmatpush.msra.mxu3 %v710_v34  ;;  %1138 = vmatpush.msra.mxu0 %v612_v36  ;;  %v211_v34 = vld [vmem:[%s5168_s26 + $0x1d8] sm:$0xff] }
  0x1f   : > { %1250 = vmatpush.msra.mxu1 %v646_v35  ;;  %v610_v40 = vld [vmem:[%s7934_s1 + $0x50] sm:$0xff]  ;;  %1364 = vmatpush.msra.mxu2 %v676_v37  ;;  %v608_v44 = vld [vmem:[%s7934_s1 + $0x40] sm:$0xff]  ;;  %v209_v35 = vld [vmem:[%s5168_s26 + $0x1c8] sm:$0xff] }
  0x20   : > { %v674_v41 = vld [vmem:[%s7934_s1 + $0x250] sm:$0xff]  ;;  %1477 = vmatpush.msra.mxu3 %v708_v38  ;;  %v672_v45 = vld [vmem:[%s7934_s1 + $0x240] sm:$0xff]  ;;  %1139 = vmatpush.msra.mxu0 %v610_v40 }
  0x21   : > { %v706_v42 = vld [vmem:[%s7934_s1 + $0x350] sm:$0xff]  ;;  %1251 = vmatpush.msra.mxu1 %v644_v39  ;;  %1365 = vmatpush.msra.mxu2 %v674_v41  ;;  %v704_v46 = vld [vmem:[%s7934_s1 + $0x340] sm:$0xff] }
  0x22   : > { %v642_v43 = vld [vmem:[%s7934_s1 + $0x150] sm:$0xff]  ;;  %v640_v47 = vld [vmem:[%s7934_s1 + $0x140] sm:$0xff]  ;;  %1478 = vmatpush.msra.mxu3 %v706_v42  ;;  %1140 = vmatpush.msra.mxu0 %v608_v44  ;;  %v225_v42 = vld [vmem:[%s5168_s26 + $0x248] sm:$0xff] }
  0x23   : > { %1252 = vmatpush.msra.mxu1 %v642_v43  ;;  %v606_v48 = vld [vmem:[%s7934_s1 + $0x30] sm:$0xff]  ;;  %1366 = vmatpush.msra.mxu2 %v672_v45  ;;  %v604_v52 = vld [vmem:[%s7934_s1 + $0x20] sm:$0xff]  ;;  %v223_v43 = vld [vmem:[%s5168_s26 + $0x238] sm:$0xff] }
  0x24   : > { %v670_v49 = vld [vmem:[%s7934_s1 + $0x230] sm:$0xff]  ;;  %1479 = vmatpush.msra.mxu3 %v704_v46  ;;  %v668_v53 = vld [vmem:[%s7934_s1 + $0x220] sm:$0xff]  ;;  %1141 = vmatpush.msra.mxu0 %v606_v48  ;;  %v239_v46 = vld [vmem:[%s5168_s26 + $0x2b8] sm:$0xff] }
  0x25   : > { %v702_v50 = vld [vmem:[%s7934_s1 + $0x330] sm:$0xff]  ;;  %1253 = vmatpush.msra.mxu1 %v640_v47  ;;  %1367 = vmatpush.msra.mxu2 %v670_v49  ;;  %v700_v54 = vld [vmem:[%s7934_s1 + $0x320] sm:$0xff]  ;;  %v237_v47 = vld [vmem:[%s5168_s26 + $0x2a8] sm:$0xff] }
  0x26   : > { %v638_v51 = vld [vmem:[%s7934_s1 + $0x130] sm:$0xff]  ;;  %v636_v55 = vld [vmem:[%s7934_s1 + $0x120] sm:$0xff]  ;;  %1480 = vmatpush.msra.mxu3 %v702_v50  ;;  %1142 = vmatpush.msra.mxu0 %v604_v52 }
  0x27   : > { %1254 = vmatpush.msra.mxu1 %v638_v51  ;;  %v602_v56 = vld [vmem:[%s7934_s1 + $0x10] sm:$0xff]  ;;  %1368 = vmatpush.msra.mxu2 %v668_v53  ;;  %v600_v60 = vld [vmem:[%s7934_s1] sm:$0xff] }
  0x28   : > { %v666_v57 = vld [vmem:[%s7934_s1 + $0x210] sm:$0xff]  ;;  %1481 = vmatpush.msra.mxu3 %v700_v54  ;;  %v664_v61 = vld [vmem:[%s7934_s1 + $0x200] sm:$0xff]  ;;  %1143 = vmatpush.msra.mxu0 %v602_v56  ;;  %v253_v54 = vld [vmem:[%s5168_s26 + $0x328] sm:$0xff] }
  0x29   : > { %v698_v58 = vld [vmem:[%s7934_s1 + $0x310] sm:$0xff]  ;;  %1255 = vmatpush.msra.mxu1 %v636_v55  ;;  %1369 = vmatpush.msra.mxu2 %v666_v57  ;;  %v696_v62 = vld [vmem:[%s7934_s1 + $0x300] sm:$0xff]  ;;  %v251_v55 = vld [vmem:[%s5168_s26 + $0x318] sm:$0xff] }
  0x2a   : > { %v634_v59 = vld [vmem:[%s7934_s1 + $0x110] sm:$0xff]  ;;  %v152_v63 = vld [vmem:[%s5168_s26] sm:$0xff]  ;;  %1482 = vmatpush.msra.mxu3 %v698_v58  ;;  %1144 = vmatpush.msra.mxu0 %v600_v60  ;;  %v267_v58 = vld [vmem:[%s5168_s26 + $0x398] sm:$0xff] }
  0x2b   : > { %1256 = vmatpush.msra.mxu1 %v634_v59  ;;  %v154_v0 = vld [vmem:[%s5168_s26 + $0x10] sm:$0xff]  ;;  %1370 = vmatpush.msra.mxu2 %v664_v61  ;;  %v632_v3 = vld [vmem:[%s7934_s1 + $0x100] sm:$0xff]  ;;  %v265_v59 = vld [vmem:[%s5168_s26 + $0x388] sm:$0xff] }
  0x2c   : > { %v822_v2 = vld [vmem:[%s7934_s1 + $0x6f0] sm:$0xff]  ;;  %1483 = vmatpush.msra.mxu3 %v696_v62  ;;  %1145 = vmatmul.f32.vlgmr.msra.gmra.mxu0 %v152_v63  ;;  %v820_v8 = vld [vmem:[%s7934_s1 + $0x6e0] sm:$0xff] }
  0x2d   : > { %v758_v5 = vld [vmem:[%s7934_s1 + $0x4f0] sm:$0xff]  ;;  %1371 = vmatmul.f32.vlgmr.msra.gmra.mxu2 %v154_v0  ;;  %1484 = vmatmul.f32.vlgmr.msra.gmra.mxu3 %v155_v1  ;;  %v756_v9 = vld [vmem:[%s7934_s1 + $0x4e0] sm:$0xff] }
  0x2e   : > { %v854_v6 = vld [vmem:[%s7934_s1 + $0x7f0] sm:$0xff]  ;;  %1807 = vmatpush.msrb.mxu2 %v822_v2  ;;  %1257 = vmatpush.msra.mxu1 %v632_v3  ;;  %v852_v10 = vld [vmem:[%s7934_s1 + $0x7e0] sm:$0xff]  ;;  %v281_v2 = vld [vmem:[%s5168_s26 + $0x408] sm:$0xff] }
  0x2f   : > { %v790_v7 = vld [vmem:[%s7934_s1 + $0x5f0] sm:$0xff]  ;;  %1258 = vmatmul.f32.vlgmr.msra.gmra.mxu1 %v153_v4  ;;  %1581 = vmatpush.msrb.mxu0 %v758_v5  ;;  %v788_v11 = vld [vmem:[%s7934_s1 + $0x5e0] sm:$0xff]  ;;  %v279_v3 = vld [vmem:[%s5168_s26 + $0x3f8] sm:$0xff] }
  0x30   : > { %1920 = vmatpush.msrb.mxu3 %v854_v6  ;;  %1694 = vmatpush.msrb.mxu1 %v790_v7  ;;  %v818_v12 = vld [vmem:[%s7934_s1 + $0x6d0] sm:$0xff]  ;;  %v168_v16 = vld [vmem:[%s5168_s26 + $0x80] sm:$0xff]  ;;  %v295_v6 = vld [vmem:[%s5168_s26 + $0x478] sm:$0xff] }
  0x31   : > { %v754_v13 = vld [vmem:[%s7934_s1 + $0x4d0] sm:$0xff]  ;;  %1808 = vmatpush.msrb.mxu2 %v820_v8  ;;  %1582 = vmatpush.msrb.mxu0 %v756_v9  ;;  %v180_v20 = vld [vmem:[%s5168_s26 + $0xe0] sm:$0xff]  ;;  %v293_v7 = vld [vmem:[%s5168_s26 + $0x468] sm:$0xff] }
  0x32   : > { %v166_v14 = vld [vmem:[%s5168_s26 + $0x70] sm:$0xff]  ;;  %1921 = vmatpush.msrb.mxu3 %v852_v10  ;;  %1695 = vmatpush.msrb.mxu1 %v788_v11  ;;  %v816_v24 = vld [vmem:[%s7934_s1 + $0x6c0] sm:$0xff] }
  0x33   : > { %v850_v15 = vld [vmem:[%s7934_s1 + $0x7d0] sm:$0xff]  ;;  %1809 = vmatpush.msrb.mxu2 %v818_v12  ;;  %1583 = vmatpush.msrb.mxu0 %v754_v13  ;;  %v752_v25 = vld [vmem:[%s7934_s1 + $0x4c0] sm:$0xff] }
  0x34   : > { %v786_v18 = vld [vmem:[%s7934_s1 + $0x5d0] sm:$0xff]  ;;  %1148 = vmatmul.f32.gmra.mxu0 %v166_v14  ;;  %1922 = vmatpush.msrb.mxu3 %v850_v15  ;;  %v848_v26 = vld [vmem:[%s7934_s1 + $0x7c0] sm:$0xff]  ;;  %v309_v14 = vld [vmem:[%s5168_s26 + $0x4e8] sm:$0xff] }
  0x35   : > { %1374 = vmatmul.f32.gmra.mxu2 %v168_v16  ;;  %1487 = vmatmul.f32.gmra.mxu3 %v169_v17  ;;  %v182_v21 = vld [vmem:[%s5168_s26 + $0xf0] sm:$0xff]  ;;  %v784_v27 = vld [vmem:[%s7934_s1 + $0x5c0] sm:$0xff]  ;;  %v307_v15 = vld [vmem:[%s5168_s26 + $0x4d8] sm:$0xff] }
  0x36   : > { %1696 = vmatpush.msrb.mxu1 %v786_v18  ;;  %1810 = vmatpush.msrb.mxu2 %v816_v24  ;;  %v194_v28 = vld [vmem:[%s5168_s26 + $0x150] sm:$0xff]  ;;  %v196_v29 = vld [vmem:[%s5168_s26 + $0x160] sm:$0xff]  ;;  %v323_v18 = vld [vmem:[%s5168_s26 + $0x558] sm:$0xff] }
  0x37   : > { %1261 = vmatmul.f32.gmra.mxu1 %v167_v19  ;;  %1584 = vmatpush.msrb.mxu0 %v752_v25  ;;  %v208_v32 = vld [vmem:[%s5168_s26 + $0x1c0] sm:$0xff]  ;;  %v210_v33 = vld [vmem:[%s5168_s26 + $0x1d0] sm:$0xff]  ;;  %v321_v19 = vld [vmem:[%s5168_s26 + $0x548] sm:$0xff] }
  0x38   : > { %1923 = vmatpush.msrb.mxu3 %v848_v26  ;;  %1697 = vmatpush.msrb.mxu1 %v784_v27  ;;  %v814_v36 = vld [vmem:[%s7934_s1 + $0x6b0] sm:$0xff]  ;;  %v224_v41 = vld [vmem:[%s5168_s26 + $0x240] sm:$0xff]  ;;  %v337_v25 = vld [vmem:[%s5168_s26 + $0x5c8] sm:$0xff] }
  0x39   : > { %1811 = vmatpush.msrb.mxu2 %v814_v36  ;;  %v750_v37 = vld [vmem:[%s7934_s1 + $0x4b0] sm:$0xff]  ;;  %v236_v44 = vld [vmem:[%s5168_s26 + $0x2a0] sm:$0xff]  ;;  %v335_v27 = vld [vmem:[%s5168_s26 + $0x5b8] sm:$0xff] }
  0x3a   : > { %v846_v38 = vld [vmem:[%s7934_s1 + $0x7b0] sm:$0xff]  ;;  %1585 = vmatpush.msrb.mxu0 %v750_v37  ;;  %v812_v48 = vld [vmem:[%s7934_s1 + $0x6a0] sm:$0xff]  ;;  %v365_v37 = vld [vmem:[%s5168_s26 + $0x6a8] sm:$0xff] }
  0x3b   : > { %v782_v39 = vld [vmem:[%s7934_s1 + $0x5b0] sm:$0xff]  ;;  %1924 = vmatpush.msrb.mxu3 %v846_v38  ;;  %1812 = vmatpush.msrb.mxu2 %v812_v48  ;;  %v748_v49 = vld [vmem:[%s7934_s1 + $0x4a0] sm:$0xff] }
  0x3c   : > { %1151 = vmatmul.f32.gmra.mxu0 %v180_v20  ;;  %v222_v40 = vld [vmem:[%s5168_s26 + $0x230] sm:$0xff]  ;;  %1698 = vmatpush.msrb.mxu1 %v782_v39  ;;  %v844_v50 = vld [vmem:[%s7934_s1 + $0x7a0] sm:$0xff]  ;;  %v363_v39 = vld [vmem:[%s5168_s26 + $0x698] sm:$0xff] }
  0x3d   : > { %1377 = vmatmul.f32.gmra.mxu2 %v182_v21  ;;  %1490 = vmatmul.f32.gmra.mxu3 %v183_v22  ;;  %v238_v45 = vld [vmem:[%s5168_s26 + $0x2b0] sm:$0xff]  ;;  %v780_v51 = vld [vmem:[%s7934_s1 + $0x5a0] sm:$0xff] }
  0x3e   : > { %1586 = vmatpush.msrb.mxu0 %v748_v49  ;;  %1925 = vmatpush.msrb.mxu3 %v844_v50  ;;  %v250_v52 = vld [vmem:[%s5168_s26 + $0x310] sm:$0xff]  ;;  %v252_v53 = vld [vmem:[%s5168_s26 + $0x320] sm:$0xff] }
  0x3f   : > { %1264 = vmatmul.f32.gmra.mxu1 %v181_v23  ;;  %v264_v56 = vld [vmem:[%s5168_s26 + $0x380] sm:$0xff]  ;;  %v266_v57 = vld [vmem:[%s5168_s26 + $0x390] sm:$0xff] }
  0x40   : > { %1699 = vmatpush.msrb.mxu1 %v780_v51  ;;  %v810_v60 = vld [vmem:[%s7934_s1 + $0x690] sm:$0xff]  ;;  %v280_v1 = vld [vmem:[%s5168_s26 + $0x400] sm:$0xff] }
  0x41   : > { %1813 = vmatpush.msrb.mxu2 %v810_v60  ;;  %v746_v61 = vld [vmem:[%s7934_s1 + $0x490] sm:$0xff]  ;;  %v292_v4 = vld [vmem:[%s5168_s26 + $0x460] sm:$0xff]  ;;  %v391_v60 = vld [vmem:[%s5168_s26 + $0x778] sm:$0xff] }
  0x42   : > { %v842_v62 = vld [vmem:[%s7934_s1 + $0x790] sm:$0xff]  ;;  %1587 = vmatpush.msrb.mxu0 %v746_v61  ;;  %v808_v8 = vld [vmem:[%s7934_s1 + $0x680] sm:$0xff] }
  0x43   : > { %v778_v63 = vld [vmem:[%s7934_s1 + $0x590] sm:$0xff]  ;;  %1926 = vmatpush.msrb.mxu3 %v842_v62  ;;  %1814 = vmatpush.msrb.mxu2 %v808_v8  ;;  %v744_v9 = vld [vmem:[%s7934_s1 + $0x480] sm:$0xff] }
  0x44   : > { %1154 = vmatmul.f32.gmra.mxu0 %v194_v28  ;;  %v278_v0 = vld [vmem:[%s5168_s26 + $0x3f0] sm:$0xff]  ;;  %1700 = vmatpush.msrb.mxu1 %v778_v63  ;;  %v840_v10 = vld [vmem:[%s7934_s1 + $0x780] sm:$0xff] }
  0x45   : > { %1380 = vmatmul.f32.gmra.mxu2 %v196_v29  ;;  %1493 = vmatmul.f32.gmra.mxu3 %v197_v30  ;;  %v294_v5 = vld [vmem:[%s5168_s26 + $0x470] sm:$0xff]  ;;  %v776_v11 = vld [vmem:[%s7934_s1 + $0x580] sm:$0xff]  ;;  %v351_v30 = vld [vmem:[%s5168_s26 + $0x638] sm:$0xff] }
  0x46   : > { %1588 = vmatpush.msrb.mxu0 %v744_v9  ;;  %1927 = vmatpush.msrb.mxu3 %v840_v10  ;;  %v306_v12 = vld [vmem:[%s5168_s26 + $0x4d0] sm:$0xff]  ;;  %v308_v13 = vld [vmem:[%s5168_s26 + $0x4e0] sm:$0xff] }
  0x47   : > { %1267 = vmatmul.f32.gmra.mxu1 %v195_v31  ;;  %v320_v16 = vld [vmem:[%s5168_s26 + $0x540] sm:$0xff]  ;;  %v322_v17 = vld [vmem:[%s5168_s26 + $0x550] sm:$0xff]  ;;  %v349_v31 = vld [vmem:[%s5168_s26 + $0x628] sm:$0xff] }
  0x48   : > { %1701 = vmatpush.msrb.mxu1 %v776_v11  ;;  %v806_v20 = vld [vmem:[%s7934_s1 + $0x670] sm:$0xff]  ;;  %v336_v24 = vld [vmem:[%s5168_s26 + $0x5c0] sm:$0xff] }
  0x49   : > { %1815 = vmatpush.msrb.mxu2 %v806_v20  ;;  %v742_v21 = vld [vmem:[%s7934_s1 + $0x470] sm:$0xff]  ;;  %v348_v28 = vld [vmem:[%s5168_s26 + $0x620] sm:$0xff] }
  0x4a   : > { %v838_v22 = vld [vmem:[%s7934_s1 + $0x770] sm:$0xff]  ;;  %1589 = vmatpush.msrb.mxu0 %v742_v21  ;;  %v364_v36 = vld [vmem:[%s5168_s26 + $0x6a0] sm:$0xff] }
  0x4b   : > { %1928 = vmatpush.msrb.mxu3 %v838_v22  ;;  %v334_v23 = vld [vmem:[%s5168_s26 + $0x5b0] sm:$0xff]  ;;  %v772_v38 = vld [vmem:[%s7934_s1 + $0x560] sm:$0xff]  ;;  %v419_v22 = vld [vmem:[%s5168_s26 + $0x858] sm:$0xff] }
  0x4c   : > { %1157 = vmatmul.f32.gmra.mxu0 %v208_v32  ;;  %v774_v26 = vld [vmem:[%s7934_s1 + $0x570] sm:$0xff]  ;;  %v804_v32 = vld [vmem:[%s7934_s1 + $0x660] sm:$0xff] }
  0x4d   : > { %1383 = vmatmul.f32.gmra.mxu2 %v210_v33  ;;  %1496 = vmatmul.f32.gmra.mxu3 %v211_v34  ;;  %v350_v29 = vld [vmem:[%s5168_s26 + $0x630] sm:$0xff]  ;;  %v740_v33 = vld [vmem:[%s7934_s1 + $0x460] sm:$0xff] }
  0x4e   : > { %1702 = vmatpush.msrb.mxu1 %v774_v26  ;;  %1816 = vmatpush.msrb.mxu2 %v804_v32  ;;  %v836_v34 = vld [vmem:[%s7934_s1 + $0x760] sm:$0xff]  ;;  %v738_v48 = vld [vmem:[%s7934_s1 + $0x450] sm:$0xff] }
  0x4f   : > { %1270 = vmatmul.f32.gmra.mxu1 %v209_v35  ;;  %1590 = vmatpush.msrb.mxu0 %v740_v33  ;;  %v362_v35 = vld [vmem:[%s5168_s26 + $0x690] sm:$0xff]  ;;  %v800_v8 = vld [vmem:[%s7934_s1 + $0x640] sm:$0xff]  ;;  %v433_v33 = vld [vmem:[%s5168_s26 + $0x8c8] sm:$0xff] }
  0x50   : > { %1929 = vmatpush.msrb.mxu3 %v836_v34  ;;  %1703 = vmatpush.msrb.mxu1 %v772_v38  ;;  %v834_v49 = vld [vmem:[%s7934_s1 + $0x750] sm:$0xff]  ;;  %v736_v10 = vld [vmem:[%s7934_s1 + $0x440] sm:$0xff] }
  0x51   : > { %1591 = vmatpush.msrb.mxu0 %v738_v48  ;;  %v832_v11 = vld [vmem:[%s7934_s1 + $0x740] sm:$0xff]  ;;  %v798_v34 = vld [vmem:[%s7934_s1 + $0x630] sm:$0xff]  ;;  %v447_v48 = vld [vmem:[%s5168_s26 + $0x938] sm:$0xff] }
  0x52   : > { %1930 = vmatpush.msrb.mxu3 %v834_v49  ;;  %v768_v20 = vld [vmem:[%s7934_s1 + $0x540] sm:$0xff] }
  0x53   : > { %1592 = vmatpush.msrb.mxu0 %v736_v10  ;;  %v764_v10 = vld [vmem:[%s7934_s1 + $0x520] sm:$0xff] }
  0x54   : > { %1160 = vmatmul.f32.gmra.mxu0 %v222_v40  ;;  %1931 = vmatpush.msrb.mxu3 %v832_v11 }
  0x55   : > { %1386 = vmatmul.f32.gmra.mxu2 %v224_v41  ;;  %1499 = vmatmul.f32.gmra.mxu3 %v225_v42  ;;  %v376_v41 = vld [vmem:[%s5168_s26 + $0x700] sm:$0xff]  ;;  %v378_v42 = vld [vmem:[%s5168_s26 + $0x710] sm:$0xff] }
  0x57   : > { %1273 = vmatmul.f32.gmra.mxu1 %v223_v43  ;;  %v379_v43 = vld [vmem:[%s5168_s26 + $0x718] sm:$0xff] }
  0x5c   : > { %1163 = vmatmul.f32.gmra.mxu0 %v236_v44 }
  0x5d   : > { %1389 = vmatmul.f32.gmra.mxu2 %v238_v45  ;;  %1502 = vmatmul.f32.gmra.mxu3 %v239_v46  ;;  %v377_v45 = vld [vmem:[%s5168_s26 + $0x708] sm:$0xff]  ;;  %v802_v46 = vld [vmem:[%s7934_s1 + $0x650] sm:$0xff] }
  0x5e   : > { %1817 = vmatpush.msrb.mxu2 %v802_v46  ;;  %v766_v46 = vld [vmem:[%s7934_s1 + $0x530] sm:$0xff] }
  0x5f   : > { %1276 = vmatmul.f32.gmra.mxu1 %v237_v47 }
  0x60   : > { %1818 = vmatpush.msrb.mxu2 %v800_v8  ;;  %v477_v8 = vld [vmem:[%s5168_s26 + $0xa28] sm:$0xff] }
  0x62   : > { %1819 = vmatpush.msrb.mxu2 %v798_v34  ;;  %v502_v34 = vld [vmem:[%s5168_s26 + $0xaf0] sm:$0xff] }
  0x64   : > { %1166 = vmatmul.f32.gmra.mxu0 %v250_v52 }
  0x65   : > { %1392 = vmatmul.f32.gmra.mxu2 %v252_v53  ;;  %1505 = vmatmul.f32.gmra.mxu3 %v253_v54  ;;  %v390_v54 = vld [vmem:[%s5168_s26 + $0x770] sm:$0xff] }
  0x67   : > { %1279 = vmatmul.f32.gmra.mxu1 %v251_v55  ;;  %v392_v55 = vld [vmem:[%s5168_s26 + $0x780] sm:$0xff] }
  0x6c   : > { %1169 = vmatmul.f32.gmra.mxu0 %v264_v56  ;;  %v393_v56 = vld [vmem:[%s5168_s26 + $0x788] sm:$0xff] }
  0x6d   : > { %1395 = vmatmul.f32.gmra.mxu2 %v266_v57  ;;  %1508 = vmatmul.f32.gmra.mxu3 %v267_v58  ;;  %v770_v58 = vld [vmem:[%s7934_s1 + $0x550] sm:$0xff] }
  0x6e   : > { %1704 = vmatpush.msrb.mxu1 %v770_v58 }
  0x6f   : > { %1282 = vmatmul.f32.gmra.mxu1 %v265_v59 }
  0x70   : > { %1705 = vmatpush.msrb.mxu1 %v768_v20  ;;  %v490_v20 = vld [vmem:[%s5168_s26 + $0xa90] sm:$0xff] }
  0x72   : > { %1706 = vmatpush.msrb.mxu1 %v766_v46 }
  0x74   : > { %1172 = vmatmul.f32.gmra.mxu0 %v278_v0  ;;  %1707 = vmatpush.msrb.mxu1 %v764_v10 }
  0x75   : > { %1398 = vmatmul.f32.gmra.mxu2 %v280_v1  ;;  %1511 = vmatmul.f32.gmra.mxu3 %v281_v2  ;;  %v404_v2 = vld [vmem:[%s5168_s26 + $0x7e0] sm:$0xff] }
  0x77   : > { %1285 = vmatmul.f32.gmra.mxu1 %v279_v3  ;;  %v406_v3 = vld [vmem:[%s5168_s26 + $0x7f0] sm:$0xff] }
  0x7c   : > { %1175 = vmatmul.f32.gmra.mxu0 %v292_v4  ;;  %v407_v4 = vld [vmem:[%s5168_s26 + $0x7f8] sm:$0xff] }
  0x7d   : > { %1401 = vmatmul.f32.gmra.mxu2 %v294_v5  ;;  %1514 = vmatmul.f32.gmra.mxu3 %v295_v6 }
  0x7f   : > { %1288 = vmatmul.f32.gmra.mxu1 %v293_v7  ;;  %v405_v7 = vld [vmem:[%s5168_s26 + $0x7e8] sm:$0xff] }
  0x84   : > { %1178 = vmatmul.f32.gmra.mxu0 %v306_v12 }
  0x85   : > { %1404 = vmatmul.f32.gmra.mxu2 %v308_v13  ;;  %1517 = vmatmul.f32.gmra.mxu3 %v309_v14 }
  0x87   : > { %1291 = vmatmul.f32.gmra.mxu1 %v307_v15 }
  0x8c   : > { %1181 = vmatmul.f32.gmra.mxu0 %v320_v16  ;;  %v418_v16 = vld [vmem:[%s5168_s26 + $0x850] sm:$0xff] }
  0x8d   : > { %1407 = vmatmul.f32.gmra.mxu2 %v322_v17  ;;  %1520 = vmatmul.f32.gmra.mxu3 %v323_v18  ;;  %v420_v17 = vld [vmem:[%s5168_s26 + $0x860] sm:$0xff]  ;;  %v421_v18 = vld [vmem:[%s5168_s26 + $0x868] sm:$0xff] }
  0x8f   : > { %1294 = vmatmul.f32.gmra.mxu1 %v321_v19 }
  0x94   : > { %1184 = vmatmul.f32.gmra.mxu0 %v334_v23 }
  0x95   : > { %1410 = vmatmul.f32.gmra.mxu2 %v336_v24  ;;  %1523 = vmatmul.f32.gmra.mxu3 %v337_v25 }
  0x97   : > { %1297 = vmatmul.f32.gmra.mxu1 %v335_v27 }
  0x9c   : > { %1187 = vmatmul.f32.gmra.mxu0 %v348_v28  ;;  %v432_v28 = vld [vmem:[%s5168_s26 + $0x8c0] sm:$0xff] }
  0x9d   : > { %1413 = vmatmul.f32.gmra.mxu2 %v350_v29  ;;  %1526 = vmatmul.f32.gmra.mxu3 %v351_v30  ;;  %v434_v29 = vld [vmem:[%s5168_s26 + $0x8d0] sm:$0xff]  ;;  %v435_v30 = vld [vmem:[%s5168_s26 + $0x8d8] sm:$0xff] }
  0x9f   : > { %1300 = vmatmul.f32.gmra.mxu1 %v349_v31 }
  0xa4   : > { %1190 = vmatmul.f32.gmra.mxu0 %v362_v35 }
  0xa5   : > { %1416 = vmatmul.f32.gmra.mxu2 %v364_v36  ;;  %1529 = vmatmul.f32.gmra.mxu3 %v365_v37  ;;  %v734_v36 = vld [vmem:[%s7934_s1 + $0x430] sm:$0xff] }
  0xa6   : > { %v830_v37 = vld [vmem:[%s7934_s1 + $0x730] sm:$0xff]  ;;  %1593 = vmatpush.msrb.mxu0 %v734_v36  ;;  %v505_v36 = vld [vmem:[%s5168_s26 + $0xb08] sm:$0xff] }
  0xa7   : > { %1303 = vmatmul.f32.gmra.mxu1 %v363_v39  ;;  %1932 = vmatpush.msrb.mxu3 %v830_v37 }
  0xa9   : > { %v1146_v40 = vpop.f32.mrf.mxu0 }
  0xac   : > { %v1259_v44 = vpop.f32.mrf.mxu1  ;;  %1193 = vmatmul.f32.gmra.mxu0 %v376_v41 }
  0xad   : > { %1419 = vmatmul.f32.gmra.mxu2 %v378_v42  ;;  %1532 = vmatmul.f32.gmra.mxu3 %v379_v43  ;;  %v1260_v47 = vadd.f32 %v1259_v44, %v1146_v40  ;;  %v446_v42 = vld [vmem:[%s5168_s26 + $0x930] sm:$0xff]  ;;  %v448_v43 = vld [vmem:[%s5168_s26 + $0x940] sm:$0xff]  ;;  %v449_v44 = vld [vmem:[%s5168_s26 + $0x948] sm:$0xff] }
  0xaf   : > { %1306 = vmatmul.f32.gmra.mxu1 %v377_v45 }
  0xb0   : > { %v1372_v50 = vpop.f32.mrf.mxu2  ;;  %v1485_v51 = vpop.f32.mrf.mxu3 }
  0xb1   : > { %v1373_v52 = vadd.f32 %v1372_v50, %v1260_v47  ;;  %v1149_v53 = vpop.f32.mrf.mxu0 }
  0xb3   : > { %v5388_v57 = vadd.f32 %v1485_v51, %v1373_v52 }
  0xb4   : > { %v1262_v59 = vpop.f32.mrf.mxu1  ;;  %1196 = vmatmul.f32.gmra.mxu0 %v390_v54  ;;  %v460_v54 = vld [vmem:[%s5168_s26 + $0x9a0] sm:$0xff] }
  0xb5   : > { %1422 = vmatmul.f32.gmra.mxu2 %v392_v55  ;;  %1535 = vmatmul.f32.gmra.mxu3 %v393_v56  ;;  %v1263_v61 = vadd.f32 %v1262_v59, %v1149_v53  ;;  %v462_v55 = vld [vmem:[%s5168_s26 + $0x9b0] sm:$0xff]  ;;  %v463_v56 = vld [vmem:[%s5168_s26 + $0x9b8] sm:$0xff] }
  0xb7   : > { %1309 = vmatmul.f32.gmra.mxu1 %v391_v60  ;;  %v461_v60 = vld [vmem:[%s5168_s26 + $0x9a8] sm:$0xff] }
  0xb8   : > { %v1375_v62 = vpop.f32.mrf.mxu2  ;;  %v1488_v63 = vpop.f32.mrf.mxu3 }
  0xb9   : > { %v1376_v0 = vadd.f32 %v1375_v62, %v1263_v61  ;;  %v1152_v1 = vpop.f32.mrf.mxu0  ;;  %v796_v61 = vld [vmem:[%s7934_s1 + $0x620] sm:$0xff] }
  0xba   : > { %1820 = vmatpush.msrb.mxu2 %v796_v61 }
  0xbb   : > { %v5397_v5 = vadd.f32 %v1488_v63, %v1376_v0  ;;  %v732_v63 = vld [vmem:[%s7934_s1 + $0x420] sm:$0xff] }
  0xbc   : > { %v1265_v6 = vpop.f32.mrf.mxu1  ;;  %1199 = vmatmul.f32.gmra.mxu0 %v404_v2  ;;  %v828_v0 = vld [vmem:[%s7934_s1 + $0x720] sm:$0xff] }
  0xbd   : > { %1425 = vmatmul.f32.gmra.mxu2 %v406_v3  ;;  %1538 = vmatmul.f32.gmra.mxu3 %v407_v4  ;;  %v1266_v9 = vadd.f32 %v1265_v6, %v1152_v1  ;;  %v474_v6 = vld [vmem:[%s5168_s26 + $0xa10] sm:$0xff] }
  0xbe   : > { %1594 = vmatpush.msrb.mxu0 %v732_v63  ;;  %1933 = vmatpush.msrb.mxu3 %v828_v0  ;;  %v530_v63 = vld [vmem:[%s5168_s26 + $0xbd0] sm:$0xff]  ;;  %v532_v0 = vld [vmem:[%s5168_s26 + $0xbe0] sm:$0xff] }
  0xbf   : > { %1312 = vmatmul.f32.gmra.mxu1 %v405_v7  ;;  %v476_v7 = vld [vmem:[%s5168_s26 + $0xa20] sm:$0xff] }
  0xc0   : > { %v1378_v12 = vpop.f32.mrf.mxu2  ;;  %v1491_v13 = vpop.f32.mrf.mxu3 }
  0xc1   : > { %v1379_v14 = vadd.f32 %v1378_v12, %v1266_v9  ;;  %v1155_v15 = vpop.f32.mrf.mxu0  ;;  %v475_v12 = vld [vmem:[%s5168_s26 + $0xa18] sm:$0xff] }
  0xc3   : > { %v5412_v19 = vadd.f32 %v1491_v13, %v1379_v14 }
  0xc4   : > { %v1268_v21 = vpop.f32.mrf.mxu1  ;;  %1202 = vmatmul.f32.gmra.mxu0 %v418_v16 }
  0xc5   : > { %1428 = vmatmul.f32.gmra.mxu2 %v420_v17  ;;  %1541 = vmatmul.f32.gmra.mxu3 %v421_v18  ;;  %v1269_v23 = vadd.f32 %v1268_v21, %v1155_v15  ;;  %v488_v18 = vld [vmem:[%s5168_s26 + $0xa80] sm:$0xff]  ;;  %v491_v21 = vld [vmem:[%s5168_s26 + $0xa98] sm:$0xff] }
  0xc7   : > { %1315 = vmatmul.f32.gmra.mxu1 %v419_v22 }
  0xc8   : > { %v1381_v24 = vpop.f32.mrf.mxu2  ;;  %v1494_v25 = vpop.f32.mrf.mxu3 }
  0xc9   : > { %v1382_v26 = vadd.f32 %v1381_v24, %v1269_v23  ;;  %v1158_v27 = vpop.f32.mrf.mxu0  ;;  %v489_v24 = vld [vmem:[%s5168_s26 + $0xa88] sm:$0xff] }
  0xcb   : > { %v5421_v31 = vadd.f32 %v1494_v25, %v1382_v26  ;;  %v794_v25 = vld [vmem:[%s7934_s1 + $0x610] sm:$0xff] }
  0xcc   : > { %v1271_v32 = vpop.f32.mrf.mxu1  ;;  %1205 = vmatmul.f32.gmra.mxu0 %v432_v28  ;;  %1821 = vmatpush.msrb.mxu2 %v794_v25  ;;  %v826_v28 = vld [vmem:[%s7934_s1 + $0x710] sm:$0xff] }
  0xcd   : > { %1431 = vmatmul.f32.gmra.mxu2 %v434_v29  ;;  %1544 = vmatmul.f32.gmra.mxu3 %v435_v30  ;;  %v1272_v35 = vadd.f32 %v1271_v32, %v1158_v27  ;;  %v730_v27 = vld [vmem:[%s7934_s1 + $0x410] sm:$0xff] }
  0xce   : > { %1595 = vmatpush.msrb.mxu0 %v730_v27  ;;  %1934 = vmatpush.msrb.mxu3 %v826_v28 }
  0xcf   : > { %1318 = vmatmul.f32.gmra.mxu1 %v433_v33 }
  0xd0   : > { %v1384_v38 = vpop.f32.mrf.mxu2  ;;  %v1497_v39 = vpop.f32.mrf.mxu3 }
  0xd1   : > { %v1385_v40 = vadd.f32 %v1384_v38, %v1272_v35  ;;  %v1161_v41 = vpop.f32.mrf.mxu0  ;;  %v504_v35 = vld [vmem:[%s5168_s26 + $0xb00] sm:$0xff]  ;;  %v762_v38 = vld [vmem:[%s7934_s1 + $0x510] sm:$0xff] }
  0xd2   : > { %1708 = vmatpush.msrb.mxu1 %v762_v38 }
  0xd3   : > { %v5436_v45 = vadd.f32 %v1497_v39, %v1385_v40  ;;  %v503_v40 = vld [vmem:[%s5168_s26 + $0xaf8] sm:$0xff] }
  0xd4   : > { %v1274_v47 = vpop.f32.mrf.mxu1  ;;  %1208 = vmatmul.f32.gmra.mxu0 %v446_v42 }
  0xd5   : > { %1434 = vmatmul.f32.gmra.mxu2 %v448_v43  ;;  %1547 = vmatmul.f32.gmra.mxu3 %v449_v44  ;;  %v1275_v49 = vadd.f32 %v1274_v47, %v1161_v41  ;;  %v516_v47 = vld [vmem:[%s5168_s26 + $0xb60] sm:$0xff] }
  0xd7   : > { %1321 = vmatmul.f32.gmra.mxu1 %v447_v48  ;;  %v518_v48 = vld [vmem:[%s5168_s26 + $0xb70] sm:$0xff] }
  0xd8   : > { %v1387_v50 = vpop.f32.mrf.mxu2  ;;  %v1500_v51 = vpop.f32.mrf.mxu3 }
  0xd9   : > { %v1388_v52 = vadd.f32 %v1387_v50, %v1275_v49  ;;  %v1164_v53 = vpop.f32.mrf.mxu0  ;;  %v519_v49 = vld [vmem:[%s5168_s26 + $0xb78] sm:$0xff] }
  0xdb   : > { %v5445_v58 = vadd.f32 %v1500_v51, %v1388_v52  ;;  %v517_v52 = vld [vmem:[%s5168_s26 + $0xb68] sm:$0xff] }
  0xdc   : > { %v1277_v59 = vpop.f32.mrf.mxu1  ;;  %1211 = vmatmul.f32.gmra.mxu0 %v460_v54 }
  0xdd   : > { %1437 = vmatmul.f32.gmra.mxu2 %v462_v55  ;;  %1550 = vmatmul.f32.gmra.mxu3 %v463_v56  ;;  %v1278_v62 = vadd.f32 %v1277_v59, %v1164_v53  ;;  %v792_v53 = vld [vmem:[%s7934_s1 + $0x600] sm:$0xff] }
  0xde   : > { %1822 = vmatpush.msrb.mxu2 %v792_v53  ;;  %v728_v55 = vld [vmem:[%s7934_s1 + $0x400] sm:$0xff] }
  0xdf   : > { %1324 = vmatmul.f32.gmra.mxu1 %v461_v60  ;;  %v824_v56 = vld [vmem:[%s7934_s1 + $0x700] sm:$0xff]  ;;  %1596 = vmatpush.msrb.mxu0 %v728_v55 }
  0xe0   : > { %v1390_v1 = vpop.f32.mrf.mxu2  ;;  %v1503_v2 = vpop.f32.mrf.mxu3  ;;  %1935 = vmatpush.msrb.mxu3 %v824_v56  ;;  %v884_v53 = vld [vmem:[%s7934_s1 + $0x8e0] sm:$0xff] }
  0xe1   : > { %v1391_v3 = vadd.f32 %v1390_v1, %v1278_v62  ;;  %v1167_v4 = vpop.f32.mrf.mxu0  ;;  %v533_v1 = vld [vmem:[%s5168_s26 + $0xbe8] sm:$0xff] }
  0xe3   : > { %v5460_v9 = vadd.f32 %v1503_v2, %v1391_v3  ;;  %v760_v3 = vld [vmem:[%s7934_s1 + $0x500] sm:$0xff] }
  0xe4   : > { %v1280_v11 = vpop.f32.mrf.mxu1  ;;  %1214 = vmatmul.f32.gmra.mxu0 %v474_v6  ;;  %v531_v6 = vld [vmem:[%s5168_s26 + $0xbd8] sm:$0xff]  ;;  %1709 = vmatpush.msrb.mxu1 %v760_v3 }
  0xe5   : > { %1440 = vmatmul.f32.gmra.mxu2 %v476_v7  ;;  %1553 = vmatmul.f32.gmra.mxu3 %v477_v8  ;;  %v1281_v13 = vadd.f32 %v1280_v11, %v1167_v4 }
  0xe7   : > { %1327 = vmatmul.f32.gmra.mxu1 %v475_v12 }
  0xe8   : > { %v1393_v14 = vpop.f32.mrf.mxu2  ;;  %v1506_v15 = vpop.f32.mrf.mxu3 }
  0xe9   : > { %v1394_v16 = vadd.f32 %v1393_v14, %v1281_v13  ;;  %v1170_v17 = vpop.f32.mrf.mxu0  ;;  %v544_v13 = vld [vmem:[%s5168_s26 + $0xc40] sm:$0xff]  ;;  %v546_v14 = vld [vmem:[%s5168_s26 + $0xc50] sm:$0xff] }
  0xeb   : > { %v5469_v22 = vadd.f32 %v1506_v15, %v1394_v16  ;;  %v547_v15 = vld [vmem:[%s5168_s26 + $0xc58] sm:$0xff] }
  0xec   : > { %v1283_v23 = vpop.f32.mrf.mxu1  ;;  %1217 = vmatmul.f32.gmra.mxu0 %v488_v18  ;;  %v545_v18 = vld [vmem:[%s5168_s26 + $0xc48] sm:$0xff] }
  0xed   : > { %1443 = vmatmul.f32.gmra.mxu2 %v490_v20  ;;  %1556 = vmatmul.f32.gmra.mxu3 %v491_v21  ;;  %v1284_v26 = vadd.f32 %v1283_v23, %v1170_v17  ;;  %v950_v20 = vld [vmem:[%s7934_s1 + $0xaf0] sm:$0xff] }
  0xee   : > { %2259 = vmatpush.msra.mxu2 %v950_v20  ;;  %v886_v23 = vld [vmem:[%s7934_s1 + $0x8f0] sm:$0xff] }
  0xef   : > { %1330 = vmatmul.f32.gmra.mxu1 %v489_v24  ;;  %v982_v24 = vld [vmem:[%s7934_s1 + $0xbf0] sm:$0xff]  ;;  %2033 = vmatpush.msra.mxu0 %v886_v23 }
  0xf0   : > { %v1396_v29 = vpop.f32.mrf.mxu2  ;;  %v1509_v30 = vpop.f32.mrf.mxu3  ;;  %2372 = vmatpush.msra.mxu3 %v982_v24  ;;  %v946_v20 = vld [vmem:[%s7934_s1 + $0xad0] sm:$0xff] }
  0xf1   : > { %v1397_v32 = vadd.f32 %v1396_v29, %v1284_v26  ;;  %v1173_v33 = vpop.f32.mrf.mxu0  ;;  %v558_v29 = vld [vmem:[%s5168_s26 + $0xcb0] sm:$0xff]  ;;  %2034 = vmatpush.msra.mxu0 %v884_v53  ;;  %v944_v53 = vld [vmem:[%s7934_s1 + $0xac0] sm:$0xff] }
  0xf2   : > { %v882_v23 = vld [vmem:[%s7934_s1 + $0x8d0] sm:$0xff] }
  0xf3   : > { %v5484_v37 = vadd.f32 %v1509_v30, %v1397_v32  ;;  %v560_v30 = vld [vmem:[%s5168_s26 + $0xcc0] sm:$0xff]  ;;  %v561_v32 = vld [vmem:[%s5168_s26 + $0xcc8] sm:$0xff]  ;;  %v978_v24 = vld [vmem:[%s7934_s1 + $0xbd0] sm:$0xff]  ;;  %2035 = vmatpush.msra.mxu0 %v882_v23 }
  0xf4   : > { %v1286_v39 = vpop.f32.mrf.mxu1  ;;  %1220 = vmatmul.f32.gmra.mxu0 %v502_v34  ;;  %v918_v34 = vld [vmem:[%s7934_s1 + $0x9f0] sm:$0xff] }
  0xf5   : > { %1446 = vmatmul.f32.gmra.mxu2 %v504_v35  ;;  %1559 = vmatmul.f32.gmra.mxu3 %v505_v36  ;;  %v1287_v41 = vadd.f32 %v1286_v39, %v1173_v33  ;;  %v559_v36 = vld [vmem:[%s5168_s26 + $0xcb8] sm:$0xff] }
  0xf6   : > { %2146 = vmatpush.msra.mxu1 %v918_v34 }
  0xf7   : > { %1333 = vmatmul.f32.gmra.mxu1 %v503_v40 }
  0xf8   : > { %v1399_v42 = vpop.f32.mrf.mxu2  ;;  %v1512_v43 = vpop.f32.mrf.mxu3 }
  0xf9   : > { %v1400_v44 = vadd.f32 %v1399_v42, %v1287_v41  ;;  %v1176_v46 = vpop.f32.mrf.mxu0 }
  0xfb   : > { %v5493_v50 = vadd.f32 %v1512_v43, %v1400_v44  ;;  %v572_v43 = vld [vmem:[%s5168_s26 + $0xd20] sm:$0xff]  ;;  %v574_v44 = vld [vmem:[%s5168_s26 + $0xd30] sm:$0xff] }
  0xfc   : > { %v1289_v51 = vpop.f32.mrf.mxu1  ;;  %1223 = vmatmul.f32.gmra.mxu0 %v516_v47 }
  0xfd   : > { %1449 = vmatmul.f32.gmra.mxu2 %v518_v48  ;;  %1562 = vmatmul.f32.gmra.mxu3 %v519_v49  ;;  %v1290_v54 = vadd.f32 %v1289_v51, %v1176_v46  ;;  %v575_v46 = vld [vmem:[%s5168_s26 + $0xd38] sm:$0xff]  ;;  %v573_v49 = vld [vmem:[%s5168_s26 + $0xd28] sm:$0xff]  ;;  %v948_v51 = vld [vmem:[%s7934_s1 + $0xae0] sm:$0xff] }
  0xfe   : > { %2260 = vmatpush.msra.mxu2 %v948_v51 }
  0xff   : > { %1336 = vmatmul.f32.gmra.mxu1 %v517_v52 }
 0x100   : > { %v1402_v59 = vpop.f32.mrf.mxu2  ;;  %v1515_v60 = vpop.f32.mrf.mxu3  ;;  %2261 = vmatpush.msra.mxu2 %v946_v20  ;;  %v215_v20 = vld [vmem:[%s5168_s26 + $0x1f8] sm:$0xff] }
 0x101   : > { %v1403_v61 = vadd.f32 %v1402_v59, %v1290_v54  ;;  %v1179_v62 = vpop.f32.mrf.mxu0  ;;  %v980_v54 = vld [vmem:[%s7934_s1 + $0xbe0] sm:$0xff] }
 0x102   : > { %2373 = vmatpush.msra.mxu3 %v980_v54  ;;  %2262 = vmatpush.msra.mxu2 %v944_v53  ;;  %v240_v53 = vld [vmem:[%s5168_s26 + $0x2c0] sm:$0xff] }
 0x103   : > { %v5508_v2 = vadd.f32 %v1515_v60, %v1403_v61  ;;  %v586_v61 = vld [vmem:[%s5168_s26 + $0xd90] sm:$0xff] }
 0x104   : > { %v1292_v4 = vpop.f32.mrf.mxu1  ;;  %1226 = vmatmul.f32.gmra.mxu0 %v530_v63  ;;  %v589_v63 = vld [vmem:[%s5168_s26 + $0xda8] sm:$0xff]  ;;  %2374 = vmatpush.msra.mxu3 %v978_v24 }
 0x105   : > { %1452 = vmatmul.f32.gmra.mxu2 %v532_v0  ;;  %1565 = vmatmul.f32.gmra.mxu3 %v533_v1  ;;  %v1293_v7 = vadd.f32 %v1292_v4, %v1179_v62  ;;  %v588_v62 = vld [vmem:[%s5168_s26 + $0xda0] sm:$0xff]  ;;  %v587_v4 = vld [vmem:[%s5168_s26 + $0xd98] sm:$0xff]  ;;  %v213_v24 = vld [vmem:[%s5168_s26 + $0x1e8] sm:$0xff] }
 0x106   : > { %v916_v1 = vld [vmem:[%s7934_s1 + $0x9e0] sm:$0xff] }
 0x107   : > { %1339 = vmatmul.f32.gmra.mxu1 %v531_v6 }
 0x108   : > { %v1405_v8 = vpop.f32.mrf.mxu2  ;;  %v1518_v10 = vpop.f32.mrf.mxu3  ;;  %2147 = vmatpush.msra.mxu1 %v916_v1  ;;  %v200_v1 = vld [vmem:[%s5168_s26 + $0x180] sm:$0xff] }
 0x109   : > { %v1406_v11 = vadd.f32 %v1405_v8, %v1293_v7  ;;  %v1182_v12 = vpop.f32.mrf.mxu0 }
 0x10b   : > { %v5517_v16 = vadd.f32 %v1518_v10, %v1406_v11 }
 0x10c   : > { %v1295_v17 = vpop.f32.mrf.mxu1  ;;  %1229 = vmatmul.f32.gmra.mxu0 %v544_v13  ;;  %v158_v13 = vld [vmem:[%s5168_s26 + $0x30] sm:$0xff] }
 0x10d   : > { %1455 = vmatmul.f32.gmra.mxu2 %v546_v14  ;;  %1568 = vmatmul.f32.gmra.mxu3 %v547_v15  ;;  %v1296_v21 = vadd.f32 %v1295_v17, %v1182_v12  ;;  %v156_v12 = vld [vmem:[%s5168_s26 + $0x20] sm:$0xff]  ;;  %v159_v14 = vld [vmem:[%s5168_s26 + $0x38] sm:$0xff] }
 0x10f   : > { %1342 = vmatmul.f32.gmra.mxu1 %v545_v18  ;;  %v157_v18 = vld [vmem:[%s5168_s26 + $0x28] sm:$0xff] }
 0x110   : > { %v1408_v25 = vpop.f32.mrf.mxu2  ;;  %v1521_v26 = vpop.f32.mrf.mxu3 }
 0x111   : > { %v1409_v27 = vadd.f32 %v1408_v25, %v1296_v21  ;;  %v1185_v28 = vpop.f32.mrf.mxu0 }
 0x113   : > { %v5532_v33 = vadd.f32 %v1521_v26, %v1409_v27 }
 0x114   : > { %v1298_v35 = vpop.f32.mrf.mxu1  ;;  %1232 = vmatmul.f32.gmra.mxu0 %v558_v29  ;;  %v170_v29 = vld [vmem:[%s5168_s26 + $0x90] sm:$0xff] }
 0x115   : > { %1458 = vmatmul.f32.gmra.mxu2 %v560_v30  ;;  %1571 = vmatmul.f32.gmra.mxu3 %v561_v32  ;;  %v1299_v38 = vadd.f32 %v1298_v35, %v1185_v28  ;;  %v172_v30 = vld [vmem:[%s5168_s26 + $0xa0] sm:$0xff]  ;;  %v173_v32 = vld [vmem:[%s5168_s26 + $0xa8] sm:$0xff]  ;;  %v914_v35 = vld [vmem:[%s7934_s1 + $0x9d0] sm:$0xff] }
 0x116   : > { %2148 = vmatpush.msra.mxu1 %v914_v35 }
 0x117   : > { %1345 = vmatmul.f32.gmra.mxu1 %v559_v36 }
 0x118   : > { %v1411_v39 = vpop.f32.mrf.mxu2  ;;  %v1524_v40 = vpop.f32.mrf.mxu3 }
 0x119   : > { %v1412_v41 = vadd.f32 %v1411_v39, %v1299_v38  ;;  %v1188_v42 = vpop.f32.mrf.mxu0  ;;  %v171_v38 = vld [vmem:[%s5168_s26 + $0x98] sm:$0xff] }
 0x11b   : > { %v5541_v47 = vadd.f32 %v1524_v40, %v1412_v41 }
 0x11c   : > { %v1301_v48 = vpop.f32.mrf.mxu1  ;;  %1235 = vmatmul.f32.gmra.mxu0 %v572_v43 }
 0x11d   : > { %1461 = vmatmul.f32.gmra.mxu2 %v574_v44  ;;  %1574 = vmatmul.f32.gmra.mxu3 %v575_v46  ;;  %v1302_v52 = vadd.f32 %v1301_v48, %v1188_v42  ;;  %v184_v44 = vld [vmem:[%s5168_s26 + $0x100] sm:$0xff]  ;;  %v186_v46 = vld [vmem:[%s5168_s26 + $0x110] sm:$0xff]  ;;  %v187_v48 = vld [vmem:[%s5168_s26 + $0x118] sm:$0xff] }
 0x11f   : > { %1348 = vmatmul.f32.gmra.mxu1 %v573_v49 }
 0x120   : > { %v1414_v55 = vpop.f32.mrf.mxu2  ;;  %v1527_v56 = vpop.f32.mrf.mxu3 }
 0x121   : > { %v1415_v59 = vadd.f32 %v1414_v55, %v1302_v52  ;;  %v1191_v60 = vpop.f32.mrf.mxu0  ;;  %v185_v52 = vld [vmem:[%s5168_s26 + $0x108] sm:$0xff]  ;;  %v880_v55 = vld [vmem:[%s7934_s1 + $0x8c0] sm:$0xff] }
 0x122   : > { %2036 = vmatpush.msra.mxu0 %v880_v55  ;;  %v243_v55 = vld [vmem:[%s5168_s26 + $0x2d8] sm:$0xff] }
 0x123   : > { %v5556_v0 = vadd.f32 %v1527_v56, %v1415_v59  ;;  %v976_v56 = vld [vmem:[%s7934_s1 + $0xbc0] sm:$0xff] }
 0x124   : > { %v1304_v3 = vpop.f32.mrf.mxu1  ;;  %1238 = vmatmul.f32.gmra.mxu0 %v586_v61  ;;  %2375 = vmatpush.msra.mxu3 %v976_v56 }
 0x125   : > { %1464 = vmatmul.f32.gmra.mxu2 %v588_v62  ;;  %1577 = vmatmul.f32.gmra.mxu3 %v589_v63  ;;  %v1305_v6 = vadd.f32 %v1304_v3, %v1191_v60  ;;  %v198_v63 = vld [vmem:[%s5168_s26 + $0x170] sm:$0xff]  ;;  %v201_v3 = vld [vmem:[%s5168_s26 + $0x188] sm:$0xff] }
 0x127   : > { %1351 = vmatmul.f32.gmra.mxu1 %v587_v4 }
 0x128   : > { %v1417_v7 = vpop.f32.mrf.mxu2  ;;  %v1530_v8 = vpop.f32.mrf.mxu3 }
 0x129   : > { %v1418_v10 = vadd.f32 %v1417_v7, %v1305_v6  ;;  %v1194_v11 = vpop.f32.mrf.mxu0  ;;  %v912_v6 = vld [vmem:[%s7934_s1 + $0x9c0] sm:$0xff] }
 0x12a   : > { %2149 = vmatpush.msra.mxu1 %v912_v6 }
 0x12b   : > { %v5565_v15 = vadd.f32 %v1530_v8, %v1418_v10  ;;  %v199_v8 = vld [vmem:[%s5168_s26 + $0x178] sm:$0xff] }
 0x12c   : > { %v1307_v17 = vpop.f32.mrf.mxu1  ;;  %1597 = vmatmul.f32.vlgmr.msrb.gmra.mxu0 %v156_v12 }
 0x12d   : > { %1823 = vmatmul.f32.vlgmr.msrb.gmra.mxu2 %v158_v13  ;;  %1936 = vmatmul.f32.vlgmr.msrb.gmra.mxu3 %v159_v14  ;;  %v1308_v21 = vadd.f32 %v1307_v17, %v1194_v11  ;;  %v212_v17 = vld [vmem:[%s5168_s26 + $0x1e0] sm:$0xff] }
 0x12f   : > { %1710 = vmatmul.f32.vlgmr.msrb.gmra.mxu1 %v157_v18  ;;  %v214_v18 = vld [vmem:[%s5168_s26 + $0x1f0] sm:$0xff] }
 0x130   : > { %v1420_v25 = vpop.f32.mrf.mxu2  ;;  %v1533_v26 = vpop.f32.mrf.mxu3 }
 0x131   : > { %v1421_v27 = vadd.f32 %v1420_v25, %v1308_v21  ;;  %v1197_v28 = vpop.f32.mrf.mxu0  ;;  %v942_v25 = vld [vmem:[%s7934_s1 + $0xab0] sm:$0xff] }
 0x132   : > { %2263 = vmatpush.msra.mxu2 %v942_v25 }
 0x133   : > { %v5580_v34 = vadd.f32 %v1533_v26, %v1421_v27  ;;  %v878_v27 = vld [vmem:[%s7934_s1 + $0x8b0] sm:$0xff] }
 0x134   : > { %v1310_v36 = vpop.f32.mrf.mxu1  ;;  %1600 = vmatmul.f32.gmra.mxu0 %v170_v29 }
 0x135   : > { %1826 = vmatmul.f32.gmra.mxu2 %v172_v30  ;;  %1939 = vmatmul.f32.gmra.mxu3 %v173_v32  ;;  %v1311_v39 = vadd.f32 %v1310_v36, %v1197_v28  ;;  %v974_v28 = vld [vmem:[%s7934_s1 + $0xbb0] sm:$0xff] }
 0x136   : > { %2037 = vmatpush.msra.mxu0 %v878_v27  ;;  %2376 = vmatpush.msra.mxu3 %v974_v28  ;;  %v226_v36 = vld [vmem:[%s5168_s26 + $0x250] sm:$0xff]  ;;  %v268_v27 = vld [vmem:[%s5168_s26 + $0x3a0] sm:$0xff] }
 0x137   : > { %1713 = vmatmul.f32.gmra.mxu1 %v171_v38  ;;  %v228_v38 = vld [vmem:[%s5168_s26 + $0x260] sm:$0xff]  ;;  %v270_v28 = vld [vmem:[%s5168_s26 + $0x3b0] sm:$0xff] }
 0x138   : > { %v1423_v40 = vpop.f32.mrf.mxu2  ;;  %v1536_v41 = vpop.f32.mrf.mxu3 }
 0x139   : > { %v1424_v42 = vadd.f32 %v1423_v40, %v1311_v39  ;;  %v1200_v43 = vpop.f32.mrf.mxu0  ;;  %v229_v39 = vld [vmem:[%s5168_s26 + $0x268] sm:$0xff] }
 0x13b   : > { %v5589_v49 = vadd.f32 %v1536_v41, %v1424_v42  ;;  %v910_v41 = vld [vmem:[%s7934_s1 + $0x9b0] sm:$0xff] }
 0x13c   : > { %v1313_v51 = vpop.f32.mrf.mxu1  ;;  %1603 = vmatmul.f32.gmra.mxu0 %v184_v44  ;;  %2150 = vmatpush.msra.mxu1 %v910_v41  ;;  %v970_v41 = vld [vmem:[%s7934_s1 + $0xb90] sm:$0xff] }
 0x13d   : > { %1829 = vmatmul.f32.gmra.mxu2 %v186_v46  ;;  %1942 = vmatmul.f32.gmra.mxu3 %v187_v48  ;;  %v1314_v54 = vadd.f32 %v1313_v51, %v1200_v43  ;;  %v227_v43 = vld [vmem:[%s5168_s26 + $0x258] sm:$0xff] }
 0x13f   : > { %1716 = vmatmul.f32.gmra.mxu1 %v185_v52 }
 0x140   : > { %v1426_v59 = vpop.f32.mrf.mxu2  ;;  %v1539_v60 = vpop.f32.mrf.mxu3 }
 0x141   : > { %v1427_v61 = vadd.f32 %v1426_v59, %v1314_v54  ;;  %v1203_v62 = vpop.f32.mrf.mxu0  ;;  %v242_v54 = vld [vmem:[%s5168_s26 + $0x2d0] sm:$0xff] }
 0x143   : > { %v5604_v4 = vadd.f32 %v1539_v60, %v1427_v61  ;;  %v241_v60 = vld [vmem:[%s5168_s26 + $0x2c8] sm:$0xff]  ;;  %v940_v61 = vld [vmem:[%s7934_s1 + $0xaa0] sm:$0xff] }
 0x144   : > { %v1316_v7 = vpop.f32.mrf.mxu1  ;;  %1606 = vmatmul.f32.gmra.mxu0 %v198_v63  ;;  %2264 = vmatpush.msra.mxu2 %v940_v61  ;;  %v876_v63 = vld [vmem:[%s7934_s1 + $0x8a0] sm:$0xff] }
 0x145   : > { %1832 = vmatmul.f32.gmra.mxu2 %v200_v1  ;;  %1945 = vmatmul.f32.gmra.mxu3 %v201_v3  ;;  %v1317_v10 = vadd.f32 %v1316_v7, %v1203_v62  ;;  %v972_v1 = vld [vmem:[%s7934_s1 + $0xba0] sm:$0xff] }
 0x146   : > { %2038 = vmatpush.msra.mxu0 %v876_v63  ;;  %2377 = vmatpush.msra.mxu3 %v972_v1 }
 0x147   : > { %1719 = vmatmul.f32.gmra.mxu1 %v199_v8 }
 0x148   : > { %v1429_v11 = vpop.f32.mrf.mxu2  ;;  %v1542_v12 = vpop.f32.mrf.mxu3  ;;  %2378 = vmatpush.msra.mxu3 %v970_v41 }
 0x149   : > { %v1430_v13 = vadd.f32 %v1429_v11, %v1317_v10  ;;  %v1206_v14 = vpop.f32.mrf.mxu0  ;;  %v254_v10 = vld [vmem:[%s5168_s26 + $0x330] sm:$0xff]  ;;  %v256_v11 = vld [vmem:[%s5168_s26 + $0x340] sm:$0xff] }
 0x14b   : > { %v5613_v21 = vadd.f32 %v1542_v12, %v1430_v13  ;;  %v257_v12 = vld [vmem:[%s5168_s26 + $0x348] sm:$0xff] }
 0x14c   : > { %v1319_v23 = vpop.f32.mrf.mxu1  ;;  %1609 = vmatmul.f32.gmra.mxu0 %v212_v17 }
 0x14d   : > { %1835 = vmatmul.f32.gmra.mxu2 %v214_v18  ;;  %1948 = vmatmul.f32.gmra.mxu3 %v215_v20  ;;  %v1320_v26 = vadd.f32 %v1319_v23, %v1206_v14  ;;  %v908_v14 = vld [vmem:[%s7934_s1 + $0x9a0] sm:$0xff]  ;;  %v255_v18 = vld [vmem:[%s5168_s26 + $0x338] sm:$0xff] }
 0x14e   : > { %2151 = vmatpush.msra.mxu1 %v908_v14 }
 0x14f   : > { %1722 = vmatmul.f32.gmra.mxu1 %v213_v24 }
 0x150   : > { %v1432_v29 = vpop.f32.mrf.mxu2  ;;  %v1545_v30 = vpop.f32.mrf.mxu3 }
 0x151   : > { %v1433_v32 = vadd.f32 %v1432_v29, %v1320_v26  ;;  %v1209_v35 = vpop.f32.mrf.mxu0  ;;  %v271_v29 = vld [vmem:[%s5168_s26 + $0x3b8] sm:$0xff] }
 0x153   : > { %v5628_v40 = vadd.f32 %v1545_v30, %v1433_v32 }
 0x154   : > { %v1322_v42 = vpop.f32.mrf.mxu1  ;;  %1612 = vmatmul.f32.gmra.mxu0 %v226_v36  ;;  %v938_v36 = vld [vmem:[%s7934_s1 + $0xa90] sm:$0xff] }
 0x155   : > { %1838 = vmatmul.f32.gmra.mxu2 %v228_v38  ;;  %1951 = vmatmul.f32.gmra.mxu3 %v229_v39  ;;  %v1323_v44 = vadd.f32 %v1322_v42, %v1209_v35  ;;  %v269_v35 = vld [vmem:[%s5168_s26 + $0x3a8] sm:$0xff]  ;;  %v874_v39 = vld [vmem:[%s7934_s1 + $0x890] sm:$0xff] }
 0x156   : > { %2265 = vmatpush.msra.mxu2 %v938_v36  ;;  %2039 = vmatpush.msra.mxu0 %v874_v39  ;;  %v311_v36 = vld [vmem:[%s5168_s26 + $0x4f8] sm:$0xff] }
 0x157   : > { %1725 = vmatmul.f32.gmra.mxu1 %v227_v43 }
 0x158   : > { %v1435_v46 = vpop.f32.mrf.mxu2  ;;  %v1548_v48 = vpop.f32.mrf.mxu3 }
 0x159   : > { %v1436_v51 = vadd.f32 %v1435_v46, %v1323_v44  ;;  %v1212_v52 = vpop.f32.mrf.mxu0 }
 0x15b   : > { %v5637_v56 = vadd.f32 %v1548_v48, %v1436_v51  ;;  %v282_v48 = vld [vmem:[%s5168_s26 + $0x410] sm:$0xff]  ;;  %v284_v51 = vld [vmem:[%s5168_s26 + $0x420] sm:$0xff] }
 0x15c   : > { %v1325_v59 = vpop.f32.mrf.mxu1  ;;  %1615 = vmatmul.f32.gmra.mxu0 %v240_v53 }
 0x15d   : > { %1841 = vmatmul.f32.gmra.mxu2 %v242_v54  ;;  %1954 = vmatmul.f32.gmra.mxu3 %v243_v55  ;;  %v1326_v62 = vadd.f32 %v1325_v59, %v1212_v52  ;;  %v285_v52 = vld [vmem:[%s5168_s26 + $0x428] sm:$0xff]  ;;  %v906_v54 = vld [vmem:[%s7934_s1 + $0x990] sm:$0xff]  ;;  %v283_v59 = vld [vmem:[%s5168_s26 + $0x418] sm:$0xff] }
 0x15e   : > { %2152 = vmatpush.msra.mxu1 %v906_v54  ;;  %v325_v54 = vld [vmem:[%s5168_s26 + $0x568] sm:$0xff] }
 0x15f   : > { %1728 = vmatmul.f32.gmra.mxu1 %v241_v60 }
 0x160   : > { %v1438_v3 = vpop.f32.mrf.mxu2  ;;  %v1551_v6 = vpop.f32.mrf.mxu3 }
 0x161   : > { %v1439_v7 = vadd.f32 %v1438_v3, %v1326_v62  ;;  %v1215_v8 = vpop.f32.mrf.mxu0  ;;  %v296_v3 = vld [vmem:[%s5168_s26 + $0x480] sm:$0xff] }
 0x163   : > { %v5652_v13 = vadd.f32 %v1551_v6, %v1439_v7  ;;  %v298_v6 = vld [vmem:[%s5168_s26 + $0x490] sm:$0xff]  ;;  %v299_v7 = vld [vmem:[%s5168_s26 + $0x498] sm:$0xff] }
 0x164   : > { %v1328_v17 = vpop.f32.mrf.mxu1  ;;  %1618 = vmatmul.f32.gmra.mxu0 %v254_v10 }
 0x165   : > { %1844 = vmatmul.f32.gmra.mxu2 %v256_v11  ;;  %1957 = vmatmul.f32.gmra.mxu3 %v257_v12  ;;  %v1329_v20 = vadd.f32 %v1328_v17, %v1215_v8  ;;  %v297_v11 = vld [vmem:[%s5168_s26 + $0x488] sm:$0xff]  ;;  %v936_v12 = vld [vmem:[%s7934_s1 + $0xa80] sm:$0xff] }
 0x166   : > { %2266 = vmatpush.msra.mxu2 %v936_v12  ;;  %v872_v17 = vld [vmem:[%s7934_s1 + $0x880] sm:$0xff]  ;;  %v902_v12 = vld [vmem:[%s7934_s1 + $0x970] sm:$0xff] }
 0x167   : > { %1731 = vmatmul.f32.gmra.mxu1 %v255_v18  ;;  %v968_v18 = vld [vmem:[%s7934_s1 + $0xb80] sm:$0xff]  ;;  %2040 = vmatpush.msra.mxu0 %v872_v17  ;;  %v339_v17 = vld [vmem:[%s5168_s26 + $0x5d8] sm:$0xff] }
 0x168   : > { %v1441_v23 = vpop.f32.mrf.mxu2  ;;  %v1554_v24 = vpop.f32.mrf.mxu3  ;;  %2379 = vmatpush.msra.mxu3 %v968_v18 }
 0x169   : > { %v1442_v25 = vadd.f32 %v1441_v23, %v1329_v20  ;;  %v1218_v26 = vpop.f32.mrf.mxu0 }
 0x16b   : > { %v5661_v30 = vadd.f32 %v1554_v24, %v1442_v25 }
 0x16c   : > { %v1331_v32 = vpop.f32.mrf.mxu1  ;;  %1621 = vmatmul.f32.gmra.mxu0 %v268_v27  ;;  %v312_v27 = vld [vmem:[%s5168_s26 + $0x500] sm:$0xff] }
 0x16d   : > { %1847 = vmatmul.f32.gmra.mxu2 %v270_v28  ;;  %1960 = vmatmul.f32.gmra.mxu3 %v271_v29  ;;  %v1332_v38 = vadd.f32 %v1331_v32, %v1218_v26  ;;  %v310_v26 = vld [vmem:[%s5168_s26 + $0x4f0] sm:$0xff]  ;;  %v313_v28 = vld [vmem:[%s5168_s26 + $0x508] sm:$0xff]  ;;  %v904_v32 = vld [vmem:[%s7934_s1 + $0x980] sm:$0xff] }
 0x16e   : > { %2153 = vmatpush.msra.mxu1 %v904_v32 }
 0x16f   : > { %1734 = vmatmul.f32.gmra.mxu1 %v269_v35 }
 0x170   : > { %v1444_v42 = vpop.f32.mrf.mxu2  ;;  %v1557_v43 = vpop.f32.mrf.mxu3  ;;  %2154 = vmatpush.msra.mxu1 %v902_v12  ;;  %v382_v12 = vld [vmem:[%s5168_s26 + $0x730] sm:$0xff] }
 0x171   : > { %v1445_v44 = vadd.f32 %v1444_v42, %v1332_v38  ;;  %v1221_v46 = vpop.f32.mrf.mxu0 }
 0x173   : > { %v5676_v53 = vadd.f32 %v1557_v43, %v1445_v44  ;;  %v324_v44 = vld [vmem:[%s5168_s26 + $0x560] sm:$0xff] }
 0x174   : > { %v1334_v55 = vpop.f32.mrf.mxu1  ;;  %1624 = vmatmul.f32.gmra.mxu0 %v282_v48  ;;  %v327_v48 = vld [vmem:[%s5168_s26 + $0x578] sm:$0xff] }
 0x175   : > { %1850 = vmatmul.f32.gmra.mxu2 %v284_v51  ;;  %1963 = vmatmul.f32.gmra.mxu3 %v285_v52  ;;  %v1335_v60 = vadd.f32 %v1334_v55, %v1221_v46  ;;  %v326_v46 = vld [vmem:[%s5168_s26 + $0x570] sm:$0xff] }
 0x176   : > { %v934_v55 = vld [vmem:[%s7934_s1 + $0xa70] sm:$0xff] }
 0x177   : > { %1737 = vmatmul.f32.gmra.mxu1 %v283_v59  ;;  %2267 = vmatpush.msra.mxu2 %v934_v55  ;;  %v369_v55 = vld [vmem:[%s5168_s26 + $0x6c8] sm:$0xff] }
 0x178   : > { %v1447_v61 = vpop.f32.mrf.mxu2  ;;  %v1560_v62 = vpop.f32.mrf.mxu3 }
 0x179   : > { %v1448_v63 = vadd.f32 %v1447_v61, %v1335_v60  ;;  %v1224_v1 = vpop.f32.mrf.mxu0  ;;  %v870_v60 = vld [vmem:[%s7934_s1 + $0x870] sm:$0xff] }
 0x17a   : > { %v966_v61 = vld [vmem:[%s7934_s1 + $0xb70] sm:$0xff]  ;;  %2041 = vmatpush.msra.mxu0 %v870_v60  ;;  %v900_v60 = vld [vmem:[%s7934_s1 + $0x960] sm:$0xff] }
 0x17b   : > { %v5685_v8 = vadd.f32 %v1560_v62, %v1448_v63  ;;  %2380 = vmatpush.msra.mxu3 %v966_v61  ;;  %2155 = vmatpush.msra.mxu1 %v900_v60 }
 0x17c   : > { %v1337_v10 = vpop.f32.mrf.mxu1  ;;  %1627 = vmatmul.f32.gmra.mxu0 %v296_v3 }
 0x17d   : > { %1853 = vmatmul.f32.gmra.mxu2 %v298_v6  ;;  %1966 = vmatmul.f32.gmra.mxu3 %v299_v7  ;;  %v1338_v14 = vadd.f32 %v1337_v10, %v1224_v1  ;;  %v338_v6 = vld [vmem:[%s5168_s26 + $0x5d0] sm:$0xff]  ;;  %v340_v7 = vld [vmem:[%s5168_s26 + $0x5e0] sm:$0xff]  ;;  %v341_v10 = vld [vmem:[%s5168_s26 + $0x5e8] sm:$0xff] }
 0x17f   : > { %1740 = vmatmul.f32.gmra.mxu1 %v297_v11 }
 0x180   : > { %v1450_v20 = vpop.f32.mrf.mxu2  ;;  %v1563_v23 = vpop.f32.mrf.mxu3 }
 0x181   : > { %v1451_v24 = vadd.f32 %v1450_v20, %v1338_v14  ;;  %v1227_v25 = vpop.f32.mrf.mxu0 }
 0x183   : > { %v5700_v29 = vadd.f32 %v1563_v23, %v1451_v24 }
 0x184   : > { %v1340_v35 = vpop.f32.mrf.mxu1  ;;  %1630 = vmatmul.f32.gmra.mxu0 %v310_v26  ;;  %v352_v26 = vld [vmem:[%s5168_s26 + $0x640] sm:$0xff] }
 0x185   : > { %1856 = vmatmul.f32.gmra.mxu2 %v312_v27  ;;  %1969 = vmatmul.f32.gmra.mxu3 %v313_v28  ;;  %v1341_v38 = vadd.f32 %v1340_v35, %v1227_v25  ;;  %v354_v27 = vld [vmem:[%s5168_s26 + $0x650] sm:$0xff]  ;;  %v355_v28 = vld [vmem:[%s5168_s26 + $0x658] sm:$0xff] }
 0x187   : > { %1743 = vmatmul.f32.gmra.mxu1 %v311_v36  ;;  %v353_v36 = vld [vmem:[%s5168_s26 + $0x648] sm:$0xff] }
 0x188   : > { %v1453_v39 = vpop.f32.mrf.mxu2  ;;  %v1566_v41 = vpop.f32.mrf.mxu3 }
 0x189   : > { %v1454_v42 = vadd.f32 %v1453_v39, %v1341_v38  ;;  %v1230_v43 = vpop.f32.mrf.mxu0  ;;  %v932_v38 = vld [vmem:[%s7934_s1 + $0xa60] sm:$0xff] }
 0x18a   : > { %2268 = vmatpush.msra.mxu2 %v932_v38  ;;  %v394_v38 = vld [vmem:[%s5168_s26 + $0x790] sm:$0xff] }
 0x18b   : > { %v5709_v51 = vadd.f32 %v1566_v41, %v1454_v42  ;;  %v868_v41 = vld [vmem:[%s7934_s1 + $0x860] sm:$0xff] }
 0x18c   : > { %v1343_v52 = vpop.f32.mrf.mxu1  ;;  %1633 = vmatmul.f32.gmra.mxu0 %v324_v44  ;;  %v964_v42 = vld [vmem:[%s7934_s1 + $0xb60] sm:$0xff] }
 0x18d   : > { %1859 = vmatmul.f32.gmra.mxu2 %v326_v46  ;;  %1972 = vmatmul.f32.gmra.mxu3 %v327_v48  ;;  %v1344_v59 = vadd.f32 %v1343_v52, %v1230_v43  ;;  %v366_v52 = vld [vmem:[%s5168_s26 + $0x6b0] sm:$0xff] }
 0x18e   : > { %2042 = vmatpush.msra.mxu0 %v868_v41  ;;  %2381 = vmatpush.msra.mxu3 %v964_v42  ;;  %v397_v41 = vld [vmem:[%s5168_s26 + $0x7a8] sm:$0xff] }
 0x18f   : > { %1746 = vmatmul.f32.gmra.mxu1 %v325_v54  ;;  %v368_v54 = vld [vmem:[%s5168_s26 + $0x6c0] sm:$0xff] }
 0x190   : > { %v1456_v62 = vpop.f32.mrf.mxu2  ;;  %v1569_v63 = vpop.f32.mrf.mxu3 }
 0x191   : > { %v1457_v1 = vadd.f32 %v1456_v62, %v1344_v59  ;;  %v1233_v3 = vpop.f32.mrf.mxu0  ;;  %v367_v62 = vld [vmem:[%s5168_s26 + $0x6b8] sm:$0xff] }
 0x193   : > { %v5724_v11 = vadd.f32 %v1569_v63, %v1457_v1 }
 0x194   : > { %v1346_v14 = vpop.f32.mrf.mxu1  ;;  %1636 = vmatmul.f32.gmra.mxu0 %v338_v6 }
 0x195   : > { %1862 = vmatmul.f32.gmra.mxu2 %v340_v7  ;;  %1975 = vmatmul.f32.gmra.mxu3 %v341_v10  ;;  %v1347_v18 = vadd.f32 %v1346_v14, %v1233_v3  ;;  %v380_v10 = vld [vmem:[%s5168_s26 + $0x720] sm:$0xff]  ;;  %v383_v14 = vld [vmem:[%s5168_s26 + $0x738] sm:$0xff] }
 0x197   : > { %1749 = vmatmul.f32.gmra.mxu1 %v339_v17 }
 0x198   : > { %v1459_v20 = vpop.f32.mrf.mxu2  ;;  %v1572_v23 = vpop.f32.mrf.mxu3 }
 0x199   : > { %v1460_v24 = vadd.f32 %v1459_v20, %v1347_v18  ;;  %v1236_v25 = vpop.f32.mrf.mxu0 }
 0x19b   : > { %v5733_v32 = vadd.f32 %v1572_v23, %v1460_v24  ;;  %v381_v23 = vld [vmem:[%s5168_s26 + $0x728] sm:$0xff]  ;;  %v930_v24 = vld [vmem:[%s7934_s1 + $0xa50] sm:$0xff] }
 0x19c   : > { %v1349_v35 = vpop.f32.mrf.mxu1  ;;  %1639 = vmatmul.f32.gmra.mxu0 %v352_v26  ;;  %2269 = vmatpush.msra.mxu2 %v930_v24  ;;  %v866_v26 = vld [vmem:[%s7934_s1 + $0x850] sm:$0xff] }
 0x19d   : > { %1865 = vmatmul.f32.gmra.mxu2 %v354_v27  ;;  %1978 = vmatmul.f32.gmra.mxu3 %v355_v28  ;;  %v1350_v39 = vadd.f32 %v1349_v35, %v1236_v25 }
 0x19e   : > { %2043 = vmatpush.msra.mxu0 %v866_v26  ;;  %v424_v26 = vld [vmem:[%s5168_s26 + $0x880] sm:$0xff] }
 0x19f   : > { %1752 = vmatmul.f32.gmra.mxu1 %v353_v36 }
 0x1a0   : > { %v1462_v43 = vpop.f32.mrf.mxu2  ;;  %v1575_v44 = vpop.f32.mrf.mxu3 }
 0x1a1   : > { %v1463_v46 = vadd.f32 %v1462_v43, %v1350_v39  ;;  %v1239_v48 = vpop.f32.mrf.mxu0  ;;  %v396_v39 = vld [vmem:[%s5168_s26 + $0x7a0] sm:$0xff] }
 0x1a3   : > { %v5748_v59 = vadd.f32 %v1575_v44, %v1463_v46  ;;  %v898_v44 = vld [vmem:[%s7934_s1 + $0x950] sm:$0xff] }
 0x1a4   : > { %v1352_v61 = vpop.f32.mrf.mxu1  ;;  %1642 = vmatmul.f32.gmra.mxu0 %v366_v52  ;;  %2156 = vmatpush.msra.mxu1 %v898_v44 }
 0x1a5   : > { %1868 = vmatmul.f32.gmra.mxu2 %v368_v54  ;;  %1981 = vmatmul.f32.gmra.mxu3 %v369_v55  ;;  %v1353_v63 = vadd.f32 %v1352_v61, %v1239_v48  ;;  %v395_v48 = vld [vmem:[%s5168_s26 + $0x798] sm:$0xff] }
 0x1a7   : > { %1755 = vmatmul.f32.gmra.mxu1 %v367_v62  ;;  %v408_v62 = vld [vmem:[%s5168_s26 + $0x800] sm:$0xff] }
 0x1a8   : > { %v1465_v1 = vpop.f32.mrf.mxu2  ;;  %v1578_v3 = vpop.f32.mrf.mxu3 }
 0x1a9   : > { %v1466_v6 = vadd.f32 %v1465_v1, %v1353_v63  ;;  %v1598_v7 = vpop.f32.mrf.mxu0  ;;  %v411_v63 = vld [vmem:[%s5168_s26 + $0x818] sm:$0xff] }
 0x1aa   : > { %v1599_v18 = vadd.f32 %v1598_v7, %v5388_v57  ;;  %v962_v57 = vld [vmem:[%s7934_s1 + $0xb50] sm:$0xff]  ;;  %v409_v7 = vld [vmem:[%s5168_s26 + $0x808] sm:$0xff] }
 0x1ab   : > { %v5757_v17 = vadd.f32 %v1578_v3, %v1466_v6  ;;  %2382 = vmatpush.msra.mxu3 %v962_v57  ;;  %v425_v57 = vld [vmem:[%s5168_s26 + $0x888] sm:$0xff] }
 0x1ac   : > { %v1711_v20 = vpop.f32.mrf.mxu1  ;;  %1645 = vmatmul.f32.gmra.mxu0 %v380_v10  ;;  %v928_v10 = vld [vmem:[%s7934_s1 + $0xa40] sm:$0xff] }
 0x1ad   : > { %1871 = vmatmul.f32.gmra.mxu2 %v382_v12  ;;  %1984 = vmatmul.f32.gmra.mxu3 %v383_v14  ;;  %v1712_v25 = vadd.f32 %v1711_v20, %v1599_v18  ;;  %v864_v14 = vld [vmem:[%s7934_s1 + $0x840] sm:$0xff] }
 0x1ae   : > { %2270 = vmatpush.msra.mxu2 %v928_v10  ;;  %2044 = vmatpush.msra.mxu0 %v864_v14  ;;  %v452_v14 = vld [vmem:[%s5168_s26 + $0x960] sm:$0xff] }
 0x1af   : > { %1758 = vmatmul.f32.gmra.mxu1 %v381_v23 }
 0x1b0   : > { %v1824_v27 = vpop.f32.mrf.mxu2  ;;  %v1937_v28 = vpop.f32.mrf.mxu3 }
 0x1b1   : > { %v1825_v35 = vadd.f32 %v1824_v27, %v1712_v25  ;;  %v1601_v36 = vpop.f32.mrf.mxu0  ;;  %v422_v25 = vld [vmem:[%s5168_s26 + $0x870] sm:$0xff] }
 0x1b2   : > { %v1602_v43 = vadd.f32 %v1601_v36, %v5397_v5  ;;  %v410_v5 = vld [vmem:[%s5168_s26 + $0x810] sm:$0xff] }
 0x1b3   : > { %v5773_v42 = vadd.f32 %v1937_v28, %v1825_v35  ;;  %v896_v35 = vld [vmem:[%s7934_s1 + $0x940] sm:$0xff] }
 0x1b4   : > { %v1714_v46 = vpop.f32.mrf.mxu1  ;;  %1648 = vmatmul.f32.gmra.mxu0 %v394_v38  ;;  %v423_v38 = vld [vmem:[%s5168_s26 + $0x878] sm:$0xff]  ;;  %2157 = vmatpush.msra.mxu1 %v896_v35 }
 0x1b5   : > { %1874 = vmatmul.f32.gmra.mxu2 %v396_v39  ;;  %1987 = vmatmul.f32.gmra.mxu3 %v397_v41  ;;  %v1715_v52 = vadd.f32 %v1714_v46, %v1602_v43 }
 0x1b7   : > { %1761 = vmatmul.f32.gmra.mxu1 %v395_v48  ;;  %v436_v48 = vld [vmem:[%s5168_s26 + $0x8e0] sm:$0xff] }
 0x1b8   : > { %v1827_v54 = vpop.f32.mrf.mxu2  ;;  %v1940_v55 = vpop.f32.mrf.mxu3 }
 0x1b9   : > { %v1828_v60 = vadd.f32 %v1827_v54, %v1715_v52  ;;  %v1604_v61 = vpop.f32.mrf.mxu0  ;;  %v439_v52 = vld [vmem:[%s5168_s26 + $0x8f8] sm:$0xff] }
 0x1ba   : > { %v1605_v3 = vadd.f32 %v1604_v61, %v5412_v19  ;;  %v960_v19 = vld [vmem:[%s7934_s1 + $0xb40] sm:$0xff]  ;;  %v437_v61 = vld [vmem:[%s5168_s26 + $0x8e8] sm:$0xff] }
 0x1bb   : > { %v5783_v1 = vadd.f32 %v1940_v55, %v1828_v60  ;;  %2383 = vmatpush.msra.mxu3 %v960_v19  ;;  %v453_v19 = vld [vmem:[%s5168_s26 + $0x968] sm:$0xff] }
 0x1bc   : > { %v1717_v6 = vpop.f32.mrf.mxu1  ;;  %1651 = vmatmul.f32.gmra.mxu0 %v408_v62  ;;  %v926_v62 = vld [vmem:[%s7934_s1 + $0xa30] sm:$0xff] }
 0x1bd   : > { %1877 = vmatmul.f32.gmra.mxu2 %v410_v5  ;;  %1990 = vmatmul.f32.gmra.mxu3 %v411_v63  ;;  %v1718_v12 = vadd.f32 %v1717_v6, %v1605_v3  ;;  %v862_v63 = vld [vmem:[%s7934_s1 + $0x830] sm:$0xff] }
 0x1be   : > { %2271 = vmatpush.msra.mxu2 %v926_v62  ;;  %2045 = vmatpush.msra.mxu0 %v862_v63  ;;  %v480_v63 = vld [vmem:[%s5168_s26 + $0xa40] sm:$0xff] }
 0x1bf   : > { %1764 = vmatmul.f32.gmra.mxu1 %v409_v7 }
 0x1c0   : > { %v1830_v18 = vpop.f32.mrf.mxu2  ;;  %v1943_v20 = vpop.f32.mrf.mxu3 }
 0x1c1   : > { %v1831_v23 = vadd.f32 %v1830_v18, %v1718_v12  ;;  %v1607_v24 = vpop.f32.mrf.mxu0  ;;  %v450_v12 = vld [vmem:[%s5168_s26 + $0x950] sm:$0xff] }
 0x1c2   : > { %v1608_v28 = vadd.f32 %v1607_v24, %v5421_v31  ;;  %v438_v31 = vld [vmem:[%s5168_s26 + $0x8f0] sm:$0xff] }
 0x1c3   : > { %v5799_v27 = vadd.f32 %v1943_v20, %v1831_v23  ;;  %v894_v23 = vld [vmem:[%s7934_s1 + $0x930] sm:$0xff] }
 0x1c4   : > { %v1720_v36 = vpop.f32.mrf.mxu1  ;;  %1654 = vmatmul.f32.gmra.mxu0 %v422_v25  ;;  %v451_v25 = vld [vmem:[%s5168_s26 + $0x958] sm:$0xff]  ;;  %2158 = vmatpush.msra.mxu1 %v894_v23 }
 0x1c5   : > { %1880 = vmatmul.f32.gmra.mxu2 %v424_v26  ;;  %1993 = vmatmul.f32.gmra.mxu3 %v425_v57  ;;  %v1721_v39 = vadd.f32 %v1720_v36, %v1608_v28 }
 0x1c7   : > { %1767 = vmatmul.f32.gmra.mxu1 %v423_v38  ;;  %v464_v38 = vld [vmem:[%s5168_s26 + $0x9c0] sm:$0xff] }
 0x1c8   : > { %v1833_v41 = vpop.f32.mrf.mxu2  ;;  %v1946_v43 = vpop.f32.mrf.mxu3 }
 0x1c9   : > { %v1834_v44 = vadd.f32 %v1833_v41, %v1721_v39  ;;  %v1610_v46 = vpop.f32.mrf.mxu0  ;;  %v467_v39 = vld [vmem:[%s5168_s26 + $0x9d8] sm:$0xff] }
 0x1ca   : > { %v1611_v55 = vadd.f32 %v1610_v46, %v5436_v45  ;;  %v958_v45 = vld [vmem:[%s7934_s1 + $0xb30] sm:$0xff]  ;;  %v465_v46 = vld [vmem:[%s5168_s26 + $0x9c8] sm:$0xff] }
 0x1cb   : > { %v5809_v54 = vadd.f32 %v1946_v43, %v1834_v44  ;;  %2384 = vmatpush.msra.mxu3 %v958_v45  ;;  %v481_v45 = vld [vmem:[%s5168_s26 + $0xa48] sm:$0xff] }
 0x1cc   : > { %v1723_v60 = vpop.f32.mrf.mxu1  ;;  %1657 = vmatmul.f32.gmra.mxu0 %v436_v48  ;;  %v924_v48 = vld [vmem:[%s7934_s1 + $0xa20] sm:$0xff] }
 0x1cd   : > { %1883 = vmatmul.f32.gmra.mxu2 %v438_v31  ;;  %1996 = vmatmul.f32.gmra.mxu3 %v439_v52  ;;  %v1724_v5 = vadd.f32 %v1723_v60, %v1611_v55  ;;  %v860_v52 = vld [vmem:[%s7934_s1 + $0x820] sm:$0xff] }
 0x1ce   : > { %2272 = vmatpush.msra.mxu2 %v924_v48  ;;  %2046 = vmatpush.msra.mxu0 %v860_v52  ;;  %v508_v52 = vld [vmem:[%s5168_s26 + $0xb20] sm:$0xff] }
 0x1cf   : > { %1770 = vmatmul.f32.gmra.mxu1 %v437_v61 }
 0x1d0   : > { %v1836_v3 = vpop.f32.mrf.mxu2  ;;  %v1949_v6 = vpop.f32.mrf.mxu3 }
 0x1d1   : > { %v1837_v7 = vadd.f32 %v1836_v3, %v1724_v5  ;;  %v1613_v10 = vpop.f32.mrf.mxu0  ;;  %v478_v5 = vld [vmem:[%s5168_s26 + $0xa30] sm:$0xff] }
 0x1d2   : > { %v1614_v20 = vadd.f32 %v1613_v10, %v5445_v58  ;;  %v466_v58 = vld [vmem:[%s5168_s26 + $0x9d0] sm:$0xff] }
 0x1d3   : > { %v5825_v18 = vadd.f32 %v1949_v6, %v1837_v7  ;;  %v892_v7 = vld [vmem:[%s7934_s1 + $0x920] sm:$0xff] }
 0x1d4   : > { %v1726_v24 = vpop.f32.mrf.mxu1  ;;  %1660 = vmatmul.f32.gmra.mxu0 %v450_v12  ;;  %v479_v12 = vld [vmem:[%s5168_s26 + $0xa38] sm:$0xff]  ;;  %2159 = vmatpush.msra.mxu1 %v892_v7 }
 0x1d5   : > { %1886 = vmatmul.f32.gmra.mxu2 %v452_v14  ;;  %1999 = vmatmul.f32.gmra.mxu3 %v453_v19  ;;  %v1727_v26 = vadd.f32 %v1726_v24, %v1614_v20 }
 0x1d7   : > { %1773 = vmatmul.f32.gmra.mxu1 %v451_v25  ;;  %v492_v25 = vld [vmem:[%s5168_s26 + $0xaa0] sm:$0xff] }
 0x1d8   : > { %v1839_v57 = vpop.f32.mrf.mxu2  ;;  %v1952_v28 = vpop.f32.mrf.mxu3 }
 0x1d9   : > { %v1840_v35 = vadd.f32 %v1839_v57, %v1727_v26  ;;  %v1616_v36 = vpop.f32.mrf.mxu0  ;;  %v495_v26 = vld [vmem:[%s5168_s26 + $0xab8] sm:$0xff] }
 0x1da   : > { %v1617_v43 = vadd.f32 %v1616_v36, %v5460_v9  ;;  %v956_v9 = vld [vmem:[%s7934_s1 + $0xb20] sm:$0xff]  ;;  %v493_v36 = vld [vmem:[%s5168_s26 + $0xaa8] sm:$0xff] }
 0x1db   : > { %v5835_v41 = vadd.f32 %v1952_v28, %v1840_v35  ;;  %2385 = vmatpush.msra.mxu3 %v956_v9  ;;  %v509_v9 = vld [vmem:[%s5168_s26 + $0xb28] sm:$0xff] }
 0x1dc   : > { %v1729_v44 = vpop.f32.mrf.mxu1  ;;  %1663 = vmatmul.f32.gmra.mxu0 %v464_v38  ;;  %v922_v38 = vld [vmem:[%s7934_s1 + $0xa10] sm:$0xff] }
 0x1dd   : > { %1889 = vmatmul.f32.gmra.mxu2 %v466_v58  ;;  %2002 = vmatmul.f32.gmra.mxu3 %v467_v39  ;;  %v1730_v31 = vadd.f32 %v1729_v44, %v1617_v43  ;;  %v858_v39 = vld [vmem:[%s7934_s1 + $0x810] sm:$0xff] }
 0x1de   : > { %2273 = vmatpush.msra.mxu2 %v922_v38  ;;  %2047 = vmatpush.msra.mxu0 %v858_v39  ;;  %v536_v39 = vld [vmem:[%s5168_s26 + $0xc00] sm:$0xff] }
 0x1df   : > { %1776 = vmatmul.f32.gmra.mxu1 %v465_v46 }
 0x1e0   : > { %v1842_v55 = vpop.f32.mrf.mxu2  ;;  %v1955_v60 = vpop.f32.mrf.mxu3 }
 0x1e1   : > { %v1843_v61 = vadd.f32 %v1842_v55, %v1730_v31  ;;  %v1619_v62 = vpop.f32.mrf.mxu0  ;;  %v506_v31 = vld [vmem:[%s5168_s26 + $0xb10] sm:$0xff] }
 0x1e2   : > { %v1620_v6 = vadd.f32 %v1619_v62, %v5469_v22  ;;  %v494_v22 = vld [vmem:[%s5168_s26 + $0xab0] sm:$0xff] }
 0x1e3   : > { %v5851_v3 = vadd.f32 %v1955_v60, %v1843_v61  ;;  %v890_v61 = vld [vmem:[%s7934_s1 + $0x910] sm:$0xff] }
 0x1e4   : > { %v1732_v10 = vpop.f32.mrf.mxu1  ;;  %1666 = vmatmul.f32.gmra.mxu0 %v478_v5  ;;  %v507_v5 = vld [vmem:[%s5168_s26 + $0xb18] sm:$0xff]  ;;  %2160 = vmatpush.msra.mxu1 %v890_v61 }
 0x1e5   : > { %1892 = vmatmul.f32.gmra.mxu2 %v480_v63  ;;  %2005 = vmatmul.f32.gmra.mxu3 %v481_v45  ;;  %v1733_v14 = vadd.f32 %v1732_v10, %v1620_v6 }
 0x1e7   : > { %1779 = vmatmul.f32.gmra.mxu1 %v479_v12  ;;  %v520_v12 = vld [vmem:[%s5168_s26 + $0xb80] sm:$0xff] }
 0x1e8   : > { %v1845_v19 = vpop.f32.mrf.mxu2  ;;  %v1958_v20 = vpop.f32.mrf.mxu3 }
 0x1e9   : > { %v1846_v23 = vadd.f32 %v1845_v19, %v1733_v14  ;;  %v1622_v24 = vpop.f32.mrf.mxu0  ;;  %v523_v14 = vld [vmem:[%s5168_s26 + $0xb98] sm:$0xff] }
 0x1ea   : > { %v1623_v28 = vadd.f32 %v1622_v24, %v5484_v37  ;;  %v954_v37 = vld [vmem:[%s7934_s1 + $0xb10] sm:$0xff]  ;;  %v521_v24 = vld [vmem:[%s5168_s26 + $0xb88] sm:$0xff] }
 0x1eb   : > { %v5861_v57 = vadd.f32 %v1958_v20, %v1846_v23  ;;  %2386 = vmatpush.msra.mxu3 %v954_v37  ;;  %v537_v37 = vld [vmem:[%s5168_s26 + $0xc08] sm:$0xff] }
 0x1ec   : > { %v1735_v35 = vpop.f32.mrf.mxu1  ;;  %1669 = vmatmul.f32.gmra.mxu0 %v492_v25  ;;  %v920_v25 = vld [vmem:[%s7934_s1 + $0xa00] sm:$0xff] }
 0x1ed   : > { %1895 = vmatmul.f32.gmra.mxu2 %v494_v22  ;;  %2008 = vmatmul.f32.gmra.mxu3 %v495_v26  ;;  %v1736_v58 = vadd.f32 %v1735_v35, %v1623_v28  ;;  %v856_v26 = vld [vmem:[%s7934_s1 + $0x800] sm:$0xff] }
 0x1ee   : > { %2274 = vmatpush.msra.mxu2 %v920_v25  ;;  %2048 = vmatpush.msra.mxu0 %v856_v26  ;;  %v564_v26 = vld [vmem:[%s5168_s26 + $0xce0] sm:$0xff] }
 0x1ef   : > { %1782 = vmatmul.f32.gmra.mxu1 %v493_v36 }
 0x1f0   : > { %v1848_v43 = vpop.f32.mrf.mxu2  ;;  %v1961_v44 = vpop.f32.mrf.mxu3 }
 0x1f1   : > { %v1849_v46 = vadd.f32 %v1848_v43, %v1736_v58  ;;  %v1625_v48 = vpop.f32.mrf.mxu0  ;;  %v534_v58 = vld [vmem:[%s5168_s26 + $0xbf0] sm:$0xff] }
 0x1f2   : > { %v1626_v60 = vadd.f32 %v1625_v48, %v5493_v50  ;;  %v522_v50 = vld [vmem:[%s5168_s26 + $0xb90] sm:$0xff] }
 0x1f3   : > { %v5877_v55 = vadd.f32 %v1961_v44, %v1849_v46  ;;  %v888_v46 = vld [vmem:[%s7934_s1 + $0x900] sm:$0xff] }
 0x1f4   : > { %v1738_v62 = vpop.f32.mrf.mxu1  ;;  %1672 = vmatmul.f32.gmra.mxu0 %v506_v31  ;;  %v535_v31 = vld [vmem:[%s5168_s26 + $0xbf8] sm:$0xff]  ;;  %2161 = vmatpush.msra.mxu1 %v888_v46 }
 0x1f5   : > { %1898 = vmatmul.f32.gmra.mxu2 %v508_v52  ;;  %2011 = vmatmul.f32.gmra.mxu3 %v509_v9  ;;  %v1739_v63 = vadd.f32 %v1738_v62, %v1626_v60 }
 0x1f7   : > { %1785 = vmatmul.f32.gmra.mxu1 %v507_v5  ;;  %v548_v5 = vld [vmem:[%s5168_s26 + $0xc60] sm:$0xff] }
 0x1f8   : > { %v1851_v45 = vpop.f32.mrf.mxu2  ;;  %v1964_v6 = vpop.f32.mrf.mxu3 }
 0x1f9   : > { %v1852_v7 = vadd.f32 %v1851_v45, %v1739_v63  ;;  %v1628_v10 = vpop.f32.mrf.mxu0  ;;  %v551_v63 = vld [vmem:[%s5168_s26 + $0xc78] sm:$0xff] }
 0x1fa   : > { %v1629_v20 = vadd.f32 %v1628_v10, %v5508_v2  ;;  %v952_v2 = vld [vmem:[%s7934_s1 + $0xb00] sm:$0xff]  ;;  %v549_v10 = vld [vmem:[%s5168_s26 + $0xc68] sm:$0xff] }
 0x1fb   : > { %v5887_v19 = vadd.f32 %v1964_v6, %v1852_v7  ;;  %2387 = vmatpush.msra.mxu3 %v952_v2  ;;  %v565_v2 = vld [vmem:[%s5168_s26 + $0xce8] sm:$0xff] }
 0x1fc   : > { %v1741_v23 = vpop.f32.mrf.mxu1  ;;  %1675 = vmatmul.f32.gmra.mxu0 %v520_v12  ;;  %v631_v12 = vld [vmem:[%s7934_s1 + $0xf8] sm:$0xff] }
 0x1fd   : > { %1901 = vmatmul.f32.gmra.mxu2 %v522_v50  ;;  %2014 = vmatmul.f32.gmra.mxu3 %v523_v14  ;;  %v1742_v22 = vadd.f32 %v1741_v23, %v1629_v20  ;;  %v1014_v14 = vld [vmem:[%s7934_s1 + $0xcf0] sm:$0xff] }
 0x1fe   : > { %2711 = vmatpush.msrb.mxu2 %v631_v12  ;;  %2485 = vmatpush.msrb.mxu0 %v1014_v14  ;;  %v592_v14 = vld [vmem:[%s5168_s26 + $0xdc0] sm:$0xff] }
 0x1ff   : > { %1788 = vmatmul.f32.gmra.mxu1 %v521_v24 }
 0x200   : > { %v1854_v28 = vpop.f32.mrf.mxu2  ;;  %v1967_v35 = vpop.f32.mrf.mxu3 }
 0x201   : > { %v1855_v36 = vadd.f32 %v1854_v28, %v1742_v22  ;;  %v1631_v38 = vpop.f32.mrf.mxu0  ;;  %v562_v22 = vld [vmem:[%s5168_s26 + $0xcd0] sm:$0xff] }
 0x202   : > { %v1632_v44 = vadd.f32 %v1631_v38, %v5517_v16  ;;  %v550_v16 = vld [vmem:[%s5168_s26 + $0xc70] sm:$0xff] }
 0x203   : > { %v5903_v43 = vadd.f32 %v1967_v35, %v1855_v36  ;;  %v1030_v36 = vld [vmem:[%s7934_s1 + $0xd70] sm:$0xff] }
 0x204   : > { %v1744_v48 = vpop.f32.mrf.mxu1  ;;  %1678 = vmatmul.f32.gmra.mxu0 %v534_v58  ;;  %v563_v58 = vld [vmem:[%s5168_s26 + $0xcd8] sm:$0xff]  ;;  %2606 = vmatpush.msrb.mxu1 %v1030_v36 }
 0x205   : > { %1904 = vmatmul.f32.gmra.mxu2 %v536_v39  ;;  %2017 = vmatmul.f32.gmra.mxu3 %v537_v37  ;;  %v1745_v52 = vadd.f32 %v1744_v48, %v1632_v44 }
 0x207   : > { %1791 = vmatmul.f32.gmra.mxu1 %v535_v31  ;;  %v576_v31 = vld [vmem:[%s5168_s26 + $0xd40] sm:$0xff] }
 0x208   : > { %v1857_v9 = vpop.f32.mrf.mxu2  ;;  %v1970_v60 = vpop.f32.mrf.mxu3 }
 0x209   : > { %v1858_v61 = vadd.f32 %v1857_v9, %v1745_v52  ;;  %v1634_v62 = vpop.f32.mrf.mxu0  ;;  %v579_v52 = vld [vmem:[%s5168_s26 + $0xd58] sm:$0xff] }
 0x20a   : > { %v1635_v6 = vadd.f32 %v1634_v62, %v5532_v33  ;;  %v663_v33 = vld [vmem:[%s7934_s1 + $0x1f8] sm:$0xff]  ;;  %v577_v62 = vld [vmem:[%s5168_s26 + $0xd48] sm:$0xff] }
 0x20b   : > { %v5913_v45 = vadd.f32 %v1970_v60, %v1858_v61  ;;  %2824 = vmatpush.msrb.mxu3 %v663_v33  ;;  %v593_v33 = vld [vmem:[%s5168_s26 + $0xdc8] sm:$0xff] }
 0x20c   : > { %v1747_v7 = vpop.f32.mrf.mxu1  ;;  %1681 = vmatmul.f32.gmra.mxu0 %v548_v5  ;;  %v629_v5 = vld [vmem:[%s7934_s1 + $0xe8] sm:$0xff] }
 0x20d   : > { %1907 = vmatmul.f32.gmra.mxu2 %v550_v16  ;;  %2020 = vmatmul.f32.gmra.mxu3 %v551_v63  ;;  %v1748_v50 = vadd.f32 %v1747_v7, %v1635_v6  ;;  %v661_v63 = vld [vmem:[%s7934_s1 + $0x1e8] sm:$0xff] }
 0x20e   : > { %2712 = vmatpush.msrb.mxu2 %v629_v5  ;;  %2825 = vmatpush.msrb.mxu3 %v661_v63  ;;  %v174_v5 = vld [vmem:[%s5168_s26 + $0xb0] sm:$0xff] }
 0x20f   : > { %1794 = vmatmul.f32.gmra.mxu1 %v549_v10 }
 0x210   : > { %v1860_v20 = vpop.f32.mrf.mxu2  ;;  %v1973_v23 = vpop.f32.mrf.mxu3 }
 0x211   : > { %v1861_v24 = vadd.f32 %v1860_v20, %v1748_v50  ;;  %v1637_v25 = vpop.f32.mrf.mxu0  ;;  %v590_v50 = vld [vmem:[%s5168_s26 + $0xdb0] sm:$0xff] }
 0x212   : > { %v1638_v35 = vadd.f32 %v1637_v25, %v5541_v47  ;;  %v578_v47 = vld [vmem:[%s5168_s26 + $0xd50] sm:$0xff]  ;;  %v591_v25 = vld [vmem:[%s5168_s26 + $0xdb8] sm:$0xff] }
 0x213   : > { %v5929_v28 = vadd.f32 %v1973_v23, %v1861_v24 }
 0x214   : > { %v1750_v38 = vpop.f32.mrf.mxu1  ;;  %1684 = vmatmul.f32.gmra.mxu0 %v562_v22 }
 0x215   : > { %1910 = vmatmul.f32.gmra.mxu2 %v564_v26  ;;  %2023 = vmatmul.f32.gmra.mxu3 %v565_v2  ;;  %v1751_v39 = vadd.f32 %v1750_v38, %v1638_v35  ;;  %v160_v38 = vld [vmem:[%s5168_s26 + $0x40] sm:$0xff] }
 0x217   : > { %1797 = vmatmul.f32.gmra.mxu1 %v563_v58  ;;  %v162_v58 = vld [vmem:[%s5168_s26 + $0x50] sm:$0xff] }
 0x218   : > { %v1863_v37 = vpop.f32.mrf.mxu2  ;;  %v1976_v44 = vpop.f32.mrf.mxu3 }
 0x219   : > { %v1864_v46 = vadd.f32 %v1863_v37, %v1751_v39  ;;  %v1640_v48 = vpop.f32.mrf.mxu0  ;;  %v163_v39 = vld [vmem:[%s5168_s26 + $0x58] sm:$0xff] }
 0x21a   : > { %v1641_v60 = vadd.f32 %v1640_v48, %v5556_v0  ;;  %v1012_v0 = vld [vmem:[%s7934_s1 + $0xce0] sm:$0xff]  ;;  %v627_v48 = vld [vmem:[%s7934_s1 + $0xd8] sm:$0xff] }
 0x21b   : > { %v5939_v9 = vadd.f32 %v1976_v44, %v1864_v46  ;;  %2486 = vmatpush.msrb.mxu0 %v1012_v0  ;;  %v161_v46 = vld [vmem:[%s5168_s26 + $0x48] sm:$0xff]  ;;  %2713 = vmatpush.msrb.mxu2 %v627_v48 }
 0x21c   : > { %v1753_v61 = vpop.f32.mrf.mxu1  ;;  %1687 = vmatmul.f32.gmra.mxu0 %v576_v31  ;;  %v177_v0 = vld [vmem:[%s5168_s26 + $0xc8] sm:$0xff] }
 0x21d   : > { %1913 = vmatmul.f32.gmra.mxu2 %v578_v47  ;;  %2026 = vmatmul.f32.gmra.mxu3 %v579_v52  ;;  %v1754_v16 = vadd.f32 %v1753_v61, %v1641_v60  ;;  %v1010_v47 = vld [vmem:[%s7934_s1 + $0xcd0] sm:$0xff] }
 0x21e   : > { %2487 = vmatpush.msrb.mxu0 %v1010_v47  ;;  %v204_v47 = vld [vmem:[%s5168_s26 + $0x1a0] sm:$0xff] }
 0x21f   : > { %1800 = vmatmul.f32.gmra.mxu1 %v577_v62 }
 0x220   : > { %v1866_v6 = vpop.f32.mrf.mxu2  ;;  %v1979_v7 = vpop.f32.mrf.mxu3 }
 0x221   : > { %v1867_v10 = vadd.f32 %v1866_v6, %v1754_v16  ;;  %v1643_v12 = vpop.f32.mrf.mxu0  ;;  %v176_v16 = vld [vmem:[%s5168_s26 + $0xc0] sm:$0xff] }
 0x222   : > { %v1644_v23 = vadd.f32 %v1643_v12, %v5565_v15  ;;  %v175_v12 = vld [vmem:[%s5168_s26 + $0xb8] sm:$0xff] }
 0x223   : > { %v5955_v20 = vadd.f32 %v1979_v7, %v1867_v10  ;;  %v1028_v7 = vld [vmem:[%s7934_s1 + $0xd60] sm:$0xff] }
 0x224   : > { %v1756_v24 = vpop.f32.mrf.mxu1  ;;  %1690 = vmatmul.f32.gmra.mxu0 %v590_v50  ;;  %2607 = vmatpush.msrb.mxu1 %v1028_v7 }
 0x225   : > { %1916 = vmatmul.f32.gmra.mxu2 %v592_v14  ;;  %2029 = vmatmul.f32.gmra.mxu3 %v593_v33  ;;  %v1757_v22 = vadd.f32 %v1756_v24, %v1644_v23 }
 0x227   : > { %1803 = vmatmul.f32.gmra.mxu1 %v591_v25  ;;  %v188_v25 = vld [vmem:[%s5168_s26 + $0x120] sm:$0xff] }
 0x228   : > { %v1869_v26 = vpop.f32.mrf.mxu2  ;;  %v1982_v2 = vpop.f32.mrf.mxu3 }
 0x229   : > { %v1870_v35 = vadd.f32 %v1869_v26, %v1757_v22  ;;  %v1646_v36 = vpop.f32.mrf.mxu0  ;;  %v191_v22 = vld [vmem:[%s5168_s26 + $0x138] sm:$0xff] }
 0x22a   : > { %v1647_v44 = vadd.f32 %v1646_v36, %v5580_v34  ;;  %v659_v34 = vld [vmem:[%s7934_s1 + $0x1d8] sm:$0xff]  ;;  %v189_v36 = vld [vmem:[%s5168_s26 + $0x128] sm:$0xff] }
 0x22b   : > { %v5962_v37 = vadd.f32 %v1982_v2, %v1870_v35  ;;  %2826 = vmatpush.msrb.mxu3 %v659_v34  ;;  %v205_v34 = vld [vmem:[%s5168_s26 + $0x1a8] sm:$0xff] }
 0x22c   : > { %v1759_v15 = vpop.f32.mrf.mxu1  ;;  %2049 = vmatmul.f32.vlgmr.msra.gmra.mxu0 %v160_v38  ;;  %v625_v38 = vld [vmem:[%s7934_s1 + $0xc8] sm:$0xff] }
 0x22d   : > { %2275 = vmatmul.f32.vlgmr.msra.gmra.mxu2 %v162_v58  ;;  %2388 = vmatmul.f32.vlgmr.msra.gmra.mxu3 %v163_v39  ;;  %v1760_v31 = vadd.f32 %v1759_v15, %v1647_v44  ;;  %v657_v39 = vld [vmem:[%s7934_s1 + $0x1c8] sm:$0xff] }
 0x22e   : > { %2714 = vmatpush.msrb.mxu2 %v625_v38  ;;  %2827 = vmatpush.msrb.mxu3 %v657_v39  ;;  %v230_v38 = vld [vmem:[%s5168_s26 + $0x270] sm:$0xff] }
 0x22f   : > { %2162 = vmatmul.f32.vlgmr.msra.gmra.mxu1 %v161_v46 }
 0x230   : > { %v1872_v52 = vpop.f32.mrf.mxu2  ;;  %v1985_v60 = vpop.f32.mrf.mxu3 }
 0x231   : > { %v1873_v61 = vadd.f32 %v1872_v52, %v1760_v31  ;;  %v1649_v62 = vpop.f32.mrf.mxu0  ;;  %v202_v31 = vld [vmem:[%s5168_s26 + $0x190] sm:$0xff] }
 0x232   : > { %v1650_v6 = vadd.f32 %v1649_v62, %v5589_v49  ;;  %v190_v49 = vld [vmem:[%s5168_s26 + $0x130] sm:$0xff]  ;;  %v203_v62 = vld [vmem:[%s5168_s26 + $0x198] sm:$0xff] }
 0x233   : > { %v5978_v63 = vadd.f32 %v1985_v60, %v1873_v61 }
 0x234   : > { %v1762_v10 = vpop.f32.mrf.mxu1  ;;  %2052 = vmatmul.f32.gmra.mxu0 %v174_v5 }
 0x235   : > { %2278 = vmatmul.f32.gmra.mxu2 %v176_v16  ;;  %2391 = vmatmul.f32.gmra.mxu3 %v177_v0  ;;  %v1763_v50 = vadd.f32 %v1762_v10, %v1650_v6  ;;  %v216_v10 = vld [vmem:[%s5168_s26 + $0x200] sm:$0xff] }
 0x237   : > { %2165 = vmatmul.f32.gmra.mxu1 %v175_v12  ;;  %v218_v12 = vld [vmem:[%s5168_s26 + $0x210] sm:$0xff] }
 0x238   : > { %v1875_v14 = vpop.f32.mrf.mxu2  ;;  %v1988_v33 = vpop.f32.mrf.mxu3 }
 0x239   : > { %v1876_v23 = vadd.f32 %v1875_v14, %v1763_v50  ;;  %v1652_v24 = vpop.f32.mrf.mxu0  ;;  %v219_v50 = vld [vmem:[%s5168_s26 + $0x218] sm:$0xff] }
 0x23a   : > { %v1653_v2 = vadd.f32 %v1652_v24, %v5604_v4  ;;  %v1008_v4 = vld [vmem:[%s7934_s1 + $0xcc0] sm:$0xff]  ;;  %v623_v24 = vld [vmem:[%s7934_s1 + $0xb8] sm:$0xff] }
 0x23b   : > { %v5988_v26 = vadd.f32 %v1988_v33, %v1876_v23  ;;  %2488 = vmatpush.msrb.mxu0 %v1008_v4  ;;  %v217_v23 = vld [vmem:[%s5168_s26 + $0x208] sm:$0xff]  ;;  %2715 = vmatpush.msrb.mxu2 %v623_v24 }
 0x23c   : > { %v1765_v35 = vpop.f32.mrf.mxu1  ;;  %2055 = vmatmul.f32.gmra.mxu0 %v188_v25  ;;  %v233_v4 = vld [vmem:[%s5168_s26 + $0x288] sm:$0xff] }
 0x23d   : > { %2281 = vmatmul.f32.gmra.mxu2 %v190_v49  ;;  %2394 = vmatmul.f32.gmra.mxu3 %v191_v22  ;;  %v1766_v58 = vadd.f32 %v1765_v35, %v1653_v2  ;;  %v1006_v49 = vld [vmem:[%s7934_s1 + $0xcb0] sm:$0xff] }
 0x23e   : > { %2489 = vmatpush.msrb.mxu0 %v1006_v49  ;;  %v260_v49 = vld [vmem:[%s5168_s26 + $0x360] sm:$0xff] }
 0x23f   : > { %2168 = vmatmul.f32.gmra.mxu1 %v189_v36 }
 0x240   : > { %v1878_v44 = vpop.f32.mrf.mxu2  ;;  %v1991_v15 = vpop.f32.mrf.mxu3 }
 0x241   : > { %v1879_v46 = vadd.f32 %v1878_v44, %v1766_v58  ;;  %v1655_v48 = vpop.f32.mrf.mxu0  ;;  %v232_v58 = vld [vmem:[%s5168_s26 + $0x280] sm:$0xff] }
 0x242   : > { %v1656_v60 = vadd.f32 %v1655_v48, %v5613_v21  ;;  %v231_v48 = vld [vmem:[%s5168_s26 + $0x278] sm:$0xff] }
 0x243   : > { %v6004_v52 = vadd.f32 %v1991_v15, %v1879_v46  ;;  %v1026_v15 = vld [vmem:[%s7934_s1 + $0xd50] sm:$0xff] }
 0x244   : > { %v1768_v61 = vpop.f32.mrf.mxu1  ;;  %2058 = vmatmul.f32.gmra.mxu0 %v202_v31  ;;  %2608 = vmatpush.msrb.mxu1 %v1026_v15 }
 0x245   : > { %2284 = vmatmul.f32.gmra.mxu2 %v204_v47  ;;  %2397 = vmatmul.f32.gmra.mxu3 %v205_v34  ;;  %v1769_v5 = vadd.f32 %v1768_v61, %v1656_v60 }
 0x247   : > { %2171 = vmatmul.f32.gmra.mxu1 %v203_v62  ;;  %v244_v62 = vld [vmem:[%s5168_s26 + $0x2e0] sm:$0xff] }
 0x248   : > { %v1881_v16 = vpop.f32.mrf.mxu2  ;;  %v1994_v0 = vpop.f32.mrf.mxu3 }
 0x249   : > { %v1882_v6 = vadd.f32 %v1881_v16, %v1769_v5  ;;  %v1658_v7 = vpop.f32.mrf.mxu0  ;;  %v247_v5 = vld [vmem:[%s5168_s26 + $0x2f8] sm:$0xff] }
 0x24a   : > { %v1659_v33 = vadd.f32 %v1658_v7, %v5628_v40  ;;  %v655_v40 = vld [vmem:[%s7934_s1 + $0x1b8] sm:$0xff]  ;;  %v245_v7 = vld [vmem:[%s5168_s26 + $0x2e8] sm:$0xff] }
 0x24b   : > { %v6011_v14 = vadd.f32 %v1994_v0, %v1882_v6  ;;  %2828 = vmatpush.msrb.mxu3 %v655_v40  ;;  %v261_v40 = vld [vmem:[%s5168_s26 + $0x368] sm:$0xff] }
 0x24c   : > { %v1771_v21 = vpop.f32.mrf.mxu1  ;;  %2061 = vmatmul.f32.gmra.mxu0 %v216_v10  ;;  %v621_v10 = vld [vmem:[%s7934_s1 + $0xa8] sm:$0xff] }
 0x24d   : > { %2287 = vmatmul.f32.gmra.mxu2 %v218_v12  ;;  %2400 = vmatmul.f32.gmra.mxu3 %v219_v50  ;;  %v1772_v25 = vadd.f32 %v1771_v21, %v1659_v33  ;;  %v653_v50 = vld [vmem:[%s7934_s1 + $0x1a8] sm:$0xff] }
 0x24e   : > { %2716 = vmatpush.msrb.mxu2 %v621_v10  ;;  %2829 = vmatpush.msrb.mxu3 %v653_v50  ;;  %v286_v10 = vld [vmem:[%s5168_s26 + $0x430] sm:$0xff] }
 0x24f   : > { %2174 = vmatmul.f32.gmra.mxu1 %v217_v23 }
 0x250   : > { %v1884_v22 = vpop.f32.mrf.mxu2  ;;  %v1997_v2 = vpop.f32.mrf.mxu3 }
 0x251   : > { %v1885_v35 = vadd.f32 %v1884_v22, %v1772_v25  ;;  %v1661_v36 = vpop.f32.mrf.mxu0  ;;  %v258_v25 = vld [vmem:[%s5168_s26 + $0x350] sm:$0xff] }
 0x252   : > { %v1662_v44 = vadd.f32 %v1661_v36, %v5637_v56  ;;  %v246_v56 = vld [vmem:[%s5168_s26 + $0x2f0] sm:$0xff]  ;;  %v259_v36 = vld [vmem:[%s5168_s26 + $0x358] sm:$0xff] }
 0x253   : > { %v6027_v39 = vadd.f32 %v1997_v2, %v1885_v35 }
 0x254   : > { %v1774_v46 = vpop.f32.mrf.mxu1  ;;  %2064 = vmatmul.f32.gmra.mxu0 %v230_v38 }
 0x255   : > { %2290 = vmatmul.f32.gmra.mxu2 %v232_v58  ;;  %2403 = vmatmul.f32.gmra.mxu3 %v233_v4  ;;  %v1775_v31 = vadd.f32 %v1774_v46, %v1662_v44  ;;  %v272_v46 = vld [vmem:[%s5168_s26 + $0x3c0] sm:$0xff] }
 0x257   : > { %2177 = vmatmul.f32.gmra.mxu1 %v231_v48  ;;  %v274_v48 = vld [vmem:[%s5168_s26 + $0x3d0] sm:$0xff] }
 0x258   : > { %v1887_v47 = vpop.f32.mrf.mxu2  ;;  %v2000_v34 = vpop.f32.mrf.mxu3 }
 0x259   : > { %v1888_v60 = vadd.f32 %v1887_v47, %v1775_v31  ;;  %v1664_v61 = vpop.f32.mrf.mxu0  ;;  %v275_v31 = vld [vmem:[%s5168_s26 + $0x3d8] sm:$0xff] }
 0x25a   : > { %v1665_v0 = vadd.f32 %v1664_v61, %v5652_v13  ;;  %v1004_v13 = vld [vmem:[%s7934_s1 + $0xca0] sm:$0xff]  ;;  %v619_v61 = vld [vmem:[%s7934_s1 + $0x98] sm:$0xff] }
 0x25b   : > { %v6037_v16 = vadd.f32 %v2000_v34, %v1888_v60  ;;  %2490 = vmatpush.msrb.mxu0 %v1004_v13  ;;  %v273_v60 = vld [vmem:[%s5168_s26 + $0x3c8] sm:$0xff]  ;;  %2717 = vmatpush.msrb.mxu2 %v619_v61 }
 0x25c   : > { %v1777_v6 = vpop.f32.mrf.mxu1  ;;  %2067 = vmatmul.f32.gmra.mxu0 %v244_v62  ;;  %v289_v13 = vld [vmem:[%s5168_s26 + $0x448] sm:$0xff] }
 0x25d   : > { %2293 = vmatmul.f32.gmra.mxu2 %v246_v56  ;;  %2406 = vmatmul.f32.gmra.mxu3 %v247_v5  ;;  %v1778_v12 = vadd.f32 %v1777_v6, %v1665_v0  ;;  %v1002_v56 = vld [vmem:[%s7934_s1 + $0xc90] sm:$0xff] }
 0x25e   : > { %2491 = vmatpush.msrb.mxu0 %v1002_v56  ;;  %v316_v56 = vld [vmem:[%s5168_s26 + $0x520] sm:$0xff] }
 0x25f   : > { %2180 = vmatmul.f32.gmra.mxu1 %v245_v7 }
 0x260   : > { %v1890_v33 = vpop.f32.mrf.mxu2  ;;  %v2003_v21 = vpop.f32.mrf.mxu3 }
 0x261   : > { %v1891_v23 = vadd.f32 %v1890_v33, %v1778_v12  ;;  %v1667_v24 = vpop.f32.mrf.mxu0  ;;  %v288_v12 = vld [vmem:[%s5168_s26 + $0x440] sm:$0xff] }
 0x262   : > { %v1668_v2 = vadd.f32 %v1667_v24, %v5661_v30  ;;  %v287_v24 = vld [vmem:[%s5168_s26 + $0x438] sm:$0xff] }
 0x263   : > { %v6053_v22 = vadd.f32 %v2003_v21, %v1891_v23  ;;  %v1024_v21 = vld [vmem:[%s7934_s1 + $0xd40] sm:$0xff] }
 0x264   : > { %v1780_v35 = vpop.f32.mrf.mxu1  ;;  %2070 = vmatmul.f32.gmra.mxu0 %v258_v25  ;;  %2609 = vmatpush.msrb.mxu1 %v1024_v21 }
 0x265   : > { %2296 = vmatmul.f32.gmra.mxu2 %v260_v49  ;;  %2409 = vmatmul.f32.gmra.mxu3 %v261_v40  ;;  %v1781_v38 = vadd.f32 %v1780_v35, %v1668_v2 }
 0x267   : > { %2183 = vmatmul.f32.gmra.mxu1 %v259_v36  ;;  %v300_v36 = vld [vmem:[%s5168_s26 + $0x4a0] sm:$0xff] }
 0x268   : > { %v1893_v58 = vpop.f32.mrf.mxu2  ;;  %v2006_v4 = vpop.f32.mrf.mxu3 }
 0x269   : > { %v1894_v44 = vadd.f32 %v1893_v58, %v1781_v38  ;;  %v1670_v15 = vpop.f32.mrf.mxu0  ;;  %v303_v38 = vld [vmem:[%s5168_s26 + $0x4b8] sm:$0xff] }
 0x26a   : > { %v1671_v34 = vadd.f32 %v1670_v15, %v5676_v53  ;;  %v651_v53 = vld [vmem:[%s7934_s1 + $0x198] sm:$0xff]  ;;  %v301_v15 = vld [vmem:[%s5168_s26 + $0x4a8] sm:$0xff] }
 0x26b   : > { %v6060_v47 = vadd.f32 %v2006_v4, %v1894_v44  ;;  %2830 = vmatpush.msrb.mxu3 %v651_v53  ;;  %v317_v53 = vld [vmem:[%s5168_s26 + $0x528] sm:$0xff] }
 0x26c   : > { %v1783_v30 = vpop.f32.mrf.mxu1  ;;  %2073 = vmatmul.f32.gmra.mxu0 %v272_v46  ;;  %v617_v46 = vld [vmem:[%s7934_s1 + $0x88] sm:$0xff] }
 0x26d   : > { %2299 = vmatmul.f32.gmra.mxu2 %v274_v48  ;;  %2412 = vmatmul.f32.gmra.mxu3 %v275_v31  ;;  %v1784_v62 = vadd.f32 %v1783_v30, %v1671_v34  ;;  %v649_v31 = vld [vmem:[%s7934_s1 + $0x188] sm:$0xff] }
 0x26e   : > { %2718 = vmatpush.msrb.mxu2 %v617_v46  ;;  %2831 = vmatpush.msrb.mxu3 %v649_v31  ;;  %v342_v46 = vld [vmem:[%s5168_s26 + $0x5f0] sm:$0xff] }
 0x26f   : > { %2186 = vmatmul.f32.gmra.mxu1 %v273_v60 }
 0x270   : > { %v1896_v5 = vpop.f32.mrf.mxu2  ;;  %v2009_v0 = vpop.f32.mrf.mxu3 }
 0x271   : > { %v1897_v6 = vadd.f32 %v1896_v5, %v1784_v62  ;;  %v1673_v7 = vpop.f32.mrf.mxu0  ;;  %v314_v62 = vld [vmem:[%s5168_s26 + $0x510] sm:$0xff] }
 0x272   : > { %v1674_v33 = vadd.f32 %v1673_v7, %v5685_v8  ;;  %v302_v8 = vld [vmem:[%s5168_s26 + $0x4b0] sm:$0xff]  ;;  %v315_v7 = vld [vmem:[%s5168_s26 + $0x518] sm:$0xff] }
 0x273   : > { %v6076_v50 = vadd.f32 %v2009_v0, %v1897_v6 }
 0x274   : > { %v1786_v23 = vpop.f32.mrf.mxu1  ;;  %2076 = vmatmul.f32.gmra.mxu0 %v286_v10 }
 0x275   : > { %2302 = vmatmul.f32.gmra.mxu2 %v288_v12  ;;  %2415 = vmatmul.f32.gmra.mxu3 %v289_v13  ;;  %v1787_v25 = vadd.f32 %v1786_v23, %v1674_v33  ;;  %v328_v23 = vld [vmem:[%s5168_s26 + $0x580] sm:$0xff] }
 0x277   : > { %2189 = vmatmul.f32.gmra.mxu1 %v287_v24  ;;  %v330_v24 = vld [vmem:[%s5168_s26 + $0x590] sm:$0xff] }
 0x278   : > { %v1899_v49 = vpop.f32.mrf.mxu2  ;;  %v2012_v40 = vpop.f32.mrf.mxu3 }
 0x279   : > { %v1900_v2 = vadd.f32 %v1899_v49, %v1787_v25  ;;  %v1676_v35 = vpop.f32.mrf.mxu0  ;;  %v331_v25 = vld [vmem:[%s5168_s26 + $0x598] sm:$0xff] }
 0x27a   : > { %v1677_v4 = vadd.f32 %v1676_v35, %v5700_v29  ;;  %v1000_v29 = vld [vmem:[%s7934_s1 + $0xc80] sm:$0xff]  ;;  %v615_v35 = vld [vmem:[%s7934_s1 + $0x78] sm:$0xff] }
 0x27b   : > { %v6086_v58 = vadd.f32 %v2012_v40, %v1900_v2  ;;  %2492 = vmatpush.msrb.mxu0 %v1000_v29  ;;  %v329_v2 = vld [vmem:[%s5168_s26 + $0x588] sm:$0xff]  ;;  %2719 = vmatpush.msrb.mxu2 %v615_v35 }
 0x27c   : > { %v1789_v44 = vpop.f32.mrf.mxu1  ;;  %2079 = vmatmul.f32.gmra.mxu0 %v300_v36  ;;  %v345_v29 = vld [vmem:[%s5168_s26 + $0x608] sm:$0xff] }
 0x27d   : > { %2305 = vmatmul.f32.gmra.mxu2 %v302_v8  ;;  %2418 = vmatmul.f32.gmra.mxu3 %v303_v38  ;;  %v1790_v48 = vadd.f32 %v1789_v44, %v1677_v4  ;;  %v998_v8 = vld [vmem:[%s7934_s1 + $0xc70] sm:$0xff] }
 0x27e   : > { %2493 = vmatpush.msrb.mxu0 %v998_v8  ;;  %v372_v8 = vld [vmem:[%s5168_s26 + $0x6e0] sm:$0xff] }
 0x27f   : > { %2192 = vmatmul.f32.gmra.mxu1 %v301_v15 }
 0x280   : > { %v1902_v34 = vpop.f32.mrf.mxu2  ;;  %v2015_v30 = vpop.f32.mrf.mxu3 }
 0x281   : > { %v1903_v60 = vadd.f32 %v1902_v34, %v1790_v48  ;;  %v1679_v61 = vpop.f32.mrf.mxu0  ;;  %v344_v48 = vld [vmem:[%s5168_s26 + $0x600] sm:$0xff] }
 0x282   : > { %v1680_v0 = vadd.f32 %v1679_v61, %v5709_v51  ;;  %v343_v61 = vld [vmem:[%s5168_s26 + $0x5f8] sm:$0xff] }
 0x283   : > { %v6102_v5 = vadd.f32 %v2015_v30, %v1903_v60  ;;  %v1022_v30 = vld [vmem:[%s7934_s1 + $0xd30] sm:$0xff] }
 0x284   : > { %v1792_v6 = vpop.f32.mrf.mxu1  ;;  %2082 = vmatmul.f32.gmra.mxu0 %v314_v62  ;;  %2610 = vmatpush.msrb.mxu1 %v1022_v30 }
 0x285   : > { %2308 = vmatmul.f32.gmra.mxu2 %v316_v56  ;;  %2421 = vmatmul.f32.gmra.mxu3 %v317_v53  ;;  %v1793_v10 = vadd.f32 %v1792_v6, %v1680_v0 }
 0x287   : > { %2195 = vmatmul.f32.gmra.mxu1 %v315_v7  ;;  %v356_v7 = vld [vmem:[%s5168_s26 + $0x660] sm:$0xff] }
 0x288   : > { %v1905_v12 = vpop.f32.mrf.mxu2  ;;  %v2018_v13 = vpop.f32.mrf.mxu3 }
 0x289   : > { %v1906_v33 = vadd.f32 %v1905_v12, %v1793_v10  ;;  %v1682_v21 = vpop.f32.mrf.mxu0  ;;  %v359_v10 = vld [vmem:[%s5168_s26 + $0x678] sm:$0xff] }
 0x28a   : > { %v1683_v40 = vadd.f32 %v1682_v21, %v5724_v11  ;;  %v647_v11 = vld [vmem:[%s7934_s1 + $0x178] sm:$0xff]  ;;  %v357_v21 = vld [vmem:[%s5168_s26 + $0x668] sm:$0xff] }
 0x28b   : > { %v6109_v49 = vadd.f32 %v2018_v13, %v1906_v33  ;;  %2832 = vmatpush.msrb.mxu3 %v647_v11  ;;  %v373_v11 = vld [vmem:[%s5168_s26 + $0x6e8] sm:$0xff] }
 0x28c   : > { %v1795_v51 = vpop.f32.mrf.mxu1  ;;  %2085 = vmatmul.f32.gmra.mxu0 %v328_v23  ;;  %v613_v23 = vld [vmem:[%s7934_s1 + $0x68] sm:$0xff] }
 0x28d   : > { %2311 = vmatmul.f32.gmra.mxu2 %v330_v24  ;;  %2424 = vmatmul.f32.gmra.mxu3 %v331_v25  ;;  %v1796_v36 = vadd.f32 %v1795_v51, %v1683_v40  ;;  %v645_v25 = vld [vmem:[%s7934_s1 + $0x168] sm:$0xff] }
 0x28e   : > { %2720 = vmatpush.msrb.mxu2 %v613_v23  ;;  %2833 = vmatpush.msrb.mxu3 %v645_v25  ;;  %v398_v23 = vld [vmem:[%s5168_s26 + $0x7b0] sm:$0xff] }
 0x28f   : > { %2198 = vmatmul.f32.gmra.mxu1 %v329_v2 }
 0x290   : > { %v1908_v38 = vpop.f32.mrf.mxu2  ;;  %v2021_v4 = vpop.f32.mrf.mxu3 }
 0x291   : > { %v1909_v44 = vadd.f32 %v1908_v38, %v1796_v36  ;;  %v1685_v15 = vpop.f32.mrf.mxu0  ;;  %v370_v36 = vld [vmem:[%s5168_s26 + $0x6d0] sm:$0xff] }
 0x292   : > { %v1686_v34 = vadd.f32 %v1685_v15, %v5733_v32  ;;  %v358_v32 = vld [vmem:[%s5168_s26 + $0x670] sm:$0xff]  ;;  %v371_v15 = vld [vmem:[%s5168_s26 + $0x6d8] sm:$0xff] }
 0x293   : > { %v6125_v31 = vadd.f32 %v2021_v4, %v1909_v44 }
 0x294   : > { %v1798_v60 = vpop.f32.mrf.mxu1  ;;  %2088 = vmatmul.f32.gmra.mxu0 %v342_v46 }
 0x295   : > { %2314 = vmatmul.f32.gmra.mxu2 %v344_v48  ;;  %2427 = vmatmul.f32.gmra.mxu3 %v345_v29  ;;  %v1799_v62 = vadd.f32 %v1798_v60, %v1686_v34  ;;  %v384_v60 = vld [vmem:[%s5168_s26 + $0x740] sm:$0xff] }
 0x297   : > { %2201 = vmatmul.f32.gmra.mxu1 %v343_v61  ;;  %v386_v61 = vld [vmem:[%s5168_s26 + $0x750] sm:$0xff] }
 0x298   : > { %v1911_v56 = vpop.f32.mrf.mxu2  ;;  %v2024_v53 = vpop.f32.mrf.mxu3 }
 0x299   : > { %v1912_v0 = vadd.f32 %v1911_v56, %v1799_v62  ;;  %v1688_v6 = vpop.f32.mrf.mxu0  ;;  %v387_v62 = vld [vmem:[%s5168_s26 + $0x758] sm:$0xff] }
 0x29a   : > { %v1689_v13 = vadd.f32 %v1688_v6, %v5748_v59  ;;  %v996_v59 = vld [vmem:[%s7934_s1 + $0xc60] sm:$0xff]  ;;  %v611_v6 = vld [vmem:[%s7934_s1 + $0x58] sm:$0xff] }
 0x29b   : > { %v6135_v12 = vadd.f32 %v2024_v53, %v1912_v0  ;;  %2494 = vmatpush.msrb.mxu0 %v996_v59  ;;  %v385_v0 = vld [vmem:[%s5168_s26 + $0x748] sm:$0xff]  ;;  %2721 = vmatpush.msrb.mxu2 %v611_v6 }
 0x29c   : > { %v1801_v33 = vpop.f32.mrf.mxu1  ;;  %2091 = vmatmul.f32.gmra.mxu0 %v356_v7  ;;  %v401_v59 = vld [vmem:[%s5168_s26 + $0x7c8] sm:$0xff] }
 0x29d   : > { %2317 = vmatmul.f32.gmra.mxu2 %v358_v32  ;;  %2430 = vmatmul.f32.gmra.mxu3 %v359_v10  ;;  %v1802_v24 = vadd.f32 %v1801_v33, %v1689_v13  ;;  %v994_v32 = vld [vmem:[%s7934_s1 + $0xc50] sm:$0xff] }
 0x29e   : > { %2495 = vmatpush.msrb.mxu0 %v994_v32  ;;  %v428_v32 = vld [vmem:[%s5168_s26 + $0x8a0] sm:$0xff] }
 0x29f   : > { %2204 = vmatmul.f32.gmra.mxu1 %v357_v21 }
 0x2a0   : > { %v1914_v40 = vpop.f32.mrf.mxu2  ;;  %v2027_v51 = vpop.f32.mrf.mxu3 }
 0x2a1   : > { %v1915_v2 = vadd.f32 %v1914_v40, %v1802_v24  ;;  %v1691_v35 = vpop.f32.mrf.mxu0  ;;  %v400_v24 = vld [vmem:[%s5168_s26 + $0x7c0] sm:$0xff] }
 0x2a2   : > { %v1692_v4 = vadd.f32 %v1691_v35, %v5757_v17  ;;  %v399_v35 = vld [vmem:[%s5168_s26 + $0x7b8] sm:$0xff] }
 0x2a3   : > { %v6151_v38 = vadd.f32 %v2027_v51, %v1915_v2  ;;  %v1020_v51 = vld [vmem:[%s7934_s1 + $0xd20] sm:$0xff] }
 0x2a4   : > { %v1804_v44 = vpop.f32.mrf.mxu1  ;;  %2094 = vmatmul.f32.gmra.mxu0 %v370_v36  ;;  %2611 = vmatpush.msrb.mxu1 %v1020_v51 }
 0x2a5   : > { %2320 = vmatmul.f32.gmra.mxu2 %v372_v8  ;;  %2433 = vmatmul.f32.gmra.mxu3 %v373_v11  ;;  %v1805_v46 = vadd.f32 %v1804_v44, %v1692_v4 }
 0x2a7   : > { %2207 = vmatmul.f32.gmra.mxu1 %v371_v15  ;;  %v412_v15 = vld [vmem:[%s5168_s26 + $0x820] sm:$0xff] }
 0x2a8   : > { %v1917_v48 = vpop.f32.mrf.mxu2  ;;  %v2030_v29 = vpop.f32.mrf.mxu3 }
 0x2a9   : > { %v1918_v34 = vadd.f32 %v1917_v48, %v1805_v46  ;;  %v2050_v30 = vpop.f32.mrf.mxu0  ;;  %v415_v46 = vld [vmem:[%s5168_s26 + $0x838] sm:$0xff] }
 0x2aa   : > { %v2051_v53 = vadd.f32 %v2050_v30, %v5773_v42  ;;  %v643_v42 = vld [vmem:[%s7934_s1 + $0x158] sm:$0xff]  ;;  %v413_v30 = vld [vmem:[%s5168_s26 + $0x828] sm:$0xff] }
 0x2ab   : > { %v6158_v56 = vadd.f32 %v2030_v29, %v1918_v34  ;;  %2834 = vmatpush.msrb.mxu3 %v643_v42  ;;  %v429_v42 = vld [vmem:[%s5168_s26 + $0x8a8] sm:$0xff] }
 0x2ac   : > { %v2163_v17 = vpop.f32.mrf.mxu1  ;;  %2097 = vmatmul.f32.gmra.mxu0 %v384_v60  ;;  %v609_v60 = vld [vmem:[%s7934_s1 + $0x48] sm:$0xff] }
 0x2ad   : > { %2323 = vmatmul.f32.gmra.mxu2 %v386_v61  ;;  %2436 = vmatmul.f32.gmra.mxu3 %v387_v62  ;;  %v2164_v7 = vadd.f32 %v2163_v17, %v2051_v53  ;;  %v641_v62 = vld [vmem:[%s7934_s1 + $0x148] sm:$0xff] }
 0x2ae   : > { %2722 = vmatpush.msrb.mxu2 %v609_v60  ;;  %2835 = vmatpush.msrb.mxu3 %v641_v62  ;;  %v454_v60 = vld [vmem:[%s5168_s26 + $0x970] sm:$0xff] }
 0x2af   : > { %2210 = vmatmul.f32.gmra.mxu1 %v385_v0 }
 0x2b0   : > { %v2276_v10 = vpop.f32.mrf.mxu2  ;;  %v2389_v13 = vpop.f32.mrf.mxu3 }
 0x2b1   : > { %v2277_v33 = vadd.f32 %v2276_v10, %v2164_v7  ;;  %v2053_v21 = vpop.f32.mrf.mxu0  ;;  %v426_v7 = vld [vmem:[%s5168_s26 + $0x890] sm:$0xff] }
 0x2b2   : > { %v2054_v40 = vadd.f32 %v2053_v21, %v5783_v1  ;;  %v414_v1 = vld [vmem:[%s5168_s26 + $0x830] sm:$0xff]  ;;  %v427_v21 = vld [vmem:[%s5168_s26 + $0x898] sm:$0xff] }
 0x2b3   : > { %v6174_v25 = vadd.f32 %v2389_v13, %v2277_v33 }
 0x2b4   : > { %v2166_v2 = vpop.f32.mrf.mxu1  ;;  %2100 = vmatmul.f32.gmra.mxu0 %v398_v23 }
 0x2b5   : > { %2326 = vmatmul.f32.gmra.mxu2 %v400_v24  ;;  %2439 = vmatmul.f32.gmra.mxu3 %v401_v59  ;;  %v2167_v36 = vadd.f32 %v2166_v2, %v2054_v40  ;;  %v440_v2 = vld [vmem:[%s5168_s26 + $0x900] sm:$0xff] }
 0x2b7   : > { %2213 = vmatmul.f32.gmra.mxu1 %v399_v35  ;;  %v442_v35 = vld [vmem:[%s5168_s26 + $0x910] sm:$0xff] }
 0x2b8   : > { %v2279_v8 = vpop.f32.mrf.mxu2  ;;  %v2392_v11 = vpop.f32.mrf.mxu3 }
 0x2b9   : > { %v2280_v4 = vadd.f32 %v2279_v8, %v2167_v36  ;;  %v2056_v44 = vpop.f32.mrf.mxu0  ;;  %v443_v36 = vld [vmem:[%s5168_s26 + $0x918] sm:$0xff] }
 0x2ba   : > { %v2057_v29 = vadd.f32 %v2056_v44, %v5799_v27  ;;  %v992_v27 = vld [vmem:[%s7934_s1 + $0xc40] sm:$0xff]  ;;  %v607_v44 = vld [vmem:[%s7934_s1 + $0x38] sm:$0xff] }
 0x2bb   : > { %v6184_v48 = vadd.f32 %v2392_v11, %v2280_v4  ;;  %2496 = vmatpush.msrb.mxu0 %v992_v27  ;;  %v441_v4 = vld [vmem:[%s5168_s26 + $0x908] sm:$0xff]  ;;  %2723 = vmatpush.msrb.mxu2 %v607_v44 }
 0x2bc   : > { %v2169_v34 = vpop.f32.mrf.mxu1  ;;  %2103 = vmatmul.f32.gmra.mxu0 %v412_v15  ;;  %v457_v27 = vld [vmem:[%s5168_s26 + $0x988] sm:$0xff] }
 0x2bd   : > { %2329 = vmatmul.f32.gmra.mxu2 %v414_v1  ;;  %2442 = vmatmul.f32.gmra.mxu3 %v415_v46  ;;  %v2170_v61 = vadd.f32 %v2169_v34, %v2057_v29  ;;  %v990_v1 = vld [vmem:[%s7934_s1 + $0xc30] sm:$0xff] }
 0x2be   : > { %2497 = vmatpush.msrb.mxu0 %v990_v1  ;;  %v484_v1 = vld [vmem:[%s5168_s26 + $0xa60] sm:$0xff] }
 0x2bf   : > { %2216 = vmatmul.f32.gmra.mxu1 %v413_v30 }
 0x2c0   : > { %v2282_v53 = vpop.f32.mrf.mxu2  ;;  %v2395_v17 = vpop.f32.mrf.mxu3 }
 0x2c1   : > { %v2283_v0 = vadd.f32 %v2282_v53, %v2170_v61  ;;  %v2059_v6 = vpop.f32.mrf.mxu0  ;;  %v456_v61 = vld [vmem:[%s5168_s26 + $0x980] sm:$0xff] }
 0x2c2   : > { %v2060_v13 = vadd.f32 %v2059_v6, %v5809_v54  ;;  %v455_v6 = vld [vmem:[%s5168_s26 + $0x978] sm:$0xff] }
 0x2c3   : > { %v6200_v10 = vadd.f32 %v2395_v17, %v2283_v0  ;;  %v1018_v17 = vld [vmem:[%s7934_s1 + $0xd10] sm:$0xff] }
 0x2c4   : > { %v2172_v33 = vpop.f32.mrf.mxu1  ;;  %2106 = vmatmul.f32.gmra.mxu0 %v426_v7  ;;  %2612 = vmatpush.msrb.mxu1 %v1018_v17 }
 0x2c5   : > { %2332 = vmatmul.f32.gmra.mxu2 %v428_v32  ;;  %2445 = vmatmul.f32.gmra.mxu3 %v429_v42  ;;  %v2173_v23 = vadd.f32 %v2172_v33, %v2060_v13 }
 0x2c7   : > { %2219 = vmatmul.f32.gmra.mxu1 %v427_v21  ;;  %v468_v21 = vld [vmem:[%s5168_s26 + $0x9e0] sm:$0xff] }
 0x2c8   : > { %v2285_v24 = vpop.f32.mrf.mxu2  ;;  %v2398_v59 = vpop.f32.mrf.mxu3 }
 0x2c9   : > { %v2286_v40 = vadd.f32 %v2285_v24, %v2173_v23  ;;  %v2062_v51 = vpop.f32.mrf.mxu0  ;;  %v471_v23 = vld [vmem:[%s5168_s26 + $0x9f8] sm:$0xff] }
 0x2ca   : > { %v2063_v11 = vadd.f32 %v2062_v51, %v5825_v18  ;;  %v639_v18 = vld [vmem:[%s7934_s1 + $0x138] sm:$0xff]  ;;  %v469_v51 = vld [vmem:[%s5168_s26 + $0x9e8] sm:$0xff] }
 0x2cb   : > { %v6207_v8 = vadd.f32 %v2398_v59, %v2286_v40  ;;  %2836 = vmatpush.msrb.mxu3 %v639_v18  ;;  %v485_v18 = vld [vmem:[%s5168_s26 + $0xa68] sm:$0xff] }
 0x2cc   : > { %v2175_v54 = vpop.f32.mrf.mxu1  ;;  %2109 = vmatmul.f32.gmra.mxu0 %v440_v2  ;;  %v605_v2 = vld [vmem:[%s7934_s1 + $0x28] sm:$0xff] }
 0x2cd   : > { %2335 = vmatmul.f32.gmra.mxu2 %v442_v35  ;;  %2448 = vmatmul.f32.gmra.mxu3 %v443_v36  ;;  %v2176_v15 = vadd.f32 %v2175_v54, %v2063_v11  ;;  %v637_v36 = vld [vmem:[%s7934_s1 + $0x128] sm:$0xff] }
 0x2ce   : > { %2724 = vmatpush.msrb.mxu2 %v605_v2  ;;  %2837 = vmatpush.msrb.mxu3 %v637_v36  ;;  %v510_v2 = vld [vmem:[%s5168_s26 + $0xb30] sm:$0xff] }
 0x2cf   : > { %2222 = vmatmul.f32.gmra.mxu1 %v441_v4 }
 0x2d0   : > { %v2288_v46 = vpop.f32.mrf.mxu2  ;;  %v2401_v29 = vpop.f32.mrf.mxu3 }
 0x2d1   : > { %v2289_v34 = vadd.f32 %v2288_v46, %v2176_v15  ;;  %v2065_v30 = vpop.f32.mrf.mxu0  ;;  %v482_v15 = vld [vmem:[%s5168_s26 + $0xa50] sm:$0xff] }
 0x2d2   : > { %v2066_v53 = vadd.f32 %v2065_v30, %v5835_v41  ;;  %v470_v41 = vld [vmem:[%s5168_s26 + $0x9f0] sm:$0xff]  ;;  %v483_v30 = vld [vmem:[%s5168_s26 + $0xa58] sm:$0xff] }
 0x2d3   : > { %v6223_v62 = vadd.f32 %v2401_v29, %v2289_v34 }
 0x2d4   : > { %v2178_v0 = vpop.f32.mrf.mxu1  ;;  %2112 = vmatmul.f32.gmra.mxu0 %v454_v60 }
 0x2d5   : > { %2338 = vmatmul.f32.gmra.mxu2 %v456_v61  ;;  %2451 = vmatmul.f32.gmra.mxu3 %v457_v27  ;;  %v2179_v7 = vadd.f32 %v2178_v0, %v2066_v53  ;;  %v496_v0 = vld [vmem:[%s5168_s26 + $0xac0] sm:$0xff] }
 0x2d7   : > { %2225 = vmatmul.f32.gmra.mxu1 %v455_v6  ;;  %v498_v6 = vld [vmem:[%s5168_s26 + $0xad0] sm:$0xff] }
 0x2d8   : > { %v2291_v32 = vpop.f32.mrf.mxu2  ;;  %v2404_v42 = vpop.f32.mrf.mxu3 }
 0x2d9   : > { %v2292_v13 = vadd.f32 %v2291_v32, %v2179_v7  ;;  %v2068_v33 = vpop.f32.mrf.mxu0  ;;  %v499_v7 = vld [vmem:[%s5168_s26 + $0xad8] sm:$0xff] }
 0x2da   : > { %v2069_v59 = vadd.f32 %v2068_v33, %v5851_v3  ;;  %v988_v3 = vld [vmem:[%s7934_s1 + $0xc20] sm:$0xff]  ;;  %v603_v33 = vld [vmem:[%s7934_s1 + $0x18] sm:$0xff] }
 0x2db   : > { %v6233_v24 = vadd.f32 %v2404_v42, %v2292_v13  ;;  %2498 = vmatpush.msrb.mxu0 %v988_v3  ;;  %v497_v13 = vld [vmem:[%s5168_s26 + $0xac8] sm:$0xff]  ;;  %2725 = vmatpush.msrb.mxu2 %v603_v33 }
 0x2dc   : > { %v2181_v40 = vpop.f32.mrf.mxu1  ;;  %2115 = vmatmul.f32.gmra.mxu0 %v468_v21  ;;  %v513_v3 = vld [vmem:[%s5168_s26 + $0xb48] sm:$0xff] }
 0x2dd   : > { %2341 = vmatmul.f32.gmra.mxu2 %v470_v41  ;;  %2454 = vmatmul.f32.gmra.mxu3 %v471_v23  ;;  %v2182_v35 = vadd.f32 %v2181_v40, %v2069_v59  ;;  %v986_v41 = vld [vmem:[%s7934_s1 + $0xc10] sm:$0xff] }
 0x2de   : > { %2499 = vmatpush.msrb.mxu0 %v986_v41  ;;  %v540_v41 = vld [vmem:[%s5168_s26 + $0xc20] sm:$0xff] }
 0x2df   : > { %2228 = vmatmul.f32.gmra.mxu1 %v469_v51 }
 0x2e0   : > { %v2294_v11 = vpop.f32.mrf.mxu2  ;;  %v2407_v54 = vpop.f32.mrf.mxu3 }
 0x2e1   : > { %v2295_v4 = vadd.f32 %v2294_v11, %v2182_v35  ;;  %v2071_v44 = vpop.f32.mrf.mxu0  ;;  %v512_v35 = vld [vmem:[%s5168_s26 + $0xb40] sm:$0xff] }
 0x2e2   : > { %v2072_v29 = vadd.f32 %v2071_v44, %v5861_v57  ;;  %v511_v44 = vld [vmem:[%s5168_s26 + $0xb38] sm:$0xff] }
 0x2e3   : > { %v6249_v46 = vadd.f32 %v2407_v54, %v2295_v4  ;;  %v1016_v54 = vld [vmem:[%s7934_s1 + $0xd00] sm:$0xff] }
 0x2e4   : > { %v2184_v34 = vpop.f32.mrf.mxu1  ;;  %2118 = vmatmul.f32.gmra.mxu0 %v482_v15  ;;  %2613 = vmatpush.msrb.mxu1 %v1016_v54 }
 0x2e5   : > { %2344 = vmatmul.f32.gmra.mxu2 %v484_v1  ;;  %2457 = vmatmul.f32.gmra.mxu3 %v485_v18  ;;  %v2185_v60 = vadd.f32 %v2184_v34, %v2072_v29 }
 0x2e7   : > { %2231 = vmatmul.f32.gmra.mxu1 %v483_v30  ;;  %v524_v30 = vld [vmem:[%s5168_s26 + $0xba0] sm:$0xff] }
 0x2e8   : > { %v2297_v61 = vpop.f32.mrf.mxu2  ;;  %v2410_v27 = vpop.f32.mrf.mxu3 }
 0x2e9   : > { %v2298_v53 = vadd.f32 %v2297_v61, %v2185_v60  ;;  %v2074_v17 = vpop.f32.mrf.mxu0  ;;  %v527_v60 = vld [vmem:[%s5168_s26 + $0xbb8] sm:$0xff] }
 0x2ea   : > { %v2075_v42 = vadd.f32 %v2074_v17, %v5877_v55  ;;  %v635_v55 = vld [vmem:[%s7934_s1 + $0x118] sm:$0xff]  ;;  %v525_v17 = vld [vmem:[%s5168_s26 + $0xba8] sm:$0xff] }
 0x2eb   : > { %v6256_v32 = vadd.f32 %v2410_v27, %v2298_v53  ;;  %2838 = vmatpush.msrb.mxu3 %v635_v55  ;;  %v541_v55 = vld [vmem:[%s5168_s26 + $0xc28] sm:$0xff] }
 0x2ec   : > { %v2187_v57 = vpop.f32.mrf.mxu1  ;;  %2121 = vmatmul.f32.gmra.mxu0 %v496_v0  ;;  %v601_v0 = vld [vmem:[%s7934_s1 + $0x8] sm:$0xff] }
 0x2ed   : > { %2347 = vmatmul.f32.gmra.mxu2 %v498_v6  ;;  %2460 = vmatmul.f32.gmra.mxu3 %v499_v7  ;;  %v2188_v21 = vadd.f32 %v2187_v57, %v2075_v42  ;;  %v633_v7 = vld [vmem:[%s7934_s1 + $0x108] sm:$0xff] }
 0x2ee   : > { %2726 = vmatpush.msrb.mxu2 %v601_v0  ;;  %2839 = vmatpush.msrb.mxu3 %v633_v7  ;;  %v566_v0 = vld [vmem:[%s5168_s26 + $0xcf0] sm:$0xff] }
 0x2ef   : > { %2234 = vmatmul.f32.gmra.mxu1 %v497_v13 }
 0x2f0   : > { %v2300_v23 = vpop.f32.mrf.mxu2  ;;  %v2413_v59 = vpop.f32.mrf.mxu3 }
 0x2f1   : > { %v2301_v40 = vadd.f32 %v2300_v23, %v2188_v21  ;;  %v2077_v51 = vpop.f32.mrf.mxu0  ;;  %v538_v21 = vld [vmem:[%s5168_s26 + $0xc10] sm:$0xff] }
 0x2f2   : > { %v2078_v11 = vadd.f32 %v2077_v51, %v5887_v19  ;;  %v526_v19 = vld [vmem:[%s5168_s26 + $0xbb0] sm:$0xff]  ;;  %v539_v51 = vld [vmem:[%s5168_s26 + $0xc18] sm:$0xff] }
 0x2f3   : > { %v6272_v36 = vadd.f32 %v2413_v59, %v2301_v40 }
 0x2f4   : > { %v2190_v4 = vpop.f32.mrf.mxu1  ;;  %2124 = vmatmul.f32.gmra.mxu0 %v510_v2 }
 0x2f5   : > { %2350 = vmatmul.f32.gmra.mxu2 %v512_v35  ;;  %2463 = vmatmul.f32.gmra.mxu3 %v513_v3  ;;  %v2191_v15 = vadd.f32 %v2190_v4, %v2078_v11  ;;  %v552_v4 = vld [vmem:[%s5168_s26 + $0xc80] sm:$0xff] }
 0x2f7   : > { %2237 = vmatmul.f32.gmra.mxu1 %v511_v44  ;;  %v554_v44 = vld [vmem:[%s5168_s26 + $0xc90] sm:$0xff] }
 0x2f8   : > { %v2303_v1 = vpop.f32.mrf.mxu2  ;;  %v2416_v18 = vpop.f32.mrf.mxu3 }
 0x2f9   : > { %v2304_v29 = vadd.f32 %v2303_v1, %v2191_v15  ;;  %v2080_v34 = vpop.f32.mrf.mxu0  ;;  %v555_v15 = vld [vmem:[%s5168_s26 + $0xc98] sm:$0xff] }
 0x2fa   : > { %v2081_v27 = vadd.f32 %v2080_v34, %v5903_v43  ;;  %v984_v43 = vld [vmem:[%s7934_s1 + $0xc00] sm:$0xff]  ;;  %v759_v34 = vld [vmem:[%s7934_s1 + $0x4f8] sm:$0xff] }
 0x2fb   : > { %v6282_v61 = vadd.f32 %v2416_v18, %v2304_v29  ;;  %2500 = vmatpush.msrb.mxu0 %v984_v43  ;;  %v553_v29 = vld [vmem:[%s5168_s26 + $0xc88] sm:$0xff]  ;;  %3163 = vmatpush.msra.mxu2 %v759_v34 }
 0x2fc   : > { %v2193_v53 = vpop.f32.mrf.mxu1  ;;  %2127 = vmatmul.f32.gmra.mxu0 %v524_v30  ;;  %v569_v43 = vld [vmem:[%s5168_s26 + $0xd08] sm:$0xff] }
 0x2fd   : > { %2353 = vmatmul.f32.gmra.mxu2 %v526_v19  ;;  %2466 = vmatmul.f32.gmra.mxu3 %v527_v60  ;;  %v2194_v6 = vadd.f32 %v2193_v53, %v2081_v27  ;;  %v695_v19 = vld [vmem:[%s7934_s1 + $0x2f8] sm:$0xff] }
 0x2fe   : > { %2937 = vmatpush.msra.mxu0 %v695_v19  ;;  %v596_v19 = vld [vmem:[%s5168_s26 + $0xde0] sm:$0xff] }
 0x2ff   : > { %2240 = vmatmul.f32.gmra.mxu1 %v525_v17 }
 0x300   : > { %v2306_v42 = vpop.f32.mrf.mxu2  ;;  %v2419_v57 = vpop.f32.mrf.mxu3 }
 0x301   : > { %v2307_v13 = vadd.f32 %v2306_v42, %v2194_v6  ;;  %v2083_v33 = vpop.f32.mrf.mxu0  ;;  %v568_v6 = vld [vmem:[%s5168_s26 + $0xd00] sm:$0xff] }
 0x302   : > { %v2084_v59 = vadd.f32 %v2083_v33, %v5913_v45  ;;  %v567_v33 = vld [vmem:[%s5168_s26 + $0xcf8] sm:$0xff] }
 0x303   : > { %v6298_v23 = vadd.f32 %v2419_v57, %v2307_v13  ;;  %v727_v57 = vld [vmem:[%s7934_s1 + $0x3f8] sm:$0xff] }
 0x304   : > { %v2196_v40 = vpop.f32.mrf.mxu1  ;;  %2130 = vmatmul.f32.gmra.mxu0 %v538_v21  ;;  %3050 = vmatpush.msra.mxu1 %v727_v57 }
 0x305   : > { %2356 = vmatmul.f32.gmra.mxu2 %v540_v41  ;;  %2469 = vmatmul.f32.gmra.mxu3 %v541_v55  ;;  %v2197_v2 = vadd.f32 %v2196_v40, %v2084_v59 }
 0x307   : > { %2243 = vmatmul.f32.gmra.mxu1 %v539_v51  ;;  %v580_v51 = vld [vmem:[%s5168_s26 + $0xd60] sm:$0xff] }
 0x308   : > { %v2309_v35 = vpop.f32.mrf.mxu2  ;;  %v2422_v3 = vpop.f32.mrf.mxu3 }
 0x309   : > { %v2310_v11 = vadd.f32 %v2309_v35, %v2197_v2  ;;  %v2086_v54 = vpop.f32.mrf.mxu0  ;;  %v583_v2 = vld [vmem:[%s5168_s26 + $0xd78] sm:$0xff] }
 0x30a   : > { %v2087_v18 = vadd.f32 %v2086_v54, %v5929_v28  ;;  %v791_v28 = vld [vmem:[%s7934_s1 + $0x5f8] sm:$0xff]  ;;  %v581_v54 = vld [vmem:[%s5168_s26 + $0xd68] sm:$0xff] }
 0x30b   : > { %v6305_v1 = vadd.f32 %v2422_v3, %v2310_v11  ;;  %3276 = vmatpush.msra.mxu3 %v791_v28  ;;  %v597_v28 = vld [vmem:[%s5168_s26 + $0xde8] sm:$0xff] }
 0x30c   : > { %v2199_v45 = vpop.f32.mrf.mxu1  ;;  %2133 = vmatmul.f32.gmra.mxu0 %v552_v4  ;;  %v757_v4 = vld [vmem:[%s7934_s1 + $0x4e8] sm:$0xff] }
 0x30d   : > { %2359 = vmatmul.f32.gmra.mxu2 %v554_v44  ;;  %2472 = vmatmul.f32.gmra.mxu3 %v555_v15  ;;  %v2200_v30 = vadd.f32 %v2199_v45, %v2087_v18  ;;  %v693_v15 = vld [vmem:[%s7934_s1 + $0x2e8] sm:$0xff] }
 0x30e   : > { %3164 = vmatpush.msra.mxu2 %v757_v4  ;;  %2938 = vmatpush.msra.mxu0 %v693_v15 }
 0x30f   : > { %2246 = vmatmul.f32.gmra.mxu1 %v553_v29 }
 0x310   : > { %v2312_v60 = vpop.f32.mrf.mxu2  ;;  %v2425_v27 = vpop.f32.mrf.mxu3 }
 0x311   : > { %v2313_v53 = vadd.f32 %v2312_v60, %v2200_v30  ;;  %v2089_v17 = vpop.f32.mrf.mxu0  ;;  %v594_v30 = vld [vmem:[%s5168_s26 + $0xdd0] sm:$0xff] }
 0x312   : > { %v2090_v42 = vadd.f32 %v2089_v17, %v5939_v9  ;;  %v582_v9 = vld [vmem:[%s5168_s26 + $0xd70] sm:$0xff] }
 0x313   : > { %v6321_v7 = vadd.f32 %v2425_v27, %v2313_v53  ;;  %v725_v53 = vld [vmem:[%s7934_s1 + $0x3e8] sm:$0xff] }
 0x314   : > { %v2202_v13 = vpop.f32.mrf.mxu1  ;;  %2136 = vmatmul.f32.gmra.mxu0 %v566_v0  ;;  %v595_v0 = vld [vmem:[%s5168_s26 + $0xdd8] sm:$0xff]  ;;  %3051 = vmatpush.msra.mxu1 %v725_v53 }
 0x315   : > { %2362 = vmatmul.f32.gmra.mxu2 %v568_v6  ;;  %2475 = vmatmul.f32.gmra.mxu3 %v569_v43  ;;  %v2203_v21 = vadd.f32 %v2202_v13, %v2090_v42 }
 0x317   : > { %2249 = vmatmul.f32.gmra.mxu1 %v567_v33 }
 0x318   : > { %v2315_v41 = vpop.f32.mrf.mxu2  ;;  %v2428_v55 = vpop.f32.mrf.mxu3 }
 0x319   : > { %v2316_v59 = vadd.f32 %v2315_v41, %v2203_v21  ;;  %v2092_v40 = vpop.f32.mrf.mxu0 }
 0x31a   : > { %v2093_v3 = vadd.f32 %v2092_v40, %v5955_v20  ;;  %v789_v20 = vld [vmem:[%s7934_s1 + $0x5e8] sm:$0xff] }
 0x31b   : > { %v6331_v35 = vadd.f32 %v2428_v55, %v2316_v59  ;;  %3277 = vmatpush.msra.mxu3 %v789_v20  ;;  %v165_v55 = vld [vmem:[%s5168_s26 + $0x68] sm:$0xff]  ;;  %v4501_v59 = vld [vmem:[%s5168_s26] sm:$0xff] }
 0x31c   : > { %v2205_v11 = vpop.f32.mrf.mxu1  ;;  %2139 = vmatmul.f32.gmra.mxu0 %v580_v51  ;;  %v4502_v40 = vld [vmem:[%s5168_s26 + $0x8] sm:$0xff]  ;;  %v755_v51 = vld [vmem:[%s7934_s1 + $0x4d8] sm:$0xff] }
 0x31d   : > { %2365 = vmatmul.f32.gmra.mxu2 %v582_v9  ;;  %2478 = vmatmul.f32.gmra.mxu3 %v583_v2  ;;  %v2206_v44 = vadd.f32 %v2205_v11, %v2093_v3  ;;  %v787_v2 = vld [vmem:[%s7934_s1 + $0x5d8] sm:$0xff] }
 0x31e   : > { %3165 = vmatpush.msra.mxu2 %v755_v51  ;;  %3278 = vmatpush.msra.mxu3 %v787_v2 }
 0x31f   : > { %2252 = vmatmul.f32.gmra.mxu1 %v581_v54 }
 0x320   : > { %v2318_v18 = vpop.f32.mrf.mxu2  ;;  %v2431_v45 = vpop.f32.mrf.mxu3 }
 0x321   : > { %v2319_v29 = vadd.f32 %v2318_v18, %v2206_v44  ;;  %v2095_v34 = vpop.f32.mrf.mxu0  ;;  %v178_v44 = vld [vmem:[%s5168_s26 + $0xd0] sm:$0xff]  ;;  %v723_v18 = vld [vmem:[%s7934_s1 + $0x3d8] sm:$0xff] }
 0x322   : > { %v2096_v27 = vadd.f32 %v2095_v34, %v5962_v37  ;;  %v164_v37 = vld [vmem:[%s5168_s26 + $0x60] sm:$0xff]  ;;  %3052 = vmatpush.msra.mxu1 %v723_v18  ;;  %v4503_v34 = vld [vmem:[%s5168_s26 + $0x70] sm:$0xff] }
 0x323   : > { %v6347_v60 = vadd.f32 %v2431_v45, %v2319_v29  ;;  %v179_v29 = vld [vmem:[%s5168_s26 + $0xd8] sm:$0xff] }
 0x324   : > { %v2208_v17 = vpop.f32.mrf.mxu1  ;;  %2142 = vmatmul.f32.gmra.mxu0 %v594_v30  ;;  %v4504_v30 = vld [vmem:[%s5168_s26 + $0x78] sm:$0xff] }
 0x325   : > { %2368 = vmatmul.f32.gmra.mxu2 %v596_v19  ;;  %2481 = vmatmul.f32.gmra.mxu3 %v597_v28  ;;  %v2209_v6 = vadd.f32 %v2208_v17, %v2096_v27  ;;  %v192_v17 = vld [vmem:[%s5168_s26 + $0x140] sm:$0xff] }
 0x327   : > { %2255 = vmatmul.f32.gmra.mxu1 %v595_v0 }
 0x328   : > { %v2321_v43 = vpop.f32.mrf.mxu2  ;;  %v2434_v42 = vpop.f32.mrf.mxu3 }
 0x329   : > { %v2322_v57 = vadd.f32 %v2321_v43, %v2209_v6  ;;  %v2098_v13 = vpop.f32.mrf.mxu0 }
 0x32a   : > { %v2099_v21 = vadd.f32 %v2098_v13, %v5978_v63  ;;  %v691_v63 = vld [vmem:[%s7934_s1 + $0x2d8] sm:$0xff]  ;;  %v4506_v13 = vld [vmem:[%s5168_s26 + $0xe8] sm:$0xff] }
 0x32b   : > { %v6355_v33 = vadd.f32 %v2434_v42, %v2322_v57  ;;  %2939 = vmatpush.msra.mxu0 %v691_v63  ;;  %v193_v42 = vld [vmem:[%s5168_s26 + $0x148] sm:$0xff]  ;;  %v4505_v57 = vld [vmem:[%s5168_s26 + $0xe0] sm:$0xff] }
 0x32c   : > { %v2211_v41 = vpop.f32.mrf.mxu1  ;;  %2501 = vmatmul.f32.vlgmr.msrb.gmra.mxu0 %v164_v37  ;;  %v753_v37 = vld [vmem:[%s7934_s1 + $0x4c8] sm:$0xff] }
 0x32d   : > { %2727 = vmatmul.f32.vlgmr.msrb.gmra.mxu2 %v4501_v59  ;;  %2840 = vmatmul.f32.vlgmr.msrb.gmra.mxu3 %v4502_v40  ;;  %v2212_v9 = vadd.f32 %v2211_v41, %v2099_v21  ;;  %v785_v41 = vld [vmem:[%s7934_s1 + $0x5c8] sm:$0xff] }
 0x32e   : > { %3166 = vmatpush.msra.mxu2 %v753_v37  ;;  %3279 = vmatpush.msra.mxu3 %v785_v41 }
 0x32f   : > { %4425 = vmatmul.msk.f32.vlgmr.msrb.gmra.mxu1 %vm1032_vm0, %v165_v55 }
 0x330   : > { %v2324_v3 = vpop.f32.mrf.mxu2  ;;  %v2437_v11 = vpop.f32.mrf.mxu3 }
 0x331   : > { %v2325_v54 = vadd.f32 %v2324_v3, %v2212_v9  ;;  %v2101_v4 = vpop.f32.mrf.mxu0  ;;  %v206_v9 = vld [vmem:[%s5168_s26 + $0x1b0] sm:$0xff]  ;;  %v721_v3 = vld [vmem:[%s7934_s1 + $0x3c8] sm:$0xff] }
 0x332   : > { %v2102_v20 = vadd.f32 %v2101_v4, %v5988_v26  ;;  %3053 = vmatpush.msra.mxu1 %v721_v3  ;;  %v4507_v4 = vld [vmem:[%s5168_s26 + $0x150] sm:$0xff] }
 0x333   : > { %v6372_v15 = vadd.f32 %v2437_v11, %v2325_v54  ;;  %v207_v54 = vld [vmem:[%s5168_s26 + $0x1b8] sm:$0xff] }
 0x334   : > { %v2214_v45 = vpop.f32.mrf.mxu1  ;;  %2504 = vmatmul.f32.gmra.mxu0 %v178_v44  ;;  %v4508_v44 = vld [vmem:[%s5168_s26 + $0x158] sm:$0xff] }
 0x335   : > { %2730 = vmatmul.f32.gmra.mxu2 %v4503_v34  ;;  %2843 = vmatmul.f32.gmra.mxu3 %v4504_v30  ;;  %v2215_v19 = vadd.f32 %v2214_v45, %v2102_v20  ;;  %v220_v34 = vld [vmem:[%s5168_s26 + $0x220] sm:$0xff] }
 0x337   : > { %4426 = vmatmul.msk.f32.gmra.mxu1 %vm1032_vm0, %v179_v29 }
 0x338   : > { %v2327_v26 = vpop.f32.mrf.mxu2  ;;  %v2440_v28 = vpop.f32.mrf.mxu3 }
 0x339   : > { %v2328_v27 = vadd.f32 %v2327_v26, %v2215_v19  ;;  %v2104_v53 = vpop.f32.mrf.mxu0 }
 0x33a   : > { %v2105_v6 = vadd.f32 %v2104_v53, %v6004_v52  ;;  %v689_v52 = vld [vmem:[%s7934_s1 + $0x2c8] sm:$0xff] }
 0x33b   : > { %v6383_v0 = vadd.f32 %v2440_v28, %v2328_v27  ;;  %2940 = vmatpush.msra.mxu0 %v689_v52  ;;  %v221_v28 = vld [vmem:[%s5168_s26 + $0x228] sm:$0xff]  ;;  %v4509_v27 = vld [vmem:[%s5168_s26 + $0x1c0] sm:$0xff] }
 0x33c   : > { %v2217_v43 = vpop.f32.mrf.mxu1  ;;  %2507 = vmatmul.f32.gmra.mxu0 %v192_v17  ;;  %v4510_v53 = vld [vmem:[%s5168_s26 + $0x1c8] sm:$0xff]  ;;  %v751_v17 = vld [vmem:[%s7934_s1 + $0x4b8] sm:$0xff] }
 0x33d   : > { %2733 = vmatmul.f32.gmra.mxu2 %v4505_v57  ;;  %2846 = vmatmul.f32.gmra.mxu3 %v4506_v13  ;;  %v2218_v21 = vadd.f32 %v2217_v43, %v2105_v6  ;;  %v783_v43 = vld [vmem:[%s7934_s1 + $0x5b8] sm:$0xff] }
 0x33e   : > { %3167 = vmatpush.msra.mxu2 %v751_v17  ;;  %3280 = vmatpush.msra.mxu3 %v783_v43 }
 0x33f   : > { %4427 = vmatmul.msk.f32.gmra.mxu1 %vm1032_vm0, %v193_v42 }
 0x340   : > { %v2330_v55 = vpop.f32.mrf.mxu2  ;;  %v2443_v59 = vpop.f32.mrf.mxu3 }
 0x341   : > { %v2331_v40 = vadd.f32 %v2330_v55, %v2218_v21  ;;  %v2107_v51 = vpop.f32.mrf.mxu0  ;;  %v234_v21 = vld [vmem:[%s5168_s26 + $0x290] sm:$0xff]  ;;  %v719_v55 = vld [vmem:[%s7934_s1 + $0x3b8] sm:$0xff] }
 0x342   : > { %v2108_v2 = vadd.f32 %v2107_v51, %v6011_v14  ;;  %3054 = vmatpush.msra.mxu1 %v719_v55  ;;  %v4511_v51 = vld [vmem:[%s5168_s26 + $0x230] sm:$0xff] }
 0x343   : > { %v6400_v63 = vadd.f32 %v2443_v59, %v2331_v40  ;;  %v235_v40 = vld [vmem:[%s5168_s26 + $0x298] sm:$0xff] }
 0x344   : > { %v2220_v11 = vpop.f32.mrf.mxu1  ;;  %2510 = vmatmul.f32.gmra.mxu0 %v206_v9  ;;  %v4512_v9 = vld [vmem:[%s5168_s26 + $0x238] sm:$0xff] }
 0x345   : > { %2736 = vmatmul.f32.gmra.mxu2 %v4507_v4  ;;  %2849 = vmatmul.f32.gmra.mxu3 %v4508_v44  ;;  %v2221_v20 = vadd.f32 %v2220_v11, %v2108_v2  ;;  %v248_v4 = vld [vmem:[%s5168_s26 + $0x300] sm:$0xff] }
 0x347   : > { %4428 = vmatmul.msk.f32.gmra.mxu1 %vm1032_vm0, %v207_v54 }
 0x348   : > { %v2333_v14 = vpop.f32.mrf.mxu2  ;;  %v2446_v18 = vpop.f32.mrf.mxu3 }
 0x349   : > { %v2334_v45 = vadd.f32 %v2333_v14, %v2221_v20  ;;  %v2110_v29 = vpop.f32.mrf.mxu0 }
 0x34a   : > { %v2111_v19 = vadd.f32 %v2110_v29, %v6027_v39  ;;  %v687_v39 = vld [vmem:[%s7934_s1 + $0x2b8] sm:$0xff]  ;;  %v4514_v29 = vld [vmem:[%s5168_s26 + $0x2a8] sm:$0xff] }
 0x34b   : > { %v6411_v30 = vadd.f32 %v2446_v18, %v2334_v45  ;;  %2941 = vmatpush.msra.mxu0 %v687_v39  ;;  %v249_v18 = vld [vmem:[%s5168_s26 + $0x308] sm:$0xff]  ;;  %v4513_v45 = vld [vmem:[%s5168_s26 + $0x2a0] sm:$0xff] }
 0x34c   : > { %v2223_v26 = vpop.f32.mrf.mxu1  ;;  %2513 = vmatmul.f32.gmra.mxu0 %v220_v34  ;;  %v749_v34 = vld [vmem:[%s7934_s1 + $0x4a8] sm:$0xff] }
 0x34d   : > { %2739 = vmatmul.f32.gmra.mxu2 %v4509_v27  ;;  %2852 = vmatmul.f32.gmra.mxu3 %v4510_v53  ;;  %v2224_v6 = vadd.f32 %v2223_v26, %v2111_v19  ;;  %v781_v26 = vld [vmem:[%s7934_s1 + $0x5a8] sm:$0xff] }
 0x34e   : > { %3168 = vmatpush.msra.mxu2 %v749_v34  ;;  %3281 = vmatpush.msra.mxu3 %v781_v26 }
 0x34f   : > { %4429 = vmatmul.msk.f32.gmra.mxu1 %vm1032_vm0, %v221_v28 }
 0x350   : > { %v2336_v42 = vpop.f32.mrf.mxu2  ;;  %v2449_v57 = vpop.f32.mrf.mxu3 }
 0x351   : > { %v2337_v13 = vadd.f32 %v2336_v42, %v2224_v6  ;;  %v2113_v37 = vpop.f32.mrf.mxu0  ;;  %v262_v6 = vld [vmem:[%s5168_s26 + $0x370] sm:$0xff]  ;;  %v717_v42 = vld [vmem:[%s7934_s1 + $0x3a8] sm:$0xff] }
 0x352   : > { %v2114_v41 = vadd.f32 %v2113_v37, %v6037_v16  ;;  %3055 = vmatpush.msra.mxu1 %v717_v42  ;;  %v4515_v37 = vld [vmem:[%s5168_s26 + $0x310] sm:$0xff] }
 0x353   : > { %v6428_v52 = vadd.f32 %v2449_v57, %v2337_v13  ;;  %v263_v13 = vld [vmem:[%s5168_s26 + $0x378] sm:$0xff] }
 0x354   : > { %v2226_v59 = vpop.f32.mrf.mxu1  ;;  %2516 = vmatmul.f32.gmra.mxu0 %v234_v21  ;;  %v4516_v21 = vld [vmem:[%s5168_s26 + $0x318] sm:$0xff] }
 0x355   : > { %2742 = vmatmul.f32.gmra.mxu2 %v4511_v51  ;;  %2855 = vmatmul.f32.gmra.mxu3 %v4512_v9  ;;  %v2227_v2 = vadd.f32 %v2226_v59, %v2114_v41  ;;  %v276_v51 = vld [vmem:[%s5168_s26 + $0x3e0] sm:$0xff] }
 0x357   : > { %4430 = vmatmul.msk.f32.gmra.mxu1 %vm1032_vm0, %v235_v40 }
 0x358   : > { %v2339_v16 = vpop.f32.mrf.mxu2  ;;  %v2452_v3 = vpop.f32.mrf.mxu3 }
 0x359   : > { %v2340_v11 = vadd.f32 %v2339_v16, %v2227_v2  ;;  %v2116_v54 = vpop.f32.mrf.mxu0 }
 0x35a   : > { %v2117_v20 = vadd.f32 %v2116_v54, %v6053_v22  ;;  %v685_v22 = vld [vmem:[%s7934_s1 + $0x2a8] sm:$0xff] }
 0x35b   : > { %v6439_v44 = vadd.f32 %v2452_v3, %v2340_v11  ;;  %2942 = vmatpush.msra.mxu0 %v685_v22  ;;  %v277_v3 = vld [vmem:[%s5168_s26 + $0x3e8] sm:$0xff]  ;;  %v4517_v11 = vld [vmem:[%s5168_s26 + $0x380] sm:$0xff] }
 0x35c   : > { %v2229_v14 = vpop.f32.mrf.mxu1  ;;  %2519 = vmatmul.f32.gmra.mxu0 %v248_v4  ;;  %v4518_v54 = vld [vmem:[%s5168_s26 + $0x388] sm:$0xff]  ;;  %v747_v4 = vld [vmem:[%s7934_s1 + $0x498] sm:$0xff] }
 0x35d   : > { %2745 = vmatmul.f32.gmra.mxu2 %v4513_v45  ;;  %2858 = vmatmul.f32.gmra.mxu3 %v4514_v29  ;;  %v2230_v19 = vadd.f32 %v2229_v14, %v2117_v20  ;;  %v779_v14 = vld [vmem:[%s7934_s1 + $0x598] sm:$0xff] }
 0x35e   : > { %3169 = vmatpush.msra.mxu2 %v747_v4  ;;  %3282 = vmatpush.msra.mxu3 %v779_v14 }
 0x35f   : > { %4431 = vmatmul.msk.f32.gmra.mxu1 %vm1032_vm0, %v249_v18 }
 0x360   : > { %v2342_v28 = vpop.f32.mrf.mxu2  ;;  %v2455_v27 = vpop.f32.mrf.mxu3 }
 0x361   : > { %v2343_v53 = vadd.f32 %v2342_v28, %v2230_v19  ;;  %v2119_v17 = vpop.f32.mrf.mxu0  ;;  %v290_v19 = vld [vmem:[%s5168_s26 + $0x450] sm:$0xff]  ;;  %v715_v28 = vld [vmem:[%s7934_s1 + $0x398] sm:$0xff] }
 0x362   : > { %v2120_v43 = vadd.f32 %v2119_v17, %v6060_v47  ;;  %3056 = vmatpush.msra.mxu1 %v715_v28  ;;  %v4519_v17 = vld [vmem:[%s5168_s26 + $0x3f0] sm:$0xff] }
 0x363   : > { %v6456_v39 = vadd.f32 %v2455_v27, %v2343_v53  ;;  %v291_v53 = vld [vmem:[%s5168_s26 + $0x458] sm:$0xff] }
 0x364   : > { %v2232_v57 = vpop.f32.mrf.mxu1  ;;  %2522 = vmatmul.f32.gmra.mxu0 %v262_v6  ;;  %v4520_v6 = vld [vmem:[%s5168_s26 + $0x3f8] sm:$0xff] }
 0x365   : > { %2748 = vmatmul.f32.gmra.mxu2 %v4515_v37  ;;  %2861 = vmatmul.f32.gmra.mxu3 %v4516_v21  ;;  %v2233_v41 = vadd.f32 %v2232_v57, %v2120_v43  ;;  %v304_v37 = vld [vmem:[%s5168_s26 + $0x4c0] sm:$0xff] }
 0x367   : > { %4432 = vmatmul.msk.f32.gmra.mxu1 %vm1032_vm0, %v263_v13 }
 0x368   : > { %v2345_v47 = vpop.f32.mrf.mxu2  ;;  %v2458_v55 = vpop.f32.mrf.mxu3 }
 0x369   : > { %v2346_v59 = vadd.f32 %v2345_v47, %v2233_v41  ;;  %v2122_v40 = vpop.f32.mrf.mxu0 }
 0x36a   : > { %v2123_v2 = vadd.f32 %v2122_v40, %v6076_v50  ;;  %v683_v50 = vld [vmem:[%s7934_s1 + $0x298] sm:$0xff]  ;;  %v4522_v40 = vld [vmem:[%s5168_s26 + $0x468] sm:$0xff] }
 0x36b   : > { %v6467_v9 = vadd.f32 %v2458_v55, %v2346_v59  ;;  %2943 = vmatpush.msra.mxu0 %v683_v50  ;;  %v305_v55 = vld [vmem:[%s5168_s26 + $0x4c8] sm:$0xff]  ;;  %v4521_v59 = vld [vmem:[%s5168_s26 + $0x460] sm:$0xff] }
 0x36c   : > { %v2235_v16 = vpop.f32.mrf.mxu1  ;;  %2525 = vmatmul.f32.gmra.mxu0 %v276_v51  ;;  %v745_v51 = vld [vmem:[%s7934_s1 + $0x488] sm:$0xff] }
 0x36d   : > { %2751 = vmatmul.f32.gmra.mxu2 %v4517_v11  ;;  %2864 = vmatmul.f32.gmra.mxu3 %v4518_v54  ;;  %v2236_v20 = vadd.f32 %v2235_v16, %v2123_v2  ;;  %v777_v16 = vld [vmem:[%s7934_s1 + $0x588] sm:$0xff] }
 0x36e   : > { %3170 = vmatpush.msra.mxu2 %v745_v51  ;;  %3283 = vmatpush.msra.mxu3 %v777_v16 }
 0x36f   : > { %4433 = vmatmul.msk.f32.gmra.mxu1 %vm1032_vm0, %v277_v3 }
 0x370   : > { %v2348_v18 = vpop.f32.mrf.mxu2  ;;  %v2461_v45 = vpop.f32.mrf.mxu3 }
 0x371   : > { %v2349_v29 = vadd.f32 %v2348_v18, %v2236_v20  ;;  %v2125_v34 = vpop.f32.mrf.mxu0  ;;  %v318_v20 = vld [vmem:[%s5168_s26 + $0x530] sm:$0xff]  ;;  %v713_v18 = vld [vmem:[%s7934_s1 + $0x388] sm:$0xff] }
 0x372   : > { %v2126_v26 = vadd.f32 %v2125_v34, %v6086_v58  ;;  %3057 = vmatpush.msra.mxu1 %v713_v18  ;;  %v4523_v34 = vld [vmem:[%s5168_s26 + $0x4d0] sm:$0xff] }
 0x373   : > { %v6484_v22 = vadd.f32 %v2461_v45, %v2349_v29  ;;  %v319_v29 = vld [vmem:[%s5168_s26 + $0x538] sm:$0xff] }
 0x374   : > { %v2238_v27 = vpop.f32.mrf.mxu1  ;;  %2528 = vmatmul.f32.gmra.mxu0 %v290_v19  ;;  %v4524_v19 = vld [vmem:[%s5168_s26 + $0x4d8] sm:$0xff] }
 0x375   : > { %2754 = vmatmul.f32.gmra.mxu2 %v4519_v17  ;;  %2867 = vmatmul.f32.gmra.mxu3 %v4520_v6  ;;  %v2239_v43 = vadd.f32 %v2238_v27, %v2126_v26  ;;  %v332_v17 = vld [vmem:[%s5168_s26 + $0x5a0] sm:$0xff] }
 0x377   : > { %4434 = vmatmul.msk.f32.gmra.mxu1 %vm1032_vm0, %v291_v53 }
 0x378   : > { %v2351_v58 = vpop.f32.mrf.mxu2  ;;  %v2464_v42 = vpop.f32.mrf.mxu3 }
 0x379   : > { %v2352_v57 = vadd.f32 %v2351_v58, %v2239_v43  ;;  %v2128_v13 = vpop.f32.mrf.mxu0 }
 0x37a   : > { %v2129_v41 = vadd.f32 %v2128_v13, %v6102_v5  ;;  %v681_v5 = vld [vmem:[%s7934_s1 + $0x288] sm:$0xff] }
 0x37b   : > { %v6495_v21 = vadd.f32 %v2464_v42, %v2352_v57  ;;  %2944 = vmatpush.msra.mxu0 %v681_v5  ;;  %v333_v42 = vld [vmem:[%s5168_s26 + $0x5a8] sm:$0xff]  ;;  %v4525_v57 = vld [vmem:[%s5168_s26 + $0x540] sm:$0xff]  ;;  %v711_v5 = vld [vmem:[%s7934_s1 + $0x378] sm:$0xff] }
 0x37c   : > { %v2241_v47 = vpop.f32.mrf.mxu1  ;;  %2531 = vmatmul.f32.gmra.mxu0 %v304_v37  ;;  %v4526_v13 = vld [vmem:[%s5168_s26 + $0x548] sm:$0xff]  ;;  %3058 = vmatpush.msra.mxu1 %v711_v5 }
 0x37d   : > { %2757 = vmatmul.f32.gmra.mxu2 %v4521_v59  ;;  %2870 = vmatmul.f32.gmra.mxu3 %v4522_v40  ;;  %v2242_v2 = vadd.f32 %v2241_v47, %v2129_v41  ;;  %v743_v41 = vld [vmem:[%s7934_s1 + $0x478] sm:$0xff] }
 0x37e   : > { %v679_v47 = vld [vmem:[%s7934_s1 + $0x278] sm:$0xff]  ;;  %3171 = vmatpush.msra.mxu2 %v743_v41  ;;  %v374_v41 = vld [vmem:[%s5168_s26 + $0x6f0] sm:$0xff] }
 0x37f   : > { %4435 = vmatmul.msk.f32.gmra.mxu1 %vm1032_vm0, %v305_v55  ;;  %2945 = vmatpush.msra.mxu0 %v679_v47  ;;  %v709_v47 = vld [vmem:[%s7934_s1 + $0x368] sm:$0xff] }
 0x380   : > { %v2354_v3 = vpop.f32.mrf.mxu2  ;;  %v2467_v11 = vpop.f32.mrf.mxu3  ;;  %3059 = vmatpush.msra.mxu1 %v709_v47 }
 0x381   : > { %v2355_v54 = vadd.f32 %v2354_v3, %v2242_v2  ;;  %v2131_v4 = vpop.f32.mrf.mxu0  ;;  %v346_v2 = vld [vmem:[%s5168_s26 + $0x610] sm:$0xff] }
 0x382   : > { %v2132_v14 = vadd.f32 %v2131_v4, %v6109_v49  ;;  %v4527_v4 = vld [vmem:[%s5168_s26 + $0x5b0] sm:$0xff] }
 0x383   : > { %v6512_v50 = vadd.f32 %v2467_v11, %v2355_v54  ;;  %v347_v54 = vld [vmem:[%s5168_s26 + $0x618] sm:$0xff] }
 0x384   : > { %v2244_v45 = vpop.f32.mrf.mxu1  ;;  %2534 = vmatmul.f32.gmra.mxu0 %v318_v20  ;;  %v4528_v20 = vld [vmem:[%s5168_s26 + $0x5b8] sm:$0xff] }
 0x385   : > { %2760 = vmatmul.f32.gmra.mxu2 %v4523_v34  ;;  %2873 = vmatmul.f32.gmra.mxu3 %v4524_v19  ;;  %v2245_v26 = vadd.f32 %v2244_v45, %v2132_v14  ;;  %v360_v19 = vld [vmem:[%s5168_s26 + $0x680] sm:$0xff] }
 0x387   : > { %4436 = vmatmul.msk.f32.gmra.mxu1 %vm1032_vm0, %v319_v29 }
 0x388   : > { %v2357_v49 = vpop.f32.mrf.mxu2  ;;  %v2470_v28 = vpop.f32.mrf.mxu3 }
 0x389   : > { %v2358_v27 = vadd.f32 %v2357_v49, %v2245_v26  ;;  %v2134_v53 = vpop.f32.mrf.mxu0 }
 0x38a   : > { %v2135_v43 = vadd.f32 %v2134_v53, %v6125_v31  ;;  %v775_v31 = vld [vmem:[%s7934_s1 + $0x578] sm:$0xff]  ;;  %v4530_v53 = vld [vmem:[%s5168_s26 + $0x628] sm:$0xff] }
 0x38b   : > { %v6523_v6 = vadd.f32 %v2470_v28, %v2358_v27  ;;  %3284 = vmatpush.msra.mxu3 %v775_v31  ;;  %v361_v28 = vld [vmem:[%s5168_s26 + $0x688] sm:$0xff]  ;;  %v4529_v27 = vld [vmem:[%s5168_s26 + $0x620] sm:$0xff] }
 0x38c   : > { %v2247_v58 = vpop.f32.mrf.mxu1  ;;  %2537 = vmatmul.f32.gmra.mxu0 %v332_v17 }
 0x38d   : > { %2763 = vmatmul.f32.gmra.mxu2 %v4525_v57  ;;  %2876 = vmatmul.f32.gmra.mxu3 %v4526_v13  ;;  %v2248_v37 = vadd.f32 %v2247_v58, %v2135_v43  ;;  %v741_v43 = vld [vmem:[%s7934_s1 + $0x468] sm:$0xff] }
 0x38e   : > { %v677_v58 = vld [vmem:[%s7934_s1 + $0x268] sm:$0xff]  ;;  %3172 = vmatpush.msra.mxu2 %v741_v43  ;;  %v402_v43 = vld [vmem:[%s5168_s26 + $0x7d0] sm:$0xff] }
 0x38f   : > { %4437 = vmatmul.msk.f32.gmra.mxu1 %vm1032_vm0, %v333_v42  ;;  %2946 = vmatpush.msra.mxu0 %v677_v58  ;;  %v707_v58 = vld [vmem:[%s7934_s1 + $0x358] sm:$0xff] }
 0x390   : > { %v2360_v55 = vpop.f32.mrf.mxu2  ;;  %v2473_v59 = vpop.f32.mrf.mxu3  ;;  %3060 = vmatpush.msra.mxu1 %v707_v58 }
 0x391   : > { %v2361_v40 = vadd.f32 %v2360_v55, %v2248_v37  ;;  %v2137_v51 = vpop.f32.mrf.mxu0 }
 0x392   : > { %v2138_v3 = vadd.f32 %v2137_v51, %v6135_v12  ;;  %v4531_v51 = vld [vmem:[%s5168_s26 + $0x690] sm:$0xff] }
 0x393   : > { %v6543_v16 = vadd.f32 %v2473_v59, %v2361_v40  ;;  %v375_v40 = vld [vmem:[%s5168_s26 + $0x6f8] sm:$0xff] }
 0x394   : > { %v2250_v11 = vpop.f32.mrf.mxu1  ;;  %2540 = vmatmul.f32.gmra.mxu0 %v346_v2  ;;  %v4532_v2 = vld [vmem:[%s5168_s26 + $0x698] sm:$0xff] }
 0x395   : > { %2766 = vmatmul.f32.gmra.mxu2 %v4527_v4  ;;  %2879 = vmatmul.f32.gmra.mxu3 %v4528_v20  ;;  %v2251_v14 = vadd.f32 %v2250_v11, %v2138_v3  ;;  %v388_v20 = vld [vmem:[%s5168_s26 + $0x760] sm:$0xff] }
 0x397   : > { %4438 = vmatmul.msk.f32.gmra.mxu1 %vm1032_vm0, %v347_v54 }
 0x398   : > { %v2363_v18 = vpop.f32.mrf.mxu2  ;;  %v2476_v45 = vpop.f32.mrf.mxu3 }
 0x399   : > { %v2364_v29 = vadd.f32 %v2363_v18, %v2251_v14  ;;  %v2140_v34 = vpop.f32.mrf.mxu0 }
 0x39a   : > { %v2141_v12 = vadd.f32 %v2140_v34, %v6151_v38  ;;  %v773_v38 = vld [vmem:[%s7934_s1 + $0x568] sm:$0xff]  ;;  %v4533_v34 = vld [vmem:[%s5168_s26 + $0x700] sm:$0xff] }
 0x39b   : > { %v6551_v26 = vadd.f32 %v2476_v45, %v2364_v29  ;;  %3285 = vmatpush.msra.mxu3 %v773_v38  ;;  %v389_v45 = vld [vmem:[%s5168_s26 + $0x768] sm:$0xff] }
 0x39c   : > { %v2253_v49 = vpop.f32.mrf.mxu1  ;;  %2543 = vmatmul.f32.gmra.mxu0 %v360_v19  ;;  %v4534_v19 = vld [vmem:[%s5168_s26 + $0x708] sm:$0xff] }
 0x39d   : > { %2769 = vmatmul.f32.gmra.mxu2 %v4529_v27  ;;  %2882 = vmatmul.f32.gmra.mxu3 %v4530_v53  ;;  %v2254_v17 = vadd.f32 %v2253_v49, %v2141_v12  ;;  %v675_v12 = vld [vmem:[%s7934_s1 + $0x258] sm:$0xff] }
 0x39e   : > { %v771_v49 = vld [vmem:[%s7934_s1 + $0x558] sm:$0xff]  ;;  %2947 = vmatpush.msra.mxu0 %v675_v12 }
 0x39f   : > { %4439 = vmatmul.msk.f32.gmra.mxu1 %vm1032_vm0, %v361_v28  ;;  %3286 = vmatpush.msra.mxu3 %v771_v49  ;;  %v431_v49 = vld [vmem:[%s5168_s26 + $0x8b8] sm:$0xff] }
 0x3a0   : > { %v2366_v42 = vpop.f32.mrf.mxu2  ;;  %v2479_v57 = vpop.f32.mrf.mxu3 }
 0x3a1   : > { %v2367_v13 = vadd.f32 %v2366_v42, %v2254_v17  ;;  %v2143_v37 = vpop.f32.mrf.mxu0 }
 0x3a2   : > { %v2144_v55 = vadd.f32 %v2143_v37, %v6158_v56  ;;  %v4535_v37 = vld [vmem:[%s5168_s26 + $0x770] sm:$0xff] }
 0x3a3   : > { %v6571_v31 = vadd.f32 %v2479_v57, %v2367_v13  ;;  %v403_v57 = vld [vmem:[%s5168_s26 + $0x7d8] sm:$0xff] }
 0x3a4   : > { %v2256_v59 = vpop.f32.mrf.mxu1  ;;  %2546 = vmatmul.f32.gmra.mxu0 %v374_v41  ;;  %v4536_v41 = vld [vmem:[%s5168_s26 + $0x778] sm:$0xff] }
 0x3a5   : > { %2772 = vmatmul.f32.gmra.mxu2 %v4531_v51  ;;  %2885 = vmatmul.f32.gmra.mxu3 %v4532_v2  ;;  %v2257_v5 = vadd.f32 %v2256_v59, %v2144_v55 }
 0x3a7   : > { %4440 = vmatmul.msk.f32.gmra.mxu1 %vm1032_vm0, %v375_v40  ;;  %v416_v40 = vld [vmem:[%s5168_s26 + $0x840] sm:$0xff] }
 0x3a8   : > { %v2369_v3 = vpop.f32.mrf.mxu2  ;;  %v2482_v11 = vpop.f32.mrf.mxu3 }
 0x3a9   : > { %v2370_v54 = vadd.f32 %v2369_v3, %v2257_v5  ;;  %v2502_v4 = vpop.f32.mrf.mxu0  ;;  %v417_v5 = vld [vmem:[%s5168_s26 + $0x848] sm:$0xff] }
 0x3aa   : > { %v2503_v56 = vadd.f32 %v2502_v4, %v6174_v25  ;;  %v739_v25 = vld [vmem:[%s7934_s1 + $0x458] sm:$0xff]  ;;  %v737_v4 = vld [vmem:[%s7934_s1 + $0x448] sm:$0xff] }
 0x3ab   : > { %v6581_v14 = vadd.f32 %v2482_v11, %v2370_v54  ;;  %3173 = vmatpush.msra.mxu2 %v739_v25  ;;  %v4537_v11 = vld [vmem:[%s5168_s26 + $0x7e0] sm:$0xff]  ;;  %v4538_v54 = vld [vmem:[%s5168_s26 + $0x7e8] sm:$0xff] }
 0x3ac   : > { %v2615_v18 = vpop.f32.mrf.mxu1  ;;  %2549 = vmatmul.f32.gmra.mxu0 %v388_v20  ;;  %v769_v20 = vld [vmem:[%s7934_s1 + $0x548] sm:$0xff] }
 0x3ad   : > { %v2616_v29 = vadd.f32 %v2615_v18, %v2503_v56  ;;  %2775 = vmatmul.f32.gmra.mxu2 %v4533_v34  ;;  %2888 = vmatmul.f32.gmra.mxu3 %v4534_v19  ;;  %v430_v34 = vld [vmem:[%s5168_s26 + $0x8b0] sm:$0xff]  ;;  %v705_v19 = vld [vmem:[%s7934_s1 + $0x348] sm:$0xff] }
 0x3ae   : > { %3174 = vmatpush.msra.mxu2 %v737_v4  ;;  %3287 = vmatpush.msra.mxu3 %v769_v20  ;;  %v459_v20 = vld [vmem:[%s5168_s26 + $0x998] sm:$0xff] }
 0x3af   : > { %4293 = vst [vmem:[%s6586_s14] sm:$0xff] %v2616_v29  ;;  %4441 = vmatmul.msk.f32.gmra.mxu1 %vm1032_vm0, %v389_v45 }
 0x3b0   : > { %v2728_v28 = vpop.f32.mrf.mxu2  ;;  %v2841_v27 = vpop.f32.mrf.mxu3  ;;  %3061 = vmatpush.msra.mxu1 %v705_v19 }
 0x3b1   : > { %v6602_v53 = vadd.f32 %v2841_v27, %v2728_v28  ;;  %v2505_v17 = vpop.f32.mrf.mxu0  ;;  %v4539_v27 = vld [vmem:[%s5168_s26 + $0x850] sm:$0xff] }
 0x3b2   : > { %v2506_v38 = vadd.f32 %v2505_v17, %v6184_v48  ;;  %v4540_v17 = vld [vmem:[%s5168_s26 + $0x858] sm:$0xff] }
 0x3b4   : > { %v2618_v42 = vpop.f32.mrf.mxu1  ;;  %2552 = vmatmul.f32.gmra.mxu0 %v402_v43 }
 0x3b5   : > { %v2619_v13 = vadd.f32 %v2618_v42, %v2506_v38  ;;  %2778 = vmatmul.f32.gmra.mxu2 %v4535_v37  ;;  %2891 = vmatmul.f32.gmra.mxu3 %v4536_v41  ;;  %v444_v42 = vld [vmem:[%s5168_s26 + $0x920] sm:$0xff]  ;;  %v445_v37 = vld [vmem:[%s5168_s26 + $0x928] sm:$0xff] }
 0x3b7   : > { %4295 = vst [vmem:[%s6586_s14 + $0x10] sm:$0xff] %v2619_v13  ;;  %4442 = vmatmul.msk.f32.gmra.mxu1 %vm1032_vm0, %v403_v57 }
 0x3b8   : > { %v2731_v47 = vpop.f32.mrf.mxu2  ;;  %v2844_v55 = vpop.f32.mrf.mxu3 }
 0x3b9   : > { %v6614_v48 = vadd.f32 %v2844_v55, %v2731_v47  ;;  %v2508_v59 = vpop.f32.mrf.mxu0  ;;  %v4541_v47 = vld [vmem:[%s5168_s26 + $0x8c0] sm:$0xff]  ;;  %v4542_v55 = vld [vmem:[%s5168_s26 + $0x8c8] sm:$0xff] }
 0x3ba   : > { %v2509_v51 = vadd.f32 %v2508_v59, %v6200_v10  ;;  %v673_v10 = vld [vmem:[%s7934_s1 + $0x248] sm:$0xff]  ;;  %v735_v59 = vld [vmem:[%s7934_s1 + $0x438] sm:$0xff] }
 0x3bb   : > { %2948 = vmatpush.msra.mxu0 %v673_v10  ;;  %3175 = vmatpush.msra.mxu2 %v735_v59 }
 0x3bc   : > { %v2621_v2 = vpop.f32.mrf.mxu1  ;;  %2555 = vmatmul.f32.gmra.mxu0 %v416_v40  ;;  %v767_v40 = vld [vmem:[%s7934_s1 + $0x538] sm:$0xff] }
 0x3bd   : > { %v2622_v3 = vadd.f32 %v2621_v2, %v2509_v51  ;;  %2781 = vmatmul.f32.gmra.mxu2 %v4537_v11  ;;  %2894 = vmatmul.f32.gmra.mxu3 %v4538_v54  ;;  %v458_v11 = vld [vmem:[%s5168_s26 + $0x990] sm:$0xff]  ;;  %v703_v54 = vld [vmem:[%s7934_s1 + $0x338] sm:$0xff] }
 0x3be   : > { %3288 = vmatpush.msra.mxu3 %v767_v40  ;;  %3062 = vmatpush.msra.mxu1 %v703_v54  ;;  %v487_v40 = vld [vmem:[%s5168_s26 + $0xa78] sm:$0xff] }
 0x3bf   : > { %4297 = vst [vmem:[%s6586_s14 + $0x20] sm:$0xff] %v2622_v3  ;;  %4443 = vmatmul.msk.f32.gmra.mxu1 %vm1032_vm0, %v417_v5 }
 0x3c0   : > { %v2734_v56 = vpop.f32.mrf.mxu2  ;;  %v2847_v18 = vpop.f32.mrf.mxu3 }
 0x3c1   : > { %v6632_v45 = vadd.f32 %v2847_v18, %v2734_v56  ;;  %v2511_v29 = vpop.f32.mrf.mxu0  ;;  %v4543_v18 = vld [vmem:[%s5168_s26 + $0x930] sm:$0xff] }
 0x3c2   : > { %v2512_v25 = vadd.f32 %v2511_v29, %v6207_v8  ;;  %v4544_v29 = vld [vmem:[%s5168_s26 + $0x938] sm:$0xff] }
 0x3c4   : > { %v2624_v12 = vpop.f32.mrf.mxu1  ;;  %2558 = vmatmul.f32.gmra.mxu0 %v430_v34 }
 0x3c5   : > { %v2625_v28 = vadd.f32 %v2624_v12, %v2512_v25  ;;  %2784 = vmatmul.f32.gmra.mxu2 %v4539_v27  ;;  %2897 = vmatmul.f32.gmra.mxu3 %v4540_v17  ;;  %v472_v12 = vld [vmem:[%s5168_s26 + $0xa00] sm:$0xff]  ;;  %v473_v27 = vld [vmem:[%s5168_s26 + $0xa08] sm:$0xff] }
 0x3c7   : > { %4299 = vst [vmem:[%s6586_s14 + $0x30] sm:$0xff] %v2625_v28  ;;  %4444 = vmatmul.msk.f32.gmra.mxu1 %vm1032_vm0, %v431_v49 }
 0x3c8   : > { %v2737_v43 = vpop.f32.mrf.mxu2  ;;  %v2850_v58 = vpop.f32.mrf.mxu3 }
 0x3c9   : > { %v6644_v8 = vadd.f32 %v2850_v58, %v2737_v43  ;;  %v2514_v38 = vpop.f32.mrf.mxu0  ;;  %v4545_v43 = vld [vmem:[%s5168_s26 + $0x9a0] sm:$0xff]  ;;  %v4546_v58 = vld [vmem:[%s5168_s26 + $0x9a8] sm:$0xff] }
 0x3ca   : > { %v2515_v57 = vadd.f32 %v2514_v38, %v6223_v62  ;;  %v671_v62 = vld [vmem:[%s7934_s1 + $0x238] sm:$0xff]  ;;  %v733_v38 = vld [vmem:[%s7934_s1 + $0x428] sm:$0xff] }
 0x3cb   : > { %2949 = vmatpush.msra.mxu0 %v671_v62  ;;  %3176 = vmatpush.msra.mxu2 %v733_v38 }
 0x3cc   : > { %v2627_v13 = vpop.f32.mrf.mxu1  ;;  %2561 = vmatmul.f32.gmra.mxu0 %v444_v42  ;;  %v765_v42 = vld [vmem:[%s7934_s1 + $0x528] sm:$0xff] }
 0x3cd   : > { %v2628_v41 = vadd.f32 %v2627_v13, %v2515_v57  ;;  %2787 = vmatmul.f32.gmra.mxu2 %v4541_v47  ;;  %2900 = vmatmul.f32.gmra.mxu3 %v4542_v55  ;;  %v486_v47 = vld [vmem:[%s5168_s26 + $0xa70] sm:$0xff]  ;;  %v701_v55 = vld [vmem:[%s7934_s1 + $0x328] sm:$0xff] }
 0x3ce   : > { %3289 = vmatpush.msra.mxu3 %v765_v42  ;;  %3063 = vmatpush.msra.mxu1 %v701_v55  ;;  %v515_v42 = vld [vmem:[%s5168_s26 + $0xb58] sm:$0xff] }
 0x3cf   : > { %4301 = vst [vmem:[%s6586_s14 + $0x40] sm:$0xff] %v2628_v41  ;;  %4445 = vmatmul.msk.f32.gmra.mxu1 %vm1032_vm0, %v445_v37 }
 0x3d0   : > { %v2740_v51 = vpop.f32.mrf.mxu2  ;;  %v2853_v2 = vpop.f32.mrf.mxu3 }
 0x3d1   : > { %v6662_v5 = vadd.f32 %v2853_v2, %v2740_v51  ;;  %v2517_v3 = vpop.f32.mrf.mxu0  ;;  %v4547_v2 = vld [vmem:[%s5168_s26 + $0xa10] sm:$0xff] }
 0x3d2   : > { %v2518_v4 = vadd.f32 %v2517_v3, %v6233_v24  ;;  %v4548_v3 = vld [vmem:[%s5168_s26 + $0xa18] sm:$0xff] }
 0x3d4   : > { %v2630_v10 = vpop.f32.mrf.mxu1  ;;  %2564 = vmatmul.f32.gmra.mxu0 %v458_v11 }
 0x3d5   : > { %v2631_v56 = vadd.f32 %v2630_v10, %v2518_v4  ;;  %2790 = vmatmul.f32.gmra.mxu2 %v4543_v18  ;;  %2903 = vmatmul.f32.gmra.mxu3 %v4544_v29  ;;  %v500_v10 = vld [vmem:[%s5168_s26 + $0xae0] sm:$0xff]  ;;  %v501_v18 = vld [vmem:[%s5168_s26 + $0xae8] sm:$0xff] }
 0x3d7   : > { %4303 = vst [vmem:[%s6586_s14 + $0x50] sm:$0xff] %v2631_v56  ;;  %4446 = vmatmul.msk.f32.gmra.mxu1 %vm1032_vm0, %v459_v20 }
 0x3d8   : > { %v2743_v34 = vpop.f32.mrf.mxu2  ;;  %v2856_v19 = vpop.f32.mrf.mxu3 }
 0x3d9   : > { %v6674_v24 = vadd.f32 %v2856_v19, %v2743_v34  ;;  %v2520_v25 = vpop.f32.mrf.mxu0  ;;  %v4549_v34 = vld [vmem:[%s5168_s26 + $0xa80] sm:$0xff]  ;;  %v4550_v19 = vld [vmem:[%s5168_s26 + $0xa88] sm:$0xff] }
 0x3da   : > { %v2521_v49 = vadd.f32 %v2520_v25, %v6249_v46  ;;  %v669_v46 = vld [vmem:[%s7934_s1 + $0x228] sm:$0xff]  ;;  %v731_v25 = vld [vmem:[%s7934_s1 + $0x418] sm:$0xff] }
 0x3db   : > { %2950 = vmatpush.msra.mxu0 %v669_v46  ;;  %3177 = vmatpush.msra.mxu2 %v731_v25 }
 0x3dc   : > { %v2633_v28 = vpop.f32.mrf.mxu1  ;;  %2567 = vmatmul.f32.gmra.mxu0 %v472_v12  ;;  %v763_v12 = vld [vmem:[%s7934_s1 + $0x518] sm:$0xff] }
 0x3dd   : > { %v2634_v17 = vadd.f32 %v2633_v28, %v2521_v49  ;;  %2793 = vmatmul.f32.gmra.mxu2 %v4545_v43  ;;  %2906 = vmatmul.f32.gmra.mxu3 %v4546_v58  ;;  %v514_v43 = vld [vmem:[%s5168_s26 + $0xb50] sm:$0xff]  ;;  %v699_v58 = vld [vmem:[%s7934_s1 + $0x318] sm:$0xff] }
 0x3de   : > { %3290 = vmatpush.msra.mxu3 %v763_v12  ;;  %3064 = vmatpush.msra.mxu1 %v699_v58  ;;  %v543_v12 = vld [vmem:[%s5168_s26 + $0xc38] sm:$0xff] }
 0x3df   : > { %4305 = vst [vmem:[%s6586_s14 + $0x60] sm:$0xff] %v2634_v17  ;;  %4447 = vmatmul.msk.f32.gmra.mxu1 %vm1032_vm0, %v473_v27 }
 0x3e0   : > { %v2746_v57 = vpop.f32.mrf.mxu2  ;;  %v2859_v13 = vpop.f32.mrf.mxu3 }
 0x3e1   : > { %v6692_v37 = vadd.f32 %v2859_v13, %v2746_v57  ;;  %v2523_v41 = vpop.f32.mrf.mxu0  ;;  %v4551_v13 = vld [vmem:[%s5168_s26 + $0xaf0] sm:$0xff] }
 0x3e2   : > { %v2524_v59 = vadd.f32 %v2523_v41, %v6256_v32  ;;  %v4552_v41 = vld [vmem:[%s5168_s26 + $0xaf8] sm:$0xff] }
 0x3e4   : > { %v2636_v62 = vpop.f32.mrf.mxu1  ;;  %2570 = vmatmul.f32.gmra.mxu0 %v486_v47 }
 0x3e5   : > { %v2637_v51 = vadd.f32 %v2636_v62, %v2524_v59  ;;  %2796 = vmatmul.f32.gmra.mxu2 %v4547_v2  ;;  %2909 = vmatmul.f32.gmra.mxu3 %v4548_v3  ;;  %v528_v62 = vld [vmem:[%s5168_s26 + $0xbc0] sm:$0xff]  ;;  %v529_v2 = vld [vmem:[%s5168_s26 + $0xbc8] sm:$0xff] }
 0x3e7   : > { %4307 = vst [vmem:[%s6586_s14 + $0x70] sm:$0xff] %v2637_v51  ;;  %4448 = vmatmul.msk.f32.gmra.mxu1 %vm1032_vm0, %v487_v40 }
 0x3e8   : > { %v2749_v11 = vpop.f32.mrf.mxu2  ;;  %v2862_v54 = vpop.f32.mrf.mxu3 }
 0x3e9   : > { %v6704_v32 = vadd.f32 %v2862_v54, %v2749_v11  ;;  %v2526_v4 = vpop.f32.mrf.mxu0  ;;  %v4553_v11 = vld [vmem:[%s5168_s26 + $0xb60] sm:$0xff]  ;;  %v4554_v54 = vld [vmem:[%s5168_s26 + $0xb68] sm:$0xff] }
 0x3ea   : > { %v2527_v20 = vadd.f32 %v2526_v4, %v6272_v36  ;;  %v667_v36 = vld [vmem:[%s7934_s1 + $0x218] sm:$0xff]  ;;  %v729_v4 = vld [vmem:[%s7934_s1 + $0x408] sm:$0xff] }
 0x3eb   : > { %2951 = vmatpush.msra.mxu0 %v667_v36  ;;  %3178 = vmatpush.msra.mxu2 %v729_v4 }
 0x3ec   : > { %v2639_v56 = vpop.f32.mrf.mxu1  ;;  %2573 = vmatmul.f32.gmra.mxu0 %v500_v10  ;;  %v761_v10 = vld [vmem:[%s7934_s1 + $0x508] sm:$0xff] }
 0x3ed   : > { %v2640_v29 = vadd.f32 %v2639_v56, %v2527_v20  ;;  %2799 = vmatmul.f32.gmra.mxu2 %v4549_v34  ;;  %2912 = vmatmul.f32.gmra.mxu3 %v4550_v19  ;;  %v542_v34 = vld [vmem:[%s5168_s26 + $0xc30] sm:$0xff]  ;;  %v697_v19 = vld [vmem:[%s7934_s1 + $0x308] sm:$0xff] }
 0x3ee   : > { %3291 = vmatpush.msra.mxu3 %v761_v10  ;;  %3065 = vmatpush.msra.mxu1 %v697_v19  ;;  %v571_v10 = vld [vmem:[%s5168_s26 + $0xd18] sm:$0xff] }
 0x3ef   : > { %4309 = vst [vmem:[%s6586_s14 + $0x80] sm:$0xff] %v2640_v29  ;;  %4449 = vmatmul.msk.f32.gmra.mxu1 %vm1032_vm0, %v501_v18 }
 0x3f0   : > { %v2752_v49 = vpop.f32.mrf.mxu2  ;;  %v2865_v28 = vpop.f32.mrf.mxu3 }
 0x3f1   : > { %v6722_v27 = vadd.f32 %v2865_v28, %v2752_v49  ;;  %v2529_v17 = vpop.f32.mrf.mxu0  ;;  %v4555_v28 = vld [vmem:[%s5168_s26 + $0xbd0] sm:$0xff] }
 0x3f2   : > { %v2530_v38 = vadd.f32 %v2529_v17, %v6282_v61  ;;  %v4556_v17 = vld [vmem:[%s5168_s26 + $0xbd8] sm:$0xff] }
 0x3f4   : > { %v2642_v46 = vpop.f32.mrf.mxu1  ;;  %2576 = vmatmul.f32.gmra.mxu0 %v514_v43 }
 0x3f5   : > { %v2643_v57 = vadd.f32 %v2642_v46, %v2530_v38  ;;  %2802 = vmatmul.f32.gmra.mxu2 %v4551_v13  ;;  %2915 = vmatmul.f32.gmra.mxu3 %v4552_v41  ;;  %v556_v46 = vld [vmem:[%s5168_s26 + $0xca0] sm:$0xff]  ;;  %v557_v13 = vld [vmem:[%s5168_s26 + $0xca8] sm:$0xff] }
 0x3f7   : > { %4311 = vst [vmem:[%s6586_s14 + $0x90] sm:$0xff] %v2643_v57  ;;  %4450 = vmatmul.msk.f32.gmra.mxu1 %vm1032_vm0, %v515_v42 }
 0x3f8   : > { %v2755_v47 = vpop.f32.mrf.mxu2  ;;  %v2868_v55 = vpop.f32.mrf.mxu3 }
 0x3f9   : > { %v6734_v61 = vadd.f32 %v2868_v55, %v2755_v47  ;;  %v2532_v59 = vpop.f32.mrf.mxu0  ;;  %v4557_v47 = vld [vmem:[%s5168_s26 + $0xc40] sm:$0xff]  ;;  %v4558_v55 = vld [vmem:[%s5168_s26 + $0xc48] sm:$0xff] }
 0x3fa   : > { %v2533_v40 = vadd.f32 %v2532_v59, %v6298_v23  ;;  %v665_v23 = vld [vmem:[%s7934_s1 + $0x208] sm:$0xff]  ;;  %v887_v59 = vld [vmem:[%s7934_s1 + $0x8f8] sm:$0xff] }
 0x3fb   : > { %2952 = vmatpush.msra.mxu0 %v665_v23  ;;  %3615 = vmatpush.msrb.mxu2 %v887_v59 }
 0x3fc   : > { %v2645_v51 = vpop.f32.mrf.mxu1  ;;  %2579 = vmatmul.f32.gmra.mxu0 %v528_v62  ;;  %v919_v62 = vld [vmem:[%s7934_s1 + $0x9f8] sm:$0xff] }
 0x3fd   : > { %v2646_v3 = vadd.f32 %v2645_v51, %v2533_v40  ;;  %2805 = vmatmul.f32.gmra.mxu2 %v4553_v11  ;;  %2918 = vmatmul.f32.gmra.mxu3 %v4554_v54  ;;  %v570_v11 = vld [vmem:[%s5168_s26 + $0xd10] sm:$0xff]  ;;  %v855_v54 = vld [vmem:[%s7934_s1 + $0x7f8] sm:$0xff] }
 0x3fe   : > { %3728 = vmatpush.msrb.mxu3 %v919_v62  ;;  %3502 = vmatpush.msrb.mxu1 %v855_v54  ;;  %v599_v62 = vld [vmem:[%s5168_s26 + $0xdf8] sm:$0xff] }
 0x3ff   : > { %4313 = vst [vmem:[%s6586_s14 + $0xa0] sm:$0xff] %v2646_v3  ;;  %4451 = vmatmul.msk.f32.gmra.mxu1 %vm1032_vm0, %v529_v2 }
 0x400   : > { %v2758_v20 = vpop.f32.mrf.mxu2  ;;  %v2871_v56 = vpop.f32.mrf.mxu3 }
 0x401   : > { %v6752_v18 = vadd.f32 %v2871_v56, %v2758_v20  ;;  %v2535_v29 = vpop.f32.mrf.mxu0  ;;  %v4559_v56 = vld [vmem:[%s5168_s26 + $0xcb0] sm:$0xff] }
 0x402   : > { %v2536_v25 = vadd.f32 %v2535_v29, %v6305_v1  ;;  %v4560_v29 = vld [vmem:[%s5168_s26 + $0xcb8] sm:$0xff] }
 0x404   : > { %v2648_v36 = vpop.f32.mrf.mxu1  ;;  %2582 = vmatmul.f32.gmra.mxu0 %v542_v34 }
 0x405   : > { %v2649_v49 = vadd.f32 %v2648_v36, %v2536_v25  ;;  %2808 = vmatmul.f32.gmra.mxu2 %v4555_v28  ;;  %2921 = vmatmul.f32.gmra.mxu3 %v4556_v17  ;;  %v584_v36 = vld [vmem:[%s5168_s26 + $0xd80] sm:$0xff]  ;;  %v585_v28 = vld [vmem:[%s5168_s26 + $0xd88] sm:$0xff] }
 0x407   : > { %4315 = vst [vmem:[%s6586_s14 + $0xb0] sm:$0xff] %v2649_v49  ;;  %4452 = vmatmul.msk.f32.gmra.mxu1 %vm1032_vm0, %v543_v12 }
 0x408   : > { %v2761_v43 = vpop.f32.mrf.mxu2  ;;  %v2874_v58 = vpop.f32.mrf.mxu3 }
 0x409   : > { %v6764_v1 = vadd.f32 %v2874_v58, %v2761_v43  ;;  %v2538_v38 = vpop.f32.mrf.mxu0  ;;  %v4561_v43 = vld [vmem:[%s5168_s26 + $0xd20] sm:$0xff]  ;;  %v4562_v58 = vld [vmem:[%s5168_s26 + $0xd28] sm:$0xff] }
 0x40a   : > { %v2539_v42 = vadd.f32 %v2538_v38, %v6321_v7  ;;  %v823_v7 = vld [vmem:[%s7934_s1 + $0x6f8] sm:$0xff]  ;;  %v885_v38 = vld [vmem:[%s7934_s1 + $0x8e8] sm:$0xff] }
 0x40b   : > { %3389 = vmatpush.msrb.mxu0 %v823_v7  ;;  %3616 = vmatpush.msrb.mxu2 %v885_v38 }
 0x40c   : > { %v2651_v57 = vpop.f32.mrf.mxu1  ;;  %2585 = vmatmul.f32.gmra.mxu0 %v556_v46  ;;  %v917_v46 = vld [vmem:[%s7934_s1 + $0x9e8] sm:$0xff] }
 0x40d   : > { %v2652_v41 = vadd.f32 %v2651_v57, %v2539_v42  ;;  %2811 = vmatmul.f32.gmra.mxu2 %v4557_v47  ;;  %2924 = vmatmul.f32.gmra.mxu3 %v4558_v55  ;;  %v598_v47 = vld [vmem:[%s5168_s26 + $0xdf0] sm:$0xff]  ;;  %v853_v55 = vld [vmem:[%s7934_s1 + $0x7e8] sm:$0xff] }
 0x40e   : > { %3729 = vmatpush.msrb.mxu3 %v917_v46  ;;  %3503 = vmatpush.msrb.mxu1 %v853_v55 }
 0x40f   : > { %4317 = vst [vmem:[%s6586_s14 + $0xc0] sm:$0xff] %v2652_v41  ;;  %4453 = vmatmul.msk.f32.gmra.mxu1 %vm1032_vm0, %v557_v13 }
 0x410   : > { %v2764_v40 = vpop.f32.mrf.mxu2  ;;  %v2877_v51 = vpop.f32.mrf.mxu3 }
 0x411   : > { %v6782_v2 = vadd.f32 %v2877_v51, %v2764_v40  ;;  %v2541_v3 = vpop.f32.mrf.mxu0  ;;  %v4563_v51 = vld [vmem:[%s5168_s26 + $0xd90] sm:$0xff] }
 0x412   : > { %v2542_v4 = vadd.f32 %v2541_v3, %v6331_v35  ;;  %v4564_v3 = vld [vmem:[%s5168_s26 + $0xd98] sm:$0xff] }
 0x414   : > { %v2654_v23 = vpop.f32.mrf.mxu1  ;;  %2588 = vmatmul.f32.gmra.mxu0 %v570_v11 }
 0x415   : > { %v2655_v20 = vadd.f32 %v2654_v23, %v2542_v4  ;;  %2814 = vmatmul.f32.gmra.mxu2 %v4559_v56  ;;  %2927 = vmatmul.f32.gmra.mxu3 %v4560_v29  ;;  %v4566_v29 = vld [vmem:[%s5168_s26 + $0x20] sm:$0xff] }
 0x417   : > { %4319 = vst [vmem:[%s6586_s14 + $0xd0] sm:$0xff] %v2655_v20  ;;  %4454 = vmatmul.msk.f32.gmra.mxu1 %vm1032_vm0, %v571_v10  ;;  %v4565_v20 = vld [vmem:[%s5168_s26 + $0x10] sm:$0xff] }
 0x418   : > { %v2767_v34 = vpop.f32.mrf.mxu2  ;;  %v2880_v19 = vpop.f32.mrf.mxu3 }
 0x419   : > { %v6794_v35 = vadd.f32 %v2880_v19, %v2767_v34  ;;  %v2544_v25 = vpop.f32.mrf.mxu0  ;;  %v4567_v34 = vld [vmem:[%s5168_s26 + $0x28] sm:$0xff]  ;;  %v4568_v19 = vld [vmem:[%s5168_s26 + $0x18] sm:$0xff] }
 0x41a   : > { %v2545_v12 = vadd.f32 %v2544_v25, %v6347_v60  ;;  %v821_v60 = vld [vmem:[%s7934_s1 + $0x6e8] sm:$0xff]  ;;  %v883_v25 = vld [vmem:[%s7934_s1 + $0x8d8] sm:$0xff] }
 0x41b   : > { %3390 = vmatpush.msrb.mxu0 %v821_v60  ;;  %3617 = vmatpush.msrb.mxu2 %v883_v25  ;;  %v4569_v60 = vld [vmem:[%s5168_s26 + $0x80] sm:$0xff] }
 0x41c   : > { %v2657_v49 = vpop.f32.mrf.mxu1  ;;  %2591 = vmatmul.f32.gmra.mxu0 %v584_v36  ;;  %v915_v36 = vld [vmem:[%s7934_s1 + $0x9d8] sm:$0xff] }
 0x41d   : > { %v2658_v17 = vadd.f32 %v2657_v49, %v2545_v12  ;;  %2817 = vmatmul.f32.gmra.mxu2 %v4561_v43  ;;  %2930 = vmatmul.f32.gmra.mxu3 %v4562_v58  ;;  %v851_v43 = vld [vmem:[%s7934_s1 + $0x7d8] sm:$0xff] }
 0x41e   : > { %3730 = vmatpush.msrb.mxu3 %v915_v36  ;;  %3504 = vmatpush.msrb.mxu1 %v851_v43 }
 0x41f   : > { %4321 = vst [vmem:[%s6586_s14 + $0xe0] sm:$0xff] %v2658_v17  ;;  %4455 = vmatmul.msk.f32.gmra.mxu1 %vm1032_vm0, %v585_v28 }
 0x420   : > { %v2770_v42 = vpop.f32.mrf.mxu2  ;;  %v2883_v57 = vpop.f32.mrf.mxu3 }
 0x421   : > { %v6812_v13 = vadd.f32 %v2883_v57, %v2770_v42  ;;  %v2547_v41 = vpop.f32.mrf.mxu0  ;;  %v4570_v42 = vld [vmem:[%s5168_s26 + $0x90] sm:$0xff]  ;;  %v4571_v57 = vld [vmem:[%s5168_s26 + $0x98] sm:$0xff] }
 0x422   : > { %v2548_v59 = vadd.f32 %v2547_v41, %v6355_v33  ;;  %v4572_v41 = vld [vmem:[%s5168_s26 + $0x88] sm:$0xff] }
 0x424   : > { %v2660_v7 = vpop.f32.mrf.mxu1  ;;  %2594 = vmatmul.f32.gmra.mxu0 %v598_v47 }
 0x425   : > { %v2661_v40 = vadd.f32 %v2660_v7, %v2548_v59  ;;  %2820 = vmatmul.f32.gmra.mxu2 %v4563_v51  ;;  %2933 = vmatmul.f32.gmra.mxu3 %v4564_v3  ;;  %v4574_v3 = vld [vmem:[%s5168_s26 + $0x100] sm:$0xff] }
 0x427   : > { %4323 = vst [vmem:[%s6586_s14 + $0xf0] sm:$0xff] %v2661_v40  ;;  %4456 = vmatmul.msk.f32.gmra.mxu1 %vm1032_vm0, %v599_v62  ;;  %v4573_v40 = vld [vmem:[%s5168_s26 + $0xf0] sm:$0xff] }
 0x428   : > { %v2773_v11 = vpop.f32.mrf.mxu2  ;;  %v2886_v54 = vpop.f32.mrf.mxu3 }
 0x429   : > { %v6824_v33 = vadd.f32 %v2886_v54, %v2773_v11  ;;  %v2550_v4 = vpop.f32.mrf.mxu0  ;;  %v4575_v11 = vld [vmem:[%s5168_s26 + $0x108] sm:$0xff]  ;;  %v4576_v54 = vld [vmem:[%s5168_s26 + $0xf8] sm:$0xff] }
 0x42a   : > { %v2551_v23 = vadd.f32 %v2550_v4, %v6372_v15  ;;  %v819_v15 = vld [vmem:[%s7934_s1 + $0x6d8] sm:$0xff]  ;;  %v881_v4 = vld [vmem:[%s7934_s1 + $0x8c8] sm:$0xff] }
 0x42b   : > { %3391 = vmatpush.msrb.mxu0 %v819_v15  ;;  %3618 = vmatpush.msrb.mxu2 %v881_v4  ;;  %v4577_v15 = vld [vmem:[%s5168_s26 + $0x160] sm:$0xff] }
 0x42c   : > { %v2663_v10 = vpop.f32.mrf.mxu1  ;;  %2953 = vmatmul.f32.vlgmr.msra.gmra.mxu0 %v4565_v20 }
 0x42d   : > { %v2664_v56 = vadd.f32 %v2663_v10, %v2551_v23  ;;  %3179 = vmatmul.f32.vlgmr.msra.gmra.mxu2 %v4566_v29  ;;  %3292 = vmatmul.f32.vlgmr.msra.gmra.mxu3 %v4567_v34  ;;  %v913_v23 = vld [vmem:[%s7934_s1 + $0x9c8] sm:$0xff] }
 0x42e   : > { %3731 = vmatpush.msrb.mxu3 %v913_v23  ;;  %v849_v34 = vld [vmem:[%s7934_s1 + $0x7c8] sm:$0xff] }
 0x42f   : > { %4325 = vst [vmem:[%s6586_s14 + $0x100] sm:$0xff] %v2664_v56  ;;  %3066 = vmatmul.f32.vlgmr.msra.gmra.mxu1 %v4568_v19 }
 0x430   : > { %v2776_v12 = vpop.f32.mrf.mxu2  ;;  %v2889_v49 = vpop.f32.mrf.mxu3  ;;  %3505 = vmatpush.msrb.mxu1 %v849_v34 }
 0x431   : > { %v6841_v28 = vadd.f32 %v2889_v49, %v2776_v12  ;;  %v2553_v17 = vpop.f32.mrf.mxu0  ;;  %v4578_v12 = vld [vmem:[%s5168_s26 + $0x170] sm:$0xff]  ;;  %v4579_v49 = vld [vmem:[%s5168_s26 + $0x178] sm:$0xff] }
 0x432   : > { %v2554_v58 = vadd.f32 %v2553_v17, %v6383_v0  ;;  %v4580_v17 = vld [vmem:[%s5168_s26 + $0x168] sm:$0xff] }
 0x434   : > { %v2666_v38 = vpop.f32.mrf.mxu1  ;;  %2956 = vmatmul.f32.gmra.mxu0 %v4569_v60 }
 0x435   : > { %v2667_v46 = vadd.f32 %v2666_v38, %v2554_v58  ;;  %3182 = vmatmul.f32.gmra.mxu2 %v4570_v42  ;;  %3295 = vmatmul.f32.gmra.mxu3 %v4571_v57  ;;  %v4581_v42 = vld [vmem:[%s5168_s26 + $0x1d0] sm:$0xff] }
 0x437   : > { %4327 = vst [vmem:[%s6586_s14 + $0x110] sm:$0xff] %v2667_v46  ;;  %3069 = vmatmul.f32.gmra.mxu1 %v4572_v41  ;;  %v4582_v41 = vld [vmem:[%s5168_s26 + $0x1e0] sm:$0xff] }
 0x438   : > { %v2779_v47 = vpop.f32.mrf.mxu2  ;;  %v2892_v55 = vpop.f32.mrf.mxu3 }
 0x439   : > { %v6852_v0 = vadd.f32 %v2892_v55, %v2779_v47  ;;  %v2556_v59 = vpop.f32.mrf.mxu0  ;;  %v4583_v47 = vld [vmem:[%s5168_s26 + $0x1e8] sm:$0xff]  ;;  %v4584_v55 = vld [vmem:[%s5168_s26 + $0x1d8] sm:$0xff] }
 0x43a   : > { %v2557_v7 = vadd.f32 %v2556_v59, %v6400_v63  ;;  %v817_v63 = vld [vmem:[%s7934_s1 + $0x6c8] sm:$0xff]  ;;  %v879_v59 = vld [vmem:[%s7934_s1 + $0x8b8] sm:$0xff] }
 0x43b   : > { %3392 = vmatpush.msrb.mxu0 %v817_v63  ;;  %3619 = vmatpush.msrb.mxu2 %v879_v59  ;;  %v4585_v63 = vld [vmem:[%s5168_s26 + $0x240] sm:$0xff] }
 0x43c   : > { %v2669_v62 = vpop.f32.mrf.mxu1  ;;  %2959 = vmatmul.f32.gmra.mxu0 %v4573_v40 }
 0x43d   : > { %v2670_v51 = vadd.f32 %v2669_v62, %v2557_v7  ;;  %3185 = vmatmul.f32.gmra.mxu2 %v4574_v3  ;;  %3298 = vmatmul.f32.gmra.mxu3 %v4575_v11  ;;  %v911_v7 = vld [vmem:[%s7934_s1 + $0x9b8] sm:$0xff] }
 0x43e   : > { %3732 = vmatpush.msrb.mxu3 %v911_v7  ;;  %v847_v11 = vld [vmem:[%s7934_s1 + $0x7b8] sm:$0xff] }
 0x43f   : > { %4329 = vst [vmem:[%s6586_s14 + $0x120] sm:$0xff] %v2670_v51  ;;  %3072 = vmatmul.f32.gmra.mxu1 %v4576_v54 }
 0x440   : > { %v2782_v10 = vpop.f32.mrf.mxu2  ;;  %v2895_v20 = vpop.f32.mrf.mxu3  ;;  %3506 = vmatpush.msrb.mxu1 %v847_v11 }
 0x441   : > { %v6869_v56 = vadd.f32 %v2895_v20, %v2782_v10  ;;  %v2559_v29 = vpop.f32.mrf.mxu0  ;;  %v4586_v10 = vld [vmem:[%s5168_s26 + $0x250] sm:$0xff]  ;;  %v4587_v20 = vld [vmem:[%s5168_s26 + $0x258] sm:$0xff] }
 0x442   : > { %v2560_v19 = vadd.f32 %v2559_v29, %v6411_v30  ;;  %v4588_v29 = vld [vmem:[%s5168_s26 + $0x248] sm:$0xff] }
 0x444   : > { %v2672_v25 = vpop.f32.mrf.mxu1  ;;  %2962 = vmatmul.f32.gmra.mxu0 %v4577_v15 }
 0x445   : > { %v2673_v36 = vadd.f32 %v2672_v25, %v2560_v19  ;;  %3188 = vmatmul.f32.gmra.mxu2 %v4578_v12  ;;  %3301 = vmatmul.f32.gmra.mxu3 %v4579_v49  ;;  %v4589_v12 = vld [vmem:[%s5168_s26 + $0x2b0] sm:$0xff] }
 0x447   : > { %4331 = vst [vmem:[%s6586_s14 + $0x130] sm:$0xff] %v2673_v36  ;;  %3075 = vmatmul.f32.gmra.mxu1 %v4580_v17  ;;  %v4590_v17 = vld [vmem:[%s5168_s26 + $0x2c0] sm:$0xff] }
 0x448   : > { %v2785_v43 = vpop.f32.mrf.mxu2  ;;  %v2898_v58 = vpop.f32.mrf.mxu3 }
 0x449   : > { %v6880_v30 = vadd.f32 %v2898_v58, %v2785_v43  ;;  %v2562_v38 = vpop.f32.mrf.mxu0  ;;  %v4591_v43 = vld [vmem:[%s5168_s26 + $0x2c8] sm:$0xff]  ;;  %v4592_v58 = vld [vmem:[%s5168_s26 + $0x2b8] sm:$0xff] }
 0x44a   : > { %v2563_v60 = vadd.f32 %v2562_v38, %v6428_v52  ;;  %v815_v52 = vld [vmem:[%s7934_s1 + $0x6b8] sm:$0xff]  ;;  %v877_v38 = vld [vmem:[%s7934_s1 + $0x8a8] sm:$0xff] }
 0x44b   : > { %3393 = vmatpush.msrb.mxu0 %v815_v52  ;;  %3620 = vmatpush.msrb.mxu2 %v877_v38  ;;  %v4593_v52 = vld [vmem:[%s5168_s26 + $0x320] sm:$0xff] }
 0x44c   : > { %v2675_v46 = vpop.f32.mrf.mxu1  ;;  %2965 = vmatmul.f32.gmra.mxu0 %v4581_v42 }
 0x44d   : > { %v2676_v57 = vadd.f32 %v2675_v46, %v2563_v60  ;;  %3191 = vmatmul.f32.gmra.mxu2 %v4582_v41  ;;  %3304 = vmatmul.f32.gmra.mxu3 %v4583_v47  ;;  %v909_v60 = vld [vmem:[%s7934_s1 + $0x9a8] sm:$0xff] }
 0x44e   : > { %3733 = vmatpush.msrb.mxu3 %v909_v60  ;;  %v845_v47 = vld [vmem:[%s7934_s1 + $0x7a8] sm:$0xff] }
 0x44f   : > { %4333 = vst [vmem:[%s6586_s14 + $0x140] sm:$0xff] %v2676_v57  ;;  %3078 = vmatmul.f32.gmra.mxu1 %v4584_v55 }
 0x450   : > { %v2788_v62 = vpop.f32.mrf.mxu2  ;;  %v2901_v40 = vpop.f32.mrf.mxu3  ;;  %3507 = vmatpush.msrb.mxu1 %v845_v47 }
 0x451   : > { %v6897_v51 = vadd.f32 %v2901_v40, %v2788_v62  ;;  %v2565_v3 = vpop.f32.mrf.mxu0  ;;  %v4594_v62 = vld [vmem:[%s5168_s26 + $0x330] sm:$0xff]  ;;  %v4595_v40 = vld [vmem:[%s5168_s26 + $0x338] sm:$0xff] }
 0x452   : > { %v2566_v54 = vadd.f32 %v2565_v3, %v6439_v44  ;;  %v4596_v3 = vld [vmem:[%s5168_s26 + $0x328] sm:$0xff] }
 0x454   : > { %v2678_v4 = vpop.f32.mrf.mxu1  ;;  %2968 = vmatmul.f32.gmra.mxu0 %v4585_v63 }
 0x455   : > { %v2679_v23 = vadd.f32 %v2678_v4, %v2566_v54  ;;  %3194 = vmatmul.f32.gmra.mxu2 %v4586_v10  ;;  %3307 = vmatmul.f32.gmra.mxu3 %v4587_v20  ;;  %v4597_v10 = vld [vmem:[%s5168_s26 + $0x390] sm:$0xff] }
 0x457   : > { %4335 = vst [vmem:[%s6586_s14 + $0x150] sm:$0xff] %v2679_v23  ;;  %3081 = vmatmul.f32.gmra.mxu1 %v4588_v29  ;;  %v4598_v29 = vld [vmem:[%s5168_s26 + $0x3a0] sm:$0xff] }
 0x458   : > { %v2791_v34 = vpop.f32.mrf.mxu2  ;;  %v2904_v19 = vpop.f32.mrf.mxu3 }
 0x459   : > { %v6908_v44 = vadd.f32 %v2904_v19, %v2791_v34  ;;  %v2568_v25 = vpop.f32.mrf.mxu0  ;;  %v4599_v34 = vld [vmem:[%s5168_s26 + $0x3a8] sm:$0xff]  ;;  %v4600_v19 = vld [vmem:[%s5168_s26 + $0x398] sm:$0xff] }
 0x45a   : > { %v2569_v15 = vadd.f32 %v2568_v25, %v6456_v39  ;;  %v813_v39 = vld [vmem:[%s7934_s1 + $0x6a8] sm:$0xff]  ;;  %v875_v25 = vld [vmem:[%s7934_s1 + $0x898] sm:$0xff] }
 0x45b   : > { %3394 = vmatpush.msrb.mxu0 %v813_v39  ;;  %3621 = vmatpush.msrb.mxu2 %v875_v25  ;;  %v4601_v39 = vld [vmem:[%s5168_s26 + $0x400] sm:$0xff] }
 0x45c   : > { %v2681_v36 = vpop.f32.mrf.mxu1  ;;  %2971 = vmatmul.f32.gmra.mxu0 %v4589_v12 }
 0x45d   : > { %v2682_v49 = vadd.f32 %v2681_v36, %v2569_v15  ;;  %3197 = vmatmul.f32.gmra.mxu2 %v4590_v17  ;;  %3310 = vmatmul.f32.gmra.mxu3 %v4591_v43  ;;  %v907_v15 = vld [vmem:[%s7934_s1 + $0x998] sm:$0xff] }
 0x45e   : > { %3734 = vmatpush.msrb.mxu3 %v907_v15  ;;  %v843_v43 = vld [vmem:[%s7934_s1 + $0x798] sm:$0xff] }
 0x45f   : > { %4337 = vst [vmem:[%s6586_s14 + $0x160] sm:$0xff] %v2682_v49  ;;  %3084 = vmatmul.f32.gmra.mxu1 %v4592_v58 }
 0x460   : > { %v2794_v46 = vpop.f32.mrf.mxu2  ;;  %v2907_v42 = vpop.f32.mrf.mxu3  ;;  %3508 = vmatpush.msrb.mxu1 %v843_v43 }
 0x461   : > { %v6925_v57 = vadd.f32 %v2907_v42, %v2794_v46  ;;  %v2571_v41 = vpop.f32.mrf.mxu0  ;;  %v4602_v46 = vld [vmem:[%s5168_s26 + $0x410] sm:$0xff]  ;;  %v4603_v42 = vld [vmem:[%s5168_s26 + $0x418] sm:$0xff] }
 0x462   : > { %v2572_v55 = vadd.f32 %v2571_v41, %v6467_v9  ;;  %v4604_v41 = vld [vmem:[%s5168_s26 + $0x408] sm:$0xff] }
 0x464   : > { %v2684_v59 = vpop.f32.mrf.mxu1  ;;  %2974 = vmatmul.f32.gmra.mxu0 %v4593_v52 }
 0x465   : > { %v2685_v7 = vadd.f32 %v2684_v59, %v2572_v55  ;;  %3200 = vmatmul.f32.gmra.mxu2 %v4594_v62  ;;  %3313 = vmatmul.f32.gmra.mxu3 %v4595_v40  ;;  %v4605_v62 = vld [vmem:[%s5168_s26 + $0x470] sm:$0xff] }
 0x467   : > { %4339 = vst [vmem:[%s6586_s14 + $0x170] sm:$0xff] %v2685_v7  ;;  %3087 = vmatmul.f32.gmra.mxu1 %v4596_v3  ;;  %v4606_v3 = vld [vmem:[%s5168_s26 + $0x480] sm:$0xff] }
 0x468   : > { %v2797_v11 = vpop.f32.mrf.mxu2  ;;  %v2910_v54 = vpop.f32.mrf.mxu3 }
 0x469   : > { %v6936_v9 = vadd.f32 %v2910_v54, %v2797_v11  ;;  %v2574_v4 = vpop.f32.mrf.mxu0  ;;  %v4607_v11 = vld [vmem:[%s5168_s26 + $0x488] sm:$0xff]  ;;  %v4608_v54 = vld [vmem:[%s5168_s26 + $0x478] sm:$0xff] }
 0x46a   : > { %v2575_v63 = vadd.f32 %v2574_v4, %v6484_v22  ;;  %v811_v22 = vld [vmem:[%s7934_s1 + $0x698] sm:$0xff]  ;;  %v873_v4 = vld [vmem:[%s7934_s1 + $0x888] sm:$0xff] }
 0x46b   : > { %3395 = vmatpush.msrb.mxu0 %v811_v22  ;;  %3622 = vmatpush.msrb.mxu2 %v873_v4  ;;  %v4609_v22 = vld [vmem:[%s5168_s26 + $0x4e0] sm:$0xff] }
 0x46c   : > { %v2687_v23 = vpop.f32.mrf.mxu1  ;;  %2977 = vmatmul.f32.gmra.mxu0 %v4597_v10 }
 0x46d   : > { %v2688_v20 = vadd.f32 %v2687_v23, %v2575_v63  ;;  %3203 = vmatmul.f32.gmra.mxu2 %v4598_v29  ;;  %3316 = vmatmul.f32.gmra.mxu3 %v4599_v34  ;;  %v905_v63 = vld [vmem:[%s7934_s1 + $0x988] sm:$0xff] }
 0x46e   : > { %3735 = vmatpush.msrb.mxu3 %v905_v63  ;;  %v841_v34 = vld [vmem:[%s7934_s1 + $0x788] sm:$0xff] }
 0x46f   : > { %4341 = vst [vmem:[%s6586_s14 + $0x180] sm:$0xff] %v2688_v20  ;;  %3090 = vmatmul.f32.gmra.mxu1 %v4600_v19 }
 0x470   : > { %v2800_v36 = vpop.f32.mrf.mxu2  ;;  %v2913_v12 = vpop.f32.mrf.mxu3  ;;  %3509 = vmatpush.msrb.mxu1 %v841_v34 }
 0x471   : > { %v6953_v49 = vadd.f32 %v2913_v12, %v2800_v36  ;;  %v2577_v17 = vpop.f32.mrf.mxu0  ;;  %v4610_v36 = vld [vmem:[%s5168_s26 + $0x4f0] sm:$0xff]  ;;  %v4611_v12 = vld [vmem:[%s5168_s26 + $0x4f8] sm:$0xff] }
 0x472   : > { %v2578_v58 = vadd.f32 %v2577_v17, %v6495_v21  ;;  %v4612_v17 = vld [vmem:[%s5168_s26 + $0x4e8] sm:$0xff] }
 0x474   : > { %v2690_v38 = vpop.f32.mrf.mxu1  ;;  %2980 = vmatmul.f32.gmra.mxu0 %v4601_v39 }
 0x475   : > { %v2691_v60 = vadd.f32 %v2690_v38, %v2578_v58  ;;  %3206 = vmatmul.f32.gmra.mxu2 %v4602_v46  ;;  %3319 = vmatmul.f32.gmra.mxu3 %v4603_v42  ;;  %v4613_v46 = vld [vmem:[%s5168_s26 + $0x550] sm:$0xff] }
 0x477   : > { %4343 = vst [vmem:[%s6586_s14 + $0x190] sm:$0xff] %v2691_v60  ;;  %3093 = vmatmul.f32.gmra.mxu1 %v4604_v41  ;;  %v4614_v41 = vld [vmem:[%s5168_s26 + $0x560] sm:$0xff] }
 0x478   : > { %v2803_v47 = vpop.f32.mrf.mxu2  ;;  %v2916_v55 = vpop.f32.mrf.mxu3 }
 0x479   : > { %v6964_v21 = vadd.f32 %v2916_v55, %v2803_v47  ;;  %v2580_v59 = vpop.f32.mrf.mxu0  ;;  %v4615_v47 = vld [vmem:[%s5168_s26 + $0x568] sm:$0xff]  ;;  %v871_v55 = vld [vmem:[%s7934_s1 + $0x878] sm:$0xff] }
 0x47a   : > { %v2581_v52 = vadd.f32 %v2580_v59, %v6512_v50  ;;  %v809_v50 = vld [vmem:[%s7934_s1 + $0x688] sm:$0xff]  ;;  %3623 = vmatpush.msrb.mxu2 %v871_v55  ;;  %v4616_v59 = vld [vmem:[%s5168_s26 + $0x558] sm:$0xff] }
 0x47b   : > { %3396 = vmatpush.msrb.mxu0 %v809_v50  ;;  %v4617_v50 = vld [vmem:[%s5168_s26 + $0x5c0] sm:$0xff] }
 0x47c   : > { %v2693_v7 = vpop.f32.mrf.mxu1  ;;  %2983 = vmatmul.f32.gmra.mxu0 %v4605_v62 }
 0x47d   : > { %v2694_v40 = vadd.f32 %v2693_v7, %v2581_v52  ;;  %3209 = vmatmul.f32.gmra.mxu2 %v4606_v3  ;;  %3322 = vmatmul.f32.gmra.mxu3 %v4607_v11  ;;  %v903_v52 = vld [vmem:[%s7934_s1 + $0x978] sm:$0xff] }
 0x47e   : > { %3736 = vmatpush.msrb.mxu3 %v903_v52  ;;  %v839_v11 = vld [vmem:[%s7934_s1 + $0x778] sm:$0xff] }
 0x47f   : > { %4345 = vst [vmem:[%s6586_s14 + $0x1a0] sm:$0xff] %v2694_v40  ;;  %3096 = vmatmul.f32.gmra.mxu1 %v4608_v54 }
 0x480   : > { %v2806_v23 = vpop.f32.mrf.mxu2  ;;  %v2919_v10 = vpop.f32.mrf.mxu3  ;;  %3510 = vmatpush.msrb.mxu1 %v839_v11 }
 0x481   : > { %v6981_v20 = vadd.f32 %v2919_v10, %v2806_v23  ;;  %v2583_v29 = vpop.f32.mrf.mxu0  ;;  %v4618_v23 = vld [vmem:[%s5168_s26 + $0x5d0] sm:$0xff]  ;;  %v4619_v10 = vld [vmem:[%s5168_s26 + $0x5d8] sm:$0xff] }
 0x482   : > { %v2584_v19 = vadd.f32 %v2583_v29, %v6523_v6  ;;  %v4620_v29 = vld [vmem:[%s5168_s26 + $0x5c8] sm:$0xff] }
 0x484   : > { %v2696_v25 = vpop.f32.mrf.mxu1  ;;  %2986 = vmatmul.f32.gmra.mxu0 %v4609_v22 }
 0x485   : > { %v2697_v15 = vadd.f32 %v2696_v25, %v2584_v19  ;;  %3212 = vmatmul.f32.gmra.mxu2 %v4610_v36  ;;  %3325 = vmatmul.f32.gmra.mxu3 %v4611_v12  ;;  %v4621_v36 = vld [vmem:[%s5168_s26 + $0x630] sm:$0xff] }
 0x487   : > { %4347 = vst [vmem:[%s6586_s14 + $0x1b0] sm:$0xff] %v2697_v15  ;;  %3099 = vmatmul.f32.gmra.mxu1 %v4612_v17  ;;  %v4622_v17 = vld [vmem:[%s5168_s26 + $0x640] sm:$0xff] }
 0x488   : > { %v2809_v43 = vpop.f32.mrf.mxu2  ;;  %v2922_v58 = vpop.f32.mrf.mxu3 }
 0x489   : > { %v6992_v6 = vadd.f32 %v2922_v58, %v2809_v43  ;;  %v2586_v38 = vpop.f32.mrf.mxu0  ;;  %v4623_v43 = vld [vmem:[%s5168_s26 + $0x648] sm:$0xff] }
 0x48a   : > { %v2587_v39 = vadd.f32 %v2586_v38, %v6543_v16  ;;  %v807_v16 = vld [vmem:[%s7934_s1 + $0x678] sm:$0xff]  ;;  %v869_v58 = vld [vmem:[%s7934_s1 + $0x868] sm:$0xff] }
 0x48b   : > { %3397 = vmatpush.msrb.mxu0 %v807_v16  ;;  %3624 = vmatpush.msrb.mxu2 %v869_v58  ;;  %v4624_v38 = vld [vmem:[%s5168_s26 + $0x638] sm:$0xff]  ;;  %v4625_v16 = vld [vmem:[%s5168_s26 + $0x6a0] sm:$0xff] }
 0x48c   : > { %v2699_v60 = vpop.f32.mrf.mxu1  ;;  %2989 = vmatmul.f32.gmra.mxu0 %v4613_v46 }
 0x48d   : > { %v2700_v42 = vadd.f32 %v2699_v60, %v2587_v39  ;;  %3215 = vmatmul.f32.gmra.mxu2 %v4614_v41  ;;  %3328 = vmatmul.f32.gmra.mxu3 %v4615_v47  ;;  %v901_v39 = vld [vmem:[%s7934_s1 + $0x968] sm:$0xff] }
 0x48e   : > { %3737 = vmatpush.msrb.mxu3 %v901_v39  ;;  %v837_v47 = vld [vmem:[%s7934_s1 + $0x768] sm:$0xff]  ;;  %v4633_v39 = vld [vmem:[%s5168_s26 + $0x780] sm:$0xff] }
 0x48f   : > { %4349 = vst [vmem:[%s6586_s14 + $0x1c0] sm:$0xff] %v2700_v42  ;;  %3102 = vmatmul.f32.gmra.mxu1 %v4616_v59 }
 0x490   : > { %v2812_v7 = vpop.f32.mrf.mxu2  ;;  %v2925_v62 = vpop.f32.mrf.mxu3  ;;  %3511 = vmatpush.msrb.mxu1 %v837_v47  ;;  %v4636_v47 = vld [vmem:[%s5168_s26 + $0x788] sm:$0xff] }
 0x491   : > { %v7009_v40 = vadd.f32 %v2925_v62, %v2812_v7  ;;  %v2589_v3 = vpop.f32.mrf.mxu0  ;;  %v4626_v7 = vld [vmem:[%s5168_s26 + $0x6b0] sm:$0xff]  ;;  %v4627_v62 = vld [vmem:[%s5168_s26 + $0x6b8] sm:$0xff] }
 0x492   : > { %v2590_v54 = vadd.f32 %v2589_v3, %v6551_v26  ;;  %v4628_v3 = vld [vmem:[%s5168_s26 + $0x6a8] sm:$0xff] }
 0x494   : > { %v2702_v4 = vpop.f32.mrf.mxu1  ;;  %2992 = vmatmul.f32.gmra.mxu0 %v4617_v50 }
 0x495   : > { %v2703_v63 = vadd.f32 %v2702_v4, %v2590_v54  ;;  %3218 = vmatmul.f32.gmra.mxu2 %v4618_v23  ;;  %3331 = vmatmul.f32.gmra.mxu3 %v4619_v10  ;;  %v4629_v23 = vld [vmem:[%s5168_s26 + $0x710] sm:$0xff]  ;;  %v4630_v10 = vld [vmem:[%s5168_s26 + $0x720] sm:$0xff] }
 0x497   : > { %4351 = vst [vmem:[%s6586_s14 + $0x1d0] sm:$0xff] %v2703_v63  ;;  %3105 = vmatmul.f32.gmra.mxu1 %v4620_v29  ;;  %v4631_v29 = vld [vmem:[%s5168_s26 + $0x728] sm:$0xff] }
 0x498   : > { %v2815_v34 = vpop.f32.mrf.mxu2  ;;  %v2928_v19 = vpop.f32.mrf.mxu3 }
 0x499   : > { %v7020_v26 = vadd.f32 %v2928_v19, %v2815_v34  ;;  %v2592_v25 = vpop.f32.mrf.mxu0  ;;  %v867_v34 = vld [vmem:[%s7934_s1 + $0x858] sm:$0xff] }
 0x49a   : > { %v2593_v22 = vadd.f32 %v2592_v25, %v6571_v31  ;;  %v805_v31 = vld [vmem:[%s7934_s1 + $0x668] sm:$0xff]  ;;  %3625 = vmatpush.msrb.mxu2 %v867_v34  ;;  %v4632_v25 = vld [vmem:[%s5168_s26 + $0x718] sm:$0xff] }
 0x49b   : > { %3398 = vmatpush.msrb.mxu0 %v805_v31 }
 0x49c   : > { %v2705_v15 = vpop.f32.mrf.mxu1  ;;  %2995 = vmatmul.f32.gmra.mxu0 %v4621_v36 }
 0x49d   : > { %v2706_v12 = vadd.f32 %v2705_v15, %v2593_v22  ;;  %3221 = vmatmul.f32.gmra.mxu2 %v4622_v17  ;;  %3334 = vmatmul.f32.gmra.mxu3 %v4623_v43  ;;  %v899_v22 = vld [vmem:[%s7934_s1 + $0x958] sm:$0xff] }
 0x49e   : > { %3738 = vmatpush.msrb.mxu3 %v899_v22  ;;  %v835_v43 = vld [vmem:[%s7934_s1 + $0x758] sm:$0xff] }
 0x49f   : > { %4353 = vst [vmem:[%s6586_s14 + $0x1e0] sm:$0xff] %v2706_v12  ;;  %3108 = vmatmul.f32.gmra.mxu1 %v4624_v38 }
 0x4a0   : > { %v2818_v60 = vpop.f32.mrf.mxu2  ;;  %v2931_v46 = vpop.f32.mrf.mxu3  ;;  %3512 = vmatpush.msrb.mxu1 %v835_v43 }
 0x4a1   : > { %v7037_v42 = vadd.f32 %v2931_v46, %v2818_v60  ;;  %v2595_v41 = vpop.f32.mrf.mxu0  ;;  %v4634_v60 = vld [vmem:[%s5168_s26 + $0x790] sm:$0xff]  ;;  %v4635_v46 = vld [vmem:[%s5168_s26 + $0x798] sm:$0xff] }
 0x4a2   : > { %v2596_v55 = vadd.f32 %v2595_v41, %v6581_v14 }
 0x4a4   : > { %v2708_v59 = vpop.f32.mrf.mxu1  ;;  %2998 = vmatmul.f32.gmra.mxu0 %v4625_v16 }
 0x4a5   : > { %v2709_v52 = vadd.f32 %v2708_v59, %v2596_v55  ;;  %3224 = vmatmul.f32.gmra.mxu2 %v4626_v7  ;;  %3337 = vmatmul.f32.gmra.mxu3 %v4627_v62 }
 0x4a7   : > { %4355 = vst [vmem:[%s6586_s14 + $0x1f0] sm:$0xff] %v2709_v52  ;;  %3111 = vmatmul.f32.gmra.mxu1 %v4628_v3  ;;  %v4637_v3 = vld [vmem:[%s5168_s26 + $0x7f0] sm:$0xff] }
 0x4a8   : > { %v2821_v11 = vpop.f32.mrf.mxu2  ;;  %v2934_v54 = vpop.f32.mrf.mxu3 }
 0x4a9   : > { %v7048_v4 = vadd.f32 %v2934_v54, %v2821_v11  ;;  %v2954_v14 = vpop.f32.mrf.mxu0  ;;  %v4638_v11 = vld [vmem:[%s5168_s26 + $0x800] sm:$0xff]  ;;  %v4639_v54 = vld [vmem:[%s5168_s26 + $0x808] sm:$0xff] }
 0x4aa   : > { %v2955_v50 = vadd.f32 %v2954_v14, %v6602_v53  ;;  %v803_v53 = vld [vmem:[%s7934_s1 + $0x658] sm:$0xff]  ;;  %v865_v14 = vld [vmem:[%s7934_s1 + $0x848] sm:$0xff] }
 0x4ab   : > { %3399 = vmatpush.msrb.mxu0 %v803_v53  ;;  %3626 = vmatpush.msrb.mxu2 %v865_v14 }
 0x4ac   : > { %v3067_v63 = vpop.f32.mrf.mxu1  ;;  %3001 = vmatmul.f32.gmra.mxu0 %v4629_v23  ;;  %v897_v23 = vld [vmem:[%s7934_s1 + $0x948] sm:$0xff] }
 0x4ad   : > { %3227 = vmatmul.f32.gmra.mxu2 %v4630_v10  ;;  %3340 = vmatmul.f32.gmra.mxu3 %v4631_v29  ;;  %v3068_v19 = vadd.f32 %v3067_v63, %v2955_v50  ;;  %v4640_v63 = vld [vmem:[%s5168_s26 + $0x7f8] sm:$0xff] }
 0x4ae   : > { %3739 = vmatpush.msrb.mxu3 %v897_v23 }
 0x4af   : > { %3114 = vmatmul.f32.gmra.mxu1 %v4632_v25  ;;  %v833_v25 = vld [vmem:[%s7934_s1 + $0x748] sm:$0xff] }
 0x4b0   : > { %v3180_v15 = vpop.f32.mrf.mxu2  ;;  %v3293_v36 = vpop.f32.mrf.mxu3  ;;  %3513 = vmatpush.msrb.mxu1 %v833_v25 }
 0x4b1   : > { %v3181_v12 = vadd.f32 %v3180_v15, %v3068_v19  ;;  %v2957_v17 = vpop.f32.mrf.mxu0 }
 0x4b2   : > { %v2958_v58 = vadd.f32 %v2957_v17, %v6614_v48  ;;  %v4643_v17 = vld [vmem:[%s5168_s26 + $0x878] sm:$0xff] }
 0x4b3   : > { %v7068_v38 = vadd.f32 %v3293_v36, %v3181_v12  ;;  %v4641_v36 = vld [vmem:[%s5168_s26 + $0x860] sm:$0xff]  ;;  %v4642_v12 = vld [vmem:[%s5168_s26 + $0x870] sm:$0xff] }
 0x4b4   : > { %v3070_v31 = vpop.f32.mrf.mxu1  ;;  %3004 = vmatmul.f32.gmra.mxu0 %v4633_v39 }
 0x4b5   : > { %3230 = vmatmul.f32.gmra.mxu2 %v4634_v60  ;;  %3343 = vmatmul.f32.gmra.mxu3 %v4635_v46  ;;  %v3071_v41 = vadd.f32 %v3070_v31, %v2958_v58  ;;  %v4644_v58 = vld [vmem:[%s5168_s26 + $0x868] sm:$0xff] }
 0x4b7   : > { %3117 = vmatmul.f32.gmra.mxu1 %v4636_v47 }
 0x4b8   : > { %v3183_v55 = vpop.f32.mrf.mxu2  ;;  %v3296_v59 = vpop.f32.mrf.mxu3 }
 0x4b9   : > { %v3184_v16 = vadd.f32 %v3183_v55, %v3071_v41  ;;  %v2960_v48 = vpop.f32.mrf.mxu0  ;;  %v4645_v55 = vld [vmem:[%s5168_s26 + $0x8d0] sm:$0xff] }
 0x4ba   : > { %v2961_v52 = vadd.f32 %v2960_v48, %v6632_v45  ;;  %v801_v45 = vld [vmem:[%s7934_s1 + $0x648] sm:$0xff]  ;;  %v863_v48 = vld [vmem:[%s7934_s1 + $0x838] sm:$0xff] }
 0x4bb   : > { %v7075_v7 = vadd.f32 %v3296_v59, %v3184_v16  ;;  %3400 = vmatpush.msrb.mxu0 %v801_v45  ;;  %v4646_v59 = vld [vmem:[%s5168_s26 + $0x8e0] sm:$0xff]  ;;  %v4647_v16 = vld [vmem:[%s5168_s26 + $0x8e8] sm:$0xff]  ;;  %3627 = vmatpush.msrb.mxu2 %v863_v48 }
 0x4bc   : > { %v3073_v62 = vpop.f32.mrf.mxu1  ;;  %3007 = vmatmul.f32.gmra.mxu0 %v4637_v3  ;;  %v895_v3 = vld [vmem:[%s7934_s1 + $0x938] sm:$0xff] }
 0x4bd   : > { %3233 = vmatmul.f32.gmra.mxu2 %v4638_v11  ;;  %3346 = vmatmul.f32.gmra.mxu3 %v4639_v54  ;;  %v3074_v50 = vadd.f32 %v3073_v62, %v2961_v52  ;;  %v4648_v62 = vld [vmem:[%s5168_s26 + $0x8d8] sm:$0xff] }
 0x4be   : > { %3740 = vmatpush.msrb.mxu3 %v895_v3 }
 0x4bf   : > { %3120 = vmatmul.f32.gmra.mxu1 %v4640_v63  ;;  %v831_v63 = vld [vmem:[%s7934_s1 + $0x738] sm:$0xff] }
 0x4c0   : > { %v3186_v10 = vpop.f32.mrf.mxu2  ;;  %v3299_v29 = vpop.f32.mrf.mxu3  ;;  %3514 = vmatpush.msrb.mxu1 %v831_v63 }
 0x4c1   : > { %v3187_v34 = vadd.f32 %v3186_v10, %v3074_v50  ;;  %v2963_v19 = vpop.f32.mrf.mxu0 }
 0x4c2   : > { %v2964_v53 = vadd.f32 %v2963_v19, %v6644_v8  ;;  %v4651_v19 = vld [vmem:[%s5168_s26 + $0x958] sm:$0xff] }
 0x4c3   : > { %v7094_v22 = vadd.f32 %v3299_v29, %v3187_v34  ;;  %v4649_v29 = vld [vmem:[%s5168_s26 + $0x940] sm:$0xff]  ;;  %v4650_v34 = vld [vmem:[%s5168_s26 + $0x950] sm:$0xff] }
 0x4c4   : > { %v3076_v15 = vpop.f32.mrf.mxu1  ;;  %3010 = vmatmul.f32.gmra.mxu0 %v4641_v36 }
 0x4c5   : > { %3236 = vmatmul.f32.gmra.mxu2 %v4642_v12  ;;  %3349 = vmatmul.f32.gmra.mxu3 %v4643_v17  ;;  %v3077_v43 = vadd.f32 %v3076_v15, %v2964_v53  ;;  %v4652_v53 = vld [vmem:[%s5168_s26 + $0x948] sm:$0xff] }
 0x4c7   : > { %3123 = vmatmul.f32.gmra.mxu1 %v4644_v58 }
 0x4c8   : > { %v3189_v31 = vpop.f32.mrf.mxu2  ;;  %v3302_v39 = vpop.f32.mrf.mxu3 }
 0x4c9   : > { %v3190_v60 = vadd.f32 %v3189_v31, %v3077_v43  ;;  %v2966_v8 = vpop.f32.mrf.mxu0  ;;  %v4653_v31 = vld [vmem:[%s5168_s26 + $0x9b0] sm:$0xff] }
 0x4ca   : > { %v2967_v46 = vadd.f32 %v2966_v8, %v6662_v5  ;;  %v799_v5 = vld [vmem:[%s7934_s1 + $0x638] sm:$0xff]  ;;  %v861_v8 = vld [vmem:[%s7934_s1 + $0x828] sm:$0xff] }
 0x4cb   : > { %v7101_v41 = vadd.f32 %v3302_v39, %v3190_v60  ;;  %3401 = vmatpush.msrb.mxu0 %v799_v5  ;;  %v4654_v39 = vld [vmem:[%s5168_s26 + $0x9c0] sm:$0xff]  ;;  %v4655_v60 = vld [vmem:[%s5168_s26 + $0x9c8] sm:$0xff]  ;;  %3628 = vmatpush.msrb.mxu2 %v861_v8 }
 0x4cc   : > { %v3079_v47 = vpop.f32.mrf.mxu1  ;;  %3013 = vmatmul.f32.gmra.mxu0 %v4645_v55  ;;  %v893_v55 = vld [vmem:[%s7934_s1 + $0x928] sm:$0xff] }
 0x4cd   : > { %3239 = vmatmul.f32.gmra.mxu2 %v4646_v59  ;;  %3352 = vmatmul.f32.gmra.mxu3 %v4647_v16  ;;  %v3080_v52 = vadd.f32 %v3079_v47, %v2967_v46  ;;  %v4656_v47 = vld [vmem:[%s5168_s26 + $0x9b8] sm:$0xff] }
 0x4ce   : > { %3741 = vmatpush.msrb.mxu3 %v893_v55 }
 0x4cf   : > { %3126 = vmatmul.f32.gmra.mxu1 %v4648_v62  ;;  %v829_v62 = vld [vmem:[%s7934_s1 + $0x728] sm:$0xff] }
 0x4d0   : > { %v3192_v11 = vpop.f32.mrf.mxu2  ;;  %v3305_v54 = vpop.f32.mrf.mxu3  ;;  %3515 = vmatpush.msrb.mxu1 %v829_v62 }
 0x4d1   : > { %v3193_v14 = vadd.f32 %v3192_v11, %v3080_v52  ;;  %v2969_v50 = vpop.f32.mrf.mxu0 }
 0x4d2   : > { %v2970_v45 = vadd.f32 %v2969_v50, %v6674_v24  ;;  %v4659_v50 = vld [vmem:[%s5168_s26 + $0xa38] sm:$0xff] }
 0x4d3   : > { %v7120_v23 = vadd.f32 %v3305_v54, %v3193_v14  ;;  %v4657_v54 = vld [vmem:[%s5168_s26 + $0xa20] sm:$0xff]  ;;  %v4658_v14 = vld [vmem:[%s5168_s26 + $0xa30] sm:$0xff] }
 0x4d4   : > { %v3082_v10 = vpop.f32.mrf.mxu1  ;;  %3016 = vmatmul.f32.gmra.mxu0 %v4649_v29 }
 0x4d5   : > { %3242 = vmatmul.f32.gmra.mxu2 %v4650_v34  ;;  %3355 = vmatmul.f32.gmra.mxu3 %v4651_v19  ;;  %v3083_v25 = vadd.f32 %v3082_v10, %v2970_v45  ;;  %v4660_v45 = vld [vmem:[%s5168_s26 + $0xa28] sm:$0xff] }
 0x4d7   : > { %3129 = vmatmul.f32.gmra.mxu1 %v4652_v53 }
 0x4d8   : > { %v3195_v15 = vpop.f32.mrf.mxu2  ;;  %v3308_v36 = vpop.f32.mrf.mxu3 }
 0x4d9   : > { %v3196_v12 = vadd.f32 %v3195_v15, %v3083_v25  ;;  %v2972_v24 = vpop.f32.mrf.mxu0  ;;  %v4661_v15 = vld [vmem:[%s5168_s26 + $0xa90] sm:$0xff] }
 0x4da   : > { %v2973_v17 = vadd.f32 %v2972_v24, %v6692_v37  ;;  %v797_v37 = vld [vmem:[%s7934_s1 + $0x628] sm:$0xff]  ;;  %v859_v24 = vld [vmem:[%s7934_s1 + $0x818] sm:$0xff] }
 0x4db   : > { %v7127_v43 = vadd.f32 %v3308_v36, %v3196_v12  ;;  %3402 = vmatpush.msrb.mxu0 %v797_v37  ;;  %v4662_v36 = vld [vmem:[%s5168_s26 + $0xaa0] sm:$0xff]  ;;  %v4663_v12 = vld [vmem:[%s5168_s26 + $0xaa8] sm:$0xff]  ;;  %3629 = vmatpush.msrb.mxu2 %v859_v24 }
 0x4dc   : > { %v3085_v58 = vpop.f32.mrf.mxu1  ;;  %3019 = vmatmul.f32.gmra.mxu0 %v4653_v31  ;;  %v891_v31 = vld [vmem:[%s7934_s1 + $0x918] sm:$0xff] }
 0x4dd   : > { %3245 = vmatmul.f32.gmra.mxu2 %v4654_v39  ;;  %3358 = vmatmul.f32.gmra.mxu3 %v4655_v60  ;;  %v3086_v46 = vadd.f32 %v3085_v58, %v2973_v17  ;;  %v4664_v58 = vld [vmem:[%s5168_s26 + $0xa98] sm:$0xff] }
 0x4de   : > { %3742 = vmatpush.msrb.mxu3 %v891_v31 }
 0x4df   : > { %3132 = vmatmul.f32.gmra.mxu1 %v4656_v47  ;;  %v827_v47 = vld [vmem:[%s7934_s1 + $0x718] sm:$0xff] }
 0x4e0   : > { %v3198_v59 = vpop.f32.mrf.mxu2  ;;  %v3311_v16 = vpop.f32.mrf.mxu3  ;;  %3516 = vmatpush.msrb.mxu1 %v827_v47 }
 0x4e1   : > { %v3199_v48 = vadd.f32 %v3198_v59, %v3086_v46  ;;  %v2975_v52 = vpop.f32.mrf.mxu0 }
 0x4e2   : > { %v2976_v5 = vadd.f32 %v2975_v52, %v6704_v32  ;;  %v4667_v52 = vld [vmem:[%s5168_s26 + $0xb18] sm:$0xff] }
 0x4e3   : > { %v7146_v3 = vadd.f32 %v3311_v16, %v3199_v48  ;;  %v4665_v16 = vld [vmem:[%s5168_s26 + $0xb00] sm:$0xff]  ;;  %v4666_v48 = vld [vmem:[%s5168_s26 + $0xb10] sm:$0xff] }
 0x4e4   : > { %v3088_v11 = vpop.f32.mrf.mxu1  ;;  %3022 = vmatmul.f32.gmra.mxu0 %v4657_v54 }
 0x4e5   : > { %3248 = vmatmul.f32.gmra.mxu2 %v4658_v14  ;;  %3361 = vmatmul.f32.gmra.mxu3 %v4659_v50  ;;  %v3089_v63 = vadd.f32 %v3088_v11, %v2976_v5  ;;  %v4668_v5 = vld [vmem:[%s5168_s26 + $0xb08] sm:$0xff] }
 0x4e7   : > { %3135 = vmatmul.f32.gmra.mxu1 %v4660_v45 }
 0x4e8   : > { %v3201_v10 = vpop.f32.mrf.mxu2  ;;  %v3314_v29 = vpop.f32.mrf.mxu3 }
 0x4e9   : > { %v3202_v34 = vadd.f32 %v3201_v10, %v3089_v63  ;;  %v2978_v32 = vpop.f32.mrf.mxu0  ;;  %v4669_v10 = vld [vmem:[%s5168_s26 + $0xb70] sm:$0xff] }
 0x4ea   : > { %v2979_v19 = vadd.f32 %v2978_v32, %v6722_v27  ;;  %v795_v27 = vld [vmem:[%s7934_s1 + $0x618] sm:$0xff]  ;;  %v857_v32 = vld [vmem:[%s7934_s1 + $0x808] sm:$0xff] }
 0x4eb   : > { %v7153_v25 = vadd.f32 %v3314_v29, %v3202_v34  ;;  %3403 = vmatpush.msrb.mxu0 %v795_v27  ;;  %v4670_v29 = vld [vmem:[%s5168_s26 + $0xb80] sm:$0xff]  ;;  %v4671_v34 = vld [vmem:[%s5168_s26 + $0xb88] sm:$0xff]  ;;  %3630 = vmatpush.msrb.mxu2 %v857_v32 }
 0x4ec   : > { %v3091_v53 = vpop.f32.mrf.mxu1  ;;  %3025 = vmatmul.f32.gmra.mxu0 %v4661_v15  ;;  %v889_v15 = vld [vmem:[%s7934_s1 + $0x908] sm:$0xff] }
 0x4ed   : > { %3251 = vmatmul.f32.gmra.mxu2 %v4662_v36  ;;  %3364 = vmatmul.f32.gmra.mxu3 %v4663_v12  ;;  %v3092_v17 = vadd.f32 %v3091_v53, %v2979_v19  ;;  %v4672_v53 = vld [vmem:[%s5168_s26 + $0xb78] sm:$0xff] }
 0x4ee   : > { %3743 = vmatpush.msrb.mxu3 %v889_v15 }
 0x4ef   : > { %3138 = vmatmul.f32.gmra.mxu1 %v4664_v58  ;;  %v825_v58 = vld [vmem:[%s7934_s1 + $0x708] sm:$0xff] }
 0x4f0   : > { %v3204_v39 = vpop.f32.mrf.mxu2  ;;  %v3317_v60 = vpop.f32.mrf.mxu3  ;;  %3517 = vmatpush.msrb.mxu1 %v825_v58 }
 0x4f1   : > { %v3205_v8 = vadd.f32 %v3204_v39, %v3092_v17  ;;  %v2981_v46 = vpop.f32.mrf.mxu0 }
 0x4f2   : > { %v2982_v37 = vadd.f32 %v2981_v46, %v6734_v61  ;;  %v4675_v46 = vld [vmem:[%s5168_s26 + $0xbf8] sm:$0xff] }
 0x4f3   : > { %v7172_v55 = vadd.f32 %v3317_v60, %v3205_v8  ;;  %v4673_v60 = vld [vmem:[%s5168_s26 + $0xbe0] sm:$0xff]  ;;  %v4674_v8 = vld [vmem:[%s5168_s26 + $0xbf0] sm:$0xff] }
 0x4f4   : > { %v3094_v59 = vpop.f32.mrf.mxu1  ;;  %3028 = vmatmul.f32.gmra.mxu0 %v4665_v16 }
 0x4f5   : > { %3254 = vmatmul.f32.gmra.mxu2 %v4666_v48  ;;  %3367 = vmatmul.f32.gmra.mxu3 %v4667_v52  ;;  %v3095_v62 = vadd.f32 %v3094_v59, %v2982_v37  ;;  %v4676_v37 = vld [vmem:[%s5168_s26 + $0xbe8] sm:$0xff] }
 0x4f7   : > { %3141 = vmatmul.f32.gmra.mxu1 %v4668_v5 }
 0x4f8   : > { %v3207_v11 = vpop.f32.mrf.mxu2  ;;  %v3320_v54 = vpop.f32.mrf.mxu3 }
 0x4f9   : > { %v3208_v14 = vadd.f32 %v3207_v11, %v3095_v62  ;;  %v2984_v61 = vpop.f32.mrf.mxu0  ;;  %v4677_v11 = vld [vmem:[%s5168_s26 + $0xc50] sm:$0xff] }
 0x4fa   : > { %v2985_v50 = vadd.f32 %v2984_v61, %v6752_v18  ;;  %v793_v18 = vld [vmem:[%s7934_s1 + $0x608] sm:$0xff]  ;;  %v1015_v61 = vld [vmem:[%s7934_s1 + $0xcf8] sm:$0xff] }
 0x4fb   : > { %v7179_v63 = vadd.f32 %v3320_v54, %v3208_v14  ;;  %3404 = vmatpush.msrb.mxu0 %v793_v18  ;;  %v4678_v54 = vld [vmem:[%s5168_s26 + $0xc60] sm:$0xff]  ;;  %v4679_v14 = vld [vmem:[%s5168_s26 + $0xc68] sm:$0xff]  ;;  %4067 = vmatpush.msra.mxu2 %v1015_v61 }
 0x4fc   : > { %v3097_v45 = vpop.f32.mrf.mxu1  ;;  %3031 = vmatmul.f32.gmra.mxu0 %v4669_v10  ;;  %v1031_v10 = vld [vmem:[%s7934_s1 + $0xd78] sm:$0xff] }
 0x4fd   : > { %3257 = vmatmul.f32.gmra.mxu2 %v4670_v29  ;;  %3370 = vmatmul.f32.gmra.mxu3 %v4671_v34  ;;  %v3098_v19 = vadd.f32 %v3097_v45, %v2985_v50  ;;  %v4680_v45 = vld [vmem:[%s5168_s26 + $0xc58] sm:$0xff] }
 0x4fe   : > { %4188 = vmatpush.msra.mxu3 %v1031_v10 }
 0x4ff   : > { %3144 = vmatmul.f32.gmra.mxu1 %v4672_v53  ;;  %v983_v53 = vld [vmem:[%s7934_s1 + $0xbf8] sm:$0xff] }
 0x500   : > { %v3210_v36 = vpop.f32.mrf.mxu2  ;;  %v3323_v12 = vpop.f32.mrf.mxu3  ;;  %3954 = vmatpush.msra.mxu1 %v983_v53  ;;  %v4692_v53 = vld [vmem:[%s5168_s26 + $0xda8] sm:$0xff] }
 0x501   : > { %v3211_v24 = vadd.f32 %v3210_v36, %v3098_v19  ;;  %v2987_v17 = vpop.f32.mrf.mxu0 }
 0x502   : > { %v2988_v27 = vadd.f32 %v2987_v17, %v6764_v1  ;;  %v4683_v17 = vld [vmem:[%s5168_s26 + $0xcd8] sm:$0xff] }
 0x503   : > { %v7198_v31 = vadd.f32 %v3323_v12, %v3211_v24  ;;  %v4681_v12 = vld [vmem:[%s5168_s26 + $0xcc0] sm:$0xff]  ;;  %v4682_v24 = vld [vmem:[%s5168_s26 + $0xcd0] sm:$0xff] }
 0x504   : > { %v3100_v39 = vpop.f32.mrf.mxu1  ;;  %3034 = vmatmul.f32.gmra.mxu0 %v4673_v60 }
 0x505   : > { %3260 = vmatmul.f32.gmra.mxu2 %v4674_v8  ;;  %3373 = vmatmul.f32.gmra.mxu3 %v4675_v46  ;;  %v3101_v47 = vadd.f32 %v3100_v39, %v2988_v27  ;;  %v4684_v27 = vld [vmem:[%s5168_s26 + $0xcc8] sm:$0xff] }
 0x507   : > { %3147 = vmatmul.f32.gmra.mxu1 %v4676_v37 }
 0x508   : > { %v3213_v59 = vpop.f32.mrf.mxu2  ;;  %v3326_v16 = vpop.f32.mrf.mxu3 }
 0x509   : > { %v3214_v48 = vadd.f32 %v3213_v59, %v3101_v47  ;;  %v2990_v1 = vpop.f32.mrf.mxu0  ;;  %v4685_v59 = vld [vmem:[%s5168_s26 + $0xd30] sm:$0xff] }
 0x50a   : > { %v2991_v52 = vadd.f32 %v2990_v1, %v6782_v2  ;;  %v951_v2 = vld [vmem:[%s7934_s1 + $0xaf8] sm:$0xff]  ;;  %v1013_v1 = vld [vmem:[%s7934_s1 + $0xce8] sm:$0xff] }
 0x50b   : > { %v7205_v62 = vadd.f32 %v3326_v16, %v3214_v48  ;;  %3841 = vmatpush.msra.mxu0 %v951_v2  ;;  %v4686_v16 = vld [vmem:[%s5168_s26 + $0xd40] sm:$0xff]  ;;  %v4687_v48 = vld [vmem:[%s5168_s26 + $0xd48] sm:$0xff]  ;;  %4068 = vmatpush.msra.mxu2 %v1013_v1 }
 0x50c   : > { %v3103_v5 = vpop.f32.mrf.mxu1  ;;  %3037 = vmatmul.f32.gmra.mxu0 %v4677_v11 }
 0x50d   : > { %3263 = vmatmul.f32.gmra.mxu2 %v4678_v54  ;;  %3376 = vmatmul.f32.gmra.mxu3 %v4679_v14  ;;  %v3104_v50 = vadd.f32 %v3103_v5, %v2991_v52  ;;  %v4688_v5 = vld [vmem:[%s5168_s26 + $0xd38] sm:$0xff] }
 0x50f   : > { %3150 = vmatmul.f32.gmra.mxu1 %v4680_v45 }
 0x510   : > { %v3216_v29 = vpop.f32.mrf.mxu2  ;;  %v3329_v34 = vpop.f32.mrf.mxu3 }
 0x511   : > { %v3217_v32 = vadd.f32 %v3216_v29, %v3104_v50  ;;  %v2993_v19 = vpop.f32.mrf.mxu0  ;;  %v981_v50 = vld [vmem:[%s7934_s1 + $0xbe8] sm:$0xff]  ;;  %v4689_v29 = vld [vmem:[%s5168_s26 + $0xda0] sm:$0xff] }
 0x512   : > { %v2994_v18 = vadd.f32 %v2993_v19, %v6794_v35  ;;  %3955 = vmatpush.msra.mxu1 %v981_v50 }
 0x513   : > { %v7224_v15 = vadd.f32 %v3329_v34, %v3217_v32  ;;  %v4690_v34 = vld [vmem:[%s5168_s26 + $0xdb0] sm:$0xff]  ;;  %v4691_v32 = vld [vmem:[%s5168_s26 + $0xdb8] sm:$0xff] }
 0x514   : > { %v3106_v36 = vpop.f32.mrf.mxu1  ;;  %3040 = vmatmul.f32.gmra.mxu0 %v4681_v12 }
 0x515   : > { %3266 = vmatmul.f32.gmra.mxu2 %v4682_v24  ;;  %3379 = vmatmul.f32.gmra.mxu3 %v4683_v17  ;;  %v3107_v58 = vadd.f32 %v3106_v36, %v2994_v18 }
 0x517   : > { %3153 = vmatmul.f32.gmra.mxu1 %v4684_v27  ;;  %v4693_v27 = vld [vmem:[%s5168_s26 + $0x30] sm:$0xff] }
 0x518   : > { %v3219_v39 = vpop.f32.mrf.mxu2  ;;  %v3332_v60 = vpop.f32.mrf.mxu3 }
 0x519   : > { %v3220_v8 = vadd.f32 %v3219_v39, %v3107_v58  ;;  %v2996_v35 = vpop.f32.mrf.mxu0  ;;  %v4694_v39 = vld [vmem:[%s5168_s26 + $0x40] sm:$0xff] }
 0x51a   : > { %v2997_v46 = vadd.f32 %v2996_v35, %v6812_v13  ;;  %v949_v13 = vld [vmem:[%s7934_s1 + $0xae8] sm:$0xff] }
 0x51b   : > { %v7231_v47 = vadd.f32 %v3332_v60, %v3220_v8  ;;  %3842 = vmatpush.msra.mxu0 %v949_v13  ;;  %v4695_v60 = vld [vmem:[%s5168_s26 + $0x48] sm:$0xff]  ;;  %v1011_v8 = vld [vmem:[%s7934_s1 + $0xcd8] sm:$0xff] }
 0x51c   : > { %v3109_v37 = vpop.f32.mrf.mxu1  ;;  %3043 = vmatmul.f32.gmra.mxu0 %v4685_v59  ;;  %4069 = vmatpush.msra.mxu2 %v1011_v8 }
 0x51d   : > { %3269 = vmatmul.f32.gmra.mxu2 %v4686_v16  ;;  %3382 = vmatmul.f32.gmra.mxu3 %v4687_v48  ;;  %v3110_v52 = vadd.f32 %v3109_v37, %v2997_v46  ;;  %v4696_v46 = vld [vmem:[%s5168_s26 + $0x38] sm:$0xff]  ;;  %v1029_v37 = vld [vmem:[%s7934_s1 + $0xd68] sm:$0xff] }
 0x51e   : > { %4189 = vmatpush.msra.mxu3 %v1029_v37 }
 0x51f   : > { %3156 = vmatmul.f32.gmra.mxu1 %v4688_v5 }
 0x520   : > { %v3222_v11 = vpop.f32.mrf.mxu2  ;;  %v3335_v54 = vpop.f32.mrf.mxu3 }
 0x521   : > { %v3223_v14 = vadd.f32 %v3222_v11, %v3110_v52  ;;  %v2999_v61 = vpop.f32.mrf.mxu0  ;;  %v979_v52 = vld [vmem:[%s7934_s1 + $0xbd8] sm:$0xff] }
 0x522   : > { %v3000_v45 = vadd.f32 %v2999_v61, %v6824_v33  ;;  %3956 = vmatpush.msra.mxu1 %v979_v52  ;;  %v4699_v61 = vld [vmem:[%s5168_s26 + $0xb8] sm:$0xff]  ;;  %v4708_v52 = vld [vmem:[%s5168_s26 + $0x188] sm:$0xff] }
 0x523   : > { %v7247_v2 = vadd.f32 %v3335_v54, %v3223_v14  ;;  %v4697_v54 = vld [vmem:[%s5168_s26 + $0xa0] sm:$0xff]  ;;  %v4698_v14 = vld [vmem:[%s5168_s26 + $0xb0] sm:$0xff] }
 0x524   : > { %v3112_v10 = vpop.f32.mrf.mxu1  ;;  %3046 = vmatmul.f32.gmra.mxu0 %v4689_v29 }
 0x525   : > { %3272 = vmatmul.f32.gmra.mxu2 %v4690_v34  ;;  %3385 = vmatmul.f32.gmra.mxu3 %v4691_v32  ;;  %v3113_v19 = vadd.f32 %v3112_v10, %v3000_v45  ;;  %v4700_v45 = vld [vmem:[%s5168_s26 + $0xa8] sm:$0xff] }
 0x527   : > { %3159 = vmatmul.f32.gmra.mxu1 %v4692_v53 }
 0x528   : > { %v3225_v18 = vpop.f32.mrf.mxu2  ;;  %v3338_v36 = vpop.f32.mrf.mxu3 }
 0x529   : > { %v3226_v12 = vadd.f32 %v3225_v18, %v3113_v19  ;;  %v3002_v33 = vpop.f32.mrf.mxu0  ;;  %v4701_v18 = vld [vmem:[%s5168_s26 + $0x110] sm:$0xff] }
 0x52a   : > { %v3003_v24 = vadd.f32 %v3002_v33, %v6841_v28  ;;  %v947_v28 = vld [vmem:[%s7934_s1 + $0xad8] sm:$0xff]  ;;  %v1009_v33 = vld [vmem:[%s7934_s1 + $0xcc8] sm:$0xff] }
 0x52b   : > { %v7254_v17 = vadd.f32 %v3338_v36, %v3226_v12  ;;  %3843 = vmatpush.msra.mxu0 %v947_v28  ;;  %v4702_v36 = vld [vmem:[%s5168_s26 + $0x120] sm:$0xff]  ;;  %v4703_v12 = vld [vmem:[%s5168_s26 + $0x128] sm:$0xff]  ;;  %4070 = vmatpush.msra.mxu2 %v1009_v33 }
 0x52c   : > { %v3115_v58 = vpop.f32.mrf.mxu1  ;;  %3405 = vmatmul.f32.vlgmr.msrb.gmra.mxu0 %v4693_v27 }
 0x52d   : > { %3631 = vmatmul.f32.vlgmr.msrb.gmra.mxu2 %v4694_v39  ;;  %3744 = vmatmul.f32.vlgmr.msrb.gmra.mxu3 %v4695_v60  ;;  %v3116_v35 = vadd.f32 %v3115_v58, %v3003_v24  ;;  %v4704_v58 = vld [vmem:[%s5168_s26 + $0x118] sm:$0xff] }
 0x52f   : > { %3518 = vmatmul.f32.vlgmr.msrb.gmra.mxu1 %v4696_v46 }
 0x530   : > { %v3228_v59 = vpop.f32.mrf.mxu2  ;;  %v3341_v16 = vpop.f32.mrf.mxu3 }
 0x531   : > { %v3229_v48 = vadd.f32 %v3228_v59, %v3116_v35  ;;  %v3005_v1 = vpop.f32.mrf.mxu0  ;;  %v977_v35 = vld [vmem:[%s7934_s1 + $0xbc8] sm:$0xff]  ;;  %v4705_v59 = vld [vmem:[%s5168_s26 + $0x180] sm:$0xff] }
 0x532   : > { %v3006_v5 = vadd.f32 %v3005_v1, %v6852_v0  ;;  %3957 = vmatpush.msra.mxu1 %v977_v35 }
 0x533   : > { %v7273_v13 = vadd.f32 %v3341_v16, %v3229_v48  ;;  %v4706_v16 = vld [vmem:[%s5168_s26 + $0x190] sm:$0xff]  ;;  %v4707_v48 = vld [vmem:[%s5168_s26 + $0x198] sm:$0xff] }
 0x534   : > { %v3118_v11 = vpop.f32.mrf.mxu1  ;;  %3408 = vmatmul.f32.gmra.mxu0 %v4697_v54 }
 0x535   : > { %3634 = vmatmul.f32.gmra.mxu2 %v4698_v14  ;;  %3747 = vmatmul.f32.gmra.mxu3 %v4699_v61  ;;  %v3119_v50 = vadd.f32 %v3118_v11, %v3006_v5 }
 0x537   : > { %3521 = vmatmul.f32.gmra.mxu1 %v4700_v45  ;;  %v4709_v45 = vld [vmem:[%s5168_s26 + $0x1f0] sm:$0xff] }
 0x538   : > { %v3231_v10 = vpop.f32.mrf.mxu2  ;;  %v3344_v29 = vpop.f32.mrf.mxu3 }
 0x539   : > { %v3232_v34 = vadd.f32 %v3231_v10, %v3119_v50  ;;  %v3008_v0 = vpop.f32.mrf.mxu0  ;;  %v4710_v10 = vld [vmem:[%s5168_s26 + $0x200] sm:$0xff] }
 0x53a   : > { %v3009_v32 = vadd.f32 %v3008_v0, %v6869_v56  ;;  %v945_v56 = vld [vmem:[%s7934_s1 + $0xac8] sm:$0xff] }
 0x53b   : > { %v7280_v19 = vadd.f32 %v3344_v29, %v3232_v34  ;;  %3844 = vmatpush.msra.mxu0 %v945_v56  ;;  %v4711_v29 = vld [vmem:[%s5168_s26 + $0x208] sm:$0xff]  ;;  %v1007_v34 = vld [vmem:[%s7934_s1 + $0xcb8] sm:$0xff] }
 0x53c   : > { %v3121_v53 = vpop.f32.mrf.mxu1  ;;  %3411 = vmatmul.f32.gmra.mxu0 %v4701_v18  ;;  %4071 = vmatpush.msra.mxu2 %v1007_v34 }
 0x53d   : > { %3637 = vmatmul.f32.gmra.mxu2 %v4702_v36  ;;  %3750 = vmatmul.f32.gmra.mxu3 %v4703_v12  ;;  %v3122_v24 = vadd.f32 %v3121_v53, %v3009_v32  ;;  %v4712_v32 = vld [vmem:[%s5168_s26 + $0x1f8] sm:$0xff] }
 0x53e   : > { %v1027_v53 = vld [vmem:[%s7934_s1 + $0xd58] sm:$0xff] }
 0x53f   : > { %3524 = vmatmul.f32.gmra.mxu1 %v4704_v58  ;;  %4190 = vmatpush.msra.mxu3 %v1027_v53 }
 0x540   : > { %v3234_v27 = vpop.f32.mrf.mxu2  ;;  %v3347_v39 = vpop.f32.mrf.mxu3 }
 0x541   : > { %v3235_v60 = vadd.f32 %v3234_v27, %v3122_v24  ;;  %v3011_v8 = vpop.f32.mrf.mxu0  ;;  %v975_v24 = vld [vmem:[%s7934_s1 + $0xbb8] sm:$0xff] }
 0x542   : > { %v3012_v46 = vadd.f32 %v3011_v8, %v6880_v30  ;;  %3958 = vmatpush.msra.mxu1 %v975_v24  ;;  %v4715_v8 = vld [vmem:[%s5168_s26 + $0x278] sm:$0xff]  ;;  %v4724_v24 = vld [vmem:[%s5168_s26 + $0x348] sm:$0xff] }
 0x543   : > { %v7296_v28 = vadd.f32 %v3347_v39, %v3235_v60  ;;  %v4713_v39 = vld [vmem:[%s5168_s26 + $0x260] sm:$0xff]  ;;  %v4714_v60 = vld [vmem:[%s5168_s26 + $0x270] sm:$0xff] }
 0x544   : > { %v3124_v37 = vpop.f32.mrf.mxu1  ;;  %3414 = vmatmul.f32.gmra.mxu0 %v4705_v59 }
 0x545   : > { %3640 = vmatmul.f32.gmra.mxu2 %v4706_v16  ;;  %3753 = vmatmul.f32.gmra.mxu3 %v4707_v48  ;;  %v3125_v1 = vadd.f32 %v3124_v37, %v3012_v46  ;;  %v4716_v46 = vld [vmem:[%s5168_s26 + $0x268] sm:$0xff] }
 0x547   : > { %3527 = vmatmul.f32.gmra.mxu1 %v4708_v52 }
 0x548   : > { %v3237_v5 = vpop.f32.mrf.mxu2  ;;  %v3350_v11 = vpop.f32.mrf.mxu3 }
 0x549   : > { %v3238_v54 = vadd.f32 %v3237_v5, %v3125_v1  ;;  %v3014_v30 = vpop.f32.mrf.mxu0  ;;  %v4717_v5 = vld [vmem:[%s5168_s26 + $0x2d0] sm:$0xff] }
 0x54a   : > { %v3015_v14 = vadd.f32 %v3014_v30, %v6897_v51  ;;  %v943_v51 = vld [vmem:[%s7934_s1 + $0xab8] sm:$0xff]  ;;  %v1005_v30 = vld [vmem:[%s7934_s1 + $0xca8] sm:$0xff] }
 0x54b   : > { %v7303_v61 = vadd.f32 %v3350_v11, %v3238_v54  ;;  %3845 = vmatpush.msra.mxu0 %v943_v51  ;;  %v4718_v11 = vld [vmem:[%s5168_s26 + $0x2e0] sm:$0xff]  ;;  %v4719_v54 = vld [vmem:[%s5168_s26 + $0x2e8] sm:$0xff]  ;;  %4072 = vmatpush.msra.mxu2 %v1005_v30 }
 0x54c   : > { %v3127_v50 = vpop.f32.mrf.mxu1  ;;  %3417 = vmatmul.f32.gmra.mxu0 %v4709_v45 }
 0x54d   : > { %3643 = vmatmul.f32.gmra.mxu2 %v4710_v10  ;;  %3756 = vmatmul.f32.gmra.mxu3 %v4711_v29  ;;  %v3128_v0 = vadd.f32 %v3127_v50, %v3015_v14  ;;  %v4720_v50 = vld [vmem:[%s5168_s26 + $0x2d8] sm:$0xff] }
 0x54f   : > { %3530 = vmatmul.f32.gmra.mxu1 %v4712_v32 }
 0x550   : > { %v3240_v18 = vpop.f32.mrf.mxu2  ;;  %v3353_v36 = vpop.f32.mrf.mxu3 }
 0x551   : > { %v3241_v12 = vadd.f32 %v3240_v18, %v3128_v0  ;;  %v3017_v33 = vpop.f32.mrf.mxu0  ;;  %v973_v0 = vld [vmem:[%s7934_s1 + $0xba8] sm:$0xff]  ;;  %v4721_v18 = vld [vmem:[%s5168_s26 + $0x340] sm:$0xff] }
 0x552   : > { %v3018_v58 = vadd.f32 %v3017_v33, %v6908_v44  ;;  %3959 = vmatpush.msra.mxu1 %v973_v0 }
 0x553   : > { %v7322_v56 = vadd.f32 %v3353_v36, %v3241_v12  ;;  %v4722_v36 = vld [vmem:[%s5168_s26 + $0x350] sm:$0xff]  ;;  %v4723_v12 = vld [vmem:[%s5168_s26 + $0x358] sm:$0xff] }
 0x554   : > { %v3130_v27 = vpop.f32.mrf.mxu1  ;;  %3420 = vmatmul.f32.gmra.mxu0 %v4713_v39 }
 0x555   : > { %3646 = vmatmul.f32.gmra.mxu2 %v4714_v60  ;;  %3759 = vmatmul.f32.gmra.mxu3 %v4715_v8  ;;  %v3131_v35 = vadd.f32 %v3130_v27, %v3018_v58 }
 0x557   : > { %3533 = vmatmul.f32.gmra.mxu1 %v4716_v46  ;;  %v4725_v46 = vld [vmem:[%s5168_s26 + $0x3b0] sm:$0xff] }
 0x558   : > { %v3243_v37 = vpop.f32.mrf.mxu2  ;;  %v3356_v59 = vpop.f32.mrf.mxu3 }
 0x559   : > { %v3244_v16 = vadd.f32 %v3243_v37, %v3131_v35  ;;  %v3020_v44 = vpop.f32.mrf.mxu0  ;;  %v4726_v37 = vld [vmem:[%s5168_s26 + $0x3c0] sm:$0xff] }
 0x55a   : > { %v3021_v48 = vadd.f32 %v3020_v44, %v6925_v57  ;;  %v941_v57 = vld [vmem:[%s7934_s1 + $0xaa8] sm:$0xff] }
 0x55b   : > { %v7329_v1 = vadd.f32 %v3356_v59, %v3244_v16  ;;  %3846 = vmatpush.msra.mxu0 %v941_v57  ;;  %v4727_v59 = vld [vmem:[%s5168_s26 + $0x3c8] sm:$0xff]  ;;  %v1003_v16 = vld [vmem:[%s7934_s1 + $0xc98] sm:$0xff] }
 0x55c   : > { %v3133_v52 = vpop.f32.mrf.mxu1  ;;  %3423 = vmatmul.f32.gmra.mxu0 %v4717_v5  ;;  %4073 = vmatpush.msra.mxu2 %v1003_v16 }
 0x55d   : > { %3649 = vmatmul.f32.gmra.mxu2 %v4718_v11  ;;  %3762 = vmatmul.f32.gmra.mxu3 %v4719_v54  ;;  %v3134_v14 = vadd.f32 %v3133_v52, %v3021_v48  ;;  %v4728_v48 = vld [vmem:[%s5168_s26 + $0x3b8] sm:$0xff]  ;;  %v1025_v52 = vld [vmem:[%s7934_s1 + $0xd48] sm:$0xff] }
 0x55e   : > { %4191 = vmatpush.msra.mxu3 %v1025_v52 }
 0x55f   : > { %3536 = vmatmul.f32.gmra.mxu1 %v4720_v50 }
 0x560   : > { %v3246_v45 = vpop.f32.mrf.mxu2  ;;  %v3359_v10 = vpop.f32.mrf.mxu3 }
 0x561   : > { %v3247_v29 = vadd.f32 %v3246_v45, %v3134_v14  ;;  %v3023_v34 = vpop.f32.mrf.mxu0  ;;  %v971_v14 = vld [vmem:[%s7934_s1 + $0xb98] sm:$0xff] }
 0x562   : > { %v3024_v32 = vadd.f32 %v3023_v34, %v6936_v9  ;;  %3960 = vmatpush.msra.mxu1 %v971_v14  ;;  %v4731_v34 = vld [vmem:[%s5168_s26 + $0x438] sm:$0xff]  ;;  %v4740_v14 = vld [vmem:[%s5168_s26 + $0x508] sm:$0xff] }
 0x563   : > { %v7345_v51 = vadd.f32 %v3359_v10, %v3247_v29  ;;  %v4729_v10 = vld [vmem:[%s5168_s26 + $0x420] sm:$0xff]  ;;  %v4730_v29 = vld [vmem:[%s5168_s26 + $0x430] sm:$0xff] }
 0x564   : > { %v3136_v53 = vpop.f32.mrf.mxu1  ;;  %3426 = vmatmul.f32.gmra.mxu0 %v4721_v18 }
 0x565   : > { %3652 = vmatmul.f32.gmra.mxu2 %v4722_v36  ;;  %3765 = vmatmul.f32.gmra.mxu3 %v4723_v12  ;;  %v3137_v33 = vadd.f32 %v3136_v53, %v3024_v32  ;;  %v4732_v32 = vld [vmem:[%s5168_s26 + $0x428] sm:$0xff] }
 0x567   : > { %3539 = vmatmul.f32.gmra.mxu1 %v4724_v24 }
 0x568   : > { %v3249_v58 = vpop.f32.mrf.mxu2  ;;  %v3362_v27 = vpop.f32.mrf.mxu3 }
 0x569   : > { %v3250_v39 = vadd.f32 %v3249_v58, %v3137_v33  ;;  %v3026_v9 = vpop.f32.mrf.mxu0  ;;  %v4733_v58 = vld [vmem:[%s5168_s26 + $0x490] sm:$0xff] }
 0x56a   : > { %v3027_v60 = vadd.f32 %v3026_v9, %v6953_v49  ;;  %v939_v49 = vld [vmem:[%s7934_s1 + $0xa98] sm:$0xff]  ;;  %v1001_v9 = vld [vmem:[%s7934_s1 + $0xc88] sm:$0xff] }
 0x56b   : > { %v7352_v8 = vadd.f32 %v3362_v27, %v3250_v39  ;;  %3847 = vmatpush.msra.mxu0 %v939_v49  ;;  %v4734_v27 = vld [vmem:[%s5168_s26 + $0x4a0] sm:$0xff]  ;;  %v4735_v39 = vld [vmem:[%s5168_s26 + $0x4a8] sm:$0xff]  ;;  %4074 = vmatpush.msra.mxu2 %v1001_v9 }
 0x56c   : > { %v3139_v35 = vpop.f32.mrf.mxu1  ;;  %3429 = vmatmul.f32.gmra.mxu0 %v4725_v46 }
 0x56d   : > { %3655 = vmatmul.f32.gmra.mxu2 %v4726_v37  ;;  %3768 = vmatmul.f32.gmra.mxu3 %v4727_v59  ;;  %v3140_v44 = vadd.f32 %v3139_v35, %v3027_v60  ;;  %v4736_v35 = vld [vmem:[%s5168_s26 + $0x498] sm:$0xff] }
 0x56f   : > { %3542 = vmatmul.f32.gmra.mxu1 %v4728_v48 }
 0x570   : > { %v3252_v5 = vpop.f32.mrf.mxu2  ;;  %v3365_v11 = vpop.f32.mrf.mxu3 }
 0x571   : > { %v3253_v54 = vadd.f32 %v3252_v5, %v3140_v44  ;;  %v3029_v30 = vpop.f32.mrf.mxu0  ;;  %v969_v44 = vld [vmem:[%s7934_s1 + $0xb88] sm:$0xff]  ;;  %v4737_v5 = vld [vmem:[%s5168_s26 + $0x500] sm:$0xff] }
 0x572   : > { %v3030_v50 = vadd.f32 %v3029_v30, %v6964_v21  ;;  %3961 = vmatpush.msra.mxu1 %v969_v44 }
 0x573   : > { %v7371_v57 = vadd.f32 %v3365_v11, %v3253_v54  ;;  %v4738_v11 = vld [vmem:[%s5168_s26 + $0x510] sm:$0xff]  ;;  %v4739_v54 = vld [vmem:[%s5168_s26 + $0x518] sm:$0xff] }
 0x574   : > { %v3142_v45 = vpop.f32.mrf.mxu1  ;;  %3432 = vmatmul.f32.gmra.mxu0 %v4729_v10 }
 0x575   : > { %3658 = vmatmul.f32.gmra.mxu2 %v4730_v29  ;;  %3771 = vmatmul.f32.gmra.mxu3 %v4731_v34  ;;  %v3143_v0 = vadd.f32 %v3142_v45, %v3030_v50 }
 0x577   : > { %3545 = vmatmul.f32.gmra.mxu1 %v4732_v32  ;;  %v4741_v32 = vld [vmem:[%s5168_s26 + $0x570] sm:$0xff] }
 0x578   : > { %v3255_v53 = vpop.f32.mrf.mxu2  ;;  %v3368_v18 = vpop.f32.mrf.mxu3 }
 0x579   : > { %v3256_v36 = vadd.f32 %v3255_v53, %v3143_v0  ;;  %v3032_v21 = vpop.f32.mrf.mxu0  ;;  %v4742_v53 = vld [vmem:[%s5168_s26 + $0x580] sm:$0xff] }
 0x57a   : > { %v3033_v12 = vadd.f32 %v3032_v21, %v6981_v20  ;;  %v937_v20 = vld [vmem:[%s7934_s1 + $0xa88] sm:$0xff] }
 0x57b   : > { %v7378_v33 = vadd.f32 %v3368_v18, %v3256_v36  ;;  %3848 = vmatpush.msra.mxu0 %v937_v20  ;;  %v4743_v18 = vld [vmem:[%s5168_s26 + $0x588] sm:$0xff]  ;;  %v999_v36 = vld [vmem:[%s7934_s1 + $0xc78] sm:$0xff] }
 0x57c   : > { %v3145_v24 = vpop.f32.mrf.mxu1  ;;  %3435 = vmatmul.f32.gmra.mxu0 %v4733_v58  ;;  %4075 = vmatpush.msra.mxu2 %v999_v36 }
 0x57d   : > { %3661 = vmatmul.f32.gmra.mxu2 %v4734_v27  ;;  %3774 = vmatmul.f32.gmra.mxu3 %v4735_v39  ;;  %v3146_v60 = vadd.f32 %v3145_v24, %v3033_v12  ;;  %v4744_v12 = vld [vmem:[%s5168_s26 + $0x578] sm:$0xff] }
 0x57e   : > { %v1023_v24 = vld [vmem:[%s7934_s1 + $0xd38] sm:$0xff] }
 0x57f   : > { %3548 = vmatmul.f32.gmra.mxu1 %v4736_v35  ;;  %4192 = vmatpush.msra.mxu3 %v1023_v24 }
 0x580   : > { %v3258_v46 = vpop.f32.mrf.mxu2  ;;  %v3371_v37 = vpop.f32.mrf.mxu3 }
 0x581   : > { %v3259_v59 = vadd.f32 %v3258_v46, %v3146_v60  ;;  %v3035_v16 = vpop.f32.mrf.mxu0  ;;  %v967_v60 = vld [vmem:[%s7934_s1 + $0xb78] sm:$0xff] }
 0x582   : > { %v3036_v48 = vadd.f32 %v3035_v16, %v6992_v6  ;;  %3962 = vmatpush.msra.mxu1 %v967_v60  ;;  %v4747_v16 = vld [vmem:[%s5168_s26 + $0x5f8] sm:$0xff]  ;;  %v4756_v60 = vld [vmem:[%s5168_s26 + $0x6c8] sm:$0xff] }
 0x583   : > { %v7394_v49 = vadd.f32 %v3371_v37, %v3259_v59  ;;  %v4745_v37 = vld [vmem:[%s5168_s26 + $0x5e0] sm:$0xff]  ;;  %v4746_v59 = vld [vmem:[%s5168_s26 + $0x5f0] sm:$0xff] }
 0x584   : > { %v3148_v52 = vpop.f32.mrf.mxu1  ;;  %3438 = vmatmul.f32.gmra.mxu0 %v4737_v5 }
 0x585   : > { %3664 = vmatmul.f32.gmra.mxu2 %v4738_v11  ;;  %3777 = vmatmul.f32.gmra.mxu3 %v4739_v54  ;;  %v3149_v30 = vadd.f32 %v3148_v52, %v3036_v48  ;;  %v4748_v48 = vld [vmem:[%s5168_s26 + $0x5e8] sm:$0xff] }
 0x587   : > { %3551 = vmatmul.f32.gmra.mxu1 %v4740_v14 }
 0x588   : > { %v3261_v50 = vpop.f32.mrf.mxu2  ;;  %v3374_v45 = vpop.f32.mrf.mxu3 }
 0x589   : > { %v3262_v10 = vadd.f32 %v3261_v50, %v3149_v30  ;;  %v3038_v6 = vpop.f32.mrf.mxu0  ;;  %v4749_v50 = vld [vmem:[%s5168_s26 + $0x650] sm:$0xff] }
 0x58a   : > { %v3039_v29 = vadd.f32 %v3038_v6, %v7009_v40  ;;  %v935_v40 = vld [vmem:[%s7934_s1 + $0xa78] sm:$0xff]  ;;  %v997_v6 = vld [vmem:[%s7934_s1 + $0xc68] sm:$0xff] }
 0x58b   : > { %v7401_v34 = vadd.f32 %v3374_v45, %v3262_v10  ;;  %3849 = vmatpush.msra.mxu0 %v935_v40  ;;  %v4750_v45 = vld [vmem:[%s5168_s26 + $0x660] sm:$0xff]  ;;  %v4751_v10 = vld [vmem:[%s5168_s26 + $0x668] sm:$0xff]  ;;  %4076 = vmatpush.msra.mxu2 %v997_v6 }
 0x58c   : > { %v3151_v0 = vpop.f32.mrf.mxu1  ;;  %3441 = vmatmul.f32.gmra.mxu0 %v4741_v32 }
 0x58d   : > { %3667 = vmatmul.f32.gmra.mxu2 %v4742_v53  ;;  %3780 = vmatmul.f32.gmra.mxu3 %v4743_v18  ;;  %v3152_v21 = vadd.f32 %v3151_v0, %v3039_v29  ;;  %v4752_v0 = vld [vmem:[%s5168_s26 + $0x658] sm:$0xff] }
 0x58f   : > { %3554 = vmatmul.f32.gmra.mxu1 %v4744_v12 }
 0x590   : > { %v3264_v58 = vpop.f32.mrf.mxu2  ;;  %v3377_v27 = vpop.f32.mrf.mxu3 }
 0x591   : > { %v3265_v39 = vadd.f32 %v3264_v58, %v3152_v21  ;;  %v3041_v9 = vpop.f32.mrf.mxu0  ;;  %v965_v21 = vld [vmem:[%s7934_s1 + $0xb68] sm:$0xff]  ;;  %v4753_v58 = vld [vmem:[%s5168_s26 + $0x6c0] sm:$0xff] }
 0x592   : > { %v3042_v35 = vadd.f32 %v3041_v9, %v7020_v26  ;;  %3963 = vmatpush.msra.mxu1 %v965_v21 }
 0x593   : > { %v7420_v20 = vadd.f32 %v3377_v27, %v3265_v39  ;;  %v4754_v27 = vld [vmem:[%s5168_s26 + $0x6d0] sm:$0xff]  ;;  %v4755_v39 = vld [vmem:[%s5168_s26 + $0x6d8] sm:$0xff] }
 0x594   : > { %v3154_v46 = vpop.f32.mrf.mxu1  ;;  %3444 = vmatmul.f32.gmra.mxu0 %v4745_v37 }
 0x595   : > { %3670 = vmatmul.f32.gmra.mxu2 %v4746_v59  ;;  %3783 = vmatmul.f32.gmra.mxu3 %v4747_v16  ;;  %v3155_v44 = vadd.f32 %v3154_v46, %v3042_v35 }
 0x597   : > { %3557 = vmatmul.f32.gmra.mxu1 %v4748_v48  ;;  %v4757_v48 = vld [vmem:[%s5168_s26 + $0x730] sm:$0xff] }
 0x598   : > { %v3267_v52 = vpop.f32.mrf.mxu2  ;;  %v3380_v5 = vpop.f32.mrf.mxu3 }
 0x599   : > { %v3268_v11 = vadd.f32 %v3267_v52, %v3155_v44  ;;  %v3044_v26 = vpop.f32.mrf.mxu0  ;;  %v4758_v52 = vld [vmem:[%s5168_s26 + $0x740] sm:$0xff] }
 0x59a   : > { %v3045_v54 = vadd.f32 %v3044_v26, %v7037_v42  ;;  %v933_v42 = vld [vmem:[%s7934_s1 + $0xa68] sm:$0xff] }
 0x59b   : > { %v7427_v30 = vadd.f32 %v3380_v5, %v3268_v11  ;;  %3850 = vmatpush.msra.mxu0 %v933_v42  ;;  %v4759_v5 = vld [vmem:[%s5168_s26 + $0x748] sm:$0xff]  ;;  %v995_v11 = vld [vmem:[%s7934_s1 + $0xc58] sm:$0xff] }
 0x59c   : > { %v3157_v14 = vpop.f32.mrf.mxu1  ;;  %3447 = vmatmul.f32.gmra.mxu0 %v4749_v50  ;;  %4077 = vmatpush.msra.mxu2 %v995_v11 }
 0x59d   : > { %3673 = vmatmul.f32.gmra.mxu2 %v4750_v45  ;;  %3786 = vmatmul.f32.gmra.mxu3 %v4751_v10  ;;  %v3158_v29 = vadd.f32 %v3157_v14, %v3045_v54  ;;  %v4760_v54 = vld [vmem:[%s5168_s26 + $0x738] sm:$0xff]  ;;  %v1021_v14 = vld [vmem:[%s7934_s1 + $0xd28] sm:$0xff] }
 0x59e   : > { %4193 = vmatpush.msra.mxu3 %v1021_v14 }
 0x59f   : > { %3560 = vmatmul.f32.gmra.mxu1 %v4752_v0 }
 0x5a0   : > { %v3270_v32 = vpop.f32.mrf.mxu2  ;;  %v3383_v53 = vpop.f32.mrf.mxu3 }
 0x5a1   : > { %v3271_v18 = vadd.f32 %v3270_v32, %v3158_v29  ;;  %v3047_v36 = vpop.f32.mrf.mxu0  ;;  %v963_v29 = vld [vmem:[%s7934_s1 + $0xb58] sm:$0xff] }
 0x5a2   : > { %v3048_v12 = vadd.f32 %v3047_v36, %v7048_v4  ;;  %3964 = vmatpush.msra.mxu1 %v963_v29  ;;  %v4763_v36 = vld [vmem:[%s5168_s26 + $0x7b8] sm:$0xff]  ;;  %v4772_v29 = vld [vmem:[%s5168_s26 + $0x888] sm:$0xff] }
 0x5a3   : > { %v7443_v40 = vadd.f32 %v3383_v53, %v3271_v18  ;;  %v4761_v53 = vld [vmem:[%s5168_s26 + $0x7a0] sm:$0xff]  ;;  %v4762_v18 = vld [vmem:[%s5168_s26 + $0x7b0] sm:$0xff] }
 0x5a4   : > { %v3160_v24 = vpop.f32.mrf.mxu1  ;;  %3450 = vmatmul.f32.gmra.mxu0 %v4753_v58 }
 0x5a5   : > { %3676 = vmatmul.f32.gmra.mxu2 %v4754_v27  ;;  %3789 = vmatmul.f32.gmra.mxu3 %v4755_v39  ;;  %v3161_v9 = vadd.f32 %v3160_v24, %v3048_v12  ;;  %v4764_v12 = vld [vmem:[%s5168_s26 + $0x7a8] sm:$0xff] }
 0x5a7   : > { %3563 = vmatmul.f32.gmra.mxu1 %v4756_v60 }
 0x5a8   : > { %v3273_v35 = vpop.f32.mrf.mxu2  ;;  %v3386_v46 = vpop.f32.mrf.mxu3 }
 0x5a9   : > { %v3274_v37 = vadd.f32 %v3273_v35, %v3161_v9  ;;  %v3406_v4 = vpop.f32.mrf.mxu0  ;;  %v4765_v35 = vld [vmem:[%s5168_s26 + $0x810] sm:$0xff] }
 0x5aa   : > { %v3407_v16 = vadd.f32 %v3406_v4, %v7068_v38  ;;  %v931_v38 = vld [vmem:[%s7934_s1 + $0xa58] sm:$0xff]  ;;  %v993_v4 = vld [vmem:[%s7934_s1 + $0xc48] sm:$0xff] }
 0x5ab   : > { %v7449_v59 = vadd.f32 %v3386_v46, %v3274_v37  ;;  %3851 = vmatpush.msra.mxu0 %v931_v38  ;;  %v4766_v46 = vld [vmem:[%s5168_s26 + $0x820] sm:$0xff]  ;;  %v4767_v37 = vld [vmem:[%s5168_s26 + $0x828] sm:$0xff]  ;;  %4078 = vmatpush.msra.mxu2 %v993_v4 }
 0x5ac   : > { %v3519_v44 = vpop.f32.mrf.mxu1  ;;  %3453 = vmatmul.f32.gmra.mxu0 %v4757_v48 }
 0x5ad   : > { %3679 = vmatmul.f32.gmra.mxu2 %v4758_v52  ;;  %3792 = vmatmul.f32.gmra.mxu3 %v4759_v5  ;;  %v3520_v26 = vadd.f32 %v3519_v44, %v3407_v16  ;;  %v4768_v44 = vld [vmem:[%s5168_s26 + $0x818] sm:$0xff] }
 0x5af   : > { %3566 = vmatmul.f32.gmra.mxu1 %v4760_v54 }
 0x5b0   : > { %v3632_v50 = vpop.f32.mrf.mxu2  ;;  %v3745_v45 = vpop.f32.mrf.mxu3 }
 0x5b1   : > { %v3633_v10 = vadd.f32 %v3632_v50, %v3520_v26  ;;  %v3409_v6 = vpop.f32.mrf.mxu0  ;;  %v961_v26 = vld [vmem:[%s7934_s1 + $0xb48] sm:$0xff]  ;;  %v4769_v50 = vld [vmem:[%s5168_s26 + $0x880] sm:$0xff] }
 0x5b2   : > { %v3410_v0 = vadd.f32 %v3409_v6, %v7075_v7  ;;  %3965 = vmatpush.msra.mxu1 %v961_v26 }
 0x5b3   : > { %v7469_v42 = vadd.f32 %v3745_v45, %v3633_v10  ;;  %v4770_v45 = vld [vmem:[%s5168_s26 + $0x890] sm:$0xff]  ;;  %v4771_v10 = vld [vmem:[%s5168_s26 + $0x898] sm:$0xff] }
 0x5b4   : > { %v3522_v32 = vpop.f32.mrf.mxu1  ;;  %3456 = vmatmul.f32.gmra.mxu0 %v4761_v53 }
 0x5b5   : > { %3682 = vmatmul.f32.gmra.mxu2 %v4762_v18  ;;  %3795 = vmatmul.f32.gmra.mxu3 %v4763_v36  ;;  %v3523_v21 = vadd.f32 %v3522_v32, %v3410_v0 }
 0x5b7   : > { %3569 = vmatmul.f32.gmra.mxu1 %v4764_v12  ;;  %v4773_v12 = vld [vmem:[%s5168_s26 + $0x8f0] sm:$0xff] }
 0x5b8   : > { %v3635_v24 = vpop.f32.mrf.mxu2  ;;  %v3748_v58 = vpop.f32.mrf.mxu3 }
 0x5b9   : > { %v3636_v27 = vadd.f32 %v3635_v24, %v3523_v21  ;;  %v3412_v7 = vpop.f32.mrf.mxu0  ;;  %v4774_v24 = vld [vmem:[%s5168_s26 + $0x900] sm:$0xff] }
 0x5ba   : > { %v3413_v39 = vadd.f32 %v3412_v7, %v7094_v22  ;;  %v929_v22 = vld [vmem:[%s7934_s1 + $0xa48] sm:$0xff] }
 0x5bb   : > { %v7476_v9 = vadd.f32 %v3748_v58, %v3636_v27  ;;  %3852 = vmatpush.msra.mxu0 %v929_v22  ;;  %v4775_v58 = vld [vmem:[%s5168_s26 + $0x908] sm:$0xff]  ;;  %v991_v27 = vld [vmem:[%s7934_s1 + $0xc38] sm:$0xff] }
 0x5bc   : > { %v3525_v60 = vpop.f32.mrf.mxu1  ;;  %3459 = vmatmul.f32.gmra.mxu0 %v4765_v35  ;;  %4079 = vmatpush.msra.mxu2 %v991_v27 }
 0x5bd   : > { %3685 = vmatmul.f32.gmra.mxu2 %v4766_v46  ;;  %3798 = vmatmul.f32.gmra.mxu3 %v4767_v37  ;;  %v3526_v16 = vadd.f32 %v3525_v60, %v3413_v39  ;;  %v4776_v39 = vld [vmem:[%s5168_s26 + $0x8f8] sm:$0xff] }
 0x5be   : > { %v1019_v60 = vld [vmem:[%s7934_s1 + $0xd18] sm:$0xff] }
 0x5bf   : > { %3572 = vmatmul.f32.gmra.mxu1 %v4768_v44  ;;  %4194 = vmatpush.msra.mxu3 %v1019_v60 }
 0x5c0   : > { %v3638_v48 = vpop.f32.mrf.mxu2  ;;  %v3751_v52 = vpop.f32.mrf.mxu3 }
 0x5c1   : > { %v3639_v5 = vadd.f32 %v3638_v48, %v3526_v16  ;;  %v3415_v11 = vpop.f32.mrf.mxu0  ;;  %v959_v16 = vld [vmem:[%s7934_s1 + $0xb38] sm:$0xff] }
 0x5c2   : > { %v3416_v54 = vadd.f32 %v3415_v11, %v7101_v41  ;;  %3966 = vmatpush.msra.mxu1 %v959_v16  ;;  %v4779_v11 = vld [vmem:[%s5168_s26 + $0x978] sm:$0xff]  ;;  %v4788_v16 = vld [vmem:[%s5168_s26 + $0xa48] sm:$0xff] }
 0x5c3   : > { %v7492_v38 = vadd.f32 %v3751_v52, %v3639_v5  ;;  %v4777_v52 = vld [vmem:[%s5168_s26 + $0x960] sm:$0xff]  ;;  %v4778_v5 = vld [vmem:[%s5168_s26 + $0x970] sm:$0xff] }
 0x5c4   : > { %v3528_v14 = vpop.f32.mrf.mxu1  ;;  %3462 = vmatmul.f32.gmra.mxu0 %v4769_v50 }
 0x5c5   : > { %3688 = vmatmul.f32.gmra.mxu2 %v4770_v45  ;;  %3801 = vmatmul.f32.gmra.mxu3 %v4771_v10  ;;  %v3529_v6 = vadd.f32 %v3528_v14, %v3416_v54  ;;  %v4780_v54 = vld [vmem:[%s5168_s26 + $0x968] sm:$0xff] }
 0x5c7   : > { %3575 = vmatmul.f32.gmra.mxu1 %v4772_v29 }
 0x5c8   : > { %v3641_v0 = vpop.f32.mrf.mxu2  ;;  %v3754_v32 = vpop.f32.mrf.mxu3 }
 0x5c9   : > { %v3642_v53 = vadd.f32 %v3641_v0, %v3529_v6  ;;  %v3418_v41 = vpop.f32.mrf.mxu0  ;;  %v4781_v0 = vld [vmem:[%s5168_s26 + $0x9d0] sm:$0xff] }
 0x5ca   : > { %v3419_v18 = vadd.f32 %v3418_v41, %v7120_v23  ;;  %v927_v23 = vld [vmem:[%s7934_s1 + $0xa38] sm:$0xff]  ;;  %v989_v41 = vld [vmem:[%s7934_s1 + $0xc28] sm:$0xff] }
 0x5cb   : > { %v7499_v36 = vadd.f32 %v3754_v32, %v3642_v53  ;;  %3853 = vmatpush.msra.mxu0 %v927_v23  ;;  %v4782_v32 = vld [vmem:[%s5168_s26 + $0x9e0] sm:$0xff]  ;;  %v4783_v53 = vld [vmem:[%s5168_s26 + $0x9e8] sm:$0xff]  ;;  %4080 = vmatpush.msra.mxu2 %v989_v41 }
 0x5cc   : > { %v3531_v21 = vpop.f32.mrf.mxu1  ;;  %3465 = vmatmul.f32.gmra.mxu0 %v4773_v12 }
 0x5cd   : > { %3691 = vmatmul.f32.gmra.mxu2 %v4774_v24  ;;  %3804 = vmatmul.f32.gmra.mxu3 %v4775_v58  ;;  %v3532_v7 = vadd.f32 %v3531_v21, %v3419_v18  ;;  %v4784_v21 = vld [vmem:[%s5168_s26 + $0x9d8] sm:$0xff] }
 0x5cf   : > { %3578 = vmatmul.f32.gmra.mxu1 %v4776_v39 }
 0x5d0   : > { %v3644_v35 = vpop.f32.mrf.mxu2  ;;  %v3757_v46 = vpop.f32.mrf.mxu3 }
 0x5d1   : > { %v3645_v37 = vadd.f32 %v3644_v35, %v3532_v7  ;;  %v3421_v4 = vpop.f32.mrf.mxu0  ;;  %v957_v7 = vld [vmem:[%s7934_s1 + $0xb28] sm:$0xff]  ;;  %v4785_v35 = vld [vmem:[%s5168_s26 + $0xa40] sm:$0xff] }
 0x5d2   : > { %v3422_v44 = vadd.f32 %v3421_v4, %v7127_v43  ;;  %3967 = vmatpush.msra.mxu1 %v957_v7 }
 0x5d3   : > { %v7518_v22 = vadd.f32 %v3757_v46, %v3645_v37  ;;  %v4786_v46 = vld [vmem:[%s5168_s26 + $0xa50] sm:$0xff]  ;;  %v4787_v37 = vld [vmem:[%s5168_s26 + $0xa58] sm:$0xff] }
 0x5d4   : > { %v3534_v48 = vpop.f32.mrf.mxu1  ;;  %3468 = vmatmul.f32.gmra.mxu0 %v4777_v52 }
 0x5d5   : > { %3694 = vmatmul.f32.gmra.mxu2 %v4778_v5  ;;  %3807 = vmatmul.f32.gmra.mxu3 %v4779_v11  ;;  %v3535_v26 = vadd.f32 %v3534_v48, %v3422_v44 }
 0x5d7   : > { %3581 = vmatmul.f32.gmra.mxu1 %v4780_v54  ;;  %v4789_v54 = vld [vmem:[%s5168_s26 + $0xab0] sm:$0xff] }
 0x5d8   : > { %v3647_v14 = vpop.f32.mrf.mxu2  ;;  %v3760_v50 = vpop.f32.mrf.mxu3 }
 0x5d9   : > { %v3648_v45 = vadd.f32 %v3647_v14, %v3535_v26  ;;  %v3424_v43 = vpop.f32.mrf.mxu0  ;;  %v4790_v14 = vld [vmem:[%s5168_s26 + $0xac0] sm:$0xff] }
 0x5da   : > { %v3425_v10 = vadd.f32 %v3424_v43, %v7146_v3  ;;  %v925_v3 = vld [vmem:[%s7934_s1 + $0xa28] sm:$0xff] }
 0x5db   : > { %v7525_v6 = vadd.f32 %v3760_v50, %v3648_v45  ;;  %3854 = vmatpush.msra.mxu0 %v925_v3  ;;  %v4791_v50 = vld [vmem:[%s5168_s26 + $0xac8] sm:$0xff]  ;;  %v987_v45 = vld [vmem:[%s7934_s1 + $0xc18] sm:$0xff] }
 0x5dc   : > { %v3537_v29 = vpop.f32.mrf.mxu1  ;;  %3471 = vmatmul.f32.gmra.mxu0 %v4781_v0  ;;  %4081 = vmatpush.msra.mxu2 %v987_v45 }
 0x5dd   : > { %3697 = vmatmul.f32.gmra.mxu2 %v4782_v32  ;;  %3810 = vmatmul.f32.gmra.mxu3 %v4783_v53  ;;  %v3538_v18 = vadd.f32 %v3537_v29, %v3425_v10  ;;  %v4792_v10 = vld [vmem:[%s5168_s26 + $0xab8] sm:$0xff]  ;;  %v1017_v29 = vld [vmem:[%s7934_s1 + $0xd08] sm:$0xff] }
 0x5de   : > { %4195 = vmatpush.msra.mxu3 %v1017_v29 }
 0x5df   : > { %3584 = vmatmul.f32.gmra.mxu1 %v4784_v21 }
 0x5e0   : > { %v3650_v12 = vpop.f32.mrf.mxu2  ;;  %v3763_v24 = vpop.f32.mrf.mxu3 }
 0x5e1   : > { %v3651_v58 = vadd.f32 %v3650_v12, %v3538_v18  ;;  %v3427_v27 = vpop.f32.mrf.mxu0  ;;  %v955_v18 = vld [vmem:[%s7934_s1 + $0xb18] sm:$0xff] }
 0x5e2   : > { %v3428_v39 = vadd.f32 %v3427_v27, %v7153_v25  ;;  %3968 = vmatpush.msra.mxu1 %v955_v18  ;;  %v4795_v27 = vld [vmem:[%s5168_s26 + $0xb38] sm:$0xff]  ;;  %v4804_v18 = vld [vmem:[%s5168_s26 + $0xc08] sm:$0xff] }
 0x5e3   : > { %v7541_v23 = vadd.f32 %v3763_v24, %v3651_v58  ;;  %v4793_v24 = vld [vmem:[%s5168_s26 + $0xb20] sm:$0xff]  ;;  %v4794_v58 = vld [vmem:[%s5168_s26 + $0xb30] sm:$0xff] }
 0x5e4   : > { %v3540_v60 = vpop.f32.mrf.mxu1  ;;  %3474 = vmatmul.f32.gmra.mxu0 %v4785_v35 }
 0x5e5   : > { %3700 = vmatmul.f32.gmra.mxu2 %v4786_v46  ;;  %3813 = vmatmul.f32.gmra.mxu3 %v4787_v37  ;;  %v3541_v4 = vadd.f32 %v3540_v60, %v3428_v39  ;;  %v4796_v39 = vld [vmem:[%s5168_s26 + $0xb28] sm:$0xff] }
 0x5e7   : > { %3587 = vmatmul.f32.gmra.mxu1 %v4788_v16 }
 0x5e8   : > { %v3653_v44 = vpop.f32.mrf.mxu2  ;;  %v3766_v48 = vpop.f32.mrf.mxu3 }
 0x5e9   : > { %v3654_v52 = vadd.f32 %v3653_v44, %v3541_v4  ;;  %v3430_v25 = vpop.f32.mrf.mxu0  ;;  %v4797_v44 = vld [vmem:[%s5168_s26 + $0xb90] sm:$0xff] }
 0x5ea   : > { %v3431_v5 = vadd.f32 %v3430_v25, %v7172_v55  ;;  %v923_v55 = vld [vmem:[%s7934_s1 + $0xa18] sm:$0xff]  ;;  %v985_v25 = vld [vmem:[%s7934_s1 + $0xc08] sm:$0xff] }
 0x5eb   : > { %v7548_v11 = vadd.f32 %v3766_v48, %v3654_v52  ;;  %3855 = vmatpush.msra.mxu0 %v923_v55  ;;  %v4798_v48 = vld [vmem:[%s5168_s26 + $0xba0] sm:$0xff]  ;;  %v4799_v52 = vld [vmem:[%s5168_s26 + $0xba8] sm:$0xff]  ;;  %4082 = vmatpush.msra.mxu2 %v985_v25 }
 0x5ec   : > { %v3543_v26 = vpop.f32.mrf.mxu1  ;;  %3477 = vmatmul.f32.gmra.mxu0 %v4789_v54 }
 0x5ed   : > { %3703 = vmatmul.f32.gmra.mxu2 %v4790_v14  ;;  %3816 = vmatmul.f32.gmra.mxu3 %v4791_v50  ;;  %v3544_v43 = vadd.f32 %v3543_v26, %v3431_v5  ;;  %v4800_v26 = vld [vmem:[%s5168_s26 + $0xb98] sm:$0xff] }
 0x5ef   : > { %3590 = vmatmul.f32.gmra.mxu1 %v4792_v10 }
 0x5f0   : > { %v3656_v0 = vpop.f32.mrf.mxu2  ;;  %v3769_v32 = vpop.f32.mrf.mxu3 }
 0x5f1   : > { %v3657_v53 = vadd.f32 %v3656_v0, %v3544_v43  ;;  %v3433_v41 = vpop.f32.mrf.mxu0  ;;  %v953_v43 = vld [vmem:[%s7934_s1 + $0xb08] sm:$0xff]  ;;  %v4801_v0 = vld [vmem:[%s5168_s26 + $0xc00] sm:$0xff] }
 0x5f2   : > { %v3434_v21 = vadd.f32 %v3433_v41, %v7179_v63  ;;  %3969 = vmatpush.msra.mxu1 %v953_v43 }
 0x5f3   : > { %v7567_v3 = vadd.f32 %v3769_v32, %v3657_v53  ;;  %v4802_v32 = vld [vmem:[%s5168_s26 + $0xc10] sm:$0xff]  ;;  %v4803_v53 = vld [vmem:[%s5168_s26 + $0xc18] sm:$0xff] }
 0x5f4   : > { %v3546_v12 = vpop.f32.mrf.mxu1  ;;  %3480 = vmatmul.f32.gmra.mxu0 %v4793_v24 }
 0x5f5   : > { %3706 = vmatmul.f32.gmra.mxu2 %v4794_v58  ;;  %3819 = vmatmul.f32.gmra.mxu3 %v4795_v27  ;;  %v3547_v7 = vadd.f32 %v3546_v12, %v3434_v21 }
 0x5f7   : > { %3593 = vmatmul.f32.gmra.mxu1 %v4796_v39  ;;  %v4805_v39 = vld [vmem:[%s5168_s26 + $0xc70] sm:$0xff] }
 0x5f8   : > { %v3659_v60 = vpop.f32.mrf.mxu2  ;;  %v3772_v35 = vpop.f32.mrf.mxu3 }
 0x5f9   : > { %v3660_v46 = vadd.f32 %v3659_v60, %v3547_v7  ;;  %v3436_v63 = vpop.f32.mrf.mxu0  ;;  %v4806_v60 = vld [vmem:[%s5168_s26 + $0xc80] sm:$0xff] }
 0x5fa   : > { %v3437_v37 = vadd.f32 %v3436_v63, %v7198_v31  ;;  %v921_v31 = vld [vmem:[%s7934_s1 + $0xa08] sm:$0xff]  ;;  %v4808_v63 = vld [vmem:[%s5168_s26 + $0xc78] sm:$0xff] }
 0x5fb   : > { %v7574_v4 = vadd.f32 %v3772_v35, %v3660_v46  ;;  %3856 = vmatpush.msra.mxu0 %v921_v31  ;;  %v4807_v35 = vld [vmem:[%s5168_s26 + $0xc88] sm:$0xff]  ;;  %v4811_v31 = vld [vmem:[%s5168_s26 + $0xcf8] sm:$0xff] }
 0x5fc   : > { %v3549_v16 = vpop.f32.mrf.mxu1  ;;  %3483 = vmatmul.f32.gmra.mxu0 %v4797_v44 }
 0x5fd   : > { %3709 = vmatmul.f32.gmra.mxu2 %v4798_v48  ;;  %3822 = vmatmul.f32.gmra.mxu3 %v4799_v52  ;;  %v3550_v5 = vadd.f32 %v3549_v16, %v3437_v37 }
 0x5ff   : > { %3596 = vmatmul.f32.gmra.mxu1 %v4800_v26  ;;  %v4810_v26 = vld [vmem:[%s5168_s26 + $0xcf0] sm:$0xff] }
 0x600   : > { %v3662_v54 = vpop.f32.mrf.mxu2  ;;  %v3775_v14 = vpop.f32.mrf.mxu3 }
 0x601   : > { %v3663_v50 = vadd.f32 %v3662_v54, %v3550_v5  ;;  %v3439_v45 = vpop.f32.mrf.mxu0  ;;  %v4809_v5 = vld [vmem:[%s5168_s26 + $0xce0] sm:$0xff] }
 0x602   : > { %v3440_v10 = vadd.f32 %v3439_v45, %v7205_v62 }
 0x603   : > { %v7590_v55 = vadd.f32 %v3775_v14, %v3663_v50  ;;  %v4812_v14 = vld [vmem:[%s5168_s26 + $0xce8] sm:$0xff] }
 0x604   : > { %v3552_v29 = vpop.f32.mrf.mxu1  ;;  %3486 = vmatmul.f32.gmra.mxu0 %v4801_v0 }
 0x605   : > { %3712 = vmatmul.f32.gmra.mxu2 %v4802_v32  ;;  %3825 = vmatmul.f32.gmra.mxu3 %v4803_v53  ;;  %v3553_v41 = vadd.f32 %v3552_v29, %v3440_v10  ;;  %v4813_v32 = vld [vmem:[%s5168_s26 + $0xd50] sm:$0xff]  ;;  %v4814_v53 = vld [vmem:[%s5168_s26 + $0xd60] sm:$0xff] }
 0x607   : > { %3599 = vmatmul.f32.gmra.mxu1 %v4804_v18 }
 0x608   : > { %v3665_v21 = vpop.f32.mrf.mxu2  ;;  %v3778_v12 = vpop.f32.mrf.mxu3 }
 0x609   : > { %v3666_v24 = vadd.f32 %v3665_v21, %v3553_v41  ;;  %v3442_v62 = vpop.f32.mrf.mxu0  ;;  %v4815_v41 = vld [vmem:[%s5168_s26 + $0xd68] sm:$0xff]  ;;  %v4816_v21 = vld [vmem:[%s5168_s26 + $0xd58] sm:$0xff] }
 0x60a   : > { %v3443_v58 = vadd.f32 %v3442_v62, %v7224_v15 }
 0x60b   : > { %v7597_v27 = vadd.f32 %v3778_v12, %v3666_v24 }
 0x60c   : > { %v3555_v7 = vpop.f32.mrf.mxu1  ;;  %3489 = vmatmul.f32.gmra.mxu0 %v4805_v39 }
 0x60d   : > { %3715 = vmatmul.f32.gmra.mxu2 %v4806_v60  ;;  %3828 = vmatmul.f32.gmra.mxu3 %v4807_v35  ;;  %v3556_v46 = vadd.f32 %v3555_v7, %v3443_v58  ;;  %v4817_v60 = vld [vmem:[%s5168_s26 + $0xdc0] sm:$0xff]  ;;  %v4818_v35 = vld [vmem:[%s5168_s26 + $0xdd0] sm:$0xff] }
 0x60f   : > { %3602 = vmatmul.f32.gmra.mxu1 %v4808_v63 }
 0x610   : > { %v3668_v37 = vpop.f32.mrf.mxu2  ;;  %v3781_v16 = vpop.f32.mrf.mxu3 }
 0x611   : > { %v3669_v44 = vadd.f32 %v3668_v37, %v3556_v46  ;;  %v3445_v15 = vpop.f32.mrf.mxu0  ;;  %v4819_v46 = vld [vmem:[%s5168_s26 + $0xdd8] sm:$0xff]  ;;  %v4820_v37 = vld [vmem:[%s5168_s26 + $0xdc8] sm:$0xff] }
 0x612   : > { %v3446_v48 = vadd.f32 %v3445_v15, %v7231_v47 }
 0x613   : > { %v7604_v52 = vadd.f32 %v3781_v16, %v3669_v44 }
 0x614   : > { %v3558_v25 = vpop.f32.mrf.mxu1  ;;  %3492 = vmatmul.f32.gmra.mxu0 %v4809_v5 }
 0x615   : > { %3718 = vmatmul.f32.gmra.mxu2 %v4810_v26  ;;  %3831 = vmatmul.f32.gmra.mxu3 %v4811_v31  ;;  %v3559_v54 = vadd.f32 %v3558_v25, %v3446_v48  ;;  %v4821_v26 = vld [vmem:[%s5168_s26 + $0x50] sm:$0xff]  ;;  %v4822_v31 = vld [vmem:[%s5168_s26 + $0x60] sm:$0xff] }
 0x617   : > { %3605 = vmatmul.f32.gmra.mxu1 %v4812_v14 }
 0x618   : > { %v3671_v50 = vpop.f32.mrf.mxu2  ;;  %v3784_v45 = vpop.f32.mrf.mxu3 }
 0x619   : > { %v3672_v43 = vadd.f32 %v3671_v50, %v3559_v54  ;;  %v3448_v47 = vpop.f32.mrf.mxu0  ;;  %v4823_v54 = vld [vmem:[%s5168_s26 + $0x68] sm:$0xff]  ;;  %v4824_v50 = vld [vmem:[%s5168_s26 + $0x58] sm:$0xff] }
 0x61a   : > { %v3449_v10 = vadd.f32 %v3448_v47, %v7247_v2 }
 0x61b   : > { %v7611_v29 = vadd.f32 %v3784_v45, %v3672_v43 }
 0x61c   : > { %v3561_v0 = vpop.f32.mrf.mxu1  ;;  %3495 = vmatmul.f32.gmra.mxu0 %v4813_v32 }
 0x61d   : > { %3721 = vmatmul.f32.gmra.mxu2 %v4814_v53  ;;  %3834 = vmatmul.f32.gmra.mxu3 %v4815_v41  ;;  %v3562_v18 = vadd.f32 %v3561_v0, %v3449_v10  ;;  %v4825_v53 = vld [vmem:[%s5168_s26 + $0xc0] sm:$0xff]  ;;  %v4826_v41 = vld [vmem:[%s5168_s26 + $0xd0] sm:$0xff] }
 0x61f   : > { %3608 = vmatmul.f32.gmra.mxu1 %v4816_v21 }
 0x620   : > { %v3674_v12 = vpop.f32.mrf.mxu2  ;;  %v3787_v24 = vpop.f32.mrf.mxu3 }
 0x621   : > { %v3675_v62 = vadd.f32 %v3674_v12, %v3562_v18  ;;  %v3451_v2 = vpop.f32.mrf.mxu0  ;;  %v4827_v18 = vld [vmem:[%s5168_s26 + $0xd8] sm:$0xff]  ;;  %v4828_v12 = vld [vmem:[%s5168_s26 + $0xc8] sm:$0xff] }
 0x622   : > { %v3452_v58 = vadd.f32 %v3451_v2, %v7254_v17 }
 0x623   : > { %v7618_v7 = vadd.f32 %v3787_v24, %v3675_v62 }
 0x624   : > { %v3564_v39 = vpop.f32.mrf.mxu1  ;;  %3498 = vmatmul.f32.gmra.mxu0 %v4817_v60 }
 0x625   : > { %3724 = vmatmul.f32.gmra.mxu2 %v4818_v35  ;;  %3837 = vmatmul.f32.gmra.mxu3 %v4819_v46  ;;  %v3565_v63 = vadd.f32 %v3564_v39, %v3452_v58  ;;  %v4829_v35 = vld [vmem:[%s5168_s26 + $0x130] sm:$0xff]  ;;  %v4830_v46 = vld [vmem:[%s5168_s26 + $0x140] sm:$0xff] }
 0x627   : > { %3611 = vmatmul.f32.gmra.mxu1 %v4820_v37 }
 0x628   : > { %v3677_v16 = vpop.f32.mrf.mxu2  ;;  %v3790_v44 = vpop.f32.mrf.mxu3 }
 0x629   : > { %v3678_v15 = vadd.f32 %v3677_v16, %v3565_v63  ;;  %v3454_v17 = vpop.f32.mrf.mxu0  ;;  %v4831_v63 = vld [vmem:[%s5168_s26 + $0x148] sm:$0xff]  ;;  %v4832_v16 = vld [vmem:[%s5168_s26 + $0x138] sm:$0xff] }
 0x62a   : > { %v3455_v48 = vadd.f32 %v3454_v17, %v7273_v13 }
 0x62b   : > { %v7625_v25 = vadd.f32 %v3790_v44, %v3678_v15 }
 0x62c   : > { %v3567_v5 = vpop.f32.mrf.mxu1  ;;  %3857 = vmatmul.f32.vlgmr.msra.gmra.mxu0 %v4821_v26 }
 0x62d   : > { %4083 = vmatmul.f32.vlgmr.msra.gmra.mxu2 %v4822_v31  ;;  %4457 = vmatmul.msk.f32.vlgmr.msra.gmra.mxu3 %vm1032_vm0, %v4823_v54  ;;  %v3568_v14 = vadd.f32 %v3567_v5, %v3455_v48  ;;  %v4833_v31 = vld [vmem:[%s5168_s26 + $0x1a0] sm:$0xff]  ;;  %v4834_v54 = vld [vmem:[%s5168_s26 + $0x1b0] sm:$0xff] }
 0x62f   : > { %3970 = vmatmul.f32.vlgmr.msra.gmra.mxu1 %v4824_v50 }
 0x630   : > { %v3680_v45 = vpop.f32.mrf.mxu2  ;;  %v3793_v43 = vpop.f32.mrf.mxu3 }
 0x631   : > { %v3681_v13 = vadd.f32 %v3680_v45, %v3568_v14  ;;  %v3457_v47 = vpop.f32.mrf.mxu0  ;;  %v4835_v14 = vld [vmem:[%s5168_s26 + $0x1b8] sm:$0xff]  ;;  %v4836_v45 = vld [vmem:[%s5168_s26 + $0x1a8] sm:$0xff] }
 0x632   : > { %v3458_v10 = vadd.f32 %v3457_v47, %v7280_v19 }
 0x633   : > { %v7633_v0 = vadd.f32 %v3793_v43, %v3681_v13 }
 0x634   : > { %v3570_v32 = vpop.f32.mrf.mxu1  ;;  %3860 = vmatmul.f32.gmra.mxu0 %v4825_v53 }
 0x635   : > { %4086 = vmatmul.f32.gmra.mxu2 %v4826_v41  ;;  %4458 = vmatmul.msk.f32.gmra.mxu3 %vm1032_vm0, %v4827_v18  ;;  %v3571_v21 = vadd.f32 %v3570_v32, %v3458_v10  ;;  %v4837_v41 = vld [vmem:[%s5168_s26 + $0x210] sm:$0xff]  ;;  %v4838_v18 = vld [vmem:[%s5168_s26 + $0x220] sm:$0xff] }
 0x637   : > { %3973 = vmatmul.f32.gmra.mxu1 %v4828_v12 }
 0x638   : > { %v3683_v24 = vpop.f32.mrf.mxu2  ;;  %v3796_v62 = vpop.f32.mrf.mxu3 }
 0x639   : > { %v3684_v19 = vadd.f32 %v3683_v24, %v3571_v21  ;;  %v3460_v2 = vpop.f32.mrf.mxu0  ;;  %v4839_v21 = vld [vmem:[%s5168_s26 + $0x228] sm:$0xff]  ;;  %v4840_v24 = vld [vmem:[%s5168_s26 + $0x218] sm:$0xff] }
 0x63a   : > { %v3461_v58 = vadd.f32 %v3460_v2, %v7296_v28 }
 0x63b   : > { %v7641_v39 = vadd.f32 %v3796_v62, %v3684_v19 }
 0x63c   : > { %v3573_v60 = vpop.f32.mrf.mxu1  ;;  %3863 = vmatmul.f32.gmra.mxu0 %v4829_v35 }
 0x63d   : > { %4089 = vmatmul.f32.gmra.mxu2 %v4830_v46  ;;  %4459 = vmatmul.msk.f32.gmra.mxu3 %vm1032_vm0, %v4831_v63  ;;  %v3574_v37 = vadd.f32 %v3573_v60, %v3461_v58  ;;  %v4841_v46 = vld [vmem:[%s5168_s26 + $0x280] sm:$0xff]  ;;  %v4842_v63 = vld [vmem:[%s5168_s26 + $0x290] sm:$0xff] }
 0x63f   : > { %3976 = vmatmul.f32.gmra.mxu1 %v4832_v16 }
 0x640   : > { %v3686_v44 = vpop.f32.mrf.mxu2  ;;  %v3799_v15 = vpop.f32.mrf.mxu3 }
 0x641   : > { %v3687_v28 = vadd.f32 %v3686_v44, %v3574_v37  ;;  %v3463_v17 = vpop.f32.mrf.mxu0  ;;  %v4843_v37 = vld [vmem:[%s5168_s26 + $0x298] sm:$0xff]  ;;  %v4844_v44 = vld [vmem:[%s5168_s26 + $0x288] sm:$0xff] }
 0x642   : > { %v3464_v48 = vadd.f32 %v3463_v17, %v7303_v61 }
 0x643   : > { %v7649_v5 = vadd.f32 %v3799_v15, %v3687_v28 }
 0x644   : > { %v3576_v26 = vpop.f32.mrf.mxu1  ;;  %3866 = vmatmul.f32.gmra.mxu0 %v4833_v31 }
 0x645   : > { %4092 = vmatmul.f32.gmra.mxu2 %v4834_v54  ;;  %4460 = vmatmul.msk.f32.gmra.mxu3 %vm1032_vm0, %v4835_v14  ;;  %v3577_v50 = vadd.f32 %v3576_v26, %v3464_v48  ;;  %v4845_v54 = vld [vmem:[%s5168_s26 + $0x2f0] sm:$0xff]  ;;  %v4846_v14 = vld [vmem:[%s5168_s26 + $0x300] sm:$0xff] }
 0x647   : > { %3979 = vmatmul.f32.gmra.mxu1 %v4836_v45 }
 0x648   : > { %v3689_v43 = vpop.f32.mrf.mxu2  ;;  %v3802_v13 = vpop.f32.mrf.mxu3 }
 0x649   : > { %v3690_v61 = vadd.f32 %v3689_v43, %v3577_v50  ;;  %v3466_v47 = vpop.f32.mrf.mxu0  ;;  %v4847_v50 = vld [vmem:[%s5168_s26 + $0x308] sm:$0xff]  ;;  %v4848_v43 = vld [vmem:[%s5168_s26 + $0x2f8] sm:$0xff] }
 0x64a   : > { %v3467_v10 = vadd.f32 %v3466_v47, %v7322_v56 }
 0x64b   : > { %v7657_v32 = vadd.f32 %v3802_v13, %v3690_v61 }
 0x64c   : > { %v3579_v53 = vpop.f32.mrf.mxu1  ;;  %3869 = vmatmul.f32.gmra.mxu0 %v4837_v41 }
 0x64d   : > { %4095 = vmatmul.f32.gmra.mxu2 %v4838_v18  ;;  %4461 = vmatmul.msk.f32.gmra.mxu3 %vm1032_vm0, %v4839_v21  ;;  %v3580_v12 = vadd.f32 %v3579_v53, %v3467_v10  ;;  %v4849_v18 = vld [vmem:[%s5168_s26 + $0x360] sm:$0xff]  ;;  %v4850_v21 = vld [vmem:[%s5168_s26 + $0x370] sm:$0xff] }
 0x64f   : > { %3982 = vmatmul.f32.gmra.mxu1 %v4840_v24 }
 0x650   : > { %v3692_v62 = vpop.f32.mrf.mxu2  ;;  %v3805_v19 = vpop.f32.mrf.mxu3 }
 0x651   : > { %v3693_v56 = vadd.f32 %v3692_v62, %v3580_v12  ;;  %v3469_v2 = vpop.f32.mrf.mxu0  ;;  %v4851_v12 = vld [vmem:[%s5168_s26 + $0x378] sm:$0xff]  ;;  %v4852_v62 = vld [vmem:[%s5168_s26 + $0x368] sm:$0xff] }
 0x652   : > { %v3470_v58 = vadd.f32 %v3469_v2, %v7329_v1 }
 0x653   : > { %v7665_v60 = vadd.f32 %v3805_v19, %v3693_v56 }
 0x654   : > { %v3582_v35 = vpop.f32.mrf.mxu1  ;;  %3872 = vmatmul.f32.gmra.mxu0 %v4841_v46 }
 0x655   : > { %4098 = vmatmul.f32.gmra.mxu2 %v4842_v63  ;;  %4462 = vmatmul.msk.f32.gmra.mxu3 %vm1032_vm0, %v4843_v37  ;;  %v3583_v16 = vadd.f32 %v3582_v35, %v3470_v58  ;;  %v4853_v63 = vld [vmem:[%s5168_s26 + $0x3d0] sm:$0xff]  ;;  %v4854_v37 = vld [vmem:[%s5168_s26 + $0x3e0] sm:$0xff] }
 0x657   : > { %3985 = vmatmul.f32.gmra.mxu1 %v4844_v44 }
 0x658   : > { %v3695_v15 = vpop.f32.mrf.mxu2  ;;  %v3808_v28 = vpop.f32.mrf.mxu3 }
 0x659   : > { %v3696_v1 = vadd.f32 %v3695_v15, %v3583_v16  ;;  %v3472_v17 = vpop.f32.mrf.mxu0  ;;  %v4855_v16 = vld [vmem:[%s5168_s26 + $0x3e8] sm:$0xff]  ;;  %v4856_v15 = vld [vmem:[%s5168_s26 + $0x3d8] sm:$0xff] }
 0x65a   : > { %v3473_v48 = vadd.f32 %v3472_v17, %v7345_v51 }
 0x65b   : > { %v7673_v26 = vadd.f32 %v3808_v28, %v3696_v1 }
 0x65c   : > { %v3585_v31 = vpop.f32.mrf.mxu1  ;;  %3875 = vmatmul.f32.gmra.mxu0 %v4845_v54 }
 0x65d   : > { %4101 = vmatmul.f32.gmra.mxu2 %v4846_v14  ;;  %4463 = vmatmul.msk.f32.gmra.mxu3 %vm1032_vm0, %v4847_v50  ;;  %v3586_v45 = vadd.f32 %v3585_v31, %v3473_v48  ;;  %v4857_v14 = vld [vmem:[%s5168_s26 + $0x440] sm:$0xff]  ;;  %v4858_v50 = vld [vmem:[%s5168_s26 + $0x450] sm:$0xff] }
 0x65f   : > { %3988 = vmatmul.f32.gmra.mxu1 %v4848_v43 }
 0x660   : > { %v3698_v13 = vpop.f32.mrf.mxu2  ;;  %v3811_v61 = vpop.f32.mrf.mxu3 }
 0x661   : > { %v3699_v51 = vadd.f32 %v3698_v13, %v3586_v45  ;;  %v3475_v47 = vpop.f32.mrf.mxu0  ;;  %v4859_v45 = vld [vmem:[%s5168_s26 + $0x458] sm:$0xff]  ;;  %v4860_v13 = vld [vmem:[%s5168_s26 + $0x448] sm:$0xff] }
 0x662   : > { %v3476_v10 = vadd.f32 %v3475_v47, %v7352_v8 }
 0x663   : > { %v7681_v53 = vadd.f32 %v3811_v61, %v3699_v51 }
 0x664   : > { %v3588_v41 = vpop.f32.mrf.mxu1  ;;  %3878 = vmatmul.f32.gmra.mxu0 %v4849_v18 }
 0x665   : > { %4104 = vmatmul.f32.gmra.mxu2 %v4850_v21  ;;  %4464 = vmatmul.msk.f32.gmra.mxu3 %vm1032_vm0, %v4851_v12  ;;  %v3589_v24 = vadd.f32 %v3588_v41, %v3476_v10  ;;  %v4861_v21 = vld [vmem:[%s5168_s26 + $0x4b0] sm:$0xff]  ;;  %v4862_v12 = vld [vmem:[%s5168_s26 + $0x4c0] sm:$0xff] }
 0x667   : > { %3991 = vmatmul.f32.gmra.mxu1 %v4852_v62 }
 0x668   : > { %v3701_v19 = vpop.f32.mrf.mxu2  ;;  %v3814_v56 = vpop.f32.mrf.mxu3 }
 0x669   : > { %v3702_v8 = vadd.f32 %v3701_v19, %v3589_v24  ;;  %v3478_v2 = vpop.f32.mrf.mxu0  ;;  %v4863_v24 = vld [vmem:[%s5168_s26 + $0x4c8] sm:$0xff]  ;;  %v4864_v19 = vld [vmem:[%s5168_s26 + $0x4b8] sm:$0xff] }
 0x66a   : > { %v3479_v58 = vadd.f32 %v3478_v2, %v7371_v57 }
 0x66b   : > { %v7689_v35 = vadd.f32 %v3814_v56, %v3702_v8 }
 0x66c   : > { %v3591_v46 = vpop.f32.mrf.mxu1  ;;  %3881 = vmatmul.f32.gmra.mxu0 %v4853_v63 }
 0x66d   : > { %4107 = vmatmul.f32.gmra.mxu2 %v4854_v37  ;;  %4465 = vmatmul.msk.f32.gmra.mxu3 %vm1032_vm0, %v4855_v16  ;;  %v3592_v44 = vadd.f32 %v3591_v46, %v3479_v58  ;;  %v4865_v37 = vld [vmem:[%s5168_s26 + $0x520] sm:$0xff]  ;;  %v4866_v16 = vld [vmem:[%s5168_s26 + $0x530] sm:$0xff] }
 0x66f   : > { %3994 = vmatmul.f32.gmra.mxu1 %v4856_v15 }
 0x670   : > { %v3704_v28 = vpop.f32.mrf.mxu2  ;;  %v3817_v1 = vpop.f32.mrf.mxu3 }
 0x671   : > { %v3705_v57 = vadd.f32 %v3704_v28, %v3592_v44  ;;  %v3481_v17 = vpop.f32.mrf.mxu0  ;;  %v4867_v44 = vld [vmem:[%s5168_s26 + $0x538] sm:$0xff]  ;;  %v4868_v28 = vld [vmem:[%s5168_s26 + $0x528] sm:$0xff] }
 0x672   : > { %v3482_v48 = vadd.f32 %v3481_v17, %v7378_v33 }
 0x673   : > { %v7697_v31 = vadd.f32 %v3817_v1, %v3705_v57 }
 0x674   : > { %v3594_v54 = vpop.f32.mrf.mxu1  ;;  %3884 = vmatmul.f32.gmra.mxu0 %v4857_v14 }
 0x675   : > { %4110 = vmatmul.f32.gmra.mxu2 %v4858_v50  ;;  %4466 = vmatmul.msk.f32.gmra.mxu3 %vm1032_vm0, %v4859_v45  ;;  %v3595_v43 = vadd.f32 %v3594_v54, %v3482_v48  ;;  %v4869_v50 = vld [vmem:[%s5168_s26 + $0x590] sm:$0xff]  ;;  %v4870_v45 = vld [vmem:[%s5168_s26 + $0x5a0] sm:$0xff] }
 0x677   : > { %3997 = vmatmul.f32.gmra.mxu1 %v4860_v13 }
 0x678   : > { %v3707_v61 = vpop.f32.mrf.mxu2  ;;  %v3820_v51 = vpop.f32.mrf.mxu3 }
 0x679   : > { %v3708_v33 = vadd.f32 %v3707_v61, %v3595_v43  ;;  %v3484_v47 = vpop.f32.mrf.mxu0  ;;  %v4871_v43 = vld [vmem:[%s5168_s26 + $0x5a8] sm:$0xff]  ;;  %v4872_v61 = vld [vmem:[%s5168_s26 + $0x598] sm:$0xff] }
 0x67a   : > { %v3485_v10 = vadd.f32 %v3484_v47, %v7394_v49 }
 0x67b   : > { %v7705_v41 = vadd.f32 %v3820_v51, %v3708_v33 }
 0x67c   : > { %v3597_v18 = vpop.f32.mrf.mxu1  ;;  %3887 = vmatmul.f32.gmra.mxu0 %v4861_v21 }
 0x67d   : > { %4113 = vmatmul.f32.gmra.mxu2 %v4862_v12  ;;  %4467 = vmatmul.msk.f32.gmra.mxu3 %vm1032_vm0, %v4863_v24  ;;  %v3598_v62 = vadd.f32 %v3597_v18, %v3485_v10  ;;  %v4873_v12 = vld [vmem:[%s5168_s26 + $0x600] sm:$0xff]  ;;  %v4874_v24 = vld [vmem:[%s5168_s26 + $0x610] sm:$0xff] }
 0x67f   : > { %4000 = vmatmul.f32.gmra.mxu1 %v4864_v19 }
 0x680   : > { %v3710_v56 = vpop.f32.mrf.mxu2  ;;  %v3823_v8 = vpop.f32.mrf.mxu3 }
 0x681   : > { %v3711_v49 = vadd.f32 %v3710_v56, %v3598_v62  ;;  %v3487_v2 = vpop.f32.mrf.mxu0  ;;  %v4875_v62 = vld [vmem:[%s5168_s26 + $0x618] sm:$0xff]  ;;  %v4876_v56 = vld [vmem:[%s5168_s26 + $0x608] sm:$0xff] }
 0x682   : > { %v3488_v58 = vadd.f32 %v3487_v2, %v7401_v34 }
 0x683   : > { %v7713_v46 = vadd.f32 %v3823_v8, %v3711_v49 }
 0x684   : > { %v3600_v63 = vpop.f32.mrf.mxu1  ;;  %3890 = vmatmul.f32.gmra.mxu0 %v4865_v37 }
 0x685   : > { %4116 = vmatmul.f32.gmra.mxu2 %v4866_v16  ;;  %4468 = vmatmul.msk.f32.gmra.mxu3 %vm1032_vm0, %v4867_v44  ;;  %v3601_v15 = vadd.f32 %v3600_v63, %v3488_v58  ;;  %v4877_v16 = vld [vmem:[%s5168_s26 + $0x670] sm:$0xff]  ;;  %v4878_v44 = vld [vmem:[%s5168_s26 + $0x680] sm:$0xff] }
 0x687   : > { %4003 = vmatmul.f32.gmra.mxu1 %v4868_v28 }
 0x688   : > { %v3713_v1 = vpop.f32.mrf.mxu2  ;;  %v3826_v57 = vpop.f32.mrf.mxu3 }
 0x689   : > { %v3714_v34 = vadd.f32 %v3713_v1, %v3601_v15  ;;  %v3490_v17 = vpop.f32.mrf.mxu0  ;;  %v4879_v15 = vld [vmem:[%s5168_s26 + $0x688] sm:$0xff]  ;;  %v4880_v1 = vld [vmem:[%s5168_s26 + $0x678] sm:$0xff] }
 0x68a   : > { %v3491_v48 = vadd.f32 %v3490_v17, %v7420_v20 }
 0x68b   : > { %v7721_v54 = vadd.f32 %v3826_v57, %v3714_v34 }
 0x68c   : > { %v3603_v14 = vpop.f32.mrf.mxu1  ;;  %3893 = vmatmul.f32.gmra.mxu0 %v4869_v50 }
 0x68d   : > { %4119 = vmatmul.f32.gmra.mxu2 %v4870_v45  ;;  %4469 = vmatmul.msk.f32.gmra.mxu3 %vm1032_vm0, %v4871_v43  ;;  %v3604_v13 = vadd.f32 %v3603_v14, %v3491_v48  ;;  %v4881_v45 = vld [vmem:[%s5168_s26 + $0x6e0] sm:$0xff]  ;;  %v4882_v43 = vld [vmem:[%s5168_s26 + $0x6f0] sm:$0xff] }
 0x68f   : > { %4006 = vmatmul.f32.gmra.mxu1 %v4872_v61 }
 0x690   : > { %v3716_v51 = vpop.f32.mrf.mxu2  ;;  %v3829_v33 = vpop.f32.mrf.mxu3 }
 0x691   : > { %v3717_v20 = vadd.f32 %v3716_v51, %v3604_v13  ;;  %v3493_v47 = vpop.f32.mrf.mxu0  ;;  %v4883_v13 = vld [vmem:[%s5168_s26 + $0x6f8] sm:$0xff]  ;;  %v4884_v51 = vld [vmem:[%s5168_s26 + $0x6e8] sm:$0xff] }
 0x692   : > { %v3494_v10 = vadd.f32 %v3493_v47, %v7427_v30 }
 0x693   : > { %v7729_v18 = vadd.f32 %v3829_v33, %v3717_v20 }
 0x694   : > { %v3606_v21 = vpop.f32.mrf.mxu1  ;;  %3896 = vmatmul.f32.gmra.mxu0 %v4873_v12 }
 0x695   : > { %4122 = vmatmul.f32.gmra.mxu2 %v4874_v24  ;;  %4470 = vmatmul.msk.f32.gmra.mxu3 %vm1032_vm0, %v4875_v62  ;;  %v3607_v19 = vadd.f32 %v3606_v21, %v3494_v10  ;;  %v4885_v24 = vld [vmem:[%s5168_s26 + $0x750] sm:$0xff]  ;;  %v4886_v62 = vld [vmem:[%s5168_s26 + $0x760] sm:$0xff] }
 0x697   : > { %4009 = vmatmul.f32.gmra.mxu1 %v4876_v56 }
 0x698   : > { %v3719_v8 = vpop.f32.mrf.mxu2  ;;  %v3832_v49 = vpop.f32.mrf.mxu3 }
 0x699   : > { %v3720_v30 = vadd.f32 %v3719_v8, %v3607_v19  ;;  %v3496_v2 = vpop.f32.mrf.mxu0  ;;  %v4887_v19 = vld [vmem:[%s5168_s26 + $0x768] sm:$0xff]  ;;  %v4888_v8 = vld [vmem:[%s5168_s26 + $0x758] sm:$0xff] }
 0x69a   : > { %v3497_v58 = vadd.f32 %v3496_v2, %v7443_v40 }
 0x69b   : > { %v7737_v63 = vadd.f32 %v3832_v49, %v3720_v30 }
 0x69c   : > { %v3609_v37 = vpop.f32.mrf.mxu1  ;;  %3899 = vmatmul.f32.gmra.mxu0 %v4877_v16 }
 0x69d   : > { %4125 = vmatmul.f32.gmra.mxu2 %v4878_v44  ;;  %4471 = vmatmul.msk.f32.gmra.mxu3 %vm1032_vm0, %v4879_v15  ;;  %v3610_v28 = vadd.f32 %v3609_v37, %v3497_v58  ;;  %v4889_v44 = vld [vmem:[%s5168_s26 + $0x7c0] sm:$0xff]  ;;  %v4890_v15 = vld [vmem:[%s5168_s26 + $0x7d0] sm:$0xff] }
 0x69f   : > { %4012 = vmatmul.f32.gmra.mxu1 %v4880_v1 }
 0x6a0   : > { %v3722_v57 = vpop.f32.mrf.mxu2  ;;  %v3835_v34 = vpop.f32.mrf.mxu3 }
 0x6a1   : > { %v3723_v40 = vadd.f32 %v3722_v57, %v3610_v28  ;;  %v3499_v17 = vpop.f32.mrf.mxu0  ;;  %v4891_v28 = vld [vmem:[%s5168_s26 + $0x7d8] sm:$0xff]  ;;  %v4892_v57 = vld [vmem:[%s5168_s26 + $0x7c8] sm:$0xff] }
 0x6a2   : > { %v3500_v48 = vadd.f32 %v3499_v17, %v7449_v59 }
 0x6a3   : > { %v7745_v14 = vadd.f32 %v3835_v34, %v3723_v40 }
 0x6a4   : > { %v3612_v50 = vpop.f32.mrf.mxu1  ;;  %3902 = vmatmul.f32.gmra.mxu0 %v4881_v45 }
 0x6a5   : > { %4128 = vmatmul.f32.gmra.mxu2 %v4882_v43  ;;  %4472 = vmatmul.msk.f32.gmra.mxu3 %vm1032_vm0, %v4883_v13  ;;  %v3613_v61 = vadd.f32 %v3612_v50, %v3500_v48  ;;  %v4893_v43 = vld [vmem:[%s5168_s26 + $0x830] sm:$0xff]  ;;  %v4894_v13 = vld [vmem:[%s5168_s26 + $0x840] sm:$0xff] }
 0x6a7   : > { %4015 = vmatmul.f32.gmra.mxu1 %v4884_v51 }
 0x6a8   : > { %v3725_v33 = vpop.f32.mrf.mxu2  ;;  %v3838_v20 = vpop.f32.mrf.mxu3 }
 0x6a9   : > { %v3726_v59 = vadd.f32 %v3725_v33, %v3613_v61  ;;  %v3858_v47 = vpop.f32.mrf.mxu0  ;;  %v4895_v61 = vld [vmem:[%s5168_s26 + $0x848] sm:$0xff]  ;;  %v4896_v33 = vld [vmem:[%s5168_s26 + $0x838] sm:$0xff] }
 0x6aa   : > { %v3859_v21 = vadd.f32 %v3858_v47, %v7469_v42 }
 0x6ab   : > { %v7752_v10 = vadd.f32 %v3838_v20, %v3726_v59 }
 0x6ac   : > { %v3971_v12 = vpop.f32.mrf.mxu1  ;;  %3905 = vmatmul.f32.gmra.mxu0 %v4885_v24 }
 0x6ad   : > { %4131 = vmatmul.f32.gmra.mxu2 %v4886_v62  ;;  %4473 = vmatmul.msk.f32.gmra.mxu3 %vm1032_vm0, %v4887_v19  ;;  %v3972_v56 = vadd.f32 %v3971_v12, %v3859_v21  ;;  %v4897_v62 = vld [vmem:[%s5168_s26 + $0x8a0] sm:$0xff]  ;;  %v4898_v19 = vld [vmem:[%s5168_s26 + $0x8b0] sm:$0xff] }
 0x6af   : > { %4018 = vmatmul.f32.gmra.mxu1 %v4888_v8 }
 0x6b0   : > { %v4084_v49 = vpop.f32.mrf.mxu2  ;;  %v4197_v30 = vpop.f32.mrf.mxu3 }
 0x6b1   : > { %v4085_v2 = vadd.f32 %v4084_v49, %v3972_v56  ;;  %v3861_v42 = vpop.f32.mrf.mxu0  ;;  %v4899_v56 = vld [vmem:[%s5168_s26 + $0x8b8] sm:$0xff]  ;;  %v4900_v49 = vld [vmem:[%s5168_s26 + $0x8a8] sm:$0xff] }
 0x6b2   : > { %v3862_v58 = vadd.f32 %v3861_v42, %v7476_v9 }
 0x6b3   : > { %v4198_v37 = vadd.f32 %v4197_v30, %v4085_v2 }
 0x6b4   : > { %v3974_v16 = vpop.f32.mrf.mxu1  ;;  %3908 = vmatmul.f32.gmra.mxu0 %v4889_v44  ;;  %v4901_v44 = vld [vmem:[%s5168_s26 + $0x910] sm:$0xff] }
 0x6b5   : > { %4294 = vst.msk [vmem:[%s6586_s14 + $0x8] sm:$0xff] %vm1032_vm0, %v4198_v37  ;;  %4134 = vmatmul.f32.gmra.mxu2 %v4890_v15  ;;  %4474 = vmatmul.msk.f32.gmra.mxu3 %vm1032_vm0, %v4891_v28  ;;  %v3975_v1 = vadd.f32 %v3974_v16, %v3862_v58  ;;  %v4902_v15 = vld [vmem:[%s5168_s26 + $0x920] sm:$0xff]  ;;  %v4903_v28 = vld [vmem:[%s5168_s26 + $0x928] sm:$0xff] }
 0x6b7   : > { %4021 = vmatmul.f32.gmra.mxu1 %v4892_v57  ;;  %v4904_v57 = vld [vmem:[%s5168_s26 + $0x918] sm:$0xff] }
 0x6b8   : > { %v4087_v9 = vpop.f32.mrf.mxu2  ;;  %v4200_v34 = vpop.f32.mrf.mxu3 }
 0x6b9   : > { %v4088_v40 = vadd.f32 %v4087_v9, %v3975_v1  ;;  %v3864_v17 = vpop.f32.mrf.mxu0 }
 0x6ba   : > { %v3865_v48 = vadd.f32 %v3864_v17, %v7492_v38 }
 0x6bb   : > { %v4201_v50 = vadd.f32 %v4200_v34, %v4088_v40 }
 0x6bc   : > { %v3977_v45 = vpop.f32.mrf.mxu1  ;;  %3911 = vmatmul.f32.gmra.mxu0 %v4893_v43  ;;  %v4906_v43 = vld [vmem:[%s5168_s26 + $0x990] sm:$0xff] }
 0x6bd   : > { %4296 = vst.msk [vmem:[%s6586_s14 + $0x18] sm:$0xff] %vm1032_vm0, %v4201_v50  ;;  %4137 = vmatmul.f32.gmra.mxu2 %v4894_v13  ;;  %4475 = vmatmul.msk.f32.gmra.mxu3 %vm1032_vm0, %v4895_v61  ;;  %v3978_v51 = vadd.f32 %v3977_v45, %v3865_v48  ;;  %v4905_v45 = vld [vmem:[%s5168_s26 + $0x980] sm:$0xff]  ;;  %v4907_v13 = vld [vmem:[%s5168_s26 + $0x998] sm:$0xff] }
 0x6bf   : > { %4024 = vmatmul.f32.gmra.mxu1 %v4896_v33 }
 0x6c0   : > { %v4090_v38 = vpop.f32.mrf.mxu2  ;;  %v4203_v20 = vpop.f32.mrf.mxu3 }
 0x6c1   : > { %v4091_v59 = vadd.f32 %v4090_v38, %v3978_v51  ;;  %v3867_v47 = vpop.f32.mrf.mxu0  ;;  %v4908_v51 = vld [vmem:[%s5168_s26 + $0x988] sm:$0xff] }
 0x6c2   : > { %v3868_v21 = vadd.f32 %v3867_v47, %v7499_v36 }
 0x6c3   : > { %v4204_v12 = vadd.f32 %v4203_v20, %v4091_v59 }
 0x6c4   : > { %v3980_v24 = vpop.f32.mrf.mxu1  ;;  %3914 = vmatmul.f32.gmra.mxu0 %v4897_v62  ;;  %v4911_v62 = vld [vmem:[%s5168_s26 + $0xa08] sm:$0xff] }
 0x6c5   : > { %4298 = vst.msk [vmem:[%s6586_s14 + $0x28] sm:$0xff] %vm1032_vm0, %v4204_v12  ;;  %4140 = vmatmul.f32.gmra.mxu2 %v4898_v19  ;;  %4476 = vmatmul.msk.f32.gmra.mxu3 %vm1032_vm0, %v4899_v56  ;;  %v3981_v8 = vadd.f32 %v3980_v24, %v3868_v21  ;;  %v4909_v12 = vld [vmem:[%s5168_s26 + $0x9f0] sm:$0xff]  ;;  %v4910_v24 = vld [vmem:[%s5168_s26 + $0xa00] sm:$0xff]  ;;  %v4912_v56 = vld [vmem:[%s5168_s26 + $0x9f8] sm:$0xff] }
 0x6c7   : > { %4027 = vmatmul.f32.gmra.mxu1 %v4900_v49 }
 0x6c8   : > { %v4093_v36 = vpop.f32.mrf.mxu2  ;;  %v4206_v30 = vpop.f32.mrf.mxu3 }
 0x6c9   : > { %v4094_v2 = vadd.f32 %v4093_v36, %v3981_v8  ;;  %v3870_v42 = vpop.f32.mrf.mxu0 }
 0x6ca   : > { %v3871_v58 = vadd.f32 %v3870_v42, %v7518_v22 }
 0x6cb   : > { %v4207_v37 = vadd.f32 %v4206_v30, %v4094_v2 }
 0x6cc   : > { %v3983_v16 = vpop.f32.mrf.mxu1  ;;  %3917 = vmatmul.f32.gmra.mxu0 %v4901_v44 }
 0x6cd   : > { %4300 = vst.msk [vmem:[%s6586_s14 + $0x38] sm:$0xff] %vm1032_vm0, %v4207_v37  ;;  %4143 = vmatmul.f32.gmra.mxu2 %v4902_v15  ;;  %4477 = vmatmul.msk.f32.gmra.mxu3 %vm1032_vm0, %v4903_v28  ;;  %v3984_v1 = vadd.f32 %v3983_v16, %v3871_v58  ;;  %v4913_v58 = vld [vmem:[%s5168_s26 + $0xa60] sm:$0xff]  ;;  %v4914_v37 = vld [vmem:[%s5168_s26 + $0xa70] sm:$0xff]  ;;  %v4915_v16 = vld [vmem:[%s5168_s26 + $0xa78] sm:$0xff] }
 0x6ce   : > { %v4916_v15 = vld [vmem:[%s5168_s26 + $0xa68] sm:$0xff] }
 0x6cf   : > { %4030 = vmatmul.f32.gmra.mxu1 %v4904_v57 }
 0x6d0   : > { %v4096_v22 = vpop.f32.mrf.mxu2  ;;  %v4209_v9 = vpop.f32.mrf.mxu3 }
 0x6d1   : > { %v4097_v34 = vadd.f32 %v4096_v22, %v3984_v1  ;;  %v3873_v40 = vpop.f32.mrf.mxu0 }
 0x6d2   : > { %v3874_v17 = vadd.f32 %v3873_v40, %v7525_v6  ;;  %v4917_v40 = vld [vmem:[%s5168_s26 + $0xad0] sm:$0xff] }
 0x6d3   : > { %v4210_v48 = vadd.f32 %v4209_v9, %v4097_v34 }
 0x6d4   : > { %v3986_v50 = vpop.f32.mrf.mxu1  ;;  %3920 = vmatmul.f32.gmra.mxu0 %v4905_v45  ;;  %v4920_v45 = vld [vmem:[%s5168_s26 + $0xad8] sm:$0xff] }
 0x6d5   : > { %4302 = vst.msk [vmem:[%s6586_s14 + $0x48] sm:$0xff] %vm1032_vm0, %v4210_v48  ;;  %4146 = vmatmul.f32.gmra.mxu2 %v4906_v43  ;;  %4478 = vmatmul.msk.f32.gmra.mxu3 %vm1032_vm0, %v4907_v13  ;;  %v3987_v61 = vadd.f32 %v3986_v50, %v3874_v17  ;;  %v4918_v17 = vld [vmem:[%s5168_s26 + $0xae0] sm:$0xff]  ;;  %v4919_v48 = vld [vmem:[%s5168_s26 + $0xae8] sm:$0xff] }
 0x6d7   : > { %4033 = vmatmul.f32.gmra.mxu1 %v4908_v51 }
 0x6d8   : > { %v4099_v6 = vpop.f32.mrf.mxu2  ;;  %v4212_v33 = vpop.f32.mrf.mxu3 }
 0x6d9   : > { %v4100_v38 = vadd.f32 %v4099_v6, %v3987_v61  ;;  %v3876_v20 = vpop.f32.mrf.mxu0 }
 0x6da   : > { %v3877_v59 = vadd.f32 %v3876_v20, %v7541_v23  ;;  %v4922_v20 = vld [vmem:[%s5168_s26 + $0xb50] sm:$0xff] }
 0x6db   : > { %v4213_v47 = vadd.f32 %v4212_v33, %v4100_v38  ;;  %v4921_v38 = vld [vmem:[%s5168_s26 + $0xb40] sm:$0xff] }
 0x6dc   : > { %v3989_v21 = vpop.f32.mrf.mxu1  ;;  %3923 = vmatmul.f32.gmra.mxu0 %v4909_v12 }
 0x6dd   : > { %4304 = vst.msk [vmem:[%s6586_s14 + $0x58] sm:$0xff] %vm1032_vm0, %v4213_v47  ;;  %4149 = vmatmul.f32.gmra.mxu2 %v4910_v24  ;;  %4479 = vmatmul.msk.f32.gmra.mxu3 %vm1032_vm0, %v4911_v62  ;;  %v3990_v19 = vadd.f32 %v3989_v21, %v3877_v59  ;;  %v4923_v59 = vld [vmem:[%s5168_s26 + $0xb58] sm:$0xff]  ;;  %v4924_v21 = vld [vmem:[%s5168_s26 + $0xb48] sm:$0xff] }
 0x6df   : > { %4036 = vmatmul.f32.gmra.mxu1 %v4912_v56 }
 0x6e0   : > { %v4102_v23 = vpop.f32.mrf.mxu2  ;;  %v4215_v8 = vpop.f32.mrf.mxu3 }
 0x6e1   : > { %v4103_v49 = vadd.f32 %v4102_v23, %v3990_v19  ;;  %v3879_v36 = vpop.f32.mrf.mxu0 }
 0x6e2   : > { %v3880_v30 = vadd.f32 %v3879_v36, %v7548_v11  ;;  %v4927_v36 = vld [vmem:[%s5168_s26 + $0xbc8] sm:$0xff] }
 0x6e3   : > { %v4216_v2 = vadd.f32 %v4215_v8, %v4103_v49  ;;  %v4925_v8 = vld [vmem:[%s5168_s26 + $0xbb0] sm:$0xff]  ;;  %v4926_v49 = vld [vmem:[%s5168_s26 + $0xbc0] sm:$0xff] }
 0x6e4   : > { %v3992_v42 = vpop.f32.mrf.mxu1  ;;  %3926 = vmatmul.f32.gmra.mxu0 %v4913_v58 }
 0x6e5   : > { %4306 = vst.msk [vmem:[%s6586_s14 + $0x68] sm:$0xff] %vm1032_vm0, %v4216_v2  ;;  %4152 = vmatmul.f32.gmra.mxu2 %v4914_v37  ;;  %4480 = vmatmul.msk.f32.gmra.mxu3 %vm1032_vm0, %v4915_v16  ;;  %v3993_v44 = vadd.f32 %v3992_v42, %v3880_v30  ;;  %v4928_v2 = vld [vmem:[%s5168_s26 + $0xbb8] sm:$0xff] }
 0x6e7   : > { %4039 = vmatmul.f32.gmra.mxu1 %v4916_v15 }
 0x6e8   : > { %v4105_v11 = vpop.f32.mrf.mxu2  ;;  %v4218_v28 = vpop.f32.mrf.mxu3 }
 0x6e9   : > { %v4106_v1 = vadd.f32 %v4105_v11, %v3993_v44  ;;  %v3882_v57 = vpop.f32.mrf.mxu0  ;;  %v4929_v11 = vld [vmem:[%s5168_s26 + $0xc20] sm:$0xff] }
 0x6ea   : > { %v3883_v22 = vadd.f32 %v3882_v57, %v7567_v3 }
 0x6eb   : > { %v4219_v9 = vadd.f32 %v4218_v28, %v4106_v1  ;;  %v4930_v28 = vld [vmem:[%s5168_s26 + $0xc30] sm:$0xff]  ;;  %v4931_v1 = vld [vmem:[%s5168_s26 + $0xc38] sm:$0xff] }
 0x6ec   : > { %v3995_v34 = vpop.f32.mrf.mxu1  ;;  %3929 = vmatmul.f32.gmra.mxu0 %v4917_v40 }
 0x6ed   : > { %4308 = vst.msk [vmem:[%s6586_s14 + $0x78] sm:$0xff] %vm1032_vm0, %v4219_v9  ;;  %4155 = vmatmul.f32.gmra.mxu2 %v4918_v17  ;;  %4481 = vmatmul.msk.f32.gmra.mxu3 %vm1032_vm0, %v4919_v48  ;;  %v3996_v50 = vadd.f32 %v3995_v34, %v3883_v22  ;;  %v4932_v22 = vld [vmem:[%s5168_s26 + $0xc28] sm:$0xff] }
 0x6ef   : > { %4042 = vmatmul.f32.gmra.mxu1 %v4920_v45  ;;  %v4933_v45 = vld [vmem:[%s5168_s26 + $0xc90] sm:$0xff] }
 0x6f0   : > { %v4108_v3 = vpop.f32.mrf.mxu2  ;;  %v4221_v43 = vpop.f32.mrf.mxu3 }
 0x6f1   : > { %v4109_v13 = vadd.f32 %v4108_v3, %v3996_v50  ;;  %v3885_v61 = vpop.f32.mrf.mxu0  ;;  %v4934_v3 = vld [vmem:[%s5168_s26 + $0xca0] sm:$0xff] }
 0x6f2   : > { %v3886_v51 = vadd.f32 %v3885_v61, %v7574_v4  ;;  %v4936_v61 = vld [vmem:[%s5168_s26 + $0xc98] sm:$0xff] }
 0x6f3   : > { %v4222_v6 = vadd.f32 %v4221_v43, %v4109_v13  ;;  %v4935_v43 = vld [vmem:[%s5168_s26 + $0xca8] sm:$0xff] }
 0x6f4   : > { %v3998_v33 = vpop.f32.mrf.mxu1  ;;  %3932 = vmatmul.f32.gmra.mxu0 %v4921_v38 }
 0x6f5   : > { %4310 = vst.msk [vmem:[%s6586_s14 + $0x88] sm:$0xff] %vm1032_vm0, %v4222_v6  ;;  %4158 = vmatmul.f32.gmra.mxu2 %v4922_v20  ;;  %4482 = vmatmul.msk.f32.gmra.mxu3 %vm1032_vm0, %v4923_v59  ;;  %v3999_v47 = vadd.f32 %v3998_v33, %v3886_v51 }
 0x6f7   : > { %4045 = vmatmul.f32.gmra.mxu1 %v4924_v21  ;;  %v4938_v21 = vld [vmem:[%s5168_s26 + $0xd10] sm:$0xff] }
 0x6f8   : > { %v4111_v4 = vpop.f32.mrf.mxu2  ;;  %v4224_v12 = vpop.f32.mrf.mxu3 }
 0x6f9   : > { %v4112_v24 = vadd.f32 %v4111_v4, %v3999_v47  ;;  %v3888_v62 = vpop.f32.mrf.mxu0  ;;  %v4937_v47 = vld [vmem:[%s5168_s26 + $0xd00] sm:$0xff]  ;;  %v4939_v4 = vld [vmem:[%s5168_s26 + $0xd18] sm:$0xff] }
 0x6fa   : > { %v3889_v19 = vadd.f32 %v3888_v62, %v7590_v55 }
 0x6fb   : > { %v4225_v56 = vadd.f32 %v4224_v12, %v4112_v24  ;;  %v4940_v24 = vld [vmem:[%s5168_s26 + $0xd08] sm:$0xff] }
 0x6fc   : > { %v4001_v23 = vpop.f32.mrf.mxu1  ;;  %3935 = vmatmul.f32.gmra.mxu0 %v4925_v8 }
 0x6fd   : > { %4312 = vst.msk [vmem:[%s6586_s14 + $0x98] sm:$0xff] %vm1032_vm0, %v4225_v56  ;;  %4161 = vmatmul.f32.gmra.mxu2 %v4926_v49  ;;  %4483 = vmatmul.msk.f32.gmra.mxu3 %vm1032_vm0, %v4927_v36  ;;  %v4002_v30 = vadd.f32 %v4001_v23, %v3889_v19  ;;  %v4941_v36 = vld [vmem:[%s5168_s26 + $0xd70] sm:$0xff] }
 0x6ff   : > { %4048 = vmatmul.f32.gmra.mxu1 %v4928_v2  ;;  %v4943_v2 = vld [vmem:[%s5168_s26 + $0xd88] sm:$0xff] }
 0x700   : > { %v4114_v55 = vpop.f32.mrf.mxu2  ;;  %v4227_v42 = vpop.f32.mrf.mxu3 }
 0x701   : > { %v4115_v58 = vadd.f32 %v4114_v55, %v4002_v30  ;;  %v3891_v37 = vpop.f32.mrf.mxu0  ;;  %v4942_v30 = vld [vmem:[%s5168_s26 + $0xd80] sm:$0xff] }
 0x702   : > { %v3892_v16 = vadd.f32 %v3891_v37, %v7597_v27 }
 0x703   : > { %v4228_v44 = vadd.f32 %v4227_v42, %v4115_v58  ;;  %v4944_v42 = vld [vmem:[%s5168_s26 + $0xd78] sm:$0xff] }
 0x704   : > { %v4004_v15 = vpop.f32.mrf.mxu1  ;;  %3938 = vmatmul.f32.gmra.mxu0 %v4929_v11 }
 0x705   : > { %4314 = vst.msk [vmem:[%s6586_s14 + $0xa8] sm:$0xff] %vm1032_vm0, %v4228_v44  ;;  %4164 = vmatmul.f32.gmra.mxu2 %v4930_v28  ;;  %4484 = vmatmul.msk.f32.gmra.mxu3 %vm1032_vm0, %v4931_v1  ;;  %v4005_v57 = vadd.f32 %v4004_v15, %v3892_v16  ;;  %v4945_v28 = vld [vmem:[%s5168_s26 + $0xde0] sm:$0xff]  ;;  %v4946_v1 = vld [vmem:[%s5168_s26 + $0xdf0] sm:$0xff] }
 0x707   : > { %4051 = vmatmul.f32.gmra.mxu1 %v4932_v22 }
 0x708   : > { %v4117_v27 = vpop.f32.mrf.mxu2  ;;  %v4230_v9 = vpop.f32.mrf.mxu3 }
 0x709   : > { %v4118_v34 = vadd.f32 %v4117_v27, %v4005_v57  ;;  %v3894_v40 = vpop.f32.mrf.mxu0  ;;  %v4947_v57 = vld [vmem:[%s5168_s26 + $0xdf8] sm:$0xff]  ;;  %v4948_v27 = vld [vmem:[%s5168_s26 + $0xde8] sm:$0xff] }
 0x70a   : > { %v3895_v17 = vadd.f32 %v3894_v40, %v7604_v52 }
 0x70b   : > { %v4231_v48 = vadd.f32 %v4230_v9, %v4118_v34 }
 0x70c   : > { %v4007_v50 = vpop.f32.mrf.mxu1  ;;  %3941 = vmatmul.f32.gmra.mxu0 %v4933_v45 }
 0x70d   : > { %4316 = vst.msk [vmem:[%s6586_s14 + $0xb8] sm:$0xff] %vm1032_vm0, %v4231_v48  ;;  %4167 = vmatmul.f32.gmra.mxu2 %v4934_v3  ;;  %4485 = vmatmul.msk.f32.gmra.mxu3 %vm1032_vm0, %v4935_v43  ;;  %v4008_v13 = vadd.f32 %v4007_v50, %v3895_v17 }
 0x70f   : > { %4054 = vmatmul.f32.gmra.mxu1 %v4936_v61 }
 0x710   : > { %v4120_v52 = vpop.f32.mrf.mxu2  ;;  %v4233_v51 = vpop.f32.mrf.mxu3 }
 0x711   : > { %v4121_v6 = vadd.f32 %v4120_v52, %v4008_v13  ;;  %v3897_v33 = vpop.f32.mrf.mxu0 }
 0x712   : > { %v3898_v38 = vadd.f32 %v3897_v33, %v7611_v29 }
 0x713   : > { %v4234_v20 = vadd.f32 %v4233_v51, %v4121_v6 }
 0x714   : > { %v4010_v59 = vpop.f32.mrf.mxu1  ;;  %3944 = vmatmul.f32.gmra.mxu0 %v4937_v47 }
 0x715   : > { %4318 = vst.msk [vmem:[%s6586_s14 + $0xc8] sm:$0xff] %vm1032_vm0, %v4234_v20  ;;  %4170 = vmatmul.f32.gmra.mxu2 %v4938_v21  ;;  %4486 = vmatmul.msk.f32.gmra.mxu3 %vm1032_vm0, %v4939_v4  ;;  %v4011_v12 = vadd.f32 %v4010_v59, %v3898_v38 }
 0x717   : > { %4057 = vmatmul.f32.gmra.mxu1 %v4940_v24 }
 0x718   : > { %v4123_v29 = vpop.f32.mrf.mxu2  ;;  %v4236_v62 = vpop.f32.mrf.mxu3 }
 0x719   : > { %v4124_v19 = vadd.f32 %v4123_v29, %v4011_v12  ;;  %v3900_v56 = vpop.f32.mrf.mxu0 }
 0x71a   : > { %v3901_v23 = vadd.f32 %v3900_v56, %v7618_v7 }
 0x71b   : > { %v4237_v8 = vadd.f32 %v4236_v62, %v4124_v19 }
 0x71c   : > { %v4013_v49 = vpop.f32.mrf.mxu1  ;;  %3947 = vmatmul.f32.gmra.mxu0 %v4941_v36 }
 0x71d   : > { %4320 = vst.msk [vmem:[%s6586_s14 + $0xd8] sm:$0xff] %vm1032_vm0, %v4237_v8  ;;  %4173 = vmatmul.f32.gmra.mxu2 %v4942_v30  ;;  %4487 = vmatmul.msk.f32.gmra.mxu3 %vm1032_vm0, %v4943_v2  ;;  %v4014_v55 = vadd.f32 %v4013_v49, %v3901_v23 }
 0x71f   : > { %4060 = vmatmul.f32.gmra.mxu1 %v4944_v42 }
 0x720   : > { %v4126_v7 = vpop.f32.mrf.mxu2  ;;  %v4239_v58 = vpop.f32.mrf.mxu3 }
 0x721   : > { %v4127_v37 = vadd.f32 %v4126_v7, %v4014_v55  ;;  %v3903_v16 = vpop.f32.mrf.mxu0 }
 0x722   : > { %v3904_v44 = vadd.f32 %v3903_v16, %v7625_v25 }
 0x723   : > { %v4240_v15 = vadd.f32 %v4239_v58, %v4127_v37 }
 0x724   : > { %v4016_v11 = vpop.f32.mrf.mxu1  ;;  %3950 = vmatmul.f32.gmra.mxu0 %v4945_v28 }
 0x725   : > { %4322 = vst.msk [vmem:[%s6586_s14 + $0xe8] sm:$0xff] %vm1032_vm0, %v4240_v15  ;;  %4176 = vmatmul.f32.gmra.mxu2 %v4946_v1  ;;  %4488 = vmatmul.msk.f32.gmra.mxu3 %vm1032_vm0, %v4947_v57  ;;  %v4017_v22 = vadd.f32 %v4016_v11, %v3904_v44 }
 0x727   : > { %4063 = vmatmul.f32.gmra.mxu1 %v4948_v27 }
 0x728   : > { %v4129_v9 = vpop.f32.mrf.mxu2  ;;  %v4242_v34 = vpop.f32.mrf.mxu3 }
 0x729   : > { %v4130_v40 = vadd.f32 %v4129_v9, %v4017_v22  ;;  %v3906_v25 = vpop.f32.mrf.mxu0 }
 0x72a   : > { %v3907_v17 = vadd.f32 %v3906_v25, %v7633_v0 }
 0x72b   : > { %v4243_v48 = vadd.f32 %v4242_v34, %v4130_v40 }
 0x72c   : > { %v4019_v50 = vpop.f32.mrf.mxu1 }
 0x72d   : > { %4324 = vst.msk [vmem:[%s6586_s14 + $0xf8] sm:$0xff] %vm1032_vm0, %v4243_v48  ;;  %v4020_v45 = vadd.f32 %v4019_v50, %v3907_v17 }
 0x730   : > { %v4132_v3 = vpop.f32.mrf.mxu2  ;;  %v4245_v43 = vpop.f32.mrf.mxu3 }
 0x731   : > { %v4133_v13 = vadd.f32 %v4132_v3, %v4020_v45  ;;  %v3909_v61 = vpop.f32.mrf.mxu0 }
 0x732   : > { %v3910_v52 = vadd.f32 %v3909_v61, %v7641_v39 }
 0x733   : > { %v4246_v51 = vadd.f32 %v4245_v43, %v4133_v13 }
 0x734   : > { %v4022_v6 = vpop.f32.mrf.mxu1 }
 0x735   : > { %4326 = vst.msk [vmem:[%s6586_s14 + $0x108] sm:$0xff] %vm1032_vm0, %v4246_v51  ;;  %v4023_v33 = vadd.f32 %v4022_v6, %v3910_v52 }
 0x738   : > { %v4135_v38 = vpop.f32.mrf.mxu2  ;;  %v4248_v0 = vpop.f32.mrf.mxu3 }
 0x739   : > { %v4136_v20 = vadd.f32 %v4135_v38, %v4023_v33  ;;  %v3912_v59 = vpop.f32.mrf.mxu0 }
 0x73a   : > { %v3913_v47 = vadd.f32 %v3912_v59, %v7649_v5 }
 0x73b   : > { %v4249_v21 = vadd.f32 %v4248_v0, %v4136_v20 }
 0x73c   : > { %v4025_v4 = vpop.f32.mrf.mxu1 }
 0x73d   : > { %4328 = vst.msk [vmem:[%s6586_s14 + $0x118] sm:$0xff] %vm1032_vm0, %v4249_v21  ;;  %v4026_v12 = vadd.f32 %v4025_v4, %v3913_v47 }
 0x740   : > { %v4138_v24 = vpop.f32.mrf.mxu2  ;;  %v4251_v39 = vpop.f32.mrf.mxu3 }
 0x741   : > { %v4139_v29 = vadd.f32 %v4138_v24, %v4026_v12  ;;  %v3915_v62 = vpop.f32.mrf.mxu0 }
 0x742   : > { %v3916_v19 = vadd.f32 %v3915_v62, %v7657_v32 }
 0x743   : > { %v4252_v56 = vadd.f32 %v4251_v39, %v4139_v29 }
 0x744   : > { %v4028_v23 = vpop.f32.mrf.mxu1 }
 0x745   : > { %4330 = vst.msk [vmem:[%s6586_s14 + $0x128] sm:$0xff] %vm1032_vm0, %v4252_v56  ;;  %v4029_v8 = vadd.f32 %v4028_v23, %v3916_v19 }
 0x748   : > { %v4141_v49 = vpop.f32.mrf.mxu2  ;;  %v4254_v5 = vpop.f32.mrf.mxu3 }
 0x749   : > { %v4142_v36 = vadd.f32 %v4141_v49, %v4029_v8  ;;  %v3918_v30 = vpop.f32.mrf.mxu0 }
 0x74a   : > { %v3919_v2 = vadd.f32 %v3918_v30, %v7665_v60 }
 0x74b   : > { %v4255_v55 = vadd.f32 %v4254_v5, %v4142_v36 }
 0x74c   : > { %v4031_v42 = vpop.f32.mrf.mxu1 }
 0x74d   : > { %4332 = vst.msk [vmem:[%s6586_s14 + $0x138] sm:$0xff] %vm1032_vm0, %v4255_v55  ;;  %v4032_v7 = vadd.f32 %v4031_v42, %v3919_v2 }
 0x750   : > { %v4144_v58 = vpop.f32.mrf.mxu2  ;;  %v4257_v32 = vpop.f32.mrf.mxu3 }
 0x751   : > { %v4145_v37 = vadd.f32 %v4144_v58, %v4032_v7  ;;  %v3921_v16 = vpop.f32.mrf.mxu0 }
 0x752   : > { %v3922_v44 = vadd.f32 %v3921_v16, %v7673_v26 }
 0x753   : > { %v4258_v15 = vadd.f32 %v4257_v32, %v4145_v37 }
 0x754   : > { %v4034_v11 = vpop.f32.mrf.mxu1 }
 0x755   : > { %4334 = vst.msk [vmem:[%s6586_s14 + $0x148] sm:$0xff] %vm1032_vm0, %v4258_v15  ;;  %v4035_v28 = vadd.f32 %v4034_v11, %v3922_v44 }
 0x758   : > { %v4147_v1 = vpop.f32.mrf.mxu2  ;;  %v4260_v60 = vpop.f32.mrf.mxu3 }
 0x759   : > { %v4148_v57 = vadd.f32 %v4147_v1, %v4035_v28  ;;  %v3924_v22 = vpop.f32.mrf.mxu0 }
 0x75a   : > { %v3925_v27 = vadd.f32 %v3924_v22, %v7681_v53 }
 0x75b   : > { %v4261_v9 = vadd.f32 %v4260_v60, %v4148_v57 }
 0x75c   : > { %v4037_v34 = vpop.f32.mrf.mxu1 }
 0x75d   : > { %4336 = vst.msk [vmem:[%s6586_s14 + $0x158] sm:$0xff] %vm1032_vm0, %v4261_v9  ;;  %v4038_v40 = vadd.f32 %v4037_v34, %v3925_v27 }
 0x760   : > { %v4150_v25 = vpop.f32.mrf.mxu2  ;;  %v4263_v26 = vpop.f32.mrf.mxu3 }
 0x761   : > { %v4151_v17 = vadd.f32 %v4150_v25, %v4038_v40  ;;  %v3927_v48 = vpop.f32.mrf.mxu0 }
 0x762   : > { %v3928_v50 = vadd.f32 %v3927_v48, %v7689_v35 }
 0x763   : > { %v4264_v45 = vadd.f32 %v4263_v26, %v4151_v17 }
 0x764   : > { %v4040_v3 = vpop.f32.mrf.mxu1 }
 0x765   : > { %4338 = vst.msk [vmem:[%s6586_s14 + $0x168] sm:$0xff] %vm1032_vm0, %v4264_v45  ;;  %v4041_v43 = vadd.f32 %v4040_v3, %v3928_v50 }
 0x768   : > { %v4153_v13 = vpop.f32.mrf.mxu2  ;;  %v4266_v53 = vpop.f32.mrf.mxu3 }
 0x769   : > { %v4154_v61 = vadd.f32 %v4153_v13, %v4041_v43  ;;  %v3930_v52 = vpop.f32.mrf.mxu0 }
 0x76a   : > { %v3931_v51 = vadd.f32 %v3930_v52, %v7697_v31 }
 0x76b   : > { %v4267_v6 = vadd.f32 %v4266_v53, %v4154_v61 }
 0x76c   : > { %v4043_v33 = vpop.f32.mrf.mxu1 }
 0x76d   : > { %4340 = vst.msk [vmem:[%s6586_s14 + $0x178] sm:$0xff] %vm1032_vm0, %v4267_v6  ;;  %v4044_v38 = vadd.f32 %v4043_v33, %v3931_v51 }
 0x770   : > { %v4156_v0 = vpop.f32.mrf.mxu2  ;;  %v4269_v35 = vpop.f32.mrf.mxu3 }
 0x771   : > { %v4157_v20 = vadd.f32 %v4156_v0, %v4044_v38  ;;  %v3933_v59 = vpop.f32.mrf.mxu0 }
 0x772   : > { %v3934_v47 = vadd.f32 %v3933_v59, %v7705_v41 }
 0x773   : > { %v4270_v21 = vadd.f32 %v4269_v35, %v4157_v20 }
 0x774   : > { %v4046_v4 = vpop.f32.mrf.mxu1 }
 0x775   : > { %4342 = vst.msk [vmem:[%s6586_s14 + $0x188] sm:$0xff] %vm1032_vm0, %v4270_v21  ;;  %v4047_v12 = vadd.f32 %v4046_v4, %v3934_v47 }
 0x778   : > { %v4159_v24 = vpop.f32.mrf.mxu2  ;;  %v4272_v31 = vpop.f32.mrf.mxu3 }
 0x779   : > { %v4160_v39 = vadd.f32 %v4159_v24, %v4047_v12  ;;  %v3936_v29 = vpop.f32.mrf.mxu0 }
 0x77a   : > { %v3937_v62 = vadd.f32 %v3936_v29, %v7713_v46 }
 0x77b   : > { %v4273_v19 = vadd.f32 %v4272_v31, %v4160_v39 }
 0x77c   : > { %v4049_v56 = vpop.f32.mrf.mxu1 }
 0x77d   : > { %4344 = vst.msk [vmem:[%s6586_s14 + $0x198] sm:$0xff] %vm1032_vm0, %v4273_v19  ;;  %v4050_v23 = vadd.f32 %v4049_v56, %v3937_v62 }
 0x780   : > { %v4162_v8 = vpop.f32.mrf.mxu2  ;;  %v4275_v41 = vpop.f32.mrf.mxu3 }
 0x781   : > { %v4163_v49 = vadd.f32 %v4162_v8, %v4050_v23  ;;  %v3939_v5 = vpop.f32.mrf.mxu0 }
 0x782   : > { %v3940_v36 = vadd.f32 %v3939_v5, %v7721_v54 }
 0x783   : > { %v4276_v30 = vadd.f32 %v4275_v41, %v4163_v49 }
 0x784   : > { %v4052_v2 = vpop.f32.mrf.mxu1 }
 0x785   : > { %4346 = vst.msk [vmem:[%s6586_s14 + $0x1a8] sm:$0xff] %vm1032_vm0, %v4276_v30  ;;  %v4053_v55 = vadd.f32 %v4052_v2, %v3940_v36 }
 0x788   : > { %v4165_v42 = vpop.f32.mrf.mxu2  ;;  %v4278_v46 = vpop.f32.mrf.mxu3 }
 0x789   : > { %v4166_v7 = vadd.f32 %v4165_v42, %v4053_v55  ;;  %v3942_v58 = vpop.f32.mrf.mxu0 }
 0x78a   : > { %v3943_v32 = vadd.f32 %v3942_v58, %v7729_v18 }
 0x78b   : > { %v4279_v37 = vadd.f32 %v4278_v46, %v4166_v7 }
 0x78c   : > { %v4055_v16 = vpop.f32.mrf.mxu1 }
 0x78d   : > { %4348 = vst.msk [vmem:[%s6586_s14 + $0x1b8] sm:$0xff] %vm1032_vm0, %v4279_v37  ;;  %v4056_v44 = vadd.f32 %v4055_v16, %v3943_v32 }
 0x790   : > { %v4168_v15 = vpop.f32.mrf.mxu2  ;;  %v4281_v54 = vpop.f32.mrf.mxu3 }
 0x791   : > { %v4169_v11 = vadd.f32 %v4168_v15, %v4056_v44  ;;  %v3945_v28 = vpop.f32.mrf.mxu0 }
 0x792   : > { %v3946_v1 = vadd.f32 %v3945_v28, %v7737_v63 }
 0x793   : > { %v4282_v60 = vadd.f32 %v4281_v54, %v4169_v11 }
 0x794   : > { %v4058_v57 = vpop.f32.mrf.mxu1 }
 0x795   : > { %4350 = vst.msk [vmem:[%s6586_s14 + $0x1c8] sm:$0xff] %vm1032_vm0, %v4282_v60  ;;  %v4059_v22 = vadd.f32 %v4058_v57, %v3946_v1 }
 0x798   : > { %v4171_v27 = vpop.f32.mrf.mxu2  ;;  %v4284_v18 = vpop.f32.mrf.mxu3 }
 0x799   : > { %v4172_v9 = vadd.f32 %v4171_v27, %v4059_v22  ;;  %v3948_v34 = vpop.f32.mrf.mxu0 }
 0x79a   : > { %v3949_v40 = vadd.f32 %v3948_v34, %v7745_v14 }
 0x79b   : > { %v4285_v25 = vadd.f32 %v4284_v18, %v4172_v9 }
 0x79c   : > { %v4061_v26 = vpop.f32.mrf.mxu1 }
 0x79d   : > { %4352 = vst.msk [vmem:[%s6586_s14 + $0x1d8] sm:$0xff] %vm1032_vm0, %v4285_v25  ;;  %v4062_v17 = vadd.f32 %v4061_v26, %v3949_v40 }
 0x7a0   : > { %v4174_v48 = vpop.f32.mrf.mxu2  ;;  %v4287_v63 = vpop.f32.mrf.mxu3 }
 0x7a1   : > { %v4175_v50 = vadd.f32 %v4174_v48, %v4062_v17  ;;  %v3951_v45 = vpop.f32.mrf.mxu0 }
 0x7a2   : > { %v3952_v3 = vadd.f32 %v3951_v45, %v7752_v10 }
 0x7a3   : > { %v4288_v43 = vadd.f32 %v4287_v63, %v4175_v50 }
 0x7a4   : > { %v4064_v13 = vpop.f32.mrf.mxu1 }
 0x7a5   : > { %4354 = vst.msk [vmem:[%s6586_s14 + $0x1e8] sm:$0xff] %vm1032_vm0, %v4288_v43  ;;  %v4065_v53 = vadd.f32 %v4064_v13, %v3952_v3 }
 0x7a8   : > { %v4177_v61 = vpop.f32.mrf.mxu2  ;;  %v4290_v52 = vpop.f32.mrf.mxu3 }
 0x7a9   : > { %v4178_v14 = vadd.f32 %v4177_v61, %v4065_v53 }
 0x7ab   : > { %v4291_v51 = vadd.f32 %v4290_v52, %v4178_v14 }
 0x7ad   : > { %4356 = vst.msk [vmem:[%s6586_s14 + $0x1f8] sm:$0xff] %vm1032_vm0, %v4291_v51 }
 0x7ae PF: > { %s12_s9 = sadd.s32 1, %s4955_s9  }
 0x7af   : > { %p9_p4 = scmp.ge.s32.totalorder %s12_s9, 4  }
 0x7b1   :  { %11 = sbr.rel (!%p9_p4) target bundleno = 1 (0x1), region = 58 }

</bundles_post_ra>
